<compile_context>
chip_gen: v7x
topology: tpu7x:2x2x1
jax: 0.10.0
libtpu: 0.0.40
codegen_flags: <defaults>
</compile_context>

<pallas_src>
import jax
import jax.numpy as jnp
from jax.experimental import pallas as pl
from jax.experimental.pallas import tpu as pltpu


# ----------------------------- hyper params ---------------------------------
IN_CHANNELS = 16
HIDDEN = 8
HEADS = 4
OUT_CHANNELS = 8
NUM_LAYERS = 3
NUM_FC_LAYERS = 3
CH = HIDDEN * HEADS                      # 32, JK / FC width
LSTM_H = (NUM_LAYERS * CH) // 2          # 48, PyG JumpingKnowledge lstm hidden


def _vmem_spec():
    return pl.BlockSpec(memory_space=pltpu.MemorySpace.VMEM)


# --------------------------- fused forward kernel ----------------------------
def fused_forward_kernel(
        x_ref, adj_ref,
        w1_ref, as1_ref, ad1_ref, b1_ref,
        w2_ref, as2_ref, ad2_ref, b2_ref,
        w3_ref, as3_ref, ad3_ref, b3_ref,
        wih_f_ref, whh_f_ref, bg_f_ref,
        wih_r_ref, whh_r_ref, bg_r_ref,
        attwf_ref, attwr_ref, attb_ref,
        pool_ref,
        fw1_ref, fb1_ref, fw2_ref, fb2_ref, fw3_ref, fb3_ref,
        o_ref,
        xs0_ref, xs1_ref, xs2_ref):
    f32 = jnp.float32
    neg_inf = f32(-1e30)

    # hoisted, head/layer-invariant mask
    adj_mask = adj_ref[...] > 0.0                                   # [N, N]

    def mm(a, b):
        # MXU matmul: bf16 operands, f32 accumulate (bf16-native on v6e/v7x).
        return jnp.dot(a.astype(jnp.bfloat16), b.astype(jnp.bfloat16),
                       preferred_element_type=f32)

    # ------------------------------ GAT layer --------------------------------
    def gat_layer(h_in, w_ref, asrc_ref, adst_ref, bias_ref, out_ref):
        xp = mm(h_in, w_ref[...])                                   # [N, CH]
        # all-head attention logits via two small matmuls (f32 logits)
        alpha_src = jnp.dot(xp, asrc_ref[...], preferred_element_type=f32)  # [N, HEADS]
        alpha_dst = jnp.dot(xp, adst_ref[...], preferred_element_type=f32)  # [N, HEADS]
        alpha_src_t = alpha_src.T                                   # [HEADS, N] (single transpose)
        bias = bias_ref[...]                                        # [1, CH]
        for hd in range(HEADS):
            lo = hd * HIDDEN
            xh = xp[:, lo:lo + HIDDEN]                              # [N, HIDDEN]
            # e[i, j] = LeakyReLU(alpha_dst[i] + alpha_src[j], 0.2), softmax over j
            e = alpha_dst[:, hd:hd + 1] + alpha_src_t[hd:hd + 1, :]  # [N, N]
            e = jnp.where(e > 0, e, 0.2 * e)
            e = jnp.where(adj_mask, e, neg_inf)
            m = jnp.max(e, axis=1, keepdims=True)                   # finite: self-loops present
            p = jnp.exp(e - m)                                      # masked entries underflow to 0
            denom = jnp.sum(p, axis=1, keepdims=True)               # [N, 1]
            out_h = mm(p, xh)                                       # unnormalized aggregate
            out_h = out_h * pl.reciprocal(denom, approx=True)       # deferred normalization (EUP)
            out_h = jnp.maximum(out_h + bias[:, lo:lo + HIDDEN], 0.0)  # bias + relu (dropout=id)
            out_ref[:, lo:lo + HIDDEN] = out_h                      # direct lane-slice store
        return out_ref[...]

    h1 = gat_layer(x_ref[...], w1_ref, as1_ref, ad1_ref, b1_ref, xs0_ref)
    h2 = gat_layer(h1, w2_ref, as2_ref, ad2_ref, b2_ref, xs1_ref)
    gat_layer(h2, w3_ref, as3_ref, ad3_ref, b3_ref, xs2_ref)

    xs = [xs0_ref[...], xs1_ref[...], xs2_ref[...]]                 # [N, CH] each, in VMEM

    # --------------- JumpingKnowledge: bi-LSTM + layer attention --------------
    n_nodes = xs[0].shape[0]
    H = LSTM_H

    def run_dir(wih_ref, whh_ref, bg_ref, order):
        h = jnp.zeros((n_nodes, H), f32)
        c = jnp.zeros((n_nodes, H), f32)
        outs = [None] * NUM_LAYERS
        for t in order:                                             # static unroll (3 steps)
            gate = []
            for gi in range(4):                                     # per-gate lane-aligned matmuls
                gate.append(mm(xs[t], wih_ref[gi]) + mm(h, whh_ref[gi]) + bg_ref[gi])
            i_g = jax.nn.sigmoid(gate[0])                           # PyTorch gate order i,f,g,o
            f_g = jax.nn.sigmoid(gate[1])
            g_g = jnp.tanh(gate[2])
            o_g = jax.nn.sigmoid(gate[3])
            c = f_g * c + i_g * g_g
            h = o_g * jnp.tanh(c)
            outs[t] = h
        return outs

    out_f = run_dir(wih_f_ref, whh_f_ref, bg_f_ref, list(range(NUM_LAYERS)))
    out_r = run_dir(wih_r_ref, whh_r_ref, bg_r_ref, list(range(NUM_LAYERS - 1, -1, -1)))

    aw_f = attwf_ref[...]                                           # [H, 1]
    aw_r = attwr_ref[...]                                           # [H, 1]
    a_b = attb_ref[...]                                             # [1, 1]
    scores = [jnp.dot(out_f[t], aw_f, preferred_element_type=f32)
              + jnp.dot(out_r[t], aw_r, preferred_element_type=f32) + a_b
              for t in range(NUM_LAYERS)]                           # [N, 1] each
    smax = jnp.maximum(jnp.maximum(scores[0], scores[1]), scores[2])
    exps = [jnp.exp(s - smax) for s in scores]
    inv = pl.reciprocal(exps[0] + exps[1] + exps[2], approx=True)
    jk = (exps[0] * xs[0] + exps[1] * xs[1] + exps[2] * xs[2]) * inv  # [N, CH]

    # --------------------- global_mean_pool + FC head -------------------------
    pooled = mm(pool_ref[...], jk)                                  # [G, CH]
    h = jnp.maximum(mm(pooled, fw1_ref[...]) + fb1_ref[...], 0.0)
    h = jnp.maximum(mm(h, fw2_ref[...]) + fb2_ref[...], 0.0)
    o_ref[...] = mm(h, fw3_ref[...]) + fb3_ref[...]


def gat_with_jk_forward(x, adj, pool_mat, params):
    n = x.shape[0]
    g = pool_mat.shape[0]
    flat = [x, adj]
    for (w, asm, adm, b) in params["convs"]:
        flat += [w, asm, adm, b]
    flat += list(params["lstm"])
    flat += [pool_mat]
    flat += list(params["fc"])
    return pl.pallas_call(
        fused_forward_kernel,
        out_shape=jax.ShapeDtypeStruct((g, OUT_CHANNELS), jnp.float32),
        in_specs=[_vmem_spec()] * len(flat),
        out_specs=_vmem_spec(),
        scratch_shapes=[pltpu.VMEM((n, CH), jnp.float32)] * NUM_LAYERS,
    )(*flat)


# ----------------------------- parameter prep --------------------------------
def _head_proj_matrix(a):
    """[HEADS, HIDDEN] attention vector -> block-diagonal [CH, HEADS] so that
    (x @ W) @ A gives all per-head <x_h, a_h> dot products in one matmul."""
    m = jnp.zeros((CH, HEADS), jnp.float32)
    for h in range(HEADS):
        m = m.at[h * HIDDEN:(h + 1) * HIDDEN, h].set(a[h])
    return m


def _split_gates(m):
    """[K, 4H] (or [1, 4H]) fused gate weights -> [4, K, H] per-gate, lane-aligned."""
    h = LSTM_H
    return jnp.stack([m[:, gi * h:(gi + 1) * h] for gi in range(4)], axis=0)


def init_params(key):
    def nrm(k, shape, scale=0.1):
        return (scale * jax.random.normal(k, shape)).astype(jnp.float32)

    keys = iter(jax.random.split(key, 64))
    convs = []
    for i in range(NUM_LAYERS):
        in_dim = IN_CHANNELS if i == 0 else CH
        w = nrm(next(keys), (in_dim, CH))
        a_src = nrm(next(keys), (HEADS, HIDDEN))
        a_dst = nrm(next(keys), (HEADS, HIDDEN))
        b = nrm(next(keys), (1, CH))
        convs.append((w, _head_proj_matrix(a_src), _head_proj_matrix(a_dst), b))

    # bidirectional LSTM (PyTorch gate order i,f,g,o), weights pre-transposed,
    # then split per-gate for lane-aligned tiles.
    lstm = []
    for _ in range(2):                               # forward / reverse direction
        wih = nrm(next(keys), (CH, 4 * LSTM_H))
        whh = nrm(next(keys), (LSTM_H, 4 * LSTM_H))
        b = nrm(next(keys), (1, 4 * LSTM_H))         # b_ih + b_hh combined
        lstm += [_split_gates(wih), _split_gates(whh), _split_gates(b)]
    att_w = nrm(next(keys), (2 * LSTM_H, 1))
    att_b = nrm(next(keys), (1, 1))
    lstm += [att_w[:LSTM_H], att_w[LSTM_H:], att_b]  # split per direction (no 2H concat)

    fc = []
    for _ in range(NUM_FC_LAYERS - 1):
        fc += [nrm(next(keys), (CH, CH)), nrm(next(keys), (1, CH))]
    fc += [nrm(next(keys), (CH, OUT_CHANNELS)), nrm(next(keys), (1, OUT_CHANNELS))]

    return {"convs": convs, "lstm": tuple(lstm), "fc": tuple(fc)}


# --------------------------------- main ---------------------------------------
if __name__ == "__main__":
    key = jax.random.PRNGKey(0)
    k_x, k_e0, k_e1, k_p = jax.random.split(key, 4)

    N = 32                                            # total nodes (2 graphs x 16)
    G = 2
    x = jax.random.normal(k_x, (N, IN_CHANNELS), dtype=jnp.float32)

    # edges stay inside each graph (PyG batching convention)
    e0 = jax.random.randint(k_e0, (2, 40), 0, 16)
    e1 = jax.random.randint(k_e1, (2, 40), 16, 32)
    edge_index = jnp.concatenate([e0, e1], axis=1).astype(jnp.int32)   # [2, 80]
    batch = jnp.concatenate([jnp.zeros(16, jnp.int32), jnp.ones(16, jnp.int32)])

    # dense adjacency: adj[dst, src] = 1, plus self loops (GATConv default)
    adj = jnp.zeros((N, N), jnp.float32).at[edge_index[1], edge_index[0]].set(1.0)
    adj = jnp.maximum(adj, jnp.eye(N, dtype=jnp.float32))

    # global_mean_pool as a matmul: pool_mat[g, n] = (batch[n]==g) / count_g
    onehot = (batch[None, :] == jnp.arange(G)[:, None]).astype(jnp.float32)
    pool_mat = onehot / jnp.sum(onehot, axis=1, keepdims=True)

    params = init_params(k_p)

    out = gat_with_jk_forward(x, adj, pool_mat, params)
    out = jax.block_until_ready(out)
    assert out.shape == (G, OUT_CHANNELS)
    assert jnp.all(jnp.isfinite(out))
    print("KERNEL_OK")
</pallas_src>

<mosaic_0001>
module attributes {stable_mosaic.version = 11 : i64} {
  func.func @fused_forward_kernel(%arg0: memref<32x16xf32, #tpu.memory_space<vmem>>, %arg1: memref<32x32xf32, #tpu.memory_space<vmem>>, %arg2: memref<16x32xf32, #tpu.memory_space<vmem>>, %arg3: memref<32x4xf32, #tpu.memory_space<vmem>>, %arg4: memref<32x4xf32, #tpu.memory_space<vmem>>, %arg5: memref<1x32xf32, #tpu.memory_space<vmem>>, %arg6: memref<32x32xf32, #tpu.memory_space<vmem>>, %arg7: memref<32x4xf32, #tpu.memory_space<vmem>>, %arg8: memref<32x4xf32, #tpu.memory_space<vmem>>, %arg9: memref<1x32xf32, #tpu.memory_space<vmem>>, %arg10: memref<32x32xf32, #tpu.memory_space<vmem>>, %arg11: memref<32x4xf32, #tpu.memory_space<vmem>>, %arg12: memref<32x4xf32, #tpu.memory_space<vmem>>, %arg13: memref<1x32xf32, #tpu.memory_space<vmem>>, %arg14: memref<4x32x48xf32, #tpu.memory_space<vmem>>, %arg15: memref<4x48x48xf32, #tpu.memory_space<vmem>>, %arg16: memref<4x1x48xf32, #tpu.memory_space<vmem>>, %arg17: memref<4x32x48xf32, #tpu.memory_space<vmem>>, %arg18: memref<4x48x48xf32, #tpu.memory_space<vmem>>, %arg19: memref<4x1x48xf32, #tpu.memory_space<vmem>>, %arg20: memref<48x1xf32, #tpu.memory_space<vmem>>, %arg21: memref<48x1xf32, #tpu.memory_space<vmem>>, %arg22: memref<1x1xf32, #tpu.memory_space<vmem>>, %arg23: memref<2x32xf32, #tpu.memory_space<vmem>>, %arg24: memref<32x32xf32, #tpu.memory_space<vmem>>, %arg25: memref<1x32xf32, #tpu.memory_space<vmem>>, %arg26: memref<32x32xf32, #tpu.memory_space<vmem>>, %arg27: memref<1x32xf32, #tpu.memory_space<vmem>>, %arg28: memref<32x8xf32, #tpu.memory_space<vmem>>, %arg29: memref<1x8xf32, #tpu.memory_space<vmem>>, %arg30: memref<2x8xf32, #tpu.memory_space<vmem>>, %arg31: memref<32x32xf32, #tpu.memory_space<vmem>>, %arg32: memref<32x32xf32, #tpu.memory_space<vmem>>, %arg33: memref<32x32xf32, #tpu.memory_space<vmem>>) attributes {dimension_semantics = [], scalar_prefetch = 0 : i64, scratch_operands = 3 : i64, tpu.core_type = #tpu.core_type<tc>} {
    %c0 = arith.constant 0 : index
    %c0_0 = arith.constant 0 : index
    %0 = vector.load %arg1[%c0, %c0_0] : memref<32x32xf32, #tpu.memory_space<vmem>>, vector<32x32xf32>
    %cst = arith.constant 0.000000e+00 : f32
    %1 = vector.broadcast %cst : f32 to vector<32x32xf32>
    %2 = arith.cmpf ogt, %0, %1 : vector<32x32xf32>
    %c0_1 = arith.constant 0 : index
    %c0_2 = arith.constant 0 : index
    %3 = vector.load %arg0[%c0_1, %c0_2] : memref<32x16xf32, #tpu.memory_space<vmem>>, vector<32x16xf32>
    %c0_3 = arith.constant 0 : index
    %c0_4 = arith.constant 0 : index
    %4 = vector.load %arg2[%c0_3, %c0_4] : memref<16x32xf32, #tpu.memory_space<vmem>>, vector<16x32xf32>
    %5 = arith.truncf %3 : vector<32x16xf32> to vector<32x16xbf16>
    %6 = arith.truncf %4 : vector<16x32xf32> to vector<16x32xbf16>
    %cst_5 = arith.constant dense<0.000000e+00> : vector<32x32xf32>
    %7 = tpu.matmul %5, %6, %cst_5 {dimension_numbers = #tpu.dot_dimension_numbers<[1], [0], [0], [1], [0, 0, 1, 1], [], []>} : vector<32x16xbf16>, vector<16x32xbf16>, vector<32x32xf32> -> vector<32x32xf32>
    %c0_6 = arith.constant 0 : index
    %c0_7 = arith.constant 0 : index
    %8 = vector.load %arg3[%c0_6, %c0_7] : memref<32x4xf32, #tpu.memory_space<vmem>>, vector<32x4xf32>
    %cst_8 = arith.constant dense<0.000000e+00> : vector<32x4xf32>
    %9 = tpu.matmul %7, %8, %cst_8 {dimension_numbers = #tpu.dot_dimension_numbers<[1], [0], [0], [1], [0, 0, 1, 1], [], []>} : vector<32x32xf32>, vector<32x4xf32>, vector<32x4xf32> -> vector<32x4xf32>
    %c0_9 = arith.constant 0 : index
    %c0_10 = arith.constant 0 : index
    %10 = vector.load %arg4[%c0_9, %c0_10] : memref<32x4xf32, #tpu.memory_space<vmem>>, vector<32x4xf32>
    %cst_11 = arith.constant dense<0.000000e+00> : vector<32x4xf32>
    %11 = tpu.matmul %7, %10, %cst_11 {dimension_numbers = #tpu.dot_dimension_numbers<[1], [0], [0], [1], [0, 0, 1, 1], [], []>} : vector<32x32xf32>, vector<32x4xf32>, vector<32x4xf32> -> vector<32x4xf32>
    %12 = tpu.transpose %9, [1, 0] : vector<32x4xf32> -> vector<4x32xf32>
    %c0_12 = arith.constant 0 : index
    %c0_13 = arith.constant 0 : index
    %13 = vector.load %arg5[%c0_12, %c0_13] : memref<1x32xf32, #tpu.memory_space<vmem>>, vector<1x32xf32>
    %14 = vector.extract_strided_slice %7 {offsets = [0, 0], sizes = [32, 8], strides = [1, 1]} : vector<32x32xf32> to vector<32x8xf32>
    %15 = vector.extract_strided_slice %11 {offsets = [0, 0], sizes = [32, 1], strides = [1, 1]} : vector<32x4xf32> to vector<32x1xf32>
    %16 = vector.extract_strided_slice %12 {offsets = [0, 0], sizes = [1, 32], strides = [1, 1]} : vector<4x32xf32> to vector<1x32xf32>
    %17 = vector.broadcast %15 : vector<32x1xf32> to vector<32x32xf32>
    %18 = vector.broadcast %16 : vector<1x32xf32> to vector<32x32xf32>
    %19 = arith.addf %17, %18 : vector<32x32xf32>
    %cst_14 = arith.constant 0.000000e+00 : f32
    %20 = vector.broadcast %cst_14 : f32 to vector<32x32xf32>
    %21 = arith.cmpf ogt, %19, %20 : vector<32x32xf32>
    %cst_15 = arith.constant 2.000000e-01 : f32
    %22 = vector.broadcast %cst_15 : f32 to vector<32x32xf32>
    %23 = arith.mulf %22, %19 : vector<32x32xf32>
    %24 = arith.select %21, %19, %23 : vector<32x32xi1>, vector<32x32xf32>
    %cst_16 = arith.constant -1.000000e+30 : f32
    %25 = vector.broadcast %cst_16 : f32 to vector<32x32xf32>
    %26 = arith.select %2, %24, %25 : vector<32x32xi1>, vector<32x32xf32>
    %cst_17 = arith.constant dense<0xFF800000> : vector<32xf32>
    %27 = vector.multi_reduction <maximumf>, %26, %cst_17 [1] : vector<32x32xf32> to vector<32xf32>
    %28 = vector.shape_cast %27 : vector<32xf32> to vector<32x1xf32>
    %29 = vector.broadcast %28 : vector<32x1xf32> to vector<32x32xf32>
    %30 = arith.subf %26, %29 : vector<32x32xf32>
    %31 = math.exp %30 : vector<32x32xf32>
    %cst_18 = arith.constant dense<0.000000e+00> : vector<32xf32>
    %32 = vector.multi_reduction <add>, %31, %cst_18 [1] : vector<32x32xf32> to vector<32xf32>
    %33 = vector.shape_cast %32 : vector<32xf32> to vector<32x1xf32>
    %34 = arith.truncf %31 : vector<32x32xf32> to vector<32x32xbf16>
    %35 = arith.truncf %14 : vector<32x8xf32> to vector<32x8xbf16>
    %cst_19 = arith.constant dense<0.000000e+00> : vector<32x8xf32>
    %36 = tpu.matmul %34, %35, %cst_19 {dimension_numbers = #tpu.dot_dimension_numbers<[1], [0], [0], [1], [0, 0, 1, 1], [], []>} : vector<32x32xbf16>, vector<32x8xbf16>, vector<32x8xf32> -> vector<32x8xf32>
    %37 = tpu.reciprocal %33 {approx = true} : vector<32x1xf32> -> vector<32x1xf32>
    %38 = vector.broadcast %37 : vector<32x1xf32> to vector<32x8xf32>
    %39 = arith.mulf %36, %38 : vector<32x8xf32>
    %40 = vector.extract_strided_slice %13 {offsets = [0, 0], sizes = [1, 8], strides = [1, 1]} : vector<1x32xf32> to vector<1x8xf32>
    %41 = vector.broadcast %40 : vector<1x8xf32> to vector<32x8xf32>
    %42 = arith.addf %39, %41 : vector<32x8xf32>
    %cst_20 = arith.constant 0.000000e+00 : f32
    %43 = vector.broadcast %cst_20 : f32 to vector<32x8xf32>
    %44 = arith.maximumf %42, %43 : vector<32x8xf32>
    %c0_21 = arith.constant 0 : index
    %c0_22 = arith.constant 0 : index
    %45 = vector.load %arg31[%c0_21, %c0_22] : memref<32x32xf32, #tpu.memory_space<vmem>>, vector<32x8xf32>
    tpu.vector_store %arg31[%c0_21, %c0_22], %44 {strides = array<i32>} : memref<32x32xf32, #tpu.memory_space<vmem>>, vector<32x8xf32>,
    %46 = vector.extract_strided_slice %7 {offsets = [0, 8], sizes = [32, 8], strides = [1, 1]} : vector<32x32xf32> to vector<32x8xf32>
    %47 = vector.extract_strided_slice %11 {offsets = [0, 1], sizes = [32, 1], strides = [1, 1]} : vector<32x4xf32> to vector<32x1xf32>
    %48 = vector.extract_strided_slice %12 {offsets = [1, 0], sizes = [1, 32], strides = [1, 1]} : vector<4x32xf32> to vector<1x32xf32>
    %49 = vector.broadcast %47 : vector<32x1xf32> to vector<32x32xf32>
    %50 = vector.broadcast %48 : vector<1x32xf32> to vector<32x32xf32>
    %51 = arith.addf %49, %50 : vector<32x32xf32>
    %cst_23 = arith.constant 0.000000e+00 : f32
    %52 = vector.broadcast %cst_23 : f32 to vector<32x32xf32>
    %53 = arith.cmpf ogt, %51, %52 : vector<32x32xf32>
    %cst_24 = arith.constant 2.000000e-01 : f32
    %54 = vector.broadcast %cst_24 : f32 to vector<32x32xf32>
    %55 = arith.mulf %54, %51 : vector<32x32xf32>
    %56 = arith.select %53, %51, %55 : vector<32x32xi1>, vector<32x32xf32>
    %cst_25 = arith.constant -1.000000e+30 : f32
    %57 = vector.broadcast %cst_25 : f32 to vector<32x32xf32>
    %58 = arith.select %2, %56, %57 : vector<32x32xi1>, vector<32x32xf32>
    %cst_26 = arith.constant dense<0xFF800000> : vector<32xf32>
    %59 = vector.multi_reduction <maximumf>, %58, %cst_26 [1] : vector<32x32xf32> to vector<32xf32>
    %60 = vector.shape_cast %59 : vector<32xf32> to vector<32x1xf32>
    %61 = vector.broadcast %60 : vector<32x1xf32> to vector<32x32xf32>
    %62 = arith.subf %58, %61 : vector<32x32xf32>
    %63 = math.exp %62 : vector<32x32xf32>
    %cst_27 = arith.constant dense<0.000000e+00> : vector<32xf32>
    %64 = vector.multi_reduction <add>, %63, %cst_27 [1] : vector<32x32xf32> to vector<32xf32>
    %65 = vector.shape_cast %64 : vector<32xf32> to vector<32x1xf32>
    %66 = arith.truncf %63 : vector<32x32xf32> to vector<32x32xbf16>
    %67 = arith.truncf %46 : vector<32x8xf32> to vector<32x8xbf16>
    %cst_28 = arith.constant dense<0.000000e+00> : vector<32x8xf32>
    %68 = tpu.matmul %66, %67, %cst_28 {dimension_numbers = #tpu.dot_dimension_numbers<[1], [0], [0], [1], [0, 0, 1, 1], [], []>} : vector<32x32xbf16>, vector<32x8xbf16>, vector<32x8xf32> -> vector<32x8xf32>
    %69 = tpu.reciprocal %65 {approx = true} : vector<32x1xf32> -> vector<32x1xf32>
    %70 = vector.broadcast %69 : vector<32x1xf32> to vector<32x8xf32>
    %71 = arith.mulf %68, %70 : vector<32x8xf32>
    %72 = vector.extract_strided_slice %13 {offsets = [0, 8], sizes = [1, 8], strides = [1, 1]} : vector<1x32xf32> to vector<1x8xf32>
    %73 = vector.broadcast %72 : vector<1x8xf32> to vector<32x8xf32>
    %74 = arith.addf %71, %73 : vector<32x8xf32>
    %cst_29 = arith.constant 0.000000e+00 : f32
    %75 = vector.broadcast %cst_29 : f32 to vector<32x8xf32>
    %76 = arith.maximumf %74, %75 : vector<32x8xf32>
    %c0_30 = arith.constant 0 : index
    %c8 = arith.constant 8 : index
    %77 = vector.load %arg31[%c0_30, %c8] : memref<32x32xf32, #tpu.memory_space<vmem>>, vector<32x8xf32>
    tpu.vector_store %arg31[%c0_30, %c8], %76 {strides = array<i32>} : memref<32x32xf32, #tpu.memory_space<vmem>>, vector<32x8xf32>,
    %78 = vector.extract_strided_slice %7 {offsets = [0, 16], sizes = [32, 8], strides = [1, 1]} : vector<32x32xf32> to vector<32x8xf32>
    %79 = vector.extract_strided_slice %11 {offsets = [0, 2], sizes = [32, 1], strides = [1, 1]} : vector<32x4xf32> to vector<32x1xf32>
    %80 = vector.extract_strided_slice %12 {offsets = [2, 0], sizes = [1, 32], strides = [1, 1]} : vector<4x32xf32> to vector<1x32xf32>
    %81 = vector.broadcast %79 : vector<32x1xf32> to vector<32x32xf32>
    %82 = vector.broadcast %80 : vector<1x32xf32> to vector<32x32xf32>
    %83 = arith.addf %81, %82 : vector<32x32xf32>
    %cst_31 = arith.constant 0.000000e+00 : f32
    %84 = vector.broadcast %cst_31 : f32 to vector<32x32xf32>
    %85 = arith.cmpf ogt, %83, %84 : vector<32x32xf32>
    %cst_32 = arith.constant 2.000000e-01 : f32
    %86 = vector.broadcast %cst_32 : f32 to vector<32x32xf32>
    %87 = arith.mulf %86, %83 : vector<32x32xf32>
    %88 = arith.select %85, %83, %87 : vector<32x32xi1>, vector<32x32xf32>
    %cst_33 = arith.constant -1.000000e+30 : f32
    %89 = vector.broadcast %cst_33 : f32 to vector<32x32xf32>
    %90 = arith.select %2, %88, %89 : vector<32x32xi1>, vector<32x32xf32>
    %cst_34 = arith.constant dense<0xFF800000> : vector<32xf32>
    %91 = vector.multi_reduction <maximumf>, %90, %cst_34 [1] : vector<32x32xf32> to vector<32xf32>
    %92 = vector.shape_cast %91 : vector<32xf32> to vector<32x1xf32>
    %93 = vector.broadcast %92 : vector<32x1xf32> to vector<32x32xf32>
    %94 = arith.subf %90, %93 : vector<32x32xf32>
    %95 = math.exp %94 : vector<32x32xf32>
    %cst_35 = arith.constant dense<0.000000e+00> : vector<32xf32>
    %96 = vector.multi_reduction <add>, %95, %cst_35 [1] : vector<32x32xf32> to vector<32xf32>
    %97 = vector.shape_cast %96 : vector<32xf32> to vector<32x1xf32>
    %98 = arith.truncf %95 : vector<32x32xf32> to vector<32x32xbf16>
    %99 = arith.truncf %78 : vector<32x8xf32> to vector<32x8xbf16>
    %cst_36 = arith.constant dense<0.000000e+00> : vector<32x8xf32>
    %100 = tpu.matmul %98, %99, %cst_36 {dimension_numbers = #tpu.dot_dimension_numbers<[1], [0], [0], [1], [0, 0, 1, 1], [], []>} : vector<32x32xbf16>, vector<32x8xbf16>, vector<32x8xf32> -> vector<32x8xf32>
    %101 = tpu.reciprocal %97 {approx = true} : vector<32x1xf32> -> vector<32x1xf32>
    %102 = vector.broadcast %101 : vector<32x1xf32> to vector<32x8xf32>
    %103 = arith.mulf %100, %102 : vector<32x8xf32>
    %104 = vector.extract_strided_slice %13 {offsets = [0, 16], sizes = [1, 8], strides = [1, 1]} : vector<1x32xf32> to vector<1x8xf32>
    %105 = vector.broadcast %104 : vector<1x8xf32> to vector<32x8xf32>
    %106 = arith.addf %103, %105 : vector<32x8xf32>
    %cst_37 = arith.constant 0.000000e+00 : f32
    %107 = vector.broadcast %cst_37 : f32 to vector<32x8xf32>
    %108 = arith.maximumf %106, %107 : vector<32x8xf32>
    %c0_38 = arith.constant 0 : index
    %c16 = arith.constant 16 : index
    %109 = vector.load %arg31[%c0_38, %c16] : memref<32x32xf32, #tpu.memory_space<vmem>>, vector<32x8xf32>
    tpu.vector_store %arg31[%c0_38, %c16], %108 {strides = array<i32>} : memref<32x32xf32, #tpu.memory_space<vmem>>, vector<32x8xf32>,
    %110 = vector.extract_strided_slice %7 {offsets = [0, 24], sizes = [32, 8], strides = [1, 1]} : vector<32x32xf32> to vector<32x8xf32>
    %111 = vector.extract_strided_slice %11 {offsets = [0, 3], sizes = [32, 1], strides = [1, 1]} : vector<32x4xf32> to vector<32x1xf32>
    %112 = vector.extract_strided_slice %12 {offsets = [3, 0], sizes = [1, 32], strides = [1, 1]} : vector<4x32xf32> to vector<1x32xf32>
    %113 = vector.broadcast %111 : vector<32x1xf32> to vector<32x32xf32>
    %114 = vector.broadcast %112 : vector<1x32xf32> to vector<32x32xf32>
    %115 = arith.addf %113, %114 : vector<32x32xf32>
    %cst_39 = arith.constant 0.000000e+00 : f32
    %116 = vector.broadcast %cst_39 : f32 to vector<32x32xf32>
    %117 = arith.cmpf ogt, %115, %116 : vector<32x32xf32>
    %cst_40 = arith.constant 2.000000e-01 : f32
    %118 = vector.broadcast %cst_40 : f32 to vector<32x32xf32>
    %119 = arith.mulf %118, %115 : vector<32x32xf32>
    %120 = arith.select %117, %115, %119 : vector<32x32xi1>, vector<32x32xf32>
    %cst_41 = arith.constant -1.000000e+30 : f32
    %121 = vector.broadcast %cst_41 : f32 to vector<32x32xf32>
    %122 = arith.select %2, %120, %121 : vector<32x32xi1>, vector<32x32xf32>
    %cst_42 = arith.constant dense<0xFF800000> : vector<32xf32>
    %123 = vector.multi_reduction <maximumf>, %122, %cst_42 [1] : vector<32x32xf32> to vector<32xf32>
    %124 = vector.shape_cast %123 : vector<32xf32> to vector<32x1xf32>
    %125 = vector.broadcast %124 : vector<32x1xf32> to vector<32x32xf32>
    %126 = arith.subf %122, %125 : vector<32x32xf32>
    %127 = math.exp %126 : vector<32x32xf32>
    %cst_43 = arith.constant dense<0.000000e+00> : vector<32xf32>
    %128 = vector.multi_reduction <add>, %127, %cst_43 [1] : vector<32x32xf32> to vector<32xf32>
    %129 = vector.shape_cast %128 : vector<32xf32> to vector<32x1xf32>
    %130 = arith.truncf %127 : vector<32x32xf32> to vector<32x32xbf16>
    %131 = arith.truncf %110 : vector<32x8xf32> to vector<32x8xbf16>
    %cst_44 = arith.constant dense<0.000000e+00> : vector<32x8xf32>
    %132 = tpu.matmul %130, %131, %cst_44 {dimension_numbers = #tpu.dot_dimension_numbers<[1], [0], [0], [1], [0, 0, 1, 1], [], []>} : vector<32x32xbf16>, vector<32x8xbf16>, vector<32x8xf32> -> vector<32x8xf32>
    %133 = tpu.reciprocal %129 {approx = true} : vector<32x1xf32> -> vector<32x1xf32>
    %134 = vector.broadcast %133 : vector<32x1xf32> to vector<32x8xf32>
    %135 = arith.mulf %132, %134 : vector<32x8xf32>
    %136 = vector.extract_strided_slice %13 {offsets = [0, 24], sizes = [1, 8], strides = [1, 1]} : vector<1x32xf32> to vector<1x8xf32>
    %137 = vector.broadcast %136 : vector<1x8xf32> to vector<32x8xf32>
    %138 = arith.addf %135, %137 : vector<32x8xf32>
    %cst_45 = arith.constant 0.000000e+00 : f32
    %139 = vector.broadcast %cst_45 : f32 to vector<32x8xf32>
    %140 = arith.maximumf %138, %139 : vector<32x8xf32>
    %c0_46 = arith.constant 0 : index
    %c24 = arith.constant 24 : index
    %141 = vector.load %arg31[%c0_46, %c24] : memref<32x32xf32, #tpu.memory_space<vmem>>, vector<32x8xf32>
    tpu.vector_store %arg31[%c0_46, %c24], %140 {strides = array<i32>} : memref<32x32xf32, #tpu.memory_space<vmem>>, vector<32x8xf32>,
    %c0_47 = arith.constant 0 : index
    %c0_48 = arith.constant 0 : index
    %142 = vector.load %arg31[%c0_47, %c0_48] : memref<32x32xf32, #tpu.memory_space<vmem>>, vector<32x32xf32>
    %c0_49 = arith.constant 0 : index
    %c0_50 = arith.constant 0 : index
    %143 = vector.load %arg6[%c0_49, %c0_50] : memref<32x32xf32, #tpu.memory_space<vmem>>, vector<32x32xf32>
    %144 = arith.truncf %142 : vector<32x32xf32> to vector<32x32xbf16>
    %145 = arith.truncf %143 : vector<32x32xf32> to vector<32x32xbf16>
    %cst_51 = arith.constant dense<0.000000e+00> : vector<32x32xf32>
    %146 = tpu.matmul %144, %145, %cst_51 {dimension_numbers = #tpu.dot_dimension_numbers<[1], [0], [0], [1], [0, 0, 1, 1], [], []>} : vector<32x32xbf16>, vector<32x32xbf16>, vector<32x32xf32> -> vector<32x32xf32>
    %c0_52 = arith.constant 0 : index
    %c0_53 = arith.constant 0 : index
    %147 = vector.load %arg7[%c0_52, %c0_53] : memref<32x4xf32, #tpu.memory_space<vmem>>, vector<32x4xf32>
    %cst_54 = arith.constant dense<0.000000e+00> : vector<32x4xf32>
    %148 = tpu.matmul %146, %147, %cst_54 {dimension_numbers = #tpu.dot_dimension_numbers<[1], [0], [0], [1], [0, 0, 1, 1], [], []>} : vector<32x32xf32>, vector<32x4xf32>, vector<32x4xf32> -> vector<32x4xf32>
    %c0_55 = arith.constant 0 : index
    %c0_56 = arith.constant 0 : index
    %149 = vector.load %arg8[%c0_55, %c0_56] : memref<32x4xf32, #tpu.memory_space<vmem>>, vector<32x4xf32>
    %cst_57 = arith.constant dense<0.000000e+00> : vector<32x4xf32>
    %150 = tpu.matmul %146, %149, %cst_57 {dimension_numbers = #tpu.dot_dimension_numbers<[1], [0], [0], [1], [0, 0, 1, 1], [], []>} : vector<32x32xf32>, vector<32x4xf32>, vector<32x4xf32> -> vector<32x4xf32>
    %151 = tpu.transpose %148, [1, 0] : vector<32x4xf32> -> vector<4x32xf32>
    %c0_58 = arith.constant 0 : index
    %c0_59 = arith.constant 0 : index
    %152 = vector.load %arg9[%c0_58, %c0_59] : memref<1x32xf32, #tpu.memory_space<vmem>>, vector<1x32xf32>
    %153 = vector.extract_strided_slice %146 {offsets = [0, 0], sizes = [32, 8], strides = [1, 1]} : vector<32x32xf32> to vector<32x8xf32>
    %154 = vector.extract_strided_slice %150 {offsets = [0, 0], sizes = [32, 1], strides = [1, 1]} : vector<32x4xf32> to vector<32x1xf32>
    %155 = vector.extract_strided_slice %151 {offsets = [0, 0], sizes = [1, 32], strides = [1, 1]} : vector<4x32xf32> to vector<1x32xf32>
    %156 = vector.broadcast %154 : vector<32x1xf32> to vector<32x32xf32>
    %157 = vector.broadcast %155 : vector<1x32xf32> to vector<32x32xf32>
    %158 = arith.addf %156, %157 : vector<32x32xf32>
    %cst_60 = arith.constant 0.000000e+00 : f32
    %159 = vector.broadcast %cst_60 : f32 to vector<32x32xf32>
    %160 = arith.cmpf ogt, %158, %159 : vector<32x32xf32>
    %cst_61 = arith.constant 2.000000e-01 : f32
    %161 = vector.broadcast %cst_61 : f32 to vector<32x32xf32>
    %162 = arith.mulf %161, %158 : vector<32x32xf32>
    %163 = arith.select %160, %158, %162 : vector<32x32xi1>, vector<32x32xf32>
    %cst_62 = arith.constant -1.000000e+30 : f32
    %164 = vector.broadcast %cst_62 : f32 to vector<32x32xf32>
    %165 = arith.select %2, %163, %164 : vector<32x32xi1>, vector<32x32xf32>
    %cst_63 = arith.constant dense<0xFF800000> : vector<32xf32>
    %166 = vector.multi_reduction <maximumf>, %165, %cst_63 [1] : vector<32x32xf32> to vector<32xf32>
    %167 = vector.shape_cast %166 : vector<32xf32> to vector<32x1xf32>
    %168 = vector.broadcast %167 : vector<32x1xf32> to vector<32x32xf32>
    %169 = arith.subf %165, %168 : vector<32x32xf32>
    %170 = math.exp %169 : vector<32x32xf32>
    %cst_64 = arith.constant dense<0.000000e+00> : vector<32xf32>
    %171 = vector.multi_reduction <add>, %170, %cst_64 [1] : vector<32x32xf32> to vector<32xf32>
    %172 = vector.shape_cast %171 : vector<32xf32> to vector<32x1xf32>
    %173 = arith.truncf %170 : vector<32x32xf32> to vector<32x32xbf16>
    %174 = arith.truncf %153 : vector<32x8xf32> to vector<32x8xbf16>
    %cst_65 = arith.constant dense<0.000000e+00> : vector<32x8xf32>
    %175 = tpu.matmul %173, %174, %cst_65 {dimension_numbers = #tpu.dot_dimension_numbers<[1], [0], [0], [1], [0, 0, 1, 1], [], []>} : vector<32x32xbf16>, vector<32x8xbf16>, vector<32x8xf32> -> vector<32x8xf32>
    %176 = tpu.reciprocal %172 {approx = true} : vector<32x1xf32> -> vector<32x1xf32>
    %177 = vector.broadcast %176 : vector<32x1xf32> to vector<32x8xf32>
    %178 = arith.mulf %175, %177 : vector<32x8xf32>
    %179 = vector.extract_strided_slice %152 {offsets = [0, 0], sizes = [1, 8], strides = [1, 1]} : vector<1x32xf32> to vector<1x8xf32>
    %180 = vector.broadcast %179 : vector<1x8xf32> to vector<32x8xf32>
    %181 = arith.addf %178, %180 : vector<32x8xf32>
    %cst_66 = arith.constant 0.000000e+00 : f32
    %182 = vector.broadcast %cst_66 : f32 to vector<32x8xf32>
    %183 = arith.maximumf %181, %182 : vector<32x8xf32>
    %c0_67 = arith.constant 0 : index
    %c0_68 = arith.constant 0 : index
    %184 = vector.load %arg32[%c0_67, %c0_68] : memref<32x32xf32, #tpu.memory_space<vmem>>, vector<32x8xf32>
    tpu.vector_store %arg32[%c0_67, %c0_68], %183 {strides = array<i32>} : memref<32x32xf32, #tpu.memory_space<vmem>>, vector<32x8xf32>,
    %185 = vector.extract_strided_slice %146 {offsets = [0, 8], sizes = [32, 8], strides = [1, 1]} : vector<32x32xf32> to vector<32x8xf32>
    %186 = vector.extract_strided_slice %150 {offsets = [0, 1], sizes = [32, 1], strides = [1, 1]} : vector<32x4xf32> to vector<32x1xf32>
    %187 = vector.extract_strided_slice %151 {offsets = [1, 0], sizes = [1, 32], strides = [1, 1]} : vector<4x32xf32> to vector<1x32xf32>
    %188 = vector.broadcast %186 : vector<32x1xf32> to vector<32x32xf32>
    %189 = vector.broadcast %187 : vector<1x32xf32> to vector<32x32xf32>
    %190 = arith.addf %188, %189 : vector<32x32xf32>
    %cst_69 = arith.constant 0.000000e+00 : f32
    %191 = vector.broadcast %cst_69 : f32 to vector<32x32xf32>
    %192 = arith.cmpf ogt, %190, %191 : vector<32x32xf32>
    %cst_70 = arith.constant 2.000000e-01 : f32
    %193 = vector.broadcast %cst_70 : f32 to vector<32x32xf32>
    %194 = arith.mulf %193, %190 : vector<32x32xf32>
    %195 = arith.select %192, %190, %194 : vector<32x32xi1>, vector<32x32xf32>
    %cst_71 = arith.constant -1.000000e+30 : f32
    %196 = vector.broadcast %cst_71 : f32 to vector<32x32xf32>
    %197 = arith.select %2, %195, %196 : vector<32x32xi1>, vector<32x32xf32>
    %cst_72 = arith.constant dense<0xFF800000> : vector<32xf32>
    %198 = vector.multi_reduction <maximumf>, %197, %cst_72 [1] : vector<32x32xf32> to vector<32xf32>
    %199 = vector.shape_cast %198 : vector<32xf32> to vector<32x1xf32>
    %200 = vector.broadcast %199 : vector<32x1xf32> to vector<32x32xf32>
    %201 = arith.subf %197, %200 : vector<32x32xf32>
    %202 = math.exp %201 : vector<32x32xf32>
    %cst_73 = arith.constant dense<0.000000e+00> : vector<32xf32>
    %203 = vector.multi_reduction <add>, %202, %cst_73 [1] : vector<32x32xf32> to vector<32xf32>
    %204 = vector.shape_cast %203 : vector<32xf32> to vector<32x1xf32>
    %205 = arith.truncf %202 : vector<32x32xf32> to vector<32x32xbf16>
    %206 = arith.truncf %185 : vector<32x8xf32> to vector<32x8xbf16>
    %cst_74 = arith.constant dense<0.000000e+00> : vector<32x8xf32>
    %207 = tpu.matmul %205, %206, %cst_74 {dimension_numbers = #tpu.dot_dimension_numbers<[1], [0], [0], [1], [0, 0, 1, 1], [], []>} : vector<32x32xbf16>, vector<32x8xbf16>, vector<32x8xf32> -> vector<32x8xf32>
    %208 = tpu.reciprocal %204 {approx = true} : vector<32x1xf32> -> vector<32x1xf32>
    %209 = vector.broadcast %208 : vector<32x1xf32> to vector<32x8xf32>
    %210 = arith.mulf %207, %209 : vector<32x8xf32>
    %211 = vector.extract_strided_slice %152 {offsets = [0, 8], sizes = [1, 8], strides = [1, 1]} : vector<1x32xf32> to vector<1x8xf32>
    %212 = vector.broadcast %211 : vector<1x8xf32> to vector<32x8xf32>
    %213 = arith.addf %210, %212 : vector<32x8xf32>
    %cst_75 = arith.constant 0.000000e+00 : f32
    %214 = vector.broadcast %cst_75 : f32 to vector<32x8xf32>
    %215 = arith.maximumf %213, %214 : vector<32x8xf32>
    %c0_76 = arith.constant 0 : index
    %c8_77 = arith.constant 8 : index
    %216 = vector.load %arg32[%c0_76, %c8_77] : memref<32x32xf32, #tpu.memory_space<vmem>>, vector<32x8xf32>
    tpu.vector_store %arg32[%c0_76, %c8_77], %215 {strides = array<i32>} : memref<32x32xf32, #tpu.memory_space<vmem>>, vector<32x8xf32>,
    %217 = vector.extract_strided_slice %146 {offsets = [0, 16], sizes = [32, 8], strides = [1, 1]} : vector<32x32xf32> to vector<32x8xf32>
    %218 = vector.extract_strided_slice %150 {offsets = [0, 2], sizes = [32, 1], strides = [1, 1]} : vector<32x4xf32> to vector<32x1xf32>
    %219 = vector.extract_strided_slice %151 {offsets = [2, 0], sizes = [1, 32], strides = [1, 1]} : vector<4x32xf32> to vector<1x32xf32>
    %220 = vector.broadcast %218 : vector<32x1xf32> to vector<32x32xf32>
    %221 = vector.broadcast %219 : vector<1x32xf32> to vector<32x32xf32>
    %222 = arith.addf %220, %221 : vector<32x32xf32>
    %cst_78 = arith.constant 0.000000e+00 : f32
    %223 = vector.broadcast %cst_78 : f32 to vector<32x32xf32>
    %224 = arith.cmpf ogt, %222, %223 : vector<32x32xf32>
    %cst_79 = arith.constant 2.000000e-01 : f32
    %225 = vector.broadcast %cst_79 : f32 to vector<32x32xf32>
    %226 = arith.mulf %225, %222 : vector<32x32xf32>
    %227 = arith.select %224, %222, %226 : vector<32x32xi1>, vector<32x32xf32>
    %cst_80 = arith.constant -1.000000e+30 : f32
    %228 = vector.broadcast %cst_80 : f32 to vector<32x32xf32>
    %229 = arith.select %2, %227, %228 : vector<32x32xi1>, vector<32x32xf32>
    %cst_81 = arith.constant dense<0xFF800000> : vector<32xf32>
    %230 = vector.multi_reduction <maximumf>, %229, %cst_81 [1] : vector<32x32xf32> to vector<32xf32>
    %231 = vector.shape_cast %230 : vector<32xf32> to vector<32x1xf32>
    %232 = vector.broadcast %231 : vector<32x1xf32> to vector<32x32xf32>
    %233 = arith.subf %229, %232 : vector<32x32xf32>
    %234 = math.exp %233 : vector<32x32xf32>
    %cst_82 = arith.constant dense<0.000000e+00> : vector<32xf32>
    %235 = vector.multi_reduction <add>, %234, %cst_82 [1] : vector<32x32xf32> to vector<32xf32>
    %236 = vector.shape_cast %235 : vector<32xf32> to vector<32x1xf32>
    %237 = arith.truncf %234 : vector<32x32xf32> to vector<32x32xbf16>
    %238 = arith.truncf %217 : vector<32x8xf32> to vector<32x8xbf16>
    %cst_83 = arith.constant dense<0.000000e+00> : vector<32x8xf32>
    %239 = tpu.matmul %237, %238, %cst_83 {dimension_numbers = #tpu.dot_dimension_numbers<[1], [0], [0], [1], [0, 0, 1, 1], [], []>} : vector<32x32xbf16>, vector<32x8xbf16>, vector<32x8xf32> -> vector<32x8xf32>
    %240 = tpu.reciprocal %236 {approx = true} : vector<32x1xf32> -> vector<32x1xf32>
    %241 = vector.broadcast %240 : vector<32x1xf32> to vector<32x8xf32>
    %242 = arith.mulf %239, %241 : vector<32x8xf32>
    %243 = vector.extract_strided_slice %152 {offsets = [0, 16], sizes = [1, 8], strides = [1, 1]} : vector<1x32xf32> to vector<1x8xf32>
    %244 = vector.broadcast %243 : vector<1x8xf32> to vector<32x8xf32>
    %245 = arith.addf %242, %244 : vector<32x8xf32>
    %cst_84 = arith.constant 0.000000e+00 : f32
    %246 = vector.broadcast %cst_84 : f32 to vector<32x8xf32>
    %247 = arith.maximumf %245, %246 : vector<32x8xf32>
    %c0_85 = arith.constant 0 : index
    %c16_86 = arith.constant 16 : index
    %248 = vector.load %arg32[%c0_85, %c16_86] : memref<32x32xf32, #tpu.memory_space<vmem>>, vector<32x8xf32>
    tpu.vector_store %arg32[%c0_85, %c16_86], %247 {strides = array<i32>} : memref<32x32xf32, #tpu.memory_space<vmem>>, vector<32x8xf32>,
    %249 = vector.extract_strided_slice %146 {offsets = [0, 24], sizes = [32, 8], strides = [1, 1]} : vector<32x32xf32> to vector<32x8xf32>
    %250 = vector.extract_strided_slice %150 {offsets = [0, 3], sizes = [32, 1], strides = [1, 1]} : vector<32x4xf32> to vector<32x1xf32>
    %251 = vector.extract_strided_slice %151 {offsets = [3, 0], sizes = [1, 32], strides = [1, 1]} : vector<4x32xf32> to vector<1x32xf32>
    %252 = vector.broadcast %250 : vector<32x1xf32> to vector<32x32xf32>
    %253 = vector.broadcast %251 : vector<1x32xf32> to vector<32x32xf32>
    %254 = arith.addf %252, %253 : vector<32x32xf32>
    %cst_87 = arith.constant 0.000000e+00 : f32
    %255 = vector.broadcast %cst_87 : f32 to vector<32x32xf32>
    %256 = arith.cmpf ogt, %254, %255 : vector<32x32xf32>
    %cst_88 = arith.constant 2.000000e-01 : f32
    %257 = vector.broadcast %cst_88 : f32 to vector<32x32xf32>
    %258 = arith.mulf %257, %254 : vector<32x32xf32>
    %259 = arith.select %256, %254, %258 : vector<32x32xi1>, vector<32x32xf32>
    %cst_89 = arith.constant -1.000000e+30 : f32
    %260 = vector.broadcast %cst_89 : f32 to vector<32x32xf32>
    %261 = arith.select %2, %259, %260 : vector<32x32xi1>, vector<32x32xf32>
    %cst_90 = arith.constant dense<0xFF800000> : vector<32xf32>
    %262 = vector.multi_reduction <maximumf>, %261, %cst_90 [1] : vector<32x32xf32> to vector<32xf32>
    %263 = vector.shape_cast %262 : vector<32xf32> to vector<32x1xf32>
    %264 = vector.broadcast %263 : vector<32x1xf32> to vector<32x32xf32>
    %265 = arith.subf %261, %264 : vector<32x32xf32>
    %266 = math.exp %265 : vector<32x32xf32>
    %cst_91 = arith.constant dense<0.000000e+00> : vector<32xf32>
    %267 = vector.multi_reduction <add>, %266, %cst_91 [1] : vector<32x32xf32> to vector<32xf32>
    %268 = vector.shape_cast %267 : vector<32xf32> to vector<32x1xf32>
    %269 = arith.truncf %266 : vector<32x32xf32> to vector<32x32xbf16>
    %270 = arith.truncf %249 : vector<32x8xf32> to vector<32x8xbf16>
    %cst_92 = arith.constant dense<0.000000e+00> : vector<32x8xf32>
    %271 = tpu.matmul %269, %270, %cst_92 {dimension_numbers = #tpu.dot_dimension_numbers<[1], [0], [0], [1], [0, 0, 1, 1], [], []>} : vector<32x32xbf16>, vector<32x8xbf16>, vector<32x8xf32> -> vector<32x8xf32>
    %272 = tpu.reciprocal %268 {approx = true} : vector<32x1xf32> -> vector<32x1xf32>
    %273 = vector.broadcast %272 : vector<32x1xf32> to vector<32x8xf32>
    %274 = arith.mulf %271, %273 : vector<32x8xf32>
    %275 = vector.extract_strided_slice %152 {offsets = [0, 24], sizes = [1, 8], strides = [1, 1]} : vector<1x32xf32> to vector<1x8xf32>
    %276 = vector.broadcast %275 : vector<1x8xf32> to vector<32x8xf32>
    %277 = arith.addf %274, %276 : vector<32x8xf32>
    %cst_93 = arith.constant 0.000000e+00 : f32
    %278 = vector.broadcast %cst_93 : f32 to vector<32x8xf32>
    %279 = arith.maximumf %277, %278 : vector<32x8xf32>
    %c0_94 = arith.constant 0 : index
    %c24_95 = arith.constant 24 : index
    %280 = vector.load %arg32[%c0_94, %c24_95] : memref<32x32xf32, #tpu.memory_space<vmem>>, vector<32x8xf32>
    tpu.vector_store %arg32[%c0_94, %c24_95], %279 {strides = array<i32>} : memref<32x32xf32, #tpu.memory_space<vmem>>, vector<32x8xf32>,
    %c0_96 = arith.constant 0 : index
    %c0_97 = arith.constant 0 : index
    %281 = vector.load %arg32[%c0_96, %c0_97] : memref<32x32xf32, #tpu.memory_space<vmem>>, vector<32x32xf32>
    %c0_98 = arith.constant 0 : index
    %c0_99 = arith.constant 0 : index
    %282 = vector.load %arg10[%c0_98, %c0_99] : memref<32x32xf32, #tpu.memory_space<vmem>>, vector<32x32xf32>
    %283 = arith.truncf %281 : vector<32x32xf32> to vector<32x32xbf16>
    %284 = arith.truncf %282 : vector<32x32xf32> to vector<32x32xbf16>
    %cst_100 = arith.constant dense<0.000000e+00> : vector<32x32xf32>
    %285 = tpu.matmul %283, %284, %cst_100 {dimension_numbers = #tpu.dot_dimension_numbers<[1], [0], [0], [1], [0, 0, 1, 1], [], []>} : vector<32x32xbf16>, vector<32x32xbf16>, vector<32x32xf32> -> vector<32x32xf32>
    %c0_101 = arith.constant 0 : index
    %c0_102 = arith.constant 0 : index
    %286 = vector.load %arg11[%c0_101, %c0_102] : memref<32x4xf32, #tpu.memory_space<vmem>>, vector<32x4xf32>
    %cst_103 = arith.constant dense<0.000000e+00> : vector<32x4xf32>
    %287 = tpu.matmul %285, %286, %cst_103 {dimension_numbers = #tpu.dot_dimension_numbers<[1], [0], [0], [1], [0, 0, 1, 1], [], []>} : vector<32x32xf32>, vector<32x4xf32>, vector<32x4xf32> -> vector<32x4xf32>
    %c0_104 = arith.constant 0 : index
    %c0_105 = arith.constant 0 : index
    %288 = vector.load %arg12[%c0_104, %c0_105] : memref<32x4xf32, #tpu.memory_space<vmem>>, vector<32x4xf32>
    %cst_106 = arith.constant dense<0.000000e+00> : vector<32x4xf32>
    %289 = tpu.matmul %285, %288, %cst_106 {dimension_numbers = #tpu.dot_dimension_numbers<[1], [0], [0], [1], [0, 0, 1, 1], [], []>} : vector<32x32xf32>, vector<32x4xf32>, vector<32x4xf32> -> vector<32x4xf32>
    %290 = tpu.transpose %287, [1, 0] : vector<32x4xf32> -> vector<4x32xf32>
    %c0_107 = arith.constant 0 : index
    %c0_108 = arith.constant 0 : index
    %291 = vector.load %arg13[%c0_107, %c0_108] : memref<1x32xf32, #tpu.memory_space<vmem>>, vector<1x32xf32>
    %292 = vector.extract_strided_slice %285 {offsets = [0, 0], sizes = [32, 8], strides = [1, 1]} : vector<32x32xf32> to vector<32x8xf32>
    %293 = vector.extract_strided_slice %289 {offsets = [0, 0], sizes = [32, 1], strides = [1, 1]} : vector<32x4xf32> to vector<32x1xf32>
    %294 = vector.extract_strided_slice %290 {offsets = [0, 0], sizes = [1, 32], strides = [1, 1]} : vector<4x32xf32> to vector<1x32xf32>
    %295 = vector.broadcast %293 : vector<32x1xf32> to vector<32x32xf32>
    %296 = vector.broadcast %294 : vector<1x32xf32> to vector<32x32xf32>
    %297 = arith.addf %295, %296 : vector<32x32xf32>
    %cst_109 = arith.constant 0.000000e+00 : f32
    %298 = vector.broadcast %cst_109 : f32 to vector<32x32xf32>
    %299 = arith.cmpf ogt, %297, %298 : vector<32x32xf32>
    %cst_110 = arith.constant 2.000000e-01 : f32
    %300 = vector.broadcast %cst_110 : f32 to vector<32x32xf32>
    %301 = arith.mulf %300, %297 : vector<32x32xf32>
    %302 = arith.select %299, %297, %301 : vector<32x32xi1>, vector<32x32xf32>
    %cst_111 = arith.constant -1.000000e+30 : f32
    %303 = vector.broadcast %cst_111 : f32 to vector<32x32xf32>
    %304 = arith.select %2, %302, %303 : vector<32x32xi1>, vector<32x32xf32>
    %cst_112 = arith.constant dense<0xFF800000> : vector<32xf32>
    %305 = vector.multi_reduction <maximumf>, %304, %cst_112 [1] : vector<32x32xf32> to vector<32xf32>
    %306 = vector.shape_cast %305 : vector<32xf32> to vector<32x1xf32>
    %307 = vector.broadcast %306 : vector<32x1xf32> to vector<32x32xf32>
    %308 = arith.subf %304, %307 : vector<32x32xf32>
    %309 = math.exp %308 : vector<32x32xf32>
    %cst_113 = arith.constant dense<0.000000e+00> : vector<32xf32>
    %310 = vector.multi_reduction <add>, %309, %cst_113 [1] : vector<32x32xf32> to vector<32xf32>
    %311 = vector.shape_cast %310 : vector<32xf32> to vector<32x1xf32>
    %312 = arith.truncf %309 : vector<32x32xf32> to vector<32x32xbf16>
    %313 = arith.truncf %292 : vector<32x8xf32> to vector<32x8xbf16>
    %cst_114 = arith.constant dense<0.000000e+00> : vector<32x8xf32>
    %314 = tpu.matmul %312, %313, %cst_114 {dimension_numbers = #tpu.dot_dimension_numbers<[1], [0], [0], [1], [0, 0, 1, 1], [], []>} : vector<32x32xbf16>, vector<32x8xbf16>, vector<32x8xf32> -> vector<32x8xf32>
    %315 = tpu.reciprocal %311 {approx = true} : vector<32x1xf32> -> vector<32x1xf32>
    %316 = vector.broadcast %315 : vector<32x1xf32> to vector<32x8xf32>
    %317 = arith.mulf %314, %316 : vector<32x8xf32>
    %318 = vector.extract_strided_slice %291 {offsets = [0, 0], sizes = [1, 8], strides = [1, 1]} : vector<1x32xf32> to vector<1x8xf32>
    %319 = vector.broadcast %318 : vector<1x8xf32> to vector<32x8xf32>
    %320 = arith.addf %317, %319 : vector<32x8xf32>
    %cst_115 = arith.constant 0.000000e+00 : f32
    %321 = vector.broadcast %cst_115 : f32 to vector<32x8xf32>
    %322 = arith.maximumf %320, %321 : vector<32x8xf32>
    %c0_116 = arith.constant 0 : index
    %c0_117 = arith.constant 0 : index
    %323 = vector.load %arg33[%c0_116, %c0_117] : memref<32x32xf32, #tpu.memory_space<vmem>>, vector<32x8xf32>
    tpu.vector_store %arg33[%c0_116, %c0_117], %322 {strides = array<i32>} : memref<32x32xf32, #tpu.memory_space<vmem>>, vector<32x8xf32>,
    %324 = vector.extract_strided_slice %285 {offsets = [0, 8], sizes = [32, 8], strides = [1, 1]} : vector<32x32xf32> to vector<32x8xf32>
    %325 = vector.extract_strided_slice %289 {offsets = [0, 1], sizes = [32, 1], strides = [1, 1]} : vector<32x4xf32> to vector<32x1xf32>
    %326 = vector.extract_strided_slice %290 {offsets = [1, 0], sizes = [1, 32], strides = [1, 1]} : vector<4x32xf32> to vector<1x32xf32>
    %327 = vector.broadcast %325 : vector<32x1xf32> to vector<32x32xf32>
    %328 = vector.broadcast %326 : vector<1x32xf32> to vector<32x32xf32>
    %329 = arith.addf %327, %328 : vector<32x32xf32>
    %cst_118 = arith.constant 0.000000e+00 : f32
    %330 = vector.broadcast %cst_118 : f32 to vector<32x32xf32>
    %331 = arith.cmpf ogt, %329, %330 : vector<32x32xf32>
    %cst_119 = arith.constant 2.000000e-01 : f32
    %332 = vector.broadcast %cst_119 : f32 to vector<32x32xf32>
    %333 = arith.mulf %332, %329 : vector<32x32xf32>
    %334 = arith.select %331, %329, %333 : vector<32x32xi1>, vector<32x32xf32>
    %cst_120 = arith.constant -1.000000e+30 : f32
    %335 = vector.broadcast %cst_120 : f32 to vector<32x32xf32>
    %336 = arith.select %2, %334, %335 : vector<32x32xi1>, vector<32x32xf32>
    %cst_121 = arith.constant dense<0xFF800000> : vector<32xf32>
    %337 = vector.multi_reduction <maximumf>, %336, %cst_121 [1] : vector<32x32xf32> to vector<32xf32>
    %338 = vector.shape_cast %337 : vector<32xf32> to vector<32x1xf32>
    %339 = vector.broadcast %338 : vector<32x1xf32> to vector<32x32xf32>
    %340 = arith.subf %336, %339 : vector<32x32xf32>
    %341 = math.exp %340 : vector<32x32xf32>
    %cst_122 = arith.constant dense<0.000000e+00> : vector<32xf32>
    %342 = vector.multi_reduction <add>, %341, %cst_122 [1] : vector<32x32xf32> to vector<32xf32>
    %343 = vector.shape_cast %342 : vector<32xf32> to vector<32x1xf32>
    %344 = arith.truncf %341 : vector<32x32xf32> to vector<32x32xbf16>
    %345 = arith.truncf %324 : vector<32x8xf32> to vector<32x8xbf16>
    %cst_123 = arith.constant dense<0.000000e+00> : vector<32x8xf32>
    %346 = tpu.matmul %344, %345, %cst_123 {dimension_numbers = #tpu.dot_dimension_numbers<[1], [0], [0], [1], [0, 0, 1, 1], [], []>} : vector<32x32xbf16>, vector<32x8xbf16>, vector<32x8xf32> -> vector<32x8xf32>
    %347 = tpu.reciprocal %343 {approx = true} : vector<32x1xf32> -> vector<32x1xf32>
    %348 = vector.broadcast %347 : vector<32x1xf32> to vector<32x8xf32>
    %349 = arith.mulf %346, %348 : vector<32x8xf32>
    %350 = vector.extract_strided_slice %291 {offsets = [0, 8], sizes = [1, 8], strides = [1, 1]} : vector<1x32xf32> to vector<1x8xf32>
    %351 = vector.broadcast %350 : vector<1x8xf32> to vector<32x8xf32>
    %352 = arith.addf %349, %351 : vector<32x8xf32>
    %cst_124 = arith.constant 0.000000e+00 : f32
    %353 = vector.broadcast %cst_124 : f32 to vector<32x8xf32>
    %354 = arith.maximumf %352, %353 : vector<32x8xf32>
    %c0_125 = arith.constant 0 : index
    %c8_126 = arith.constant 8 : index
    %355 = vector.load %arg33[%c0_125, %c8_126] : memref<32x32xf32, #tpu.memory_space<vmem>>, vector<32x8xf32>
    tpu.vector_store %arg33[%c0_125, %c8_126], %354 {strides = array<i32>} : memref<32x32xf32, #tpu.memory_space<vmem>>, vector<32x8xf32>,
    %356 = vector.extract_strided_slice %285 {offsets = [0, 16], sizes = [32, 8], strides = [1, 1]} : vector<32x32xf32> to vector<32x8xf32>
    %357 = vector.extract_strided_slice %289 {offsets = [0, 2], sizes = [32, 1], strides = [1, 1]} : vector<32x4xf32> to vector<32x1xf32>
    %358 = vector.extract_strided_slice %290 {offsets = [2, 0], sizes = [1, 32], strides = [1, 1]} : vector<4x32xf32> to vector<1x32xf32>
    %359 = vector.broadcast %357 : vector<32x1xf32> to vector<32x32xf32>
    %360 = vector.broadcast %358 : vector<1x32xf32> to vector<32x32xf32>
    %361 = arith.addf %359, %360 : vector<32x32xf32>
    %cst_127 = arith.constant 0.000000e+00 : f32
    %362 = vector.broadcast %cst_127 : f32 to vector<32x32xf32>
    %363 = arith.cmpf ogt, %361, %362 : vector<32x32xf32>
    %cst_128 = arith.constant 2.000000e-01 : f32
    %364 = vector.broadcast %cst_128 : f32 to vector<32x32xf32>
    %365 = arith.mulf %364, %361 : vector<32x32xf32>
    %366 = arith.select %363, %361, %365 : vector<32x32xi1>, vector<32x32xf32>
    %cst_129 = arith.constant -1.000000e+30 : f32
    %367 = vector.broadcast %cst_129 : f32 to vector<32x32xf32>
    %368 = arith.select %2, %366, %367 : vector<32x32xi1>, vector<32x32xf32>
    %cst_130 = arith.constant dense<0xFF800000> : vector<32xf32>
    %369 = vector.multi_reduction <maximumf>, %368, %cst_130 [1] : vector<32x32xf32> to vector<32xf32>
    %370 = vector.shape_cast %369 : vector<32xf32> to vector<32x1xf32>
    %371 = vector.broadcast %370 : vector<32x1xf32> to vector<32x32xf32>
    %372 = arith.subf %368, %371 : vector<32x32xf32>
    %373 = math.exp %372 : vector<32x32xf32>
    %cst_131 = arith.constant dense<0.000000e+00> : vector<32xf32>
    %374 = vector.multi_reduction <add>, %373, %cst_131 [1] : vector<32x32xf32> to vector<32xf32>
    %375 = vector.shape_cast %374 : vector<32xf32> to vector<32x1xf32>
    %376 = arith.truncf %373 : vector<32x32xf32> to vector<32x32xbf16>
    %377 = arith.truncf %356 : vector<32x8xf32> to vector<32x8xbf16>
    %cst_132 = arith.constant dense<0.000000e+00> : vector<32x8xf32>
    %378 = tpu.matmul %376, %377, %cst_132 {dimension_numbers = #tpu.dot_dimension_numbers<[1], [0], [0], [1], [0, 0, 1, 1], [], []>} : vector<32x32xbf16>, vector<32x8xbf16>, vector<32x8xf32> -> vector<32x8xf32>
    %379 = tpu.reciprocal %375 {approx = true} : vector<32x1xf32> -> vector<32x1xf32>
    %380 = vector.broadcast %379 : vector<32x1xf32> to vector<32x8xf32>
    %381 = arith.mulf %378, %380 : vector<32x8xf32>
    %382 = vector.extract_strided_slice %291 {offsets = [0, 16], sizes = [1, 8], strides = [1, 1]} : vector<1x32xf32> to vector<1x8xf32>
    %383 = vector.broadcast %382 : vector<1x8xf32> to vector<32x8xf32>
    %384 = arith.addf %381, %383 : vector<32x8xf32>
    %cst_133 = arith.constant 0.000000e+00 : f32
    %385 = vector.broadcast %cst_133 : f32 to vector<32x8xf32>
    %386 = arith.maximumf %384, %385 : vector<32x8xf32>
    %c0_134 = arith.constant 0 : index
    %c16_135 = arith.constant 16 : index
    %387 = vector.load %arg33[%c0_134, %c16_135] : memref<32x32xf32, #tpu.memory_space<vmem>>, vector<32x8xf32>
    tpu.vector_store %arg33[%c0_134, %c16_135], %386 {strides = array<i32>} : memref<32x32xf32, #tpu.memory_space<vmem>>, vector<32x8xf32>,
    %388 = vector.extract_strided_slice %285 {offsets = [0, 24], sizes = [32, 8], strides = [1, 1]} : vector<32x32xf32> to vector<32x8xf32>
    %389 = vector.extract_strided_slice %289 {offsets = [0, 3], sizes = [32, 1], strides = [1, 1]} : vector<32x4xf32> to vector<32x1xf32>
    %390 = vector.extract_strided_slice %290 {offsets = [3, 0], sizes = [1, 32], strides = [1, 1]} : vector<4x32xf32> to vector<1x32xf32>
    %391 = vector.broadcast %389 : vector<32x1xf32> to vector<32x32xf32>
    %392 = vector.broadcast %390 : vector<1x32xf32> to vector<32x32xf32>
    %393 = arith.addf %391, %392 : vector<32x32xf32>
    %cst_136 = arith.constant 0.000000e+00 : f32
    %394 = vector.broadcast %cst_136 : f32 to vector<32x32xf32>
    %395 = arith.cmpf ogt, %393, %394 : vector<32x32xf32>
    %cst_137 = arith.constant 2.000000e-01 : f32
    %396 = vector.broadcast %cst_137 : f32 to vector<32x32xf32>
    %397 = arith.mulf %396, %393 : vector<32x32xf32>
    %398 = arith.select %395, %393, %397 : vector<32x32xi1>, vector<32x32xf32>
    %cst_138 = arith.constant -1.000000e+30 : f32
    %399 = vector.broadcast %cst_138 : f32 to vector<32x32xf32>
    %400 = arith.select %2, %398, %399 : vector<32x32xi1>, vector<32x32xf32>
    %cst_139 = arith.constant dense<0xFF800000> : vector<32xf32>
    %401 = vector.multi_reduction <maximumf>, %400, %cst_139 [1] : vector<32x32xf32> to vector<32xf32>
    %402 = vector.shape_cast %401 : vector<32xf32> to vector<32x1xf32>
    %403 = vector.broadcast %402 : vector<32x1xf32> to vector<32x32xf32>
    %404 = arith.subf %400, %403 : vector<32x32xf32>
    %405 = math.exp %404 : vector<32x32xf32>
    %cst_140 = arith.constant dense<0.000000e+00> : vector<32xf32>
    %406 = vector.multi_reduction <add>, %405, %cst_140 [1] : vector<32x32xf32> to vector<32xf32>
    %407 = vector.shape_cast %406 : vector<32xf32> to vector<32x1xf32>
    %408 = arith.truncf %405 : vector<32x32xf32> to vector<32x32xbf16>
    %409 = arith.truncf %388 : vector<32x8xf32> to vector<32x8xbf16>
    %cst_141 = arith.constant dense<0.000000e+00> : vector<32x8xf32>
    %410 = tpu.matmul %408, %409, %cst_141 {dimension_numbers = #tpu.dot_dimension_numbers<[1], [0], [0], [1], [0, 0, 1, 1], [], []>} : vector<32x32xbf16>, vector<32x8xbf16>, vector<32x8xf32> -> vector<32x8xf32>
    %411 = tpu.reciprocal %407 {approx = true} : vector<32x1xf32> -> vector<32x1xf32>
    %412 = vector.broadcast %411 : vector<32x1xf32> to vector<32x8xf32>
    %413 = arith.mulf %410, %412 : vector<32x8xf32>
    %414 = vector.extract_strided_slice %291 {offsets = [0, 24], sizes = [1, 8], strides = [1, 1]} : vector<1x32xf32> to vector<1x8xf32>
    %415 = vector.broadcast %414 : vector<1x8xf32> to vector<32x8xf32>
    %416 = arith.addf %413, %415 : vector<32x8xf32>
    %cst_142 = arith.constant 0.000000e+00 : f32
    %417 = vector.broadcast %cst_142 : f32 to vector<32x8xf32>
    %418 = arith.maximumf %416, %417 : vector<32x8xf32>
    %c0_143 = arith.constant 0 : index
    %c24_144 = arith.constant 24 : index
    %419 = vector.load %arg33[%c0_143, %c24_144] : memref<32x32xf32, #tpu.memory_space<vmem>>, vector<32x8xf32>
    tpu.vector_store %arg33[%c0_143, %c24_144], %418 {strides = array<i32>} : memref<32x32xf32, #tpu.memory_space<vmem>>, vector<32x8xf32>,
    %c0_145 = arith.constant 0 : index
    %c0_146 = arith.constant 0 : index
    %420 = vector.load %arg31[%c0_145, %c0_146] : memref<32x32xf32, #tpu.memory_space<vmem>>, vector<32x32xf32>
    %c0_147 = arith.constant 0 : index
    %c0_148 = arith.constant 0 : index
    %421 = vector.load %arg32[%c0_147, %c0_148] : memref<32x32xf32, #tpu.memory_space<vmem>>, vector<32x32xf32>
    %c0_149 = arith.constant 0 : index
    %c0_150 = arith.constant 0 : index
    %422 = vector.load %arg33[%c0_149, %c0_150] : memref<32x32xf32, #tpu.memory_space<vmem>>, vector<32x32xf32>
    %cst_151 = arith.constant 0.000000e+00 : f32
    %423 = vector.broadcast %cst_151 : f32 to vector<32x48xf32>
    %cst_152 = arith.constant 0.000000e+00 : f32
    %424 = vector.broadcast %cst_152 : f32 to vector<32x48xf32>
    %c0_153 = arith.constant 0 : index
    %c0_154 = arith.constant 0 : index
    %c0_155 = arith.constant 0 : index
    %425 = vector.load %arg14[%c0_153, %c0_154, %c0_155] : memref<4x32x48xf32, #tpu.memory_space<vmem>>, vector<1x32x48xf32>
    %426 = vector.shape_cast %425 : vector<1x32x48xf32> to vector<32x48xf32>
    %427 = arith.truncf %420 : vector<32x32xf32> to vector<32x32xbf16>
    %428 = arith.truncf %426 : vector<32x48xf32> to vector<32x48xbf16>
    %cst_156 = arith.constant dense<0.000000e+00> : vector<32x48xf32>
    %429 = tpu.matmul %427, %428, %cst_156 {dimension_numbers = #tpu.dot_dimension_numbers<[1], [0], [0], [1], [0, 0, 1, 1], [], []>} : vector<32x32xbf16>, vector<32x48xbf16>, vector<32x48xf32> -> vector<32x48xf32>
    %c0_157 = arith.constant 0 : index
    %c0_158 = arith.constant 0 : index
    %c0_159 = arith.constant 0 : index
    %430 = vector.load %arg15[%c0_157, %c0_158, %c0_159] : memref<4x48x48xf32, #tpu.memory_space<vmem>>, vector<1x48x48xf32>
    %431 = vector.shape_cast %430 : vector<1x48x48xf32> to vector<48x48xf32>
    %432 = arith.truncf %423 : vector<32x48xf32> to vector<32x48xbf16>
    %433 = arith.truncf %431 : vector<48x48xf32> to vector<48x48xbf16>
    %cst_160 = arith.constant dense<0.000000e+00> : vector<32x48xf32>
    %434 = tpu.matmul %432, %433, %cst_160 {dimension_numbers = #tpu.dot_dimension_numbers<[1], [0], [0], [1], [0, 0, 1, 1], [], []>} : vector<32x48xbf16>, vector<48x48xbf16>, vector<32x48xf32> -> vector<32x48xf32>
    %435 = arith.addf %429, %434 : vector<32x48xf32>
    %c0_161 = arith.constant 0 : index
    %c0_162 = arith.constant 0 : index
    %c0_163 = arith.constant 0 : index
    %436 = vector.load %arg16[%c0_161, %c0_162, %c0_163] : memref<4x1x48xf32, #tpu.memory_space<vmem>>, vector<1x1x48xf32>
    %437 = vector.shape_cast %436 : vector<1x1x48xf32> to vector<1x48xf32>
    %438 = vector.broadcast %437 : vector<1x48xf32> to vector<32x48xf32>
    %439 = arith.addf %435, %438 : vector<32x48xf32>
    %c1 = arith.constant 1 : index
    %c0_164 = arith.constant 0 : index
    %c0_165 = arith.constant 0 : index
    %440 = vector.load %arg14[%c1, %c0_164, %c0_165] : memref<4x32x48xf32, #tpu.memory_space<vmem>>, vector<1x32x48xf32>
    %441 = vector.shape_cast %440 : vector<1x32x48xf32> to vector<32x48xf32>
    %442 = arith.truncf %420 : vector<32x32xf32> to vector<32x32xbf16>
    %443 = arith.truncf %441 : vector<32x48xf32> to vector<32x48xbf16>
    %cst_166 = arith.constant dense<0.000000e+00> : vector<32x48xf32>
    %444 = tpu.matmul %442, %443, %cst_166 {dimension_numbers = #tpu.dot_dimension_numbers<[1], [0], [0], [1], [0, 0, 1, 1], [], []>} : vector<32x32xbf16>, vector<32x48xbf16>, vector<32x48xf32> -> vector<32x48xf32>
    %c1_167 = arith.constant 1 : index
    %c0_168 = arith.constant 0 : index
    %c0_169 = arith.constant 0 : index
    %445 = vector.load %arg15[%c1_167, %c0_168, %c0_169] : memref<4x48x48xf32, #tpu.memory_space<vmem>>, vector<1x48x48xf32>
    %446 = vector.shape_cast %445 : vector<1x48x48xf32> to vector<48x48xf32>
    %447 = arith.truncf %423 : vector<32x48xf32> to vector<32x48xbf16>
    %448 = arith.truncf %446 : vector<48x48xf32> to vector<48x48xbf16>
    %cst_170 = arith.constant dense<0.000000e+00> : vector<32x48xf32>
    %449 = tpu.matmul %447, %448, %cst_170 {dimension_numbers = #tpu.dot_dimension_numbers<[1], [0], [0], [1], [0, 0, 1, 1], [], []>} : vector<32x48xbf16>, vector<48x48xbf16>, vector<32x48xf32> -> vector<32x48xf32>
    %450 = arith.addf %444, %449 : vector<32x48xf32>
    %c1_171 = arith.constant 1 : index
    %c0_172 = arith.constant 0 : index
    %c0_173 = arith.constant 0 : index
    %451 = vector.load %arg16[%c1_171, %c0_172, %c0_173] : memref<4x1x48xf32, #tpu.memory_space<vmem>>, vector<1x1x48xf32>
    %452 = vector.shape_cast %451 : vector<1x1x48xf32> to vector<1x48xf32>
    %453 = vector.broadcast %452 : vector<1x48xf32> to vector<32x48xf32>
    %454 = arith.addf %450, %453 : vector<32x48xf32>
    %c2 = arith.constant 2 : index
    %c0_174 = arith.constant 0 : index
    %c0_175 = arith.constant 0 : index
    %455 = vector.load %arg14[%c2, %c0_174, %c0_175] : memref<4x32x48xf32, #tpu.memory_space<vmem>>, vector<1x32x48xf32>
    %456 = vector.shape_cast %455 : vector<1x32x48xf32> to vector<32x48xf32>
    %457 = arith.truncf %420 : vector<32x32xf32> to vector<32x32xbf16>
    %458 = arith.truncf %456 : vector<32x48xf32> to vector<32x48xbf16>
    %cst_176 = arith.constant dense<0.000000e+00> : vector<32x48xf32>
    %459 = tpu.matmul %457, %458, %cst_176 {dimension_numbers = #tpu.dot_dimension_numbers<[1], [0], [0], [1], [0, 0, 1, 1], [], []>} : vector<32x32xbf16>, vector<32x48xbf16>, vector<32x48xf32> -> vector<32x48xf32>
    %c2_177 = arith.constant 2 : index
    %c0_178 = arith.constant 0 : index
    %c0_179 = arith.constant 0 : index
    %460 = vector.load %arg15[%c2_177, %c0_178, %c0_179] : memref<4x48x48xf32, #tpu.memory_space<vmem>>, vector<1x48x48xf32>
    %461 = vector.shape_cast %460 : vector<1x48x48xf32> to vector<48x48xf32>
    %462 = arith.truncf %423 : vector<32x48xf32> to vector<32x48xbf16>
    %463 = arith.truncf %461 : vector<48x48xf32> to vector<48x48xbf16>
    %cst_180 = arith.constant dense<0.000000e+00> : vector<32x48xf32>
    %464 = tpu.matmul %462, %463, %cst_180 {dimension_numbers = #tpu.dot_dimension_numbers<[1], [0], [0], [1], [0, 0, 1, 1], [], []>} : vector<32x48xbf16>, vector<48x48xbf16>, vector<32x48xf32> -> vector<32x48xf32>
    %465 = arith.addf %459, %464 : vector<32x48xf32>
    %c2_181 = arith.constant 2 : index
    %c0_182 = arith.constant 0 : index
    %c0_183 = arith.constant 0 : index
    %466 = vector.load %arg16[%c2_181, %c0_182, %c0_183] : memref<4x1x48xf32, #tpu.memory_space<vmem>>, vector<1x1x48xf32>
    %467 = vector.shape_cast %466 : vector<1x1x48xf32> to vector<1x48xf32>
    %468 = vector.broadcast %467 : vector<1x48xf32> to vector<32x48xf32>
    %469 = arith.addf %465, %468 : vector<32x48xf32>
    %c3 = arith.constant 3 : index
    %c0_184 = arith.constant 0 : index
    %c0_185 = arith.constant 0 : index
    %470 = vector.load %arg14[%c3, %c0_184, %c0_185] : memref<4x32x48xf32, #tpu.memory_space<vmem>>, vector<1x32x48xf32>
    %471 = vector.shape_cast %470 : vector<1x32x48xf32> to vector<32x48xf32>
    %472 = arith.truncf %420 : vector<32x32xf32> to vector<32x32xbf16>
    %473 = arith.truncf %471 : vector<32x48xf32> to vector<32x48xbf16>
    %cst_186 = arith.constant dense<0.000000e+00> : vector<32x48xf32>
    %474 = tpu.matmul %472, %473, %cst_186 {dimension_numbers = #tpu.dot_dimension_numbers<[1], [0], [0], [1], [0, 0, 1, 1], [], []>} : vector<32x32xbf16>, vector<32x48xbf16>, vector<32x48xf32> -> vector<32x48xf32>
    %c3_187 = arith.constant 3 : index
    %c0_188 = arith.constant 0 : index
    %c0_189 = arith.constant 0 : index
    %475 = vector.load %arg15[%c3_187, %c0_188, %c0_189] : memref<4x48x48xf32, #tpu.memory_space<vmem>>, vector<1x48x48xf32>
    %476 = vector.shape_cast %475 : vector<1x48x48xf32> to vector<48x48xf32>
    %477 = arith.truncf %423 : vector<32x48xf32> to vector<32x48xbf16>
    %478 = arith.truncf %476 : vector<48x48xf32> to vector<48x48xbf16>
    %cst_190 = arith.constant dense<0.000000e+00> : vector<32x48xf32>
    %479 = tpu.matmul %477, %478, %cst_190 {dimension_numbers = #tpu.dot_dimension_numbers<[1], [0], [0], [1], [0, 0, 1, 1], [], []>} : vector<32x48xbf16>, vector<48x48xbf16>, vector<32x48xf32> -> vector<32x48xf32>
    %480 = arith.addf %474, %479 : vector<32x48xf32>
    %c3_191 = arith.constant 3 : index
    %c0_192 = arith.constant 0 : index
    %c0_193 = arith.constant 0 : index
    %481 = vector.load %arg16[%c3_191, %c0_192, %c0_193] : memref<4x1x48xf32, #tpu.memory_space<vmem>>, vector<1x1x48xf32>
    %482 = vector.shape_cast %481 : vector<1x1x48xf32> to vector<1x48xf32>
    %483 = vector.broadcast %482 : vector<1x48xf32> to vector<32x48xf32>
    %484 = arith.addf %480, %483 : vector<32x48xf32>
    %485 = arith.negf %439 : vector<32x48xf32>
    %486 = math.exp %485 : vector<32x48xf32>
    %cst_194 = arith.constant 1.000000e+00 : f32
    %487 = vector.broadcast %cst_194 : f32 to vector<32x48xf32>
    %488 = arith.addf %487, %486 : vector<32x48xf32>
    %489 = arith.divf %487, %488 : vector<32x48xf32>
    %490 = arith.negf %454 : vector<32x48xf32>
    %491 = math.exp %490 : vector<32x48xf32>
    %cst_195 = arith.constant 1.000000e+00 : f32
    %492 = vector.broadcast %cst_195 : f32 to vector<32x48xf32>
    %493 = arith.addf %492, %491 : vector<32x48xf32>
    %494 = arith.divf %492, %493 : vector<32x48xf32>
    %495 = math.tanh %469 : vector<32x48xf32>
    %496 = arith.negf %484 : vector<32x48xf32>
    %497 = math.exp %496 : vector<32x48xf32>
    %cst_196 = arith.constant 1.000000e+00 : f32
    %498 = vector.broadcast %cst_196 : f32 to vector<32x48xf32>
    %499 = arith.addf %498, %497 : vector<32x48xf32>
    %500 = arith.divf %498, %499 : vector<32x48xf32>
    %501 = arith.mulf %494, %424 : vector<32x48xf32>
    %502 = arith.mulf %489, %495 : vector<32x48xf32>
    %503 = arith.addf %501, %502 : vector<32x48xf32>
    %504 = math.tanh %503 : vector<32x48xf32>
    %505 = arith.mulf %500, %504 : vector<32x48xf32>
    %c0_197 = arith.constant 0 : index
    %c0_198 = arith.constant 0 : index
    %c0_199 = arith.constant 0 : index
    %506 = vector.load %arg14[%c0_197, %c0_198, %c0_199] : memref<4x32x48xf32, #tpu.memory_space<vmem>>, vector<1x32x48xf32>
    %507 = vector.shape_cast %506 : vector<1x32x48xf32> to vector<32x48xf32>
    %508 = arith.truncf %421 : vector<32x32xf32> to vector<32x32xbf16>
    %509 = arith.truncf %507 : vector<32x48xf32> to vector<32x48xbf16>
    %cst_200 = arith.constant dense<0.000000e+00> : vector<32x48xf32>
    %510 = tpu.matmul %508, %509, %cst_200 {dimension_numbers = #tpu.dot_dimension_numbers<[1], [0], [0], [1], [0, 0, 1, 1], [], []>} : vector<32x32xbf16>, vector<32x48xbf16>, vector<32x48xf32> -> vector<32x48xf32>
    %c0_201 = arith.constant 0 : index
    %c0_202 = arith.constant 0 : index
    %c0_203 = arith.constant 0 : index
    %511 = vector.load %arg15[%c0_201, %c0_202, %c0_203] : memref<4x48x48xf32, #tpu.memory_space<vmem>>, vector<1x48x48xf32>
    %512 = vector.shape_cast %511 : vector<1x48x48xf32> to vector<48x48xf32>
    %513 = arith.truncf %505 : vector<32x48xf32> to vector<32x48xbf16>
    %514 = arith.truncf %512 : vector<48x48xf32> to vector<48x48xbf16>
    %cst_204 = arith.constant dense<0.000000e+00> : vector<32x48xf32>
    %515 = tpu.matmul %513, %514, %cst_204 {dimension_numbers = #tpu.dot_dimension_numbers<[1], [0], [0], [1], [0, 0, 1, 1], [], []>} : vector<32x48xbf16>, vector<48x48xbf16>, vector<32x48xf32> -> vector<32x48xf32>
    %516 = arith.addf %510, %515 : vector<32x48xf32>
    %c0_205 = arith.constant 0 : index
    %c0_206 = arith.constant 0 : index
    %c0_207 = arith.constant 0 : index
    %517 = vector.load %arg16[%c0_205, %c0_206, %c0_207] : memref<4x1x48xf32, #tpu.memory_space<vmem>>, vector<1x1x48xf32>
    %518 = vector.shape_cast %517 : vector<1x1x48xf32> to vector<1x48xf32>
    %519 = vector.broadcast %518 : vector<1x48xf32> to vector<32x48xf32>
    %520 = arith.addf %516, %519 : vector<32x48xf32>
    %c1_208 = arith.constant 1 : index
    %c0_209 = arith.constant 0 : index
    %c0_210 = arith.constant 0 : index
    %521 = vector.load %arg14[%c1_208, %c0_209, %c0_210] : memref<4x32x48xf32, #tpu.memory_space<vmem>>, vector<1x32x48xf32>
    %522 = vector.shape_cast %521 : vector<1x32x48xf32> to vector<32x48xf32>
    %523 = arith.truncf %421 : vector<32x32xf32> to vector<32x32xbf16>
    %524 = arith.truncf %522 : vector<32x48xf32> to vector<32x48xbf16>
    %cst_211 = arith.constant dense<0.000000e+00> : vector<32x48xf32>
    %525 = tpu.matmul %523, %524, %cst_211 {dimension_numbers = #tpu.dot_dimension_numbers<[1], [0], [0], [1], [0, 0, 1, 1], [], []>} : vector<32x32xbf16>, vector<32x48xbf16>, vector<32x48xf32> -> vector<32x48xf32>
    %c1_212 = arith.constant 1 : index
    %c0_213 = arith.constant 0 : index
    %c0_214 = arith.constant 0 : index
    %526 = vector.load %arg15[%c1_212, %c0_213, %c0_214] : memref<4x48x48xf32, #tpu.memory_space<vmem>>, vector<1x48x48xf32>
    %527 = vector.shape_cast %526 : vector<1x48x48xf32> to vector<48x48xf32>
    %528 = arith.truncf %505 : vector<32x48xf32> to vector<32x48xbf16>
    %529 = arith.truncf %527 : vector<48x48xf32> to vector<48x48xbf16>
    %cst_215 = arith.constant dense<0.000000e+00> : vector<32x48xf32>
    %530 = tpu.matmul %528, %529, %cst_215 {dimension_numbers = #tpu.dot_dimension_numbers<[1], [0], [0], [1], [0, 0, 1, 1], [], []>} : vector<32x48xbf16>, vector<48x48xbf16>, vector<32x48xf32> -> vector<32x48xf32>
    %531 = arith.addf %525, %530 : vector<32x48xf32>
    %c1_216 = arith.constant 1 : index
    %c0_217 = arith.constant 0 : index
    %c0_218 = arith.constant 0 : index
    %532 = vector.load %arg16[%c1_216, %c0_217, %c0_218] : memref<4x1x48xf32, #tpu.memory_space<vmem>>, vector<1x1x48xf32>
    %533 = vector.shape_cast %532 : vector<1x1x48xf32> to vector<1x48xf32>
    %534 = vector.broadcast %533 : vector<1x48xf32> to vector<32x48xf32>
    %535 = arith.addf %531, %534 : vector<32x48xf32>
    %c2_219 = arith.constant 2 : index
    %c0_220 = arith.constant 0 : index
    %c0_221 = arith.constant 0 : index
    %536 = vector.load %arg14[%c2_219, %c0_220, %c0_221] : memref<4x32x48xf32, #tpu.memory_space<vmem>>, vector<1x32x48xf32>
    %537 = vector.shape_cast %536 : vector<1x32x48xf32> to vector<32x48xf32>
    %538 = arith.truncf %421 : vector<32x32xf32> to vector<32x32xbf16>
    %539 = arith.truncf %537 : vector<32x48xf32> to vector<32x48xbf16>
    %cst_222 = arith.constant dense<0.000000e+00> : vector<32x48xf32>
    %540 = tpu.matmul %538, %539, %cst_222 {dimension_numbers = #tpu.dot_dimension_numbers<[1], [0], [0], [1], [0, 0, 1, 1], [], []>} : vector<32x32xbf16>, vector<32x48xbf16>, vector<32x48xf32> -> vector<32x48xf32>
    %c2_223 = arith.constant 2 : index
    %c0_224 = arith.constant 0 : index
    %c0_225 = arith.constant 0 : index
    %541 = vector.load %arg15[%c2_223, %c0_224, %c0_225] : memref<4x48x48xf32, #tpu.memory_space<vmem>>, vector<1x48x48xf32>
    %542 = vector.shape_cast %541 : vector<1x48x48xf32> to vector<48x48xf32>
    %543 = arith.truncf %505 : vector<32x48xf32> to vector<32x48xbf16>
    %544 = arith.truncf %542 : vector<48x48xf32> to vector<48x48xbf16>
    %cst_226 = arith.constant dense<0.000000e+00> : vector<32x48xf32>
    %545 = tpu.matmul %543, %544, %cst_226 {dimension_numbers = #tpu.dot_dimension_numbers<[1], [0], [0], [1], [0, 0, 1, 1], [], []>} : vector<32x48xbf16>, vector<48x48xbf16>, vector<32x48xf32> -> vector<32x48xf32>
    %546 = arith.addf %540, %545 : vector<32x48xf32>
    %c2_227 = arith.constant 2 : index
    %c0_228 = arith.constant 0 : index
    %c0_229 = arith.constant 0 : index
    %547 = vector.load %arg16[%c2_227, %c0_228, %c0_229] : memref<4x1x48xf32, #tpu.memory_space<vmem>>, vector<1x1x48xf32>
    %548 = vector.shape_cast %547 : vector<1x1x48xf32> to vector<1x48xf32>
    %549 = vector.broadcast %548 : vector<1x48xf32> to vector<32x48xf32>
    %550 = arith.addf %546, %549 : vector<32x48xf32>
    %c3_230 = arith.constant 3 : index
    %c0_231 = arith.constant 0 : index
    %c0_232 = arith.constant 0 : index
    %551 = vector.load %arg14[%c3_230, %c0_231, %c0_232] : memref<4x32x48xf32, #tpu.memory_space<vmem>>, vector<1x32x48xf32>
    %552 = vector.shape_cast %551 : vector<1x32x48xf32> to vector<32x48xf32>
    %553 = arith.truncf %421 : vector<32x32xf32> to vector<32x32xbf16>
    %554 = arith.truncf %552 : vector<32x48xf32> to vector<32x48xbf16>
    %cst_233 = arith.constant dense<0.000000e+00> : vector<32x48xf32>
    %555 = tpu.matmul %553, %554, %cst_233 {dimension_numbers = #tpu.dot_dimension_numbers<[1], [0], [0], [1], [0, 0, 1, 1], [], []>} : vector<32x32xbf16>, vector<32x48xbf16>, vector<32x48xf32> -> vector<32x48xf32>
    %c3_234 = arith.constant 3 : index
    %c0_235 = arith.constant 0 : index
    %c0_236 = arith.constant 0 : index
    %556 = vector.load %arg15[%c3_234, %c0_235, %c0_236] : memref<4x48x48xf32, #tpu.memory_space<vmem>>, vector<1x48x48xf32>
    %557 = vector.shape_cast %556 : vector<1x48x48xf32> to vector<48x48xf32>
    %558 = arith.truncf %505 : vector<32x48xf32> to vector<32x48xbf16>
    %559 = arith.truncf %557 : vector<48x48xf32> to vector<48x48xbf16>
    %cst_237 = arith.constant dense<0.000000e+00> : vector<32x48xf32>
    %560 = tpu.matmul %558, %559, %cst_237 {dimension_numbers = #tpu.dot_dimension_numbers<[1], [0], [0], [1], [0, 0, 1, 1], [], []>} : vector<32x48xbf16>, vector<48x48xbf16>, vector<32x48xf32> -> vector<32x48xf32>
    %561 = arith.addf %555, %560 : vector<32x48xf32>
    %c3_238 = arith.constant 3 : index
    %c0_239 = arith.constant 0 : index
    %c0_240 = arith.constant 0 : index
    %562 = vector.load %arg16[%c3_238, %c0_239, %c0_240] : memref<4x1x48xf32, #tpu.memory_space<vmem>>, vector<1x1x48xf32>
    %563 = vector.shape_cast %562 : vector<1x1x48xf32> to vector<1x48xf32>
    %564 = vector.broadcast %563 : vector<1x48xf32> to vector<32x48xf32>
    %565 = arith.addf %561, %564 : vector<32x48xf32>
    %566 = arith.negf %520 : vector<32x48xf32>
    %567 = math.exp %566 : vector<32x48xf32>
    %cst_241 = arith.constant 1.000000e+00 : f32
    %568 = vector.broadcast %cst_241 : f32 to vector<32x48xf32>
    %569 = arith.addf %568, %567 : vector<32x48xf32>
    %570 = arith.divf %568, %569 : vector<32x48xf32>
    %571 = arith.negf %535 : vector<32x48xf32>
    %572 = math.exp %571 : vector<32x48xf32>
    %cst_242 = arith.constant 1.000000e+00 : f32
    %573 = vector.broadcast %cst_242 : f32 to vector<32x48xf32>
    %574 = arith.addf %573, %572 : vector<32x48xf32>
    %575 = arith.divf %573, %574 : vector<32x48xf32>
    %576 = math.tanh %550 : vector<32x48xf32>
    %577 = arith.negf %565 : vector<32x48xf32>
    %578 = math.exp %577 : vector<32x48xf32>
    %cst_243 = arith.constant 1.000000e+00 : f32
    %579 = vector.broadcast %cst_243 : f32 to vector<32x48xf32>
    %580 = arith.addf %579, %578 : vector<32x48xf32>
    %581 = arith.divf %579, %580 : vector<32x48xf32>
    %582 = arith.mulf %575, %503 : vector<32x48xf32>
    %583 = arith.mulf %570, %576 : vector<32x48xf32>
    %584 = arith.addf %582, %583 : vector<32x48xf32>
    %585 = math.tanh %584 : vector<32x48xf32>
    %586 = arith.mulf %581, %585 : vector<32x48xf32>
    %c0_244 = arith.constant 0 : index
    %c0_245 = arith.constant 0 : index
    %c0_246 = arith.constant 0 : index
    %587 = vector.load %arg14[%c0_244, %c0_245, %c0_246] : memref<4x32x48xf32, #tpu.memory_space<vmem>>, vector<1x32x48xf32>
    %588 = vector.shape_cast %587 : vector<1x32x48xf32> to vector<32x48xf32>
    %589 = arith.truncf %422 : vector<32x32xf32> to vector<32x32xbf16>
    %590 = arith.truncf %588 : vector<32x48xf32> to vector<32x48xbf16>
    %cst_247 = arith.constant dense<0.000000e+00> : vector<32x48xf32>
    %591 = tpu.matmul %589, %590, %cst_247 {dimension_numbers = #tpu.dot_dimension_numbers<[1], [0], [0], [1], [0, 0, 1, 1], [], []>} : vector<32x32xbf16>, vector<32x48xbf16>, vector<32x48xf32> -> vector<32x48xf32>
    %c0_248 = arith.constant 0 : index
    %c0_249 = arith.constant 0 : index
    %c0_250 = arith.constant 0 : index
    %592 = vector.load %arg15[%c0_248, %c0_249, %c0_250] : memref<4x48x48xf32, #tpu.memory_space<vmem>>, vector<1x48x48xf32>
    %593 = vector.shape_cast %592 : vector<1x48x48xf32> to vector<48x48xf32>
    %594 = arith.truncf %586 : vector<32x48xf32> to vector<32x48xbf16>
    %595 = arith.truncf %593 : vector<48x48xf32> to vector<48x48xbf16>
    %cst_251 = arith.constant dense<0.000000e+00> : vector<32x48xf32>
    %596 = tpu.matmul %594, %595, %cst_251 {dimension_numbers = #tpu.dot_dimension_numbers<[1], [0], [0], [1], [0, 0, 1, 1], [], []>} : vector<32x48xbf16>, vector<48x48xbf16>, vector<32x48xf32> -> vector<32x48xf32>
    %597 = arith.addf %591, %596 : vector<32x48xf32>
    %c0_252 = arith.constant 0 : index
    %c0_253 = arith.constant 0 : index
    %c0_254 = arith.constant 0 : index
    %598 = vector.load %arg16[%c0_252, %c0_253, %c0_254] : memref<4x1x48xf32, #tpu.memory_space<vmem>>, vector<1x1x48xf32>
    %599 = vector.shape_cast %598 : vector<1x1x48xf32> to vector<1x48xf32>
    %600 = vector.broadcast %599 : vector<1x48xf32> to vector<32x48xf32>
    %601 = arith.addf %597, %600 : vector<32x48xf32>
    %c1_255 = arith.constant 1 : index
    %c0_256 = arith.constant 0 : index
    %c0_257 = arith.constant 0 : index
    %602 = vector.load %arg14[%c1_255, %c0_256, %c0_257] : memref<4x32x48xf32, #tpu.memory_space<vmem>>, vector<1x32x48xf32>
    %603 = vector.shape_cast %602 : vector<1x32x48xf32> to vector<32x48xf32>
    %604 = arith.truncf %422 : vector<32x32xf32> to vector<32x32xbf16>
    %605 = arith.truncf %603 : vector<32x48xf32> to vector<32x48xbf16>
    %cst_258 = arith.constant dense<0.000000e+00> : vector<32x48xf32>
    %606 = tpu.matmul %604, %605, %cst_258 {dimension_numbers = #tpu.dot_dimension_numbers<[1], [0], [0], [1], [0, 0, 1, 1], [], []>} : vector<32x32xbf16>, vector<32x48xbf16>, vector<32x48xf32> -> vector<32x48xf32>
    %c1_259 = arith.constant 1 : index
    %c0_260 = arith.constant 0 : index
    %c0_261 = arith.constant 0 : index
    %607 = vector.load %arg15[%c1_259, %c0_260, %c0_261] : memref<4x48x48xf32, #tpu.memory_space<vmem>>, vector<1x48x48xf32>
    %608 = vector.shape_cast %607 : vector<1x48x48xf32> to vector<48x48xf32>
    %609 = arith.truncf %586 : vector<32x48xf32> to vector<32x48xbf16>
    %610 = arith.truncf %608 : vector<48x48xf32> to vector<48x48xbf16>
    %cst_262 = arith.constant dense<0.000000e+00> : vector<32x48xf32>
    %611 = tpu.matmul %609, %610, %cst_262 {dimension_numbers = #tpu.dot_dimension_numbers<[1], [0], [0], [1], [0, 0, 1, 1], [], []>} : vector<32x48xbf16>, vector<48x48xbf16>, vector<32x48xf32> -> vector<32x48xf32>
    %612 = arith.addf %606, %611 : vector<32x48xf32>
    %c1_263 = arith.constant 1 : index
    %c0_264 = arith.constant 0 : index
    %c0_265 = arith.constant 0 : index
    %613 = vector.load %arg16[%c1_263, %c0_264, %c0_265] : memref<4x1x48xf32, #tpu.memory_space<vmem>>, vector<1x1x48xf32>
    %614 = vector.shape_cast %613 : vector<1x1x48xf32> to vector<1x48xf32>
    %615 = vector.broadcast %614 : vector<1x48xf32> to vector<32x48xf32>
    %616 = arith.addf %612, %615 : vector<32x48xf32>
    %c2_266 = arith.constant 2 : index
    %c0_267 = arith.constant 0 : index
    %c0_268 = arith.constant 0 : index
    %617 = vector.load %arg14[%c2_266, %c0_267, %c0_268] : memref<4x32x48xf32, #tpu.memory_space<vmem>>, vector<1x32x48xf32>
    %618 = vector.shape_cast %617 : vector<1x32x48xf32> to vector<32x48xf32>
    %619 = arith.truncf %422 : vector<32x32xf32> to vector<32x32xbf16>
    %620 = arith.truncf %618 : vector<32x48xf32> to vector<32x48xbf16>
    %cst_269 = arith.constant dense<0.000000e+00> : vector<32x48xf32>
    %621 = tpu.matmul %619, %620, %cst_269 {dimension_numbers = #tpu.dot_dimension_numbers<[1], [0], [0], [1], [0, 0, 1, 1], [], []>} : vector<32x32xbf16>, vector<32x48xbf16>, vector<32x48xf32> -> vector<32x48xf32>
    %c2_270 = arith.constant 2 : index
    %c0_271 = arith.constant 0 : index
    %c0_272 = arith.constant 0 : index
    %622 = vector.load %arg15[%c2_270, %c0_271, %c0_272] : memref<4x48x48xf32, #tpu.memory_space<vmem>>, vector<1x48x48xf32>
    %623 = vector.shape_cast %622 : vector<1x48x48xf32> to vector<48x48xf32>
    %624 = arith.truncf %586 : vector<32x48xf32> to vector<32x48xbf16>
    %625 = arith.truncf %623 : vector<48x48xf32> to vector<48x48xbf16>
    %cst_273 = arith.constant dense<0.000000e+00> : vector<32x48xf32>
    %626 = tpu.matmul %624, %625, %cst_273 {dimension_numbers = #tpu.dot_dimension_numbers<[1], [0], [0], [1], [0, 0, 1, 1], [], []>} : vector<32x48xbf16>, vector<48x48xbf16>, vector<32x48xf32> -> vector<32x48xf32>
    %627 = arith.addf %621, %626 : vector<32x48xf32>
    %c2_274 = arith.constant 2 : index
    %c0_275 = arith.constant 0 : index
    %c0_276 = arith.constant 0 : index
    %628 = vector.load %arg16[%c2_274, %c0_275, %c0_276] : memref<4x1x48xf32, #tpu.memory_space<vmem>>, vector<1x1x48xf32>
    %629 = vector.shape_cast %628 : vector<1x1x48xf32> to vector<1x48xf32>
    %630 = vector.broadcast %629 : vector<1x48xf32> to vector<32x48xf32>
    %631 = arith.addf %627, %630 : vector<32x48xf32>
    %c3_277 = arith.constant 3 : index
    %c0_278 = arith.constant 0 : index
    %c0_279 = arith.constant 0 : index
    %632 = vector.load %arg14[%c3_277, %c0_278, %c0_279] : memref<4x32x48xf32, #tpu.memory_space<vmem>>, vector<1x32x48xf32>
    %633 = vector.shape_cast %632 : vector<1x32x48xf32> to vector<32x48xf32>
    %634 = arith.truncf %422 : vector<32x32xf32> to vector<32x32xbf16>
    %635 = arith.truncf %633 : vector<32x48xf32> to vector<32x48xbf16>
    %cst_280 = arith.constant dense<0.000000e+00> : vector<32x48xf32>
    %636 = tpu.matmul %634, %635, %cst_280 {dimension_numbers = #tpu.dot_dimension_numbers<[1], [0], [0], [1], [0, 0, 1, 1], [], []>} : vector<32x32xbf16>, vector<32x48xbf16>, vector<32x48xf32> -> vector<32x48xf32>
    %c3_281 = arith.constant 3 : index
    %c0_282 = arith.constant 0 : index
    %c0_283 = arith.constant 0 : index
    %637 = vector.load %arg15[%c3_281, %c0_282, %c0_283] : memref<4x48x48xf32, #tpu.memory_space<vmem>>, vector<1x48x48xf32>
    %638 = vector.shape_cast %637 : vector<1x48x48xf32> to vector<48x48xf32>
    %639 = arith.truncf %586 : vector<32x48xf32> to vector<32x48xbf16>
    %640 = arith.truncf %638 : vector<48x48xf32> to vector<48x48xbf16>
    %cst_284 = arith.constant dense<0.000000e+00> : vector<32x48xf32>
    %641 = tpu.matmul %639, %640, %cst_284 {dimension_numbers = #tpu.dot_dimension_numbers<[1], [0], [0], [1], [0, 0, 1, 1], [], []>} : vector<32x48xbf16>, vector<48x48xbf16>, vector<32x48xf32> -> vector<32x48xf32>
    %642 = arith.addf %636, %641 : vector<32x48xf32>
    %c3_285 = arith.constant 3 : index
    %c0_286 = arith.constant 0 : index
    %c0_287 = arith.constant 0 : index
    %643 = vector.load %arg16[%c3_285, %c0_286, %c0_287] : memref<4x1x48xf32, #tpu.memory_space<vmem>>, vector<1x1x48xf32>
    %644 = vector.shape_cast %643 : vector<1x1x48xf32> to vector<1x48xf32>
    %645 = vector.broadcast %644 : vector<1x48xf32> to vector<32x48xf32>
    %646 = arith.addf %642, %645 : vector<32x48xf32>
    %647 = arith.negf %601 : vector<32x48xf32>
    %648 = math.exp %647 : vector<32x48xf32>
    %cst_288 = arith.constant 1.000000e+00 : f32
    %649 = vector.broadcast %cst_288 : f32 to vector<32x48xf32>
    %650 = arith.addf %649, %648 : vector<32x48xf32>
    %651 = arith.divf %649, %650 : vector<32x48xf32>
    %652 = arith.negf %616 : vector<32x48xf32>
    %653 = math.exp %652 : vector<32x48xf32>
    %cst_289 = arith.constant 1.000000e+00 : f32
    %654 = vector.broadcast %cst_289 : f32 to vector<32x48xf32>
    %655 = arith.addf %654, %653 : vector<32x48xf32>
    %656 = arith.divf %654, %655 : vector<32x48xf32>
    %657 = math.tanh %631 : vector<32x48xf32>
    %658 = arith.negf %646 : vector<32x48xf32>
    %659 = math.exp %658 : vector<32x48xf32>
    %cst_290 = arith.constant 1.000000e+00 : f32
    %660 = vector.broadcast %cst_290 : f32 to vector<32x48xf32>
    %661 = arith.addf %660, %659 : vector<32x48xf32>
    %662 = arith.divf %660, %661 : vector<32x48xf32>
    %663 = arith.mulf %656, %584 : vector<32x48xf32>
    %664 = arith.mulf %651, %657 : vector<32x48xf32>
    %665 = arith.addf %663, %664 : vector<32x48xf32>
    %666 = math.tanh %665 : vector<32x48xf32>
    %667 = arith.mulf %662, %666 : vector<32x48xf32>
    %cst_291 = arith.constant 0.000000e+00 : f32
    %668 = vector.broadcast %cst_291 : f32 to vector<32x48xf32>
    %cst_292 = arith.constant 0.000000e+00 : f32
    %669 = vector.broadcast %cst_292 : f32 to vector<32x48xf32>
    %c0_293 = arith.constant 0 : index
    %c0_294 = arith.constant 0 : index
    %c0_295 = arith.constant 0 : index
    %670 = vector.load %arg17[%c0_293, %c0_294, %c0_295] : memref<4x32x48xf32, #tpu.memory_space<vmem>>, vector<1x32x48xf32>
    %671 = vector.shape_cast %670 : vector<1x32x48xf32> to vector<32x48xf32>
    %672 = arith.truncf %422 : vector<32x32xf32> to vector<32x32xbf16>
    %673 = arith.truncf %671 : vector<32x48xf32> to vector<32x48xbf16>
    %cst_296 = arith.constant dense<0.000000e+00> : vector<32x48xf32>
    %674 = tpu.matmul %672, %673, %cst_296 {dimension_numbers = #tpu.dot_dimension_numbers<[1], [0], [0], [1], [0, 0, 1, 1], [], []>} : vector<32x32xbf16>, vector<32x48xbf16>, vector<32x48xf32> -> vector<32x48xf32>
    %c0_297 = arith.constant 0 : index
    %c0_298 = arith.constant 0 : index
    %c0_299 = arith.constant 0 : index
    %675 = vector.load %arg18[%c0_297, %c0_298, %c0_299] : memref<4x48x48xf32, #tpu.memory_space<vmem>>, vector<1x48x48xf32>
    %676 = vector.shape_cast %675 : vector<1x48x48xf32> to vector<48x48xf32>
    %677 = arith.truncf %668 : vector<32x48xf32> to vector<32x48xbf16>
    %678 = arith.truncf %676 : vector<48x48xf32> to vector<48x48xbf16>
    %cst_300 = arith.constant dense<0.000000e+00> : vector<32x48xf32>
    %679 = tpu.matmul %677, %678, %cst_300 {dimension_numbers = #tpu.dot_dimension_numbers<[1], [0], [0], [1], [0, 0, 1, 1], [], []>} : vector<32x48xbf16>, vector<48x48xbf16>, vector<32x48xf32> -> vector<32x48xf32>
    %680 = arith.addf %674, %679 : vector<32x48xf32>
    %c0_301 = arith.constant 0 : index
    %c0_302 = arith.constant 0 : index
    %c0_303 = arith.constant 0 : index
    %681 = vector.load %arg19[%c0_301, %c0_302, %c0_303] : memref<4x1x48xf32, #tpu.memory_space<vmem>>, vector<1x1x48xf32>
    %682 = vector.shape_cast %681 : vector<1x1x48xf32> to vector<1x48xf32>
    %683 = vector.broadcast %682 : vector<1x48xf32> to vector<32x48xf32>
    %684 = arith.addf %680, %683 : vector<32x48xf32>
    %c1_304 = arith.constant 1 : index
    %c0_305 = arith.constant 0 : index
    %c0_306 = arith.constant 0 : index
    %685 = vector.load %arg17[%c1_304, %c0_305, %c0_306] : memref<4x32x48xf32, #tpu.memory_space<vmem>>, vector<1x32x48xf32>
    %686 = vector.shape_cast %685 : vector<1x32x48xf32> to vector<32x48xf32>
    %687 = arith.truncf %422 : vector<32x32xf32> to vector<32x32xbf16>
    %688 = arith.truncf %686 : vector<32x48xf32> to vector<32x48xbf16>
    %cst_307 = arith.constant dense<0.000000e+00> : vector<32x48xf32>
    %689 = tpu.matmul %687, %688, %cst_307 {dimension_numbers = #tpu.dot_dimension_numbers<[1], [0], [0], [1], [0, 0, 1, 1], [], []>} : vector<32x32xbf16>, vector<32x48xbf16>, vector<32x48xf32> -> vector<32x48xf32>
    %c1_308 = arith.constant 1 : index
    %c0_309 = arith.constant 0 : index
    %c0_310 = arith.constant 0 : index
    %690 = vector.load %arg18[%c1_308, %c0_309, %c0_310] : memref<4x48x48xf32, #tpu.memory_space<vmem>>, vector<1x48x48xf32>
    %691 = vector.shape_cast %690 : vector<1x48x48xf32> to vector<48x48xf32>
    %692 = arith.truncf %668 : vector<32x48xf32> to vector<32x48xbf16>
    %693 = arith.truncf %691 : vector<48x48xf32> to vector<48x48xbf16>
    %cst_311 = arith.constant dense<0.000000e+00> : vector<32x48xf32>
    %694 = tpu.matmul %692, %693, %cst_311 {dimension_numbers = #tpu.dot_dimension_numbers<[1], [0], [0], [1], [0, 0, 1, 1], [], []>} : vector<32x48xbf16>, vector<48x48xbf16>, vector<32x48xf32> -> vector<32x48xf32>
    %695 = arith.addf %689, %694 : vector<32x48xf32>
    %c1_312 = arith.constant 1 : index
    %c0_313 = arith.constant 0 : index
    %c0_314 = arith.constant 0 : index
    %696 = vector.load %arg19[%c1_312, %c0_313, %c0_314] : memref<4x1x48xf32, #tpu.memory_space<vmem>>, vector<1x1x48xf32>
    %697 = vector.shape_cast %696 : vector<1x1x48xf32> to vector<1x48xf32>
    %698 = vector.broadcast %697 : vector<1x48xf32> to vector<32x48xf32>
    %699 = arith.addf %695, %698 : vector<32x48xf32>
    %c2_315 = arith.constant 2 : index
    %c0_316 = arith.constant 0 : index
    %c0_317 = arith.constant 0 : index
    %700 = vector.load %arg17[%c2_315, %c0_316, %c0_317] : memref<4x32x48xf32, #tpu.memory_space<vmem>>, vector<1x32x48xf32>
    %701 = vector.shape_cast %700 : vector<1x32x48xf32> to vector<32x48xf32>
    %702 = arith.truncf %422 : vector<32x32xf32> to vector<32x32xbf16>
    %703 = arith.truncf %701 : vector<32x48xf32> to vector<32x48xbf16>
    %cst_318 = arith.constant dense<0.000000e+00> : vector<32x48xf32>
    %704 = tpu.matmul %702, %703, %cst_318 {dimension_numbers = #tpu.dot_dimension_numbers<[1], [0], [0], [1], [0, 0, 1, 1], [], []>} : vector<32x32xbf16>, vector<32x48xbf16>, vector<32x48xf32> -> vector<32x48xf32>
    %c2_319 = arith.constant 2 : index
    %c0_320 = arith.constant 0 : index
    %c0_321 = arith.constant 0 : index
    %705 = vector.load %arg18[%c2_319, %c0_320, %c0_321] : memref<4x48x48xf32, #tpu.memory_space<vmem>>, vector<1x48x48xf32>
    %706 = vector.shape_cast %705 : vector<1x48x48xf32> to vector<48x48xf32>
    %707 = arith.truncf %668 : vector<32x48xf32> to vector<32x48xbf16>
    %708 = arith.truncf %706 : vector<48x48xf32> to vector<48x48xbf16>
    %cst_322 = arith.constant dense<0.000000e+00> : vector<32x48xf32>
    %709 = tpu.matmul %707, %708, %cst_322 {dimension_numbers = #tpu.dot_dimension_numbers<[1], [0], [0], [1], [0, 0, 1, 1], [], []>} : vector<32x48xbf16>, vector<48x48xbf16>, vector<32x48xf32> -> vector<32x48xf32>
    %710 = arith.addf %704, %709 : vector<32x48xf32>
    %c2_323 = arith.constant 2 : index
    %c0_324 = arith.constant 0 : index
    %c0_325 = arith.constant 0 : index
    %711 = vector.load %arg19[%c2_323, %c0_324, %c0_325] : memref<4x1x48xf32, #tpu.memory_space<vmem>>, vector<1x1x48xf32>
    %712 = vector.shape_cast %711 : vector<1x1x48xf32> to vector<1x48xf32>
    %713 = vector.broadcast %712 : vector<1x48xf32> to vector<32x48xf32>
    %714 = arith.addf %710, %713 : vector<32x48xf32>
    %c3_326 = arith.constant 3 : index
    %c0_327 = arith.constant 0 : index
    %c0_328 = arith.constant 0 : index
    %715 = vector.load %arg17[%c3_326, %c0_327, %c0_328] : memref<4x32x48xf32, #tpu.memory_space<vmem>>, vector<1x32x48xf32>
    %716 = vector.shape_cast %715 : vector<1x32x48xf32> to vector<32x48xf32>
    %717 = arith.truncf %422 : vector<32x32xf32> to vector<32x32xbf16>
    %718 = arith.truncf %716 : vector<32x48xf32> to vector<32x48xbf16>
    %cst_329 = arith.constant dense<0.000000e+00> : vector<32x48xf32>
    %719 = tpu.matmul %717, %718, %cst_329 {dimension_numbers = #tpu.dot_dimension_numbers<[1], [0], [0], [1], [0, 0, 1, 1], [], []>} : vector<32x32xbf16>, vector<32x48xbf16>, vector<32x48xf32> -> vector<32x48xf32>
    %c3_330 = arith.constant 3 : index
    %c0_331 = arith.constant 0 : index
    %c0_332 = arith.constant 0 : index
    %720 = vector.load %arg18[%c3_330, %c0_331, %c0_332] : memref<4x48x48xf32, #tpu.memory_space<vmem>>, vector<1x48x48xf32>
    %721 = vector.shape_cast %720 : vector<1x48x48xf32> to vector<48x48xf32>
    %722 = arith.truncf %668 : vector<32x48xf32> to vector<32x48xbf16>
    %723 = arith.truncf %721 : vector<48x48xf32> to vector<48x48xbf16>
    %cst_333 = arith.constant dense<0.000000e+00> : vector<32x48xf32>
    %724 = tpu.matmul %722, %723, %cst_333 {dimension_numbers = #tpu.dot_dimension_numbers<[1], [0], [0], [1], [0, 0, 1, 1], [], []>} : vector<32x48xbf16>, vector<48x48xbf16>, vector<32x48xf32> -> vector<32x48xf32>
    %725 = arith.addf %719, %724 : vector<32x48xf32>
    %c3_334 = arith.constant 3 : index
    %c0_335 = arith.constant 0 : index
    %c0_336 = arith.constant 0 : index
    %726 = vector.load %arg19[%c3_334, %c0_335, %c0_336] : memref<4x1x48xf32, #tpu.memory_space<vmem>>, vector<1x1x48xf32>
    %727 = vector.shape_cast %726 : vector<1x1x48xf32> to vector<1x48xf32>
    %728 = vector.broadcast %727 : vector<1x48xf32> to vector<32x48xf32>
    %729 = arith.addf %725, %728 : vector<32x48xf32>
    %730 = arith.negf %684 : vector<32x48xf32>
    %731 = math.exp %730 : vector<32x48xf32>
    %cst_337 = arith.constant 1.000000e+00 : f32
    %732 = vector.broadcast %cst_337 : f32 to vector<32x48xf32>
    %733 = arith.addf %732, %731 : vector<32x48xf32>
    %734 = arith.divf %732, %733 : vector<32x48xf32>
    %735 = arith.negf %699 : vector<32x48xf32>
    %736 = math.exp %735 : vector<32x48xf32>
    %cst_338 = arith.constant 1.000000e+00 : f32
    %737 = vector.broadcast %cst_338 : f32 to vector<32x48xf32>
    %738 = arith.addf %737, %736 : vector<32x48xf32>
    %739 = arith.divf %737, %738 : vector<32x48xf32>
    %740 = math.tanh %714 : vector<32x48xf32>
    %741 = arith.negf %729 : vector<32x48xf32>
    %742 = math.exp %741 : vector<32x48xf32>
    %cst_339 = arith.constant 1.000000e+00 : f32
    %743 = vector.broadcast %cst_339 : f32 to vector<32x48xf32>
    %744 = arith.addf %743, %742 : vector<32x48xf32>
    %745 = arith.divf %743, %744 : vector<32x48xf32>
    %746 = arith.mulf %739, %669 : vector<32x48xf32>
    %747 = arith.mulf %734, %740 : vector<32x48xf32>
    %748 = arith.addf %746, %747 : vector<32x48xf32>
    %749 = math.tanh %748 : vector<32x48xf32>
    %750 = arith.mulf %745, %749 : vector<32x48xf32>
    %c0_340 = arith.constant 0 : index
    %c0_341 = arith.constant 0 : index
    %c0_342 = arith.constant 0 : index
    %751 = vector.load %arg17[%c0_340, %c0_341, %c0_342] : memref<4x32x48xf32, #tpu.memory_space<vmem>>, vector<1x32x48xf32>
    %752 = vector.shape_cast %751 : vector<1x32x48xf32> to vector<32x48xf32>
    %753 = arith.truncf %421 : vector<32x32xf32> to vector<32x32xbf16>
    %754 = arith.truncf %752 : vector<32x48xf32> to vector<32x48xbf16>
    %cst_343 = arith.constant dense<0.000000e+00> : vector<32x48xf32>
    %755 = tpu.matmul %753, %754, %cst_343 {dimension_numbers = #tpu.dot_dimension_numbers<[1], [0], [0], [1], [0, 0, 1, 1], [], []>} : vector<32x32xbf16>, vector<32x48xbf16>, vector<32x48xf32> -> vector<32x48xf32>
    %c0_344 = arith.constant 0 : index
    %c0_345 = arith.constant 0 : index
    %c0_346 = arith.constant 0 : index
    %756 = vector.load %arg18[%c0_344, %c0_345, %c0_346] : memref<4x48x48xf32, #tpu.memory_space<vmem>>, vector<1x48x48xf32>
    %757 = vector.shape_cast %756 : vector<1x48x48xf32> to vector<48x48xf32>
    %758 = arith.truncf %750 : vector<32x48xf32> to vector<32x48xbf16>
    %759 = arith.truncf %757 : vector<48x48xf32> to vector<48x48xbf16>
    %cst_347 = arith.constant dense<0.000000e+00> : vector<32x48xf32>
    %760 = tpu.matmul %758, %759, %cst_347 {dimension_numbers = #tpu.dot_dimension_numbers<[1], [0], [0], [1], [0, 0, 1, 1], [], []>} : vector<32x48xbf16>, vector<48x48xbf16>, vector<32x48xf32> -> vector<32x48xf32>
    %761 = arith.addf %755, %760 : vector<32x48xf32>
    %c0_348 = arith.constant 0 : index
    %c0_349 = arith.constant 0 : index
    %c0_350 = arith.constant 0 : index
    %762 = vector.load %arg19[%c0_348, %c0_349, %c0_350] : memref<4x1x48xf32, #tpu.memory_space<vmem>>, vector<1x1x48xf32>
    %763 = vector.shape_cast %762 : vector<1x1x48xf32> to vector<1x48xf32>
    %764 = vector.broadcast %763 : vector<1x48xf32> to vector<32x48xf32>
    %765 = arith.addf %761, %764 : vector<32x48xf32>
    %c1_351 = arith.constant 1 : index
    %c0_352 = arith.constant 0 : index
    %c0_353 = arith.constant 0 : index
    %766 = vector.load %arg17[%c1_351, %c0_352, %c0_353] : memref<4x32x48xf32, #tpu.memory_space<vmem>>, vector<1x32x48xf32>
    %767 = vector.shape_cast %766 : vector<1x32x48xf32> to vector<32x48xf32>
    %768 = arith.truncf %421 : vector<32x32xf32> to vector<32x32xbf16>
    %769 = arith.truncf %767 : vector<32x48xf32> to vector<32x48xbf16>
    %cst_354 = arith.constant dense<0.000000e+00> : vector<32x48xf32>
    %770 = tpu.matmul %768, %769, %cst_354 {dimension_numbers = #tpu.dot_dimension_numbers<[1], [0], [0], [1], [0, 0, 1, 1], [], []>} : vector<32x32xbf16>, vector<32x48xbf16>, vector<32x48xf32> -> vector<32x48xf32>
    %c1_355 = arith.constant 1 : index
    %c0_356 = arith.constant 0 : index
    %c0_357 = arith.constant 0 : index
    %771 = vector.load %arg18[%c1_355, %c0_356, %c0_357] : memref<4x48x48xf32, #tpu.memory_space<vmem>>, vector<1x48x48xf32>
    %772 = vector.shape_cast %771 : vector<1x48x48xf32> to vector<48x48xf32>
    %773 = arith.truncf %750 : vector<32x48xf32> to vector<32x48xbf16>
    %774 = arith.truncf %772 : vector<48x48xf32> to vector<48x48xbf16>
    %cst_358 = arith.constant dense<0.000000e+00> : vector<32x48xf32>
    %775 = tpu.matmul %773, %774, %cst_358 {dimension_numbers = #tpu.dot_dimension_numbers<[1], [0], [0], [1], [0, 0, 1, 1], [], []>} : vector<32x48xbf16>, vector<48x48xbf16>, vector<32x48xf32> -> vector<32x48xf32>
    %776 = arith.addf %770, %775 : vector<32x48xf32>
    %c1_359 = arith.constant 1 : index
    %c0_360 = arith.constant 0 : index
    %c0_361 = arith.constant 0 : index
    %777 = vector.load %arg19[%c1_359, %c0_360, %c0_361] : memref<4x1x48xf32, #tpu.memory_space<vmem>>, vector<1x1x48xf32>
    %778 = vector.shape_cast %777 : vector<1x1x48xf32> to vector<1x48xf32>
    %779 = vector.broadcast %778 : vector<1x48xf32> to vector<32x48xf32>
    %780 = arith.addf %776, %779 : vector<32x48xf32>
    %c2_362 = arith.constant 2 : index
    %c0_363 = arith.constant 0 : index
    %c0_364 = arith.constant 0 : index
    %781 = vector.load %arg17[%c2_362, %c0_363, %c0_364] : memref<4x32x48xf32, #tpu.memory_space<vmem>>, vector<1x32x48xf32>
    %782 = vector.shape_cast %781 : vector<1x32x48xf32> to vector<32x48xf32>
    %783 = arith.truncf %421 : vector<32x32xf32> to vector<32x32xbf16>
    %784 = arith.truncf %782 : vector<32x48xf32> to vector<32x48xbf16>
    %cst_365 = arith.constant dense<0.000000e+00> : vector<32x48xf32>
    %785 = tpu.matmul %783, %784, %cst_365 {dimension_numbers = #tpu.dot_dimension_numbers<[1], [0], [0], [1], [0, 0, 1, 1], [], []>} : vector<32x32xbf16>, vector<32x48xbf16>, vector<32x48xf32> -> vector<32x48xf32>
    %c2_366 = arith.constant 2 : index
    %c0_367 = arith.constant 0 : index
    %c0_368 = arith.constant 0 : index
    %786 = vector.load %arg18[%c2_366, %c0_367, %c0_368] : memref<4x48x48xf32, #tpu.memory_space<vmem>>, vector<1x48x48xf32>
    %787 = vector.shape_cast %786 : vector<1x48x48xf32> to vector<48x48xf32>
    %788 = arith.truncf %750 : vector<32x48xf32> to vector<32x48xbf16>
    %789 = arith.truncf %787 : vector<48x48xf32> to vector<48x48xbf16>
    %cst_369 = arith.constant dense<0.000000e+00> : vector<32x48xf32>
    %790 = tpu.matmul %788, %789, %cst_369 {dimension_numbers = #tpu.dot_dimension_numbers<[1], [0], [0], [1], [0, 0, 1, 1], [], []>} : vector<32x48xbf16>, vector<48x48xbf16>, vector<32x48xf32> -> vector<32x48xf32>
    %791 = arith.addf %785, %790 : vector<32x48xf32>
    %c2_370 = arith.constant 2 : index
    %c0_371 = arith.constant 0 : index
    %c0_372 = arith.constant 0 : index
    %792 = vector.load %arg19[%c2_370, %c0_371, %c0_372] : memref<4x1x48xf32, #tpu.memory_space<vmem>>, vector<1x1x48xf32>
    %793 = vector.shape_cast %792 : vector<1x1x48xf32> to vector<1x48xf32>
    %794 = vector.broadcast %793 : vector<1x48xf32> to vector<32x48xf32>
    %795 = arith.addf %791, %794 : vector<32x48xf32>
    %c3_373 = arith.constant 3 : index
    %c0_374 = arith.constant 0 : index
    %c0_375 = arith.constant 0 : index
    %796 = vector.load %arg17[%c3_373, %c0_374, %c0_375] : memref<4x32x48xf32, #tpu.memory_space<vmem>>, vector<1x32x48xf32>
    %797 = vector.shape_cast %796 : vector<1x32x48xf32> to vector<32x48xf32>
    %798 = arith.truncf %421 : vector<32x32xf32> to vector<32x32xbf16>
    %799 = arith.truncf %797 : vector<32x48xf32> to vector<32x48xbf16>
    %cst_376 = arith.constant dense<0.000000e+00> : vector<32x48xf32>
    %800 = tpu.matmul %798, %799, %cst_376 {dimension_numbers = #tpu.dot_dimension_numbers<[1], [0], [0], [1], [0, 0, 1, 1], [], []>} : vector<32x32xbf16>, vector<32x48xbf16>, vector<32x48xf32> -> vector<32x48xf32>
    %c3_377 = arith.constant 3 : index
    %c0_378 = arith.constant 0 : index
    %c0_379 = arith.constant 0 : index
    %801 = vector.load %arg18[%c3_377, %c0_378, %c0_379] : memref<4x48x48xf32, #tpu.memory_space<vmem>>, vector<1x48x48xf32>
    %802 = vector.shape_cast %801 : vector<1x48x48xf32> to vector<48x48xf32>
    %803 = arith.truncf %750 : vector<32x48xf32> to vector<32x48xbf16>
    %804 = arith.truncf %802 : vector<48x48xf32> to vector<48x48xbf16>
    %cst_380 = arith.constant dense<0.000000e+00> : vector<32x48xf32>
    %805 = tpu.matmul %803, %804, %cst_380 {dimension_numbers = #tpu.dot_dimension_numbers<[1], [0], [0], [1], [0, 0, 1, 1], [], []>} : vector<32x48xbf16>, vector<48x48xbf16>, vector<32x48xf32> -> vector<32x48xf32>
    %806 = arith.addf %800, %805 : vector<32x48xf32>
    %c3_381 = arith.constant 3 : index
    %c0_382 = arith.constant 0 : index
    %c0_383 = arith.constant 0 : index
    %807 = vector.load %arg19[%c3_381, %c0_382, %c0_383] : memref<4x1x48xf32, #tpu.memory_space<vmem>>, vector<1x1x48xf32>
    %808 = vector.shape_cast %807 : vector<1x1x48xf32> to vector<1x48xf32>
    %809 = vector.broadcast %808 : vector<1x48xf32> to vector<32x48xf32>
    %810 = arith.addf %806, %809 : vector<32x48xf32>
    %811 = arith.negf %765 : vector<32x48xf32>
    %812 = math.exp %811 : vector<32x48xf32>
    %cst_384 = arith.constant 1.000000e+00 : f32
    %813 = vector.broadcast %cst_384 : f32 to vector<32x48xf32>
    %814 = arith.addf %813, %812 : vector<32x48xf32>
    %815 = arith.divf %813, %814 : vector<32x48xf32>
    %816 = arith.negf %780 : vector<32x48xf32>
    %817 = math.exp %816 : vector<32x48xf32>
    %cst_385 = arith.constant 1.000000e+00 : f32
    %818 = vector.broadcast %cst_385 : f32 to vector<32x48xf32>
    %819 = arith.addf %818, %817 : vector<32x48xf32>
    %820 = arith.divf %818, %819 : vector<32x48xf32>
    %821 = math.tanh %795 : vector<32x48xf32>
    %822 = arith.negf %810 : vector<32x48xf32>
    %823 = math.exp %822 : vector<32x48xf32>
    %cst_386 = arith.constant 1.000000e+00 : f32
    %824 = vector.broadcast %cst_386 : f32 to vector<32x48xf32>
    %825 = arith.addf %824, %823 : vector<32x48xf32>
    %826 = arith.divf %824, %825 : vector<32x48xf32>
    %827 = arith.mulf %820, %748 : vector<32x48xf32>
    %828 = arith.mulf %815, %821 : vector<32x48xf32>
    %829 = arith.addf %827, %828 : vector<32x48xf32>
    %830 = math.tanh %829 : vector<32x48xf32>
    %831 = arith.mulf %826, %830 : vector<32x48xf32>
    %c0_387 = arith.constant 0 : index
    %c0_388 = arith.constant 0 : index
    %c0_389 = arith.constant 0 : index
    %832 = vector.load %arg17[%c0_387, %c0_388, %c0_389] : memref<4x32x48xf32, #tpu.memory_space<vmem>>, vector<1x32x48xf32>
    %833 = vector.shape_cast %832 : vector<1x32x48xf32> to vector<32x48xf32>
    %834 = arith.truncf %420 : vector<32x32xf32> to vector<32x32xbf16>
    %835 = arith.truncf %833 : vector<32x48xf32> to vector<32x48xbf16>
    %cst_390 = arith.constant dense<0.000000e+00> : vector<32x48xf32>
    %836 = tpu.matmul %834, %835, %cst_390 {dimension_numbers = #tpu.dot_dimension_numbers<[1], [0], [0], [1], [0, 0, 1, 1], [], []>} : vector<32x32xbf16>, vector<32x48xbf16>, vector<32x48xf32> -> vector<32x48xf32>
    %c0_391 = arith.constant 0 : index
    %c0_392 = arith.constant 0 : index
    %c0_393 = arith.constant 0 : index
    %837 = vector.load %arg18[%c0_391, %c0_392, %c0_393] : memref<4x48x48xf32, #tpu.memory_space<vmem>>, vector<1x48x48xf32>
    %838 = vector.shape_cast %837 : vector<1x48x48xf32> to vector<48x48xf32>
    %839 = arith.truncf %831 : vector<32x48xf32> to vector<32x48xbf16>
    %840 = arith.truncf %838 : vector<48x48xf32> to vector<48x48xbf16>
    %cst_394 = arith.constant dense<0.000000e+00> : vector<32x48xf32>
    %841 = tpu.matmul %839, %840, %cst_394 {dimension_numbers = #tpu.dot_dimension_numbers<[1], [0], [0], [1], [0, 0, 1, 1], [], []>} : vector<32x48xbf16>, vector<48x48xbf16>, vector<32x48xf32> -> vector<32x48xf32>
    %842 = arith.addf %836, %841 : vector<32x48xf32>
    %c0_395 = arith.constant 0 : index
    %c0_396 = arith.constant 0 : index
    %c0_397 = arith.constant 0 : index
    %843 = vector.load %arg19[%c0_395, %c0_396, %c0_397] : memref<4x1x48xf32, #tpu.memory_space<vmem>>, vector<1x1x48xf32>
    %844 = vector.shape_cast %843 : vector<1x1x48xf32> to vector<1x48xf32>
    %845 = vector.broadcast %844 : vector<1x48xf32> to vector<32x48xf32>
    %846 = arith.addf %842, %845 : vector<32x48xf32>
    %c1_398 = arith.constant 1 : index
    %c0_399 = arith.constant 0 : index
    %c0_400 = arith.constant 0 : index
    %847 = vector.load %arg17[%c1_398, %c0_399, %c0_400] : memref<4x32x48xf32, #tpu.memory_space<vmem>>, vector<1x32x48xf32>
    %848 = vector.shape_cast %847 : vector<1x32x48xf32> to vector<32x48xf32>
    %849 = arith.truncf %420 : vector<32x32xf32> to vector<32x32xbf16>
    %850 = arith.truncf %848 : vector<32x48xf32> to vector<32x48xbf16>
    %cst_401 = arith.constant dense<0.000000e+00> : vector<32x48xf32>
    %851 = tpu.matmul %849, %850, %cst_401 {dimension_numbers = #tpu.dot_dimension_numbers<[1], [0], [0], [1], [0, 0, 1, 1], [], []>} : vector<32x32xbf16>, vector<32x48xbf16>, vector<32x48xf32> -> vector<32x48xf32>
    %c1_402 = arith.constant 1 : index
    %c0_403 = arith.constant 0 : index
    %c0_404 = arith.constant 0 : index
    %852 = vector.load %arg18[%c1_402, %c0_403, %c0_404] : memref<4x48x48xf32, #tpu.memory_space<vmem>>, vector<1x48x48xf32>
    %853 = vector.shape_cast %852 : vector<1x48x48xf32> to vector<48x48xf32>
    %854 = arith.truncf %831 : vector<32x48xf32> to vector<32x48xbf16>
    %855 = arith.truncf %853 : vector<48x48xf32> to vector<48x48xbf16>
    %cst_405 = arith.constant dense<0.000000e+00> : vector<32x48xf32>
    %856 = tpu.matmul %854, %855, %cst_405 {dimension_numbers = #tpu.dot_dimension_numbers<[1], [0], [0], [1], [0, 0, 1, 1], [], []>} : vector<32x48xbf16>, vector<48x48xbf16>, vector<32x48xf32> -> vector<32x48xf32>
    %857 = arith.addf %851, %856 : vector<32x48xf32>
    %c1_406 = arith.constant 1 : index
    %c0_407 = arith.constant 0 : index
    %c0_408 = arith.constant 0 : index
    %858 = vector.load %arg19[%c1_406, %c0_407, %c0_408] : memref<4x1x48xf32, #tpu.memory_space<vmem>>, vector<1x1x48xf32>
    %859 = vector.shape_cast %858 : vector<1x1x48xf32> to vector<1x48xf32>
    %860 = vector.broadcast %859 : vector<1x48xf32> to vector<32x48xf32>
    %861 = arith.addf %857, %860 : vector<32x48xf32>
    %c2_409 = arith.constant 2 : index
    %c0_410 = arith.constant 0 : index
    %c0_411 = arith.constant 0 : index
    %862 = vector.load %arg17[%c2_409, %c0_410, %c0_411] : memref<4x32x48xf32, #tpu.memory_space<vmem>>, vector<1x32x48xf32>
    %863 = vector.shape_cast %862 : vector<1x32x48xf32> to vector<32x48xf32>
    %864 = arith.truncf %420 : vector<32x32xf32> to vector<32x32xbf16>
    %865 = arith.truncf %863 : vector<32x48xf32> to vector<32x48xbf16>
    %cst_412 = arith.constant dense<0.000000e+00> : vector<32x48xf32>
    %866 = tpu.matmul %864, %865, %cst_412 {dimension_numbers = #tpu.dot_dimension_numbers<[1], [0], [0], [1], [0, 0, 1, 1], [], []>} : vector<32x32xbf16>, vector<32x48xbf16>, vector<32x48xf32> -> vector<32x48xf32>
    %c2_413 = arith.constant 2 : index
    %c0_414 = arith.constant 0 : index
    %c0_415 = arith.constant 0 : index
    %867 = vector.load %arg18[%c2_413, %c0_414, %c0_415] : memref<4x48x48xf32, #tpu.memory_space<vmem>>, vector<1x48x48xf32>
    %868 = vector.shape_cast %867 : vector<1x48x48xf32> to vector<48x48xf32>
    %869 = arith.truncf %831 : vector<32x48xf32> to vector<32x48xbf16>
    %870 = arith.truncf %868 : vector<48x48xf32> to vector<48x48xbf16>
    %cst_416 = arith.constant dense<0.000000e+00> : vector<32x48xf32>
    %871 = tpu.matmul %869, %870, %cst_416 {dimension_numbers = #tpu.dot_dimension_numbers<[1], [0], [0], [1], [0, 0, 1, 1], [], []>} : vector<32x48xbf16>, vector<48x48xbf16>, vector<32x48xf32> -> vector<32x48xf32>
    %872 = arith.addf %866, %871 : vector<32x48xf32>
    %c2_417 = arith.constant 2 : index
    %c0_418 = arith.constant 0 : index
    %c0_419 = arith.constant 0 : index
    %873 = vector.load %arg19[%c2_417, %c0_418, %c0_419] : memref<4x1x48xf32, #tpu.memory_space<vmem>>, vector<1x1x48xf32>
    %874 = vector.shape_cast %873 : vector<1x1x48xf32> to vector<1x48xf32>
    %875 = vector.broadcast %874 : vector<1x48xf32> to vector<32x48xf32>
    %876 = arith.addf %872, %875 : vector<32x48xf32>
    %c3_420 = arith.constant 3 : index
    %c0_421 = arith.constant 0 : index
    %c0_422 = arith.constant 0 : index
    %877 = vector.load %arg17[%c3_420, %c0_421, %c0_422] : memref<4x32x48xf32, #tpu.memory_space<vmem>>, vector<1x32x48xf32>
    %878 = vector.shape_cast %877 : vector<1x32x48xf32> to vector<32x48xf32>
    %879 = arith.truncf %420 : vector<32x32xf32> to vector<32x32xbf16>
    %880 = arith.truncf %878 : vector<32x48xf32> to vector<32x48xbf16>
    %cst_423 = arith.constant dense<0.000000e+00> : vector<32x48xf32>
    %881 = tpu.matmul %879, %880, %cst_423 {dimension_numbers = #tpu.dot_dimension_numbers<[1], [0], [0], [1], [0, 0, 1, 1], [], []>} : vector<32x32xbf16>, vector<32x48xbf16>, vector<32x48xf32> -> vector<32x48xf32>
    %c3_424 = arith.constant 3 : index
    %c0_425 = arith.constant 0 : index
    %c0_426 = arith.constant 0 : index
    %882 = vector.load %arg18[%c3_424, %c0_425, %c0_426] : memref<4x48x48xf32, #tpu.memory_space<vmem>>, vector<1x48x48xf32>
    %883 = vector.shape_cast %882 : vector<1x48x48xf32> to vector<48x48xf32>
    %884 = arith.truncf %831 : vector<32x48xf32> to vector<32x48xbf16>
    %885 = arith.truncf %883 : vector<48x48xf32> to vector<48x48xbf16>
    %cst_427 = arith.constant dense<0.000000e+00> : vector<32x48xf32>
    %886 = tpu.matmul %884, %885, %cst_427 {dimension_numbers = #tpu.dot_dimension_numbers<[1], [0], [0], [1], [0, 0, 1, 1], [], []>} : vector<32x48xbf16>, vector<48x48xbf16>, vector<32x48xf32> -> vector<32x48xf32>
    %887 = arith.addf %881, %886 : vector<32x48xf32>
    %c3_428 = arith.constant 3 : index
    %c0_429 = arith.constant 0 : index
    %c0_430 = arith.constant 0 : index
    %888 = vector.load %arg19[%c3_428, %c0_429, %c0_430] : memref<4x1x48xf32, #tpu.memory_space<vmem>>, vector<1x1x48xf32>
    %889 = vector.shape_cast %888 : vector<1x1x48xf32> to vector<1x48xf32>
    %890 = vector.broadcast %889 : vector<1x48xf32> to vector<32x48xf32>
    %891 = arith.addf %887, %890 : vector<32x48xf32>
    %892 = arith.negf %846 : vector<32x48xf32>
    %893 = math.exp %892 : vector<32x48xf32>
    %cst_431 = arith.constant 1.000000e+00 : f32
    %894 = vector.broadcast %cst_431 : f32 to vector<32x48xf32>
    %895 = arith.addf %894, %893 : vector<32x48xf32>
    %896 = arith.divf %894, %895 : vector<32x48xf32>
    %897 = arith.negf %861 : vector<32x48xf32>
    %898 = math.exp %897 : vector<32x48xf32>
    %cst_432 = arith.constant 1.000000e+00 : f32
    %899 = vector.broadcast %cst_432 : f32 to vector<32x48xf32>
    %900 = arith.addf %899, %898 : vector<32x48xf32>
    %901 = arith.divf %899, %900 : vector<32x48xf32>
    %902 = math.tanh %876 : vector<32x48xf32>
    %903 = arith.negf %891 : vector<32x48xf32>
    %904 = math.exp %903 : vector<32x48xf32>
    %cst_433 = arith.constant 1.000000e+00 : f32
    %905 = vector.broadcast %cst_433 : f32 to vector<32x48xf32>
    %906 = arith.addf %905, %904 : vector<32x48xf32>
    %907 = arith.divf %905, %906 : vector<32x48xf32>
    %908 = arith.mulf %901, %829 : vector<32x48xf32>
    %909 = arith.mulf %896, %902 : vector<32x48xf32>
    %910 = arith.addf %908, %909 : vector<32x48xf32>
    %911 = math.tanh %910 : vector<32x48xf32>
    %912 = arith.mulf %907, %911 : vector<32x48xf32>
    %c0_434 = arith.constant 0 : index
    %c0_435 = arith.constant 0 : index
    %913 = vector.load %arg20[%c0_434, %c0_435] : memref<48x1xf32, #tpu.memory_space<vmem>>, vector<48x1xf32>
    %c0_436 = arith.constant 0 : index
    %c0_437 = arith.constant 0 : index
    %914 = vector.load %arg21[%c0_436, %c0_437] : memref<48x1xf32, #tpu.memory_space<vmem>>, vector<48x1xf32>
    %c0_438 = arith.constant 0 : index
    %c0_439 = arith.constant 0 : index
    %915 = vector.load %arg22[%c0_438, %c0_439] : memref<1x1xf32, #tpu.memory_space<vmem>>, vector<1x1xf32>
    %cst_440 = arith.constant dense<0.000000e+00> : vector<32x1xf32>
    %916 = tpu.matmul %505, %913, %cst_440 {dimension_numbers = #tpu.dot_dimension_numbers<[1], [0], [0], [1], [0, 0, 1, 1], [], []>} : vector<32x48xf32>, vector<48x1xf32>, vector<32x1xf32> -> vector<32x1xf32>
    %cst_441 = arith.constant dense<0.000000e+00> : vector<32x1xf32>
    %917 = tpu.matmul %912, %914, %cst_441 {dimension_numbers = #tpu.dot_dimension_numbers<[1], [0], [0], [1], [0, 0, 1, 1], [], []>} : vector<32x48xf32>, vector<48x1xf32>, vector<32x1xf32> -> vector<32x1xf32>
    %918 = arith.addf %916, %917 : vector<32x1xf32>
    %919 = vector.broadcast %915 : vector<1x1xf32> to vector<32x1xf32>
    %920 = arith.addf %918, %919 : vector<32x1xf32>
    %cst_442 = arith.constant dense<0.000000e+00> : vector<32x1xf32>
    %921 = tpu.matmul %586, %913, %cst_442 {dimension_numbers = #tpu.dot_dimension_numbers<[1], [0], [0], [1], [0, 0, 1, 1], [], []>} : vector<32x48xf32>, vector<48x1xf32>, vector<32x1xf32> -> vector<32x1xf32>
    %cst_443 = arith.constant dense<0.000000e+00> : vector<32x1xf32>
    %922 = tpu.matmul %831, %914, %cst_443 {dimension_numbers = #tpu.dot_dimension_numbers<[1], [0], [0], [1], [0, 0, 1, 1], [], []>} : vector<32x48xf32>, vector<48x1xf32>, vector<32x1xf32> -> vector<32x1xf32>
    %923 = arith.addf %921, %922 : vector<32x1xf32>
    %924 = vector.broadcast %915 : vector<1x1xf32> to vector<32x1xf32>
    %925 = arith.addf %923, %924 : vector<32x1xf32>
    %cst_444 = arith.constant dense<0.000000e+00> : vector<32x1xf32>
    %926 = tpu.matmul %667, %913, %cst_444 {dimension_numbers = #tpu.dot_dimension_numbers<[1], [0], [0], [1], [0, 0, 1, 1], [], []>} : vector<32x48xf32>, vector<48x1xf32>, vector<32x1xf32> -> vector<32x1xf32>
    %cst_445 = arith.constant dense<0.000000e+00> : vector<32x1xf32>
    %927 = tpu.matmul %750, %914, %cst_445 {dimension_numbers = #tpu.dot_dimension_numbers<[1], [0], [0], [1], [0, 0, 1, 1], [], []>} : vector<32x48xf32>, vector<48x1xf32>, vector<32x1xf32> -> vector<32x1xf32>
    %928 = arith.addf %926, %927 : vector<32x1xf32>
    %929 = vector.broadcast %915 : vector<1x1xf32> to vector<32x1xf32>
    %930 = arith.addf %928, %929 : vector<32x1xf32>
    %931 = arith.maximumf %920, %925 : vector<32x1xf32>
    %932 = arith.maximumf %931, %930 : vector<32x1xf32>
    %933 = arith.subf %920, %932 : vector<32x1xf32>
    %934 = math.exp %933 : vector<32x1xf32>
    %935 = arith.subf %925, %932 : vector<32x1xf32>
    %936 = math.exp %935 : vector<32x1xf32>
    %937 = arith.subf %930, %932 : vector<32x1xf32>
    %938 = math.exp %937 : vector<32x1xf32>
    %939 = arith.addf %934, %936 : vector<32x1xf32>
    %940 = arith.addf %939, %938 : vector<32x1xf32>
    %941 = tpu.reciprocal %940 {approx = true} : vector<32x1xf32> -> vector<32x1xf32>
    %942 = vector.broadcast %934 : vector<32x1xf32> to vector<32x32xf32>
    %943 = arith.mulf %942, %420 : vector<32x32xf32>
    %944 = vector.broadcast %936 : vector<32x1xf32> to vector<32x32xf32>
    %945 = arith.mulf %944, %421 : vector<32x32xf32>
    %946 = arith.addf %943, %945 : vector<32x32xf32>
    %947 = vector.broadcast %938 : vector<32x1xf32> to vector<32x32xf32>
    %948 = arith.mulf %947, %422 : vector<32x32xf32>
    %949 = arith.addf %946, %948 : vector<32x32xf32>
    %950 = vector.broadcast %941 : vector<32x1xf32> to vector<32x32xf32>
    %951 = arith.mulf %949, %950 : vector<32x32xf32>
    %c0_446 = arith.constant 0 : index
    %c0_447 = arith.constant 0 : index
    %952 = vector.load %arg23[%c0_446, %c0_447] : memref<2x32xf32, #tpu.memory_space<vmem>>, vector<2x32xf32>
    %953 = arith.truncf %952 : vector<2x32xf32> to vector<2x32xbf16>
    %954 = arith.truncf %951 : vector<32x32xf32> to vector<32x32xbf16>
    %cst_448 = arith.constant dense<0.000000e+00> : vector<2x32xf32>
    %955 = tpu.matmul %953, %954, %cst_448 {dimension_numbers = #tpu.dot_dimension_numbers<[1], [0], [0], [1], [0, 0, 1, 1], [], []>} : vector<2x32xbf16>, vector<32x32xbf16>, vector<2x32xf32> -> vector<2x32xf32>
    %c0_449 = arith.constant 0 : index
    %c0_450 = arith.constant 0 : index
    %956 = vector.load %arg24[%c0_449, %c0_450] : memref<32x32xf32, #tpu.memory_space<vmem>>, vector<32x32xf32>
    %957 = arith.truncf %955 : vector<2x32xf32> to vector<2x32xbf16>
    %958 = arith.truncf %956 : vector<32x32xf32> to vector<32x32xbf16>
    %cst_451 = arith.constant dense<0.000000e+00> : vector<2x32xf32>
    %959 = tpu.matmul %957, %958, %cst_451 {dimension_numbers = #tpu.dot_dimension_numbers<[1], [0], [0], [1], [0, 0, 1, 1], [], []>} : vector<2x32xbf16>, vector<32x32xbf16>, vector<2x32xf32> -> vector<2x32xf32>
    %c0_452 = arith.constant 0 : index
    %c0_453 = arith.constant 0 : index
    %960 = vector.load %arg25[%c0_452, %c0_453] : memref<1x32xf32, #tpu.memory_space<vmem>>, vector<1x32xf32>
    %961 = vector.broadcast %960 : vector<1x32xf32> to vector<2x32xf32>
    %962 = arith.addf %959, %961 : vector<2x32xf32>
    %cst_454 = arith.constant 0.000000e+00 : f32
    %963 = vector.broadcast %cst_454 : f32 to vector<2x32xf32>
    %964 = arith.maximumf %962, %963 : vector<2x32xf32>
    %c0_455 = arith.constant 0 : index
    %c0_456 = arith.constant 0 : index
    %965 = vector.load %arg26[%c0_455, %c0_456] : memref<32x32xf32, #tpu.memory_space<vmem>>, vector<32x32xf32>
    %966 = arith.truncf %964 : vector<2x32xf32> to vector<2x32xbf16>
    %967 = arith.truncf %965 : vector<32x32xf32> to vector<32x32xbf16>
    %cst_457 = arith.constant dense<0.000000e+00> : vector<2x32xf32>
    %968 = tpu.matmul %966, %967, %cst_457 {dimension_numbers = #tpu.dot_dimension_numbers<[1], [0], [0], [1], [0, 0, 1, 1], [], []>} : vector<2x32xbf16>, vector<32x32xbf16>, vector<2x32xf32> -> vector<2x32xf32>
    %c0_458 = arith.constant 0 : index
    %c0_459 = arith.constant 0 : index
    %969 = vector.load %arg27[%c0_458, %c0_459] : memref<1x32xf32, #tpu.memory_space<vmem>>, vector<1x32xf32>
    %970 = vector.broadcast %969 : vector<1x32xf32> to vector<2x32xf32>
    %971 = arith.addf %968, %970 : vector<2x32xf32>
    %cst_460 = arith.constant 0.000000e+00 : f32
    %972 = vector.broadcast %cst_460 : f32 to vector<2x32xf32>
    %973 = arith.maximumf %971, %972 : vector<2x32xf32>
    %c0_461 = arith.constant 0 : index
    %c0_462 = arith.constant 0 : index
    %974 = vector.load %arg28[%c0_461, %c0_462] : memref<32x8xf32, #tpu.memory_space<vmem>>, vector<32x8xf32>
    %975 = arith.truncf %973 : vector<2x32xf32> to vector<2x32xbf16>
    %976 = arith.truncf %974 : vector<32x8xf32> to vector<32x8xbf16>
    %cst_463 = arith.constant dense<0.000000e+00> : vector<2x8xf32>
    %977 = tpu.matmul %975, %976, %cst_463 {dimension_numbers = #tpu.dot_dimension_numbers<[1], [0], [0], [1], [0, 0, 1, 1], [], []>} : vector<2x32xbf16>, vector<32x8xbf16>, vector<2x8xf32> -> vector<2x8xf32>
    %c0_464 = arith.constant 0 : index
    %c0_465 = arith.constant 0 : index
    %978 = vector.load %arg29[%c0_464, %c0_465] : memref<1x8xf32, #tpu.memory_space<vmem>>, vector<1x8xf32>
    %979 = vector.broadcast %978 : vector<1x8xf32> to vector<2x8xf32>
    %980 = arith.addf %977, %979 : vector<2x8xf32>
    %c0_466 = arith.constant 0 : index
    %c0_467 = arith.constant 0 : index
    %981 = vector.load %arg30[%c0_466, %c0_467] : memref<2x8xf32, #tpu.memory_space<vmem>>, vector<2x8xf32>
    tpu.vector_store %arg30[%c0_466, %c0_467], %980 {strides = array<i32>} : memref<2x8xf32, #tpu.memory_space<vmem>>, vector<2x8xf32>,
    return
  }
}

</mosaic_0001>

<bundles_post_ra>
// kernel: tpu_custom_call.1
= control target key start
LH: loop header
LB: loop body
LE: loop exit
PB: predicated region body
PF: predicated region fallthrough
CT: control target
= control target key end

     0   :  { %s10280_s6 = smov 1   ;;  %s10281_s10 = smov 2   ;;  %s12453_s0 = inlined_call_operand.smem [shape: u32[31], index: -1, kind: input, shape index: {}] }
   0x1   :  { %s10344_s5 = sld [smem:[%s12453_s0]]   ;;  %s10282_s14 = smov 3  }
   0x2   :  { %s10349_s9 = sld [smem:[%s12453_s0 + %s10280_s6]]   ;;  %s10283_s18 = smov 4  }
   0x3   :  { %s10354_s13 = sld [smem:[%s12453_s0 + %s10281_s10]]   ;;  %s10284_s22 = smov 5  }
   0x4   :  { %s10359_s17 = sld [smem:[%s12453_s0 + %s10282_s14]]   ;;  %s10285_s26 = smov 6  }
   0x5   :  { %s10364_s21 = sld [smem:[%s12453_s0 + %s10283_s18]]   ;;  %s10286_s30 = smov 7  }
   0x6   :  { %s10369_s25 = sld [smem:[%s12453_s0 + %s10284_s22]]   ;;  %s10287_s4 = smov 8  }
   0x7   :  { %s10374_s29 = sld [smem:[%s12453_s0 + %s10285_s26]]   ;;  %s10288_s10 = smov 9  }
   0x8   :  { %s10379_s3 = sld [smem:[%s12453_s0 + %s10286_s30]]   ;;  %s10289_s15 = smov 10  }
   0x9   :  { %s10384_s8 = sld [smem:[%s12453_s0 + %s10287_s4]]   ;;  %s10290_s20 = smov 11  }
   0xa   :  { %s10389_s14 = sld [smem:[%s12453_s0 + %s10288_s10]]   ;;  %s10291_s26 = smov 12  }
   0xb   :  { %12465 = sst [smem:[#allocation32_spill]] %s10364_s21  ;;  %s10292_s1 = smov 13  }
   0xc   :  { %s10394_s19 = sld [smem:[%s12453_s0 + %s10289_s15]]   ;;  %s10293_s7 = smov 14  }
   0xd   :  { %12466 = sst [smem:[#allocation33_spill]] %s10374_s29  ;;  %s10294_s15 = smov 15  }
   0xe   :  { %12467 = sst [smem:[#allocation34_spill]] %s10379_s3  ;;  %s10295_s22 = smov 16  }
   0xf   :  { %12468 = sst [smem:[#allocation35_spill]] %s10384_s8  ;;  %s10296_s28 = smov 17  }
  0x10   :  { %s10399_s24 = sld [smem:[%s12453_s0 + %s10290_s20]]   ;;  %s10302_s16 = smov 23  }
  0x11   :  { %s10404_s30 = sld [smem:[%s12453_s0 + %s10291_s26]]   ;;  %s10303_s23 = smov 24  }
  0x12   :  { %s10409_s6 = sld [smem:[%s12453_s0 + %s10292_s1]]   ;;  %s10304_s1 = smov 25  }
  0x13   :  { %s10414_s12 = sld [smem:[%s12453_s0 + %s10293_s7]]   ;;  %s10297_s7 = smov 18  }
  0x14   :  { %s10419_s20 = sld [smem:[%s12453_s0 + %s10294_s15]]   ;;  %s10298_s15 = smov 19  }
  0x15   :  { %s10424_s27 = sld [smem:[%s12453_s0 + %s10295_s22]]   ;;  %s10299_s22 = smov 20  }
  0x16   :  { %12469 = sst [smem:[#allocation36_spill]] %s10399_s24  ;;  %s10305_s10 = smov 26  }
  0x17   :  { %12470 = sst [smem:[#allocation37_spill]] %s10404_s30 }
  0x18   :  { %s10429_s4 = sld [smem:[%s12453_s0 + %s10296_s28]]   ;;  %s10300_s28 = smov 21  }
  0x19   :  { %s10434_s30 = sld [smem:[%s12453_s0 + %s10297_s7]]   ;;  %s10301_s7 = smov 22  }
  0x1a   :  { %12471 = sst [smem:[#allocation38_spill]] %s10419_s20 }
  0x1b   :  { %s10439_s20 = sld [smem:[%s12453_s0 + %s10298_s15]]  }
  0x1c   :  { %s10444_s24 = sld [smem:[%s12453_s0 + %s10299_s22]]  }
  0x1d   :  { %s10449_s8 = sld [smem:[%s12453_s0 + %s10300_s28]]  }
  0x1e   :  { %s10457_s3 = sld [smem:[%s12453_s0 + %s10302_s16]]   ;;  %s10306_s16 = smov 27  }
  0x1f   :  { %12472 = sst [smem:[#allocation39_spill]] %s10434_s30 }
  0x20   :  { %s7581_s30 = sld [smem:[%s12453_s0 + %s10301_s7]]  }
  0x21   :  { %s10472_s29 = sld [smem:[%s12453_s0 + %s10305_s10]]   ;;  %s10309_s10 = smov 30  }
  0x22   :  { %12473 = sst [smem:[#allocation40_spill]] %s10444_s24 }
  0x23   :  { %12474 = sst [smem:[#allocation41_spill]] %s10449_s8 }
  0x24   :  { %s10462_s24 = sld [smem:[%s12453_s0 + %s10303_s23]]   ;;  %s10307_s23 = smov 28  }
  0x25   :  { %s10467_s8 = sld [smem:[%s12453_s0 + %s10304_s1]]   ;;  %s10308_s1 = smov 29  }
  0x26   :  { %s10477_s21 = sld [smem:[%s12453_s0 + %s10306_s16]]   ;;  %v66_v0 = vstv %s7581_s30 }
  0x27   :  { %s10487_s7 = sld [smem:[%s12453_s0 + %s10308_s1]]   ;;  %67 = vst [vmem:[#allocation5] sm:$0x1] %v66_v0 }
  0x28   :  { %s10492_s16 = sld [smem:[%s12453_s0 + %s10309_s10]]  }
  0x2a   :  { %12475 = sst [smem:[#allocation42_spill]] %s10462_s24 }
  0x2b   :  { %12476 = sst [smem:[#allocation43_spill]] %s10467_s8 }
  0x2c   :  { %s10482_s24 = sld [smem:[%s12453_s0 + %s10307_s23]]  }
  0x2d   :  { %68 = vsyncpa [#allocation7], 0 }
  0x2e   :  { %69 = vsyncpa [#allocation10], 0 }
  0x2f   :  { %70 = vsyncpa [#allocation13], 0 }
  0x30   :  { %71 = vsyncpa [#allocation16], 0 }
  0x31   :  { %72 = vsyncpa [#allocation19], 0 }
  0x32   :  { %73 = vsyncpa [#allocation22], 0 }
  0x33   :  { %74 = vsyncpa [#allocation8], 0  ;;  %s10310_s30 = smov [#allocation9]   ;;  %s10311_s18 = smov [#allocation12]  }
  0x34   :  { %s94_s15 = sshll.u32 %s10310_s30, 4  ;;  %s127_s23 = sshll.u32 %s10311_s18, 4  ;;  %s95_s15 = int_to_ptr.vmem [resolvable:$true] %s94_s15  ;;  %s10494_s23 = int_to_ptr.vmem [resolvable:$true] %s127_s23 }
  0x35   :  { %s10002_s8 = scalar_lea.hbm %s10354_s13, 256 }
  0x36   :  { %p10003_p0 = scmp.ne.s32.totalorder %s10354_s13, %s10002_s8  ;;  %p10006_p1 = scmp.lt.u32.totalorder %s10002_s8, %s10354_s13 }
  0x38   :  { %p10008_p2 = pnand %p10006_p1, %p10003_p0 }
  0x3a   :  { %10011 = shalt.err (!%p10008_p2)
}
  0x3b   :  { %s10012_s0 = scalar_lea.vmem %s95_s15, 256  ;;  %p10017_p4 = scmp.lt.s32.totalorder %s95_s15, %s95_s15 }
  0x3c   :  { %p10013_p3 = scmp.ne.s32.totalorder %s95_s15, %s10012_s0  ;;  %p10018_p5 = scmp.lt.s32.totalorder %s10012_s0, %s10012_s0 }
  0x3e   :  { %p10019_p6 = por %p10018_p5, %p10017_p4 }
  0x40   :  { %p10020_p7 = pnand %p10019_p6, %p10013_p3 }
  0x42   :  { %10023 = shalt.err (!%p10020_p7)
}
  0x43   :  { %s10312_s22 = smov 128   ;;  %s10313_s26 = smov 8  }
  0x44   :  { %100 = dma.hbm_to_vmem [thread:$0]  %s10354_s13, 256, %s95_s15, [#allocation10], %s10312_s22, %s10312_s22, %s10313_s26  }
  0x45   :  { %s10024_s1 = scalar_lea.hbm %s10389_s14, 16 }
  0x46   :  { %p10025_p8 = scmp.ne.s32.totalorder %s10389_s14, %s10024_s1  ;;  %p10028_p9 = scmp.lt.u32.totalorder %s10024_s1, %s10389_s14 }
  0x48   :  { %p10030_p10 = pnand %p10028_p9, %p10025_p8 }
  0x4a   :  { %10033 = shalt.err (!%p10030_p10)
}
  0x4b   :  { %s10034_s28 = scalar_lea.vmem %s10494_s23, 16  ;;  %s10038_s2 = scalar_lea.vmem %s10494_s23, 32 }
  0x4c   :  { %p10035_p11 = scmp.ne.s32.totalorder %s10494_s23, %s10034_s28  ;;  %p10039_p12 = scmp.lt.s32.totalorder %s10494_s23, %s10494_s23 }
  0x4d   :  { %p10040_p13 = scmp.lt.s32.totalorder %s10038_s2, %s10034_s28 }
  0x4f   :  { %p10041_p0 = por %p10040_p13, %p10039_p12 }
  0x51   :  { %p10042_p1 = pnand %p10041_p0, %p10035_p11 }
  0x53   :  { %10045 = shalt.err (!%p10042_p1)
}
  0x54   :  { %130 = dma.hbm_to_vmem [thread:$0]  %s10389_s14, 16, %s10494_s23, [#allocation13]  }
  0x55   :  { %s10314_s13 = smov [#allocation15]   ;;  %s10315_s11 = smov [#allocation18]  }
  0x56   :  { %s153_s10 = sshll.u32 %s10314_s13, 4  ;;  %s176_s30 = sshll.u32 %s10315_s11, 4  ;;  %s154_s10 = int_to_ptr.vmem [resolvable:$true] %s153_s10  ;;  %s10513_s30 = int_to_ptr.vmem [resolvable:$true] %s176_s30 }
  0x57   :  { %s10046_s15 = scalar_lea.hbm %s10409_s6, 16 }
  0x58   :  { %p10047_p2 = scmp.ne.s32.totalorder %s10409_s6, %s10046_s15  ;;  %p10050_p3 = scmp.lt.u32.totalorder %s10046_s15, %s10409_s6 }
  0x5a   :  { %p10052_p4 = pnand %p10050_p3, %p10047_p2 }
  0x5c   :  { %10055 = shalt.err (!%p10052_p4)
}
  0x5d   :  { %s10056_s18 = scalar_lea.vmem %s154_s10, 16  ;;  %s10060_s8 = scalar_lea.vmem %s154_s10, 32 }
  0x5e   :  { %p10057_p5 = scmp.ne.s32.totalorder %s154_s10, %s10056_s18  ;;  %p10061_p6 = scmp.lt.s32.totalorder %s154_s10, %s154_s10 }
  0x5f   :  { %p10062_p7 = scmp.lt.s32.totalorder %s10060_s8, %s10056_s18 }
  0x61   :  { %p10063_p8 = por %p10062_p7, %p10061_p6 }
  0x63   :  { %p10064_p9 = pnand %p10063_p8, %p10057_p5 }
  0x65   :  { %10067 = shalt.err (!%p10064_p9)
}
  0x66   :  { %156 = dma.hbm_to_vmem [thread:$0]  %s10409_s6, 16, %s154_s10, [#allocation16]  }
  0x67   :  { %s10068_s14 = scalar_lea.hbm %s10424_s27, 64 }
  0x68   :  { %p10069_p10 = scmp.ne.s32.totalorder %s10424_s27, %s10068_s14  ;;  %p10072_p11 = scmp.lt.u32.totalorder %s10068_s14, %s10424_s27 }
  0x6a   :  { %p10074_p12 = pnand %p10072_p11, %p10069_p10 }
  0x6c   :  { %10077 = shalt.err (!%p10074_p12)
}
  0x6d   :  { %s10078_s23 = scalar_lea.vmem %s10513_s30, 64  ;;  %p10083_p0 = scmp.lt.s32.totalorder %s10513_s30, %s10513_s30 }
  0x6e   :  { %p10079_p13 = scmp.ne.s32.totalorder %s10513_s30, %s10078_s23  ;;  %p10084_p1 = scmp.lt.s32.totalorder %s10078_s23, %s10078_s23 }
  0x70   :  { %p10085_p2 = por %p10084_p1, %p10083_p0 }
  0x72   :  { %p10086_p3 = pnand %p10085_p2, %p10079_p13 }
  0x74   :  { %10089 = shalt.err (!%p10086_p3)
}
  0x75   :  { %s10316_s0 = smov 16   ;;  %s10317_s6 = smov 1  }
  0x76   :  { %182 = dma.hbm_to_vmem [thread:$0]  %s10424_s27, 64, %s10513_s30, [#allocation19], %s10316_s0, %s10316_s0, %s10317_s6  }
  0x77   :  { %s10318_s1 = smov [#allocation21]   ;;  %s10319_s2 = smov [#allocation6]  }
  0x78   :  { %s202_s28 = sshll.u32 %s10318_s1, 4  ;;  %s82_s13 = sshll.u32 %s10319_s2, 4  ;;  %s203_s28 = int_to_ptr.vmem [resolvable:$true] %s202_s28  ;;  %s10530_s13 = int_to_ptr.vmem [resolvable:$true] %s82_s13 }
  0x79   :  { %s10090_s10 = scalar_lea.hbm %s10439_s20, 64 }
  0x7a   :  { %p10091_p4 = scmp.ne.s32.totalorder %s10439_s20, %s10090_s10  ;;  %p10094_p5 = scmp.lt.u32.totalorder %s10090_s10, %s10439_s20 }
  0x7c   :  { %p10096_p6 = pnand %p10094_p5, %p10091_p4 }
  0x7e   :  { %10099 = shalt.err (!%p10096_p6)
}
  0x7f   :  { %s10100_s11 = scalar_lea.vmem %s203_s28, 64  ;;  %p10105_p8 = scmp.lt.s32.totalorder %s203_s28, %s203_s28 }
  0x80   :  { %p10101_p7 = scmp.ne.s32.totalorder %s203_s28, %s10100_s11  ;;  %p10106_p9 = scmp.lt.s32.totalorder %s10100_s11, %s10100_s11 }
  0x82   :  { %p10107_p10 = por %p10106_p9, %p10105_p8 }
  0x84   :  { %p10108_p11 = pnand %p10107_p10, %p10101_p7 }
  0x86   :  { %10111 = shalt.err (!%p10108_p11)
}
  0x87   :  { %208 = dma.hbm_to_vmem [thread:$0]  %s10439_s20, 64, %s203_s28, [#allocation22], %s10316_s0, %s10316_s0, %s10317_s6  }
  0x88   :  { %s10112_s27 = scalar_lea.hbm %s10349_s9, 512 }
  0x89   :  { %p10113_p12 = scmp.ne.s32.totalorder %s10349_s9, %s10112_s27  ;;  %p10116_p13 = scmp.lt.u32.totalorder %s10112_s27, %s10349_s9 }
  0x8b   :  { %p10118_p0 = pnand %p10116_p13, %p10113_p12 }
  0x8d   :  { %10121 = shalt.err (!%p10118_p0)
}
  0x8e   :  { %s10122_s30 = scalar_lea.vmem %s10530_s13, 512  ;;  %p10127_p2 = scmp.lt.s32.totalorder %s10530_s13, %s10530_s13 }
  0x8f   :  { %p10123_p1 = scmp.ne.s32.totalorder %s10530_s13, %s10122_s30  ;;  %p10128_p3 = scmp.lt.s32.totalorder %s10122_s30, %s10122_s30 }
  0x91   :  { %p10129_p4 = por %p10128_p3, %p10127_p2 }
  0x93   :  { %p10130_p5 = pnand %p10129_p4, %p10123_p1 }
  0x95   :  { %10133 = shalt.err (!%p10130_p5)
}
  0x96   :  { %88 = dma.hbm_to_vmem [thread:$0]  %s10349_s9, 512, %s10530_s13, [#allocation7], %s10312_s22, %s10312_s22, %s10313_s26  }
  0x97   :  { %s10320_s20 = smov [#allocation11]   ;;  %s10321_s18 = smov [#allocation14]  }
  0x98   :  { %s111_s15 = sshll.u32 %s10320_s20, 4  ;;  %s136_s8 = sshll.u32 %s10321_s18, 4  ;;  %s112_s15 = int_to_ptr.vmem [resolvable:$true] %s111_s15  ;;  %s10550_s8 = int_to_ptr.vmem [resolvable:$true] %s136_s8 }
  0x99   :  { %s10134_s14 = scalar_lea.hbm %s10369_s25, 16 }
  0x9a   :  { %p10135_p6 = scmp.ne.s32.totalorder %s10369_s25, %s10134_s14  ;;  %p10138_p7 = scmp.lt.u32.totalorder %s10134_s14, %s10369_s25 }
  0x9c   :  { %p10140_p8 = pnand %p10138_p7, %p10135_p6 }
  0x9e   :  { %10143 = shalt.err (!%p10140_p8)
}
  0x9f   :  { %s10144_s23 = scalar_lea.vmem %s112_s15, 16  ;;  %s10148_s6 = scalar_lea.vmem %s112_s15, 32 }
  0xa0   :  { %p10145_p9 = scmp.ne.s32.totalorder %s112_s15, %s10144_s23  ;;  %p10149_p10 = scmp.lt.s32.totalorder %s112_s15, %s112_s15 }
  0xa1   :  { %p10150_p11 = scmp.lt.s32.totalorder %s10148_s6, %s10144_s23 }
  0xa3   :  { %p10151_p12 = por %p10150_p11, %p10149_p10 }
  0xa5   :  { %p10152_p13 = pnand %p10151_p12, %p10145_p9 }
  0xa7   :  { %10155 = shalt.err (!%p10152_p13)
}
  0xa8   :  { %114 = dma.hbm_to_vmem [thread:$0]  %s10369_s25, 16, %s112_s15, [#allocation10]  }
  0xa9   :  { %s10156_s9 = scalar_lea.hbm %s10394_s19, 512 }
  0xaa   :  { %p10157_p0 = scmp.ne.s32.totalorder %s10394_s19, %s10156_s9  ;;  %p10160_p1 = scmp.lt.u32.totalorder %s10156_s9, %s10394_s19 }
  0xac   :  { %p10162_p2 = pnand %p10160_p1, %p10157_p0 }
  0xae   :  { %10165 = shalt.err (!%p10162_p2)
}
  0xaf   :  { %s10166_s1 = scalar_lea.vmem %s10550_s8, 512  ;;  %p10171_p4 = scmp.lt.s32.totalorder %s10550_s8, %s10550_s8 }
  0xb0   :  { %p10167_p3 = scmp.ne.s32.totalorder %s10550_s8, %s10166_s1  ;;  %p10172_p5 = scmp.lt.s32.totalorder %s10166_s1, %s10166_s1 }
  0xb2   :  { %p10173_p6 = por %p10172_p5, %p10171_p4 }
  0xb4   :  { %p10174_p7 = pnand %p10173_p6, %p10167_p3 }
  0xb6   :  { %10177 = shalt.err (!%p10174_p7)
}
  0xb7   :  { %142 = dma.hbm_to_vmem [thread:$0]  %s10394_s19, 512, %s10550_s8, [#allocation13], %s10312_s22, %s10312_s22, %s10313_s26  }
  0xb8   :  { %s10322_s25 = smov [#allocation17]   ;;  %s10323_s2 = smov [#allocation20]  }
  0xb9   :  { %s162_s28 = sshll.u32 %s10322_s25, 4  ;;  %s188_s13 = sshll.u32 %s10323_s2, 4  ;;  %s163_s28 = int_to_ptr.vmem [resolvable:$true] %s162_s28  ;;  %s10568_s13 = int_to_ptr.vmem [resolvable:$true] %s188_s13 }
  0xba   :  { %s10178_s10 = scalar_lea.hbm %s10414_s12, 2048 }
  0xbb   :  { %p10179_p8 = scmp.ne.s32.totalorder %s10414_s12, %s10178_s10  ;;  %p10182_p9 = scmp.lt.u32.totalorder %s10178_s10, %s10414_s12 }
  0xbd   :  { %p10184_p10 = pnand %p10182_p9, %p10179_p8 }
  0xbf   :  { %10187 = shalt.err (!%p10184_p10)
}
  0xc0   :  { %s10188_s11 = scalar_lea.vmem %s163_s28, 2048  ;;  %p10193_p12 = scmp.lt.s32.totalorder %s163_s28, %s163_s28 }
  0xc1   :  { %p10189_p11 = scmp.ne.s32.totalorder %s163_s28, %s10188_s11  ;;  %p10194_p13 = scmp.lt.s32.totalorder %s10188_s11, %s10188_s11 }
  0xc3   :  { %p10195_p0 = por %p10194_p13, %p10193_p12 }
  0xc5   :  { %p10196_p1 = pnand %p10195_p0, %p10189_p11 }
  0xc7   :  { %10199 = shalt.err (!%p10196_p1)
}
  0xc8   :  { %168 = dma.hbm_to_vmem [thread:$0]  %s10414_s12, 2048, %s163_s28, [#allocation16], %s10312_s22, %s10312_s22, %s10313_s26  }
  0xc9   :  { %s10200_s19 = scalar_lea.hbm %s10429_s4, 2048 }
  0xca   :  { %p10201_p2 = scmp.ne.s32.totalorder %s10429_s4, %s10200_s19  ;;  %p10204_p3 = scmp.lt.u32.totalorder %s10200_s19, %s10429_s4 }
  0xcc   :  { %p10206_p4 = pnand %p10204_p3, %p10201_p2 }
  0xce   :  { %10209 = shalt.err (!%p10206_p4)
}
  0xcf   :  { %s10210_s27 = scalar_lea.vmem %s10568_s13, 2048  ;;  %p10215_p6 = scmp.lt.s32.totalorder %s10568_s13, %s10568_s13 }
  0xd0   :  { %p10211_p5 = scmp.ne.s32.totalorder %s10568_s13, %s10210_s27  ;;  %p10216_p7 = scmp.lt.s32.totalorder %s10210_s27, %s10210_s27 }
  0xd2   :  { %p10217_p8 = por %p10216_p7, %p10215_p6 }
  0xd4   :  { %p10218_p9 = pnand %p10217_p8, %p10211_p5 }
  0xd6   :  { %10221 = shalt.err (!%p10218_p9)
}
  0xd7   :  { %194 = dma.hbm_to_vmem [thread:$0]  %s10429_s4, 2048, %s10568_s13, [#allocation19], %s10312_s22, %s10312_s22, %s10313_s26  }
  0xd8   :  { %s10324_s12 = smov [#allocation23]   ;;  %s10222_s20 = scalar_lea.hbm %s10457_s3, 32 }
  0xd9   :  { %s221_s30 = sshll.u32 %s10324_s12, 4  ;;  %p10223_p10 = scmp.ne.s32.totalorder %s10457_s3, %s10222_s20  ;;  %s222_s30 = int_to_ptr.vmem [resolvable:$true] %s221_s30 }
  0xda   :  { %p10226_p11 = scmp.lt.u32.totalorder %s10222_s20, %s10457_s3 }
  0xdc   :  { %p10228_p12 = pnand %p10226_p11, %p10223_p10 }
  0xde   :  { %10231 = shalt.err (!%p10228_p12)
}
  0xdf   :  { %s10232_s15 = scalar_lea.vmem %s222_s30, 32  ;;  %p10237_p0 = scmp.lt.s32.totalorder %s222_s30, %s222_s30 }
  0xe0   :  { %p10233_p13 = scmp.ne.s32.totalorder %s222_s30, %s10232_s15  ;;  %p10238_p1 = scmp.lt.s32.totalorder %s10232_s15, %s10232_s15 }
  0xe2   :  { %p10239_p2 = por %p10238_p1, %p10237_p0 }
  0xe4   :  { %p10240_p3 = pnand %p10239_p2, %p10233_p13 }
  0xe6   :  { %10243 = shalt.err (!%p10240_p3)
}
  0xe7   :  { %224 = dma.hbm_to_vmem [thread:$0]  %s10457_s3, 32, %s222_s30, [#allocation22]  }
  0xe8   :  { %10266 = dma.done.wait [#allocation7], 512  }
  0xe9   :  { %10267 = vsyncadd [#allocation7], 4294966784 }
  0xea   :  { %10268 = dma.done.wait [#allocation10], 272  }
  0xeb   :  { %10269 = vsyncadd [#allocation10], 4294967024 }
  0xec   :  { %10270 = dma.done.wait [#allocation13], 528  }
  0xed   :  { %10271 = vsyncadd [#allocation13], 4294966768 }
  0xee   :  { %10272 = dma.done.wait [#allocation16], 2064  }
  0xef   :  { %10273 = vsyncadd [#allocation16], 4294965232 }
  0xf0   :  { %10274 = dma.done.wait [#allocation19], 2112  }
  0xf1   :  { %10275 = vsyncadd [#allocation19], 4294965184 }
  0xf2   :  { %10276 = dma.done.wait [#allocation22], 96  }
  0xf3   :  { %10277 = vsyncadd [#allocation22], 4294967200  ;;  %s12477_s4 = sld [smem:[#allocation32_spill]]  ;;  %v283_v1 = vld [vmem:[#allocation9] sm:$0xff]  ;;  %v284_v2 = vld [vmem:[#allocation9 + $0x8] sm:$0xff]  ;;  %vm288_vm0 = vcmask 130048   ;;  %v588_v57 = vlaneseq }
  0xf4   :  { %v279_v3 = vld [vmem:[%s10344_s5] sm:$0xff]  ;;  %v287_v4 = vpack.c.bf16 %v284_v2, %v283_v1  ;;  %v280_v5 = vld [vmem:[%s10344_s5 + $0x8] sm:$0xff]  ;;  %v281_v6 = vld [vmem:[%s10344_s5 + $0x10] sm:$0xff]  ;;  %vm348_vm1 = vcmask 261120   ;;  %v10325_v22 = vmov 1   ;;  %v10326_v23 = vmov 0  }
  0xf5   :  { %v282_v7 = vld [vmem:[%s10344_s5 + $0x18] sm:$0xff]  ;;  %v285_v8 = vpack.c.bf16 %v280_v5, %v279_v3  ;;  %v344_v9 = vld [vmem:[%s10359_s17] sm:$0xff]  ;;  %v345_v10 = vld [vmem:[%s10359_s17 + $0x8] sm:$0xff]  ;;  %9329 = vset.pattern.permute.xlu1 %v10325_v22  ;;  %9328 = vset.pattern.permute.xlu0 %v10326_v23  ;;  %s10327_s5 = smov 120   ;;  %v10328_v38 = vmov 3   ;;  %v10329_v39 = vmov 2  }
  0xf6   :  { %8270 = vmatprep.subr.bf16.mxu0 %v287_v4  ;;  %v286_v12 = vpack.c.bf16 %v282_v7, %v281_v6  ;;  %v9044_v13 = vpack.c.bf16 %v345_v10, %v344_v9  ;;  %v346_v16 = vld [vmem:[%s10359_s17 + $0x10] sm:$0xff]  ;;  %v347_v17 = vld [vmem:[%s10359_s17 + $0x18] sm:$0xff]  ;;  %s10330_s17 = smov 104   ;;  %s10331_s3 = smov 112   ;;  %v589_v59 = vshrl.u32 %v588_v57, 7 }
  0xf7   :  { %8271 = vmatpush3.bf16.msra.mxu0 %v287_v4  ;;  %8272 = vmatprep.mubr.msk.bf16.mxu0 %vm288_vm0, %v285_v8  ;;  %v9048_v19 = vpack.c.bf16 %v347_v17, %v346_v16  ;;  %v10687_v5 = vld [vmem:[#allocation6 + $0x10] sm:$0xff]  ;;  %v10689_v6 = vld [vmem:[#allocation6 + $0x8] sm:$0xff]  ;;  %s12478_s22 = sld [smem:[#allocation33_spill]]  ;;  %s12479_s18 = sld [smem:[#allocation34_spill]] }
  0xf8   :  { %9045 = vmatprep.subr.bf16.mxu1 %v9044_v13  ;;  %v10670_v61 = vsub.s32 0, %v589_v59  ;;  %v10672_v62 = vsub.s32 1, %v589_v59  ;;  %v10674_v63 = vsub.s32 2, %v589_v59  ;;  %v10676_v0 = vsub.s32 3, %v589_v59  ;;  %s12480_s8 = sld [smem:[#allocation35_spill]]  ;;  %s10332_s14 = smov 24  }
  0xf9   :  { %v446_v11 = vld [vmem:[%s12477_s4] sm:$0xff]  ;;  %v447_v14 = vld [vmem:[%s12477_s4 + $0x8] sm:$0xff]  ;;  %9047 = vmatpush3.bf16.msra.mxu1 %v9044_v13  ;;  %v448_v18 = vld [vmem:[%s12477_s4 + $0x10] sm:$0xff]  ;;  %vm277_vm2 = vcmp.gt.f32.partialorder %v10687_v5, 0.0  ;;  %vm276_vm3 = vcmp.gt.f32.partialorder %v10689_v6, 0.0  ;;  %s12481_s23 = sld [smem:[#allocation36_spill]] }
  0xfa   :  { %v9052_v15 = vpack.c.bf16 %v447_v14, %v446_v11  ;;  %8273 = vmatmul.mubr.msk.bf16.vlgmr.msra.gmra.mrb[0].mxu0 %vm288_vm0, %v286_v12  ;;  %v449_v20 = vld [vmem:[%s12477_s4 + $0x18] sm:$0xff]  ;;  %9049 = vmatprep.subr.bf16.mxu1 %v9048_v19  ;;  %s12482_s6 = sld [smem:[#allocation37_spill]]  ;;  %s12483_s9 = sld [smem:[#allocation38_spill]] }
  0xfb   :  { %v9056_v21 = vpack.c.bf16 %v449_v20, %v448_v18  ;;  %s12487_s1 = sld [smem:[#allocation40_spill]]  ;;  %s12489_s25 = sld [smem:[#allocation42_spill]] }
  0xfc   :  { %9053 = vmatprep.subr.bf16.mxu0 %v9052_v15  ;;  %s12490_s28 = sld [smem:[#allocation43_spill]] }
  0xfd   :  { %9055 = vmatpush3.bf16.msra.mxu0 %v9052_v15  ;;  %9051 = vmatpush3.bf16.msra.mxu1 %v9048_v19 }
  0xfe   :  { %9057 = vmatprep.subr.bf16.mxu0 %v9056_v21 }
 0x101   :  { %9059 = vmatpush3.bf16.msra.mxu0 %v9056_v21 }
 0x1cd   :  { %v8274_v24 = vpop.f32.mrb[0].mxu0 }
 0x1ce   :  { %v329_v25 = vpop.f32.mrb[1].mxu0 }
 0x1cf   :  { %v8275_v26 = vpop.f32.mrb[2].mxu0  ;;  %8284 = vmatprep.mubr.msk.f32.mxu1 %vm348_vm1, %v329_v25  ;;  %8298 = vmatprep.mubr.msk.f32.mxu0 %vm348_vm1, %v329_v25 }
 0x1d0   :  { %v10611_v27 = vpack.c.bf16 %v8275_v26, %v8274_v24  ;;  %v332_v28 = vpop.f32.mrb[3].mxu0 }
 0x1d1   :  { %v10613_v29 = vpack.c.bf16 %v332_v28, %v329_v25  ;;  %8285 = vmatmul.mubr.msk.f32.vlgmr.msra.gmra.mrb[0].mxu1 %vm348_vm1, %v332_v28  ;;  %8299 = vmatmul.mubr.msk.f32.vlgmr.msra.gmra.mrb[4].mxu0 %vm348_vm1, %v332_v28 }
 0x1d2   :  { %816 = vrot.lane.b32.xlu1 %v10611_v27, %s10327_s5  ;;  %8287 = vmatprep.mubr.msk.f32.mxu1 %vm348_vm1, %v8274_v24 }
 0x1d3   :  { %8301 = vmatprep.mubr.msk.f32.mxu0 %vm348_vm1, %v8274_v24  ;;  %814 = vrot.lane.b32.xlu0 %v10613_v29, %s10327_s5 }
 0x1d4   :  { %8304 = vmatprep.subr.bf16.mxu1 %v10613_v29 }
 0x1d5   :  { %8305 = vmatpush3.bf16.msra.mxu1 %v10613_v29  ;;  %8302 = vmatmul.mubr.msk.f32.gmra.mrb[6].mxu0 %vm348_vm1, %v8275_v26 }
 0x1d6   :  { %8288 = vmatmul.mubr.msk.f32.gmra.mrb[2].mxu1 %vm348_vm1, %v8275_v26  ;;  %8306 = vmatprep.subr.bf16.mxu1 %v10611_v27 }
 0x1d9   :  { %8307 = vmatpush3.bf16.msra.mxu1 %v10611_v27 }
 0x244   :  { %v817_v31 = vpop.permute.xlu1 %816 }
 0x245   :  { %v815_v30 = vpop.permute.xlu0 %814 }
 0x246   :  { %8312 = vmatprep.subr.bf16.mxu0 %v815_v30 }
 0x247   :  { %8313 = vmatpush3.bf16.msra.mxu0 %v815_v30 }
 0x248   :  { %8314 = vmatprep.subr.bf16.mxu0 %v817_v31 }
 0x24b   :  { %8315 = vmatpush3.bf16.msra.mxu0 %v817_v31 }
 0x2a4   :  { %v8286_v32 = vpop.f32.mrb[0].mxu1  ;;  %v8300_v33 = vpop.f32.mrb[4].mxu0 }
 0x2a5   :  { %739 = vperm.xlu1 %9329, %v8300_v33   ;;  %575 = vperm.xlu0 %9328, %v8300_v33   ;;  %v427_v34 = vpop.f32.mrb[1].mxu1  ;;  %v516_v35 = vpop.f32.mrb[5].mxu0 }
 0x2a8   :  { %v8303_v36 = vpop.f32.mrb[6].mxu0 }
 0x2a9   :  { %v8289_v37 = vpop.f32.mrb[2].mxu1  ;;  %9331 = vset.pattern.permute.xlu1 %v10328_v38  ;;  %9330 = vset.pattern.permute.xlu0 %v10329_v39  ;;  %v526_v40 = vpop.f32.mrb[7].mxu0 }
 0x2aa   :  { %v437_v41 = vpop.f32.mrb[3].mxu1  ;;  %1099 = vperm.xlu1 %9331, %v8300_v33   ;;  %920 = vperm.xlu0 %9330, %v8300_v33  }
 0x2ae   :  { %9334 = vset.pattern.permute.xlu1 %v10329_v39  ;;  %9332 = vset.pattern.permute.xlu0 %v10326_v23 }
 0x2af   :  { %916 = vperm.xlu1 %9334, %v516_v35   ;;  %570 = vperm.xlu0 %9332, %v516_v35  }
 0x2b3   :  { %9336 = vset.pattern.permute.xlu1 %v10326_v23  ;;  %9333 = vset.pattern.permute.xlu0 %v10325_v22 }
 0x2b4   :  { %735 = vperm.xlu0 %9333, %v516_v35   ;;  %585 = vperm.xlu1 %9336, %v8303_v36  }
 0x2b8   :  { %9335 = vset.pattern.permute.xlu0 %v10328_v38  ;;  %9338 = vset.pattern.permute.xlu1 %v10329_v39 }
 0x2b9   :  { %1095 = vperm.xlu0 %9335, %v516_v35   ;;  %928 = vperm.xlu1 %9338, %v8303_v36  }
 0x2bd   :  { %9337 = vset.pattern.permute.xlu0 %v10325_v22  ;;  %9340 = vset.pattern.permute.xlu1 %v10326_v23 }
 0x2be   :  { %747 = vperm.xlu0 %9337, %v8303_v36   ;;  %580 = vperm.xlu1 %9340, %v526_v40  }
 0x2c2   :  { %9339 = vset.pattern.permute.xlu0 %v10328_v38  ;;  %9341 = vset.pattern.permute.xlu1 %v10325_v22 }
 0x2c3   :  { %1107 = vperm.xlu0 %9339, %v8303_v36   ;;  %743 = vperm.xlu1 %9341, %v526_v40   ;;  %v10725_v36 = vld [vmem:[#allocation6] sm:$0xff] }
 0x2c4   :  { %vm275_vm10 = vcmp.gt.f32.partialorder %v10725_v36, 0.0 }
 0x2c7   :  { %1172 = vrot.lane.b32.xlu0 %v10613_v29, %s10330_s17  ;;  %9342 = vset.pattern.permute.xlu1 %v10329_v39 }
 0x2c8   :  { %924 = vperm.xlu1 %9342, %v526_v40   ;;  %9345 = vset.pattern.permute.xlu0 %v10325_v22 }
 0x2cc   :  { %9343 = vset.pattern.permute.xlu1 %v10328_v38 }
 0x2cd   :  { %1103 = vperm.xlu1 %9343, %v526_v40  }
 0x2f6   :  { %535 = vxpose.xlu1.b32.start [1/4] (short) (narrow) %v427_v34, 8 }
 0x2fa   :  { %536 = vxpose.xlu1.b32.cont [2/4] (short) (narrow) %v8286_v32, 8 }
 0x2fe   :  { %537 = vxpose.xlu1.b32.cont [3/4] (short) (narrow) %v437_v41, 8 }
 0x302   :  { %538 = vxpose.xlu1.b32.end [4/4] (short) (narrow) %v8289_v37, 8 }
 0x320   :  { %993 = vrot.lane.b32.xlu1 %v10613_v29, %s10331_s3 }
 0x321   :  { %9344 = vset.pattern.permute.xlu1 %v10326_v23 }
 0x324   :  { %v576_v42 = vpop.permute.xlu0 %575  ;;  %v740_v48 = vpop.permute.xlu1 %739 }
 0x329   :  { %v921_v43 = vpop.permute.xlu0 %920  ;;  %v1100_v51 = vpop.permute.xlu1 %1099 }
 0x32e   :  { %v571_v44 = vpop.permute.xlu0 %570  ;;  %v10658_v52 = vpop.permute.xlu1 %916 }
 0x333   :  { %v736_v45 = vpop.permute.xlu0 %735  ;;  %v10660_v53 = vpop.permute.xlu1 %585 }
 0x338   :  { %v10649_v46 = vpop.permute.xlu0 %1095  ;;  %v10662_v54 = vpop.permute.xlu1 %928 }
 0x33d   :  { %v10651_v47 = vpop.permute.xlu0 %747  ;;  %v10664_v55 = vpop.permute.xlu1 %580 }
 0x342   :  { %v10653_v49 = vpop.permute.xlu0 %1107  ;;  %v744_v56 = vpop.permute.xlu1 %743 }
 0x346   :  { %v10655_v50 = vpop.permute.xlu0 %1172 }
 0x347   :  { %8328 = vmatprep.subr.bf16.mxu0 %v10655_v50  ;;  %v10666_v58 = vpop.permute.xlu1 %924 }
 0x34c   :  { %v10668_v60 = vpop.permute.xlu1 %1103 }
 0x376   :  { %v551_v1 = vpop.trf.xlu1 }
 0x377   :  { %v10679_v2 = vrot.slane %v551_v1, %v10670_v61  ;;  %v10682_v3 = vrot.slane %v551_v1, %v10672_v62  ;;  %v10685_v4 = vrot.slane %v551_v1, %v10674_v63  ;;  %v10692_v7 = vrot.slane %v551_v1, %v10676_v0 }
 0x379   :  { %v756_v8 = vadd.f32 %v10682_v3, %v744_v56  ;;  %v593_v9 = vadd.f32 %v10679_v2, %v576_v42  ;;  %v755_v10 = vadd.f32 %v10682_v3, %v740_v48  ;;  %v936_v11 = vadd.f32 %v10685_v4, %v921_v43 }
 0x37a   :  { %v1115_v18 = vadd.f32 %v10692_v7, %v1100_v51  ;;  %v592_v30 = vadd.f32 %v10679_v2, %v571_v44  ;;  %v754_v35 = vadd.f32 %v10682_v3, %v736_v45  ;;  %v935_v43 = vadd.f32 %v10685_v4, %v10658_v52 }
 0x37b   :  { %vm760_vm4 = vcmp.gt.f32.partialorder %v756_v8, 0.0  ;;  %v764_v12 = vmul.f32 0.2, %v756_v8  ;;  %vm597_vm5 = vcmp.gt.f32.partialorder %v593_v9, 0.0  ;;  %v601_v13 = vmul.f32 0.2, %v593_v9 }
 0x37c   :  { %vm759_vm6 = vcmp.gt.f32.partialorder %v755_v10, 0.0  ;;  %v763_v14 = vmul.f32 0.2, %v755_v10  ;;  %v944_v17 = vmul.f32 0.2, %v936_v11  ;;  %vm940_vm7 = vcmp.gt.f32.partialorder %v936_v11, 0.0 }
 0x37d   :  { %v768_v15 = vsel %vm760_vm4, %v756_v8, %v764_v12  ;;  %v605_v16 = vsel %vm597_vm5, %v593_v9, %v601_v13  ;;  %v1123_v29 = vmul.f32 0.2, %v1115_v18  ;;  %vm1119_vm8 = vcmp.gt.f32.partialorder %v1115_v18, 0.0 }
 0x37e   :  { %v10703_v19 = vsel %vm277_vm2, %v768_v15, -1e+30  ;;  %v10707_v20 = vsel %vm276_vm3, %v605_v16, -1e+30  ;;  %v767_v21 = vsel %vm759_vm6, %v755_v10, %v763_v14  ;;  %v948_v28 = vsel %vm940_vm7, %v936_v11, %v944_v17  ;;  %v10765_v14 = vld [vmem:[#allocation6 + $0x18] sm:$0xff] }
 0x37f   :  { %v780_v24 = vsel %vm348_vm1, %v10703_v19, -inf  ;;  %v615_v25 = vsel %vm348_vm1, %v10707_v20, -inf  ;;  %v10715_v26 = vsel %vm276_vm3, %v767_v21, -1e+30  ;;  %v10722_v32 = vsel %vm276_vm3, %v948_v28, -1e+30 }
 0x380   :  { %781 = vmax.xlane.f32.xlu1 %v780_v24  ;;  %616 = vmax.xlane.f32.xlu0 %v615_v25  ;;  %v777_v31 = vsel %vm348_vm1, %v10715_v26, -inf  ;;  %v1127_v33 = vsel %vm1119_vm8, %v1115_v18, %v1123_v29  ;;  %v600_v34 = vmul.f32 0.2, %v592_v30  ;;  %vm596_vm9 = vcmp.gt.f32.partialorder %v592_v30, 0.0 }
 0x381   :  { %v958_v37 = vsel %vm348_vm1, %v10722_v32, -inf  ;;  %v10731_v40 = vsel %vm276_vm3, %v1127_v33, -1e+30  ;;  %v762_v42 = vmul.f32 0.2, %v754_v35  ;;  %vm758_vm11 = vcmp.gt.f32.partialorder %v754_v35, 0.0 }
 0x382   :  { %v604_v41 = vsel %vm596_vm9, %v592_v30, %v600_v34  ;;  %v1137_v44 = vsel %vm348_vm1, %v10731_v40, -inf  ;;  %v943_v51 = vmul.f32 0.2, %v935_v43  ;;  %v1114_v56 = vadd.f32 %v10692_v7, %v10649_v46 }
 0x383   :  { %v10740_v45 = vsel %vm275_vm10, %v604_v41, -1e+30  ;;  %v766_v48 = vsel %vm758_vm11, %v754_v35, %v762_v42  ;;  %vm939_vm12 = vcmp.gt.f32.partialorder %v935_v43, 0.0  ;;  %v595_v8 = vadd.f32 %v10679_v2, %v10660_v53 }
 0x384   :  { %778 = vmax.xlane.f32.xlu0 %v777_v31  ;;  %v612_v57 = vsel %vm348_vm1, %v10740_v45, -inf  ;;  %v10748_v52 = vsel %vm275_vm10, %v766_v48, -1e+30  ;;  %v947_v59 = vsel %vm939_vm12, %v935_v43, %v943_v51  ;;  %v1122_v1 = vmul.f32 0.2, %v1114_v56 }
 0x385   :  { %vm1118_vm13 = vcmp.gt.f32.partialorder %v1114_v56, 0.0  ;;  %v774_v46 = vsel %vm348_vm1, %v10748_v52, -inf  ;;  %v10761_v10 = vsel %vm275_vm10, %v947_v59, -1e+30  ;;  %v603_v12 = vmul.f32 0.2, %v595_v8 }
 0x386   :  { %v1126_v11 = vsel %vm1118_vm13, %v1114_v56, %v1122_v1  ;;  %v757_v13 = vadd.f32 %v10682_v3, %v10651_v47  ;;  %vm599_vm14 = vcmp.gt.f32.partialorder %v595_v8, 0.0  ;;  %v955_v53 = vsel %vm348_vm1, %v10761_v10, -inf }
 0x387   :  { %v10771_v15 = vsel %vm275_vm10, %v1126_v11, -1e+30  ;;  %vm278_vm15 = vcmp.gt.f32.partialorder %v10765_v14, 0.0  ;;  %v607_v16 = vsel %vm599_vm14, %v595_v8, %v603_v12  ;;  %v938_v18 = vadd.f32 %v10685_v4, %v10662_v54 }
 0x388   :  { %959 = vmax.xlane.f32.xlu0 %v958_v37  ;;  %v765_v17 = vmul.f32 0.2, %v757_v13  ;;  %vm761_vm0 = vcmp.gt.f32.partialorder %v757_v13, 0.0  ;;  %v1134_v47 = vsel %vm348_vm1, %v10771_v15, -inf  ;;  %v10780_v3 = vsel %vm278_vm15, %v607_v16, -1e+30 }
 0x389   :  { %v946_v24 = vmul.f32 0.2, %v938_v18  ;;  %v1117_v25 = vadd.f32 %v10692_v7, %v10653_v49  ;;  %vm942_vm4 = vcmp.gt.f32.partialorder %v938_v18, 0.0  ;;  %v621_v28 = vsel %vm348_vm1, %v10780_v3, -inf }
 0x38a   :  { %v769_v21 = vsel %vm761_vm0, %v757_v13, %v765_v17  ;;  %v594_v31 = vadd.f32 %v10679_v2, %v10664_v55  ;;  %v937_v37 = vadd.f32 %v10685_v4, %v10666_v58  ;;  %v1116_v43 = vadd.f32 %v10692_v7, %v10668_v60 }
 0x38b   :  { %v10788_v54 = vsel %vm278_vm15, %v769_v21, -1e+30  ;;  %v950_v29 = vsel %vm942_vm4, %v938_v18, %v946_v24  ;;  %v1125_v30 = vmul.f32 0.2, %v1117_v25  ;;  %vm1121_vm5 = vcmp.gt.f32.partialorder %v1117_v25, 0.0 }
 0x38c   :  { %1138 = vmax.xlane.f32.xlu0 %v1137_v44  ;;  %v783_v33 = vsel %vm348_vm1, %v10788_v54, -inf  ;;  %v10796_v49 = vsel %vm278_vm15, %v950_v29, -1e+30  ;;  %v602_v35 = vmul.f32 0.2, %v594_v31  ;;  %vm598_vm6 = vcmp.gt.f32.partialorder %v594_v31, 0.0 }
 0x38d   :  { %v1129_v34 = vsel %vm1121_vm5, %v1117_v25, %v1125_v30  ;;  %v964_v41 = vsel %vm348_vm1, %v10796_v49, -inf  ;;  %v945_v42 = vmul.f32 0.2, %v937_v37  ;;  %vm941_vm7 = vcmp.gt.f32.partialorder %v937_v37, 0.0 }
 0x38e   :  { %v10804_v55 = vsel %vm278_vm15, %v1129_v34, -1e+30  ;;  %v606_v2 = vsel %vm598_vm6, %v594_v31, %v602_v35  ;;  %v1124_v48 = vmul.f32 0.2, %v1116_v43  ;;  %vm1120_vm8 = vcmp.gt.f32.partialorder %v1116_v43, 0.0 }
 0x38f   :  { %v1143_v44 = vsel %vm348_vm1, %v10804_v55, -inf  ;;  %v10812_v58 = vsel %vm277_vm2, %v606_v2, -1e+30  ;;  %v949_v4 = vsel %vm941_vm7, %v937_v37, %v945_v42  ;;  %vm729_vm9 = vcmask 64512  }
 0x390   :  { %613 = vmax.xlane.f32.xlu0 %v612_v57  ;;  %v618_v51 = vsel %vm348_vm1, %v10812_v58, -inf  ;;  %v10818_v56 = vsel %vm277_vm2, %v949_v4, -1e+30  ;;  %v1128_v60 = vsel %vm1120_vm8, %v1116_v43, %v1124_v48  ;;  %vm910_vm11 = vcmask 130112  }
 0x391   :  { %995 = vrot.lane.b32.xlu1 %v10611_v27, %s10331_s3  ;;  %v961_v7 = vsel %vm348_vm1, %v10818_v56, -inf  ;;  %v10824_v57 = vsel %vm277_vm2, %v1128_v60, -1e+30  ;;  %vm1089_vm12 = vcmask 195712   ;;  %vm1268_vm13 = vcmask 261312  }
 0x392   :  { %v10754_v9 = vpop.permute.xlu1 %993  ;;  %v1140_v59 = vsel %vm348_vm1, %v10824_v57, -inf }
 0x393   :  { %8320 = vmatprep.subr.bf16.mxu1 %v10754_v9 }
 0x394   :  { %775 = vmax.xlane.f32.xlu0 %v774_v46 }
 0x398   :  { %956 = vmax.xlane.f32.xlu0 %v955_v53 }
 0x39c   :  { %1135 = vmax.xlane.f32.xlu0 %v1134_v47 }
 0x3a0   :  { %622 = vmax.xlane.f32.xlu0 %v621_v28 }
 0x3a4   :  { %784 = vmax.xlane.f32.xlu0 %v783_v33 }
 0x3a8   :  { %965 = vmax.xlane.f32.xlu0 %v964_v41 }
 0x3ac   :  { %1144 = vmax.xlane.f32.xlu0 %v1143_v44 }
 0x3b0   :  { %619 = vmax.xlane.f32.xlu0 %v618_v51 }
 0x3b4   :  { %962 = vmax.xlane.f32.xlu0 %v961_v7 }
 0x3b8   :  { %1141 = vmax.xlane.f32.xlu0 %v1140_v59 }
 0x3ce   :  { %1174 = vrot.lane.b32.xlu0 %v10611_v27, %s10330_s17 }
 0x40d   :  { %v617_v1 = vpop.xlane.xlu0 %616 }
 0x40e   :  { %v625_v16 = vsub.f32 %v10707_v20, %v617_v1 }
 0x410   :  { %v630_v21 = vmul.f32 1.442695, %v625_v16 }
 0x411   :  { %v779_v8 = vpop.xlane.xlu0 %778 }
 0x412   :  { %v787_v46 = vsub.f32 %v10715_v26, %v779_v8 }
 0x414   :  { %v792_v11 = vmul.f32 1.442695, %v787_v46 }
 0x415   :  { %v960_v12 = vpop.xlane.xlu0 %959 }
 0x416   :  { %9378 = vpow2.f32 %v792_v11  ;;  %v968_v13 = vsub.f32 %v10722_v32, %v960_v12 }
 0x418   :  { %v973_v53 = vmul.f32 1.442695, %v968_v13 }
 0x419   :  { %v1139_v17 = vpop.xlane.xlu0 %1138 }
 0x41a   :  { %9380 = vpow2.f32 %v973_v53  ;;  %v1147_v18 = vsub.f32 %v10731_v40, %v1139_v17  ;;  %v782_v40 = vpop.xlane.xlu1 %781 }
 0x41b   :  { %v788_v35 = vsub.f32 %v10703_v19, %v782_v40 }
 0x41c   :  { %v1152_v47 = vmul.f32 1.442695, %v1147_v18 }
 0x41d   :  { %v614_v24 = vpop.xlane.xlu0 %613  ;;  %v794_v44 = vmul.f32 1.442695, %v788_v35 }
 0x41e   :  { %9382 = vpow2.f32 %v1152_v47  ;;  %v624_v27 = vsub.f32 %v10740_v45, %v614_v24 }
 0x41f   :  { %9384 = vpow2.f32 %v630_v21 }
 0x420   :  { %v9379_v25 = vpop.eup %9378  ;;  %v628_v26 = vmul.f32 1.442695, %v624_v27 }
 0x421   :  { %v776_v28 = vpop.xlane.xlu0 %775  ;;  %v801_v29 = vsel %vm348_vm1, %v9379_v25, 0.0 }
 0x422   :  { %9386 = vpow2.f32 %v628_v26  ;;  %v786_v32 = vsub.f32 %v10748_v52, %v776_v28  ;;  %802 = vadd.xlane.f32.xlu0 %v801_v29 }
 0x424   :  { %v10837_v20 = vpop.eup %9380  ;;  %v790_v30 = vmul.f32 1.442695, %v786_v32 }
 0x425   :  { %v957_v31 = vpop.xlane.xlu0 %956  ;;  %v982_v33 = vsel %vm348_vm1, %v10837_v20, 0.0 }
 0x426   :  { %9388 = vpow2.f32 %v790_v30  ;;  %v967_v45 = vsub.f32 %v10761_v10, %v957_v31  ;;  %983 = vadd.xlane.f32.xlu1 %v982_v33 }
 0x428   :  { %v9383_v34 = vpop.eup %9382  ;;  %v971_v37 = vmul.f32 1.442695, %v967_v45 }
 0x429   :  { %v1136_v41 = vpop.xlane.xlu0 %1135  ;;  %v1161_v52 = vsel %vm348_vm1, %v9383_v34, 0.0  ;;  %v10845_v42 = vpop.eup %9384 }
 0x42a   :  { %9390 = vpow2.f32 %v971_v37  ;;  %v1146_v2 = vsub.f32 %v10771_v15, %v1136_v41  ;;  %1162 = vadd.xlane.f32.xlu1 %v1161_v52 }
 0x42c   :  { %v10847_v43 = vpop.eup %9386  ;;  %v1150_v4 = vmul.f32 1.442695, %v1146_v2 }
 0x42d   :  { %v623_v48 = vpop.xlane.xlu0 %622  ;;  %v648_v10 = vpack.c.bf16 %v10845_v42, %v10847_v43 }
 0x42e   :  { %9392 = vpow2.f32 %v1150_v4  ;;  %v627_v53 = vsub.f32 %v10780_v3, %v623_v48 }
 0x42f   :  { %8308 = vmatprep.mubr.msk.bf16.mxu1 %vm348_vm1, %v648_v10  ;;  %9394 = vpow2.f32 %v794_v44  ;;  %v996_v44 = vpop.permute.xlu1 %995 }
 0x430   :  { %v9389_v19 = vpop.eup %9388  ;;  %v634_v21 = vmul.f32 1.442695, %v627_v53 }
 0x431   :  { %v785_v51 = vpop.xlane.xlu0 %784  ;;  %v798_v60 = vsel %vm348_vm1, %v9389_v19, 0.0  ;;  %v810_v15 = vpack.c.bf16 %v9379_v25, %v9389_v19 }
 0x432   :  { %v789_v7 = vsub.f32 %v10788_v54, %v785_v51  ;;  %799 = vadd.xlane.f32.xlu1 %v798_v60  ;;  %v636_v51 = vsel %vm348_vm1, %v10847_v43, 0.0 }
 0x433   :  { %8316 = vmatprep.mubr.msk.bf16.mxu0 %vm348_vm1, %v810_v15 }
 0x434   :  { %v9391_v59 = vpop.eup %9390  ;;  %v796_v1 = vmul.f32 1.442695, %v789_v7 }
 0x435   :  { %v966_v8 = vpop.xlane.xlu0 %965  ;;  %v979_v46 = vsel %vm348_vm1, %v9391_v59, 0.0  ;;  %v991_v52 = vpack.c.bf16 %v10837_v20, %v9391_v59  ;;  %v10878_v20 = vld [vmem:[#allocation11] ss:$0 sm:$0xff] }
 0x436   :  { %9396 = vpow2.f32 %v796_v1  ;;  %v970_v11 = vsub.f32 %v10796_v49, %v966_v8  ;;  %980 = vadd.xlane.f32.xlu0 %v979_v46 }
 0x438   :  { %v9393_v12 = vpop.eup %9392  ;;  %v977_v13 = vmul.f32 1.442695, %v970_v11 }
 0x439   :  { %v1145_v16 = vpop.xlane.xlu0 %1144  ;;  %v1158_v17 = vsel %vm348_vm1, %v9393_v12, 0.0  ;;  %v9395_v54 = vpop.eup %9394  ;;  %v1170_v32 = vpack.c.bf16 %v9383_v34, %v9393_v12 }
 0x43a   :  { %9398 = vpow2.f32 %v977_v13  ;;  %v1149_v18 = vsub.f32 %v10804_v55, %v1145_v16  ;;  %1159 = vadd.xlane.f32.xlu0 %v1158_v17  ;;  %v804_v27 = vsel %vm348_vm1, %v9395_v54, 0.0 }
 0x43c   :  { %v1156_v47 = vmul.f32 1.442695, %v1149_v18 }
 0x43d   :  { %v620_v24 = vpop.xlane.xlu0 %619 }
 0x43e   :  { %9400 = vpow2.f32 %v1156_v47  ;;  %v626_v49 = vsub.f32 %v10812_v58, %v620_v24  ;;  %805 = vadd.xlane.f32.xlu0 %v804_v27 }
 0x43f   :  { %9402 = vpow2.f32 %v634_v21 }
 0x440   :  { %v9397_v25 = vpop.eup %9396  ;;  %v632_v26 = vmul.f32 1.442695, %v626_v49 }
 0x441   :  { %v811_v3 = vpack.c.bf16 %v9397_v25, %v9395_v54  ;;  %v963_v28 = vpop.xlane.xlu0 %962  ;;  %v807_v29 = vsel %vm348_vm1, %v9397_v25, 0.0 }
 0x442   :  { %9404 = vpow2.f32 %v632_v26  ;;  %v969_v55 = vsub.f32 %v10818_v56, %v963_v28  ;;  %808 = vadd.xlane.f32.xlu1 %v807_v29 }
 0x443   :  { %8317 = vmatmul.mubr.msk.bf16.vlgmr.msra.gmra.mrb[8].mxu0 %vm348_vm1, %v811_v3 }
 0x444   :  { %v9399_v30 = vpop.eup %9398  ;;  %v975_v40 = vmul.f32 1.442695, %v969_v55  ;;  %8329 = vmatpush3.bf16.msra.mxu0 %v10655_v50  ;;  %8332 = vmatprep.mubr.msk.bf16.mxu0 %vm348_vm1, %v1170_v32 }
 0x445   :  { %v1142_v58 = vpop.xlane.xlu0 %1141  ;;  %v988_v31 = vsel %vm348_vm1, %v9399_v30, 0.0 }
 0x446   :  { %9406 = vpow2.f32 %v975_v40  ;;  %v1148_v33 = vsub.f32 %v10824_v57, %v1142_v58  ;;  %989 = vadd.xlane.f32.xlu1 %v988_v31 }
 0x448   :  { %v9401_v45 = vpop.eup %9400  ;;  %v1154_v35 = vmul.f32 1.442695, %v1148_v33 }
 0x449   :  { %v1175_v56 = vpop.permute.xlu0 %1174  ;;  %v1167_v34 = vsel %vm348_vm1, %v9401_v45, 0.0  ;;  %v9403_v37 = vpop.eup %9402 }
 0x44a   :  { %9408 = vpow2.f32 %v1154_v35  ;;  %1168 = vadd.xlane.f32.xlu1 %v1167_v34  ;;  %8330 = vmatprep.subr.bf16.mxu0 %v1175_v56  ;;  %v645_v60 = vsel %vm348_vm1, %v9403_v37, 0.0 }
 0x44b   :  { %8331 = vmatpush3.bf16.msra.mxu0 %v1175_v56 }
 0x44c   :  { %v9405_v50 = vpop.eup %9404 }
 0x44d   :  { %v649_v41 = vpack.c.bf16 %v9403_v37, %v9405_v50  ;;  %v642_v15 = vsel %vm348_vm1, %v9405_v50, 0.0 }
 0x44f   :  { %8309 = vmatmul.mubr.msk.bf16.vlgmr.msra.gmra.mrb[4].mxu1 %vm348_vm1, %v649_v41 }
 0x450   :  { %v9407_v2 = vpop.eup %9406  ;;  %8321 = vmatpush3.bf16.msra.mxu1 %v10754_v9  ;;  %8324 = vmatprep.mubr.msk.bf16.mxu1 %vm348_vm1, %v991_v52  ;;  %v639_v9 = vsel %vm348_vm1, %v10845_v42, 0.0 }
 0x451   :  { %8322 = vmatprep.subr.bf16.mxu1 %v996_v44  ;;  %v985_v57 = vsel %vm348_vm1, %v9407_v2, 0.0  ;;  %v992_v10 = vpack.c.bf16 %v9399_v30, %v9407_v2 }
 0x452   :  { %986 = vadd.xlane.f32.xlu0 %v985_v57 }
 0x454   :  { %v9409_v4 = vpop.eup %9408  ;;  %8323 = vmatpush3.bf16.msra.mxu1 %v996_v44 }
 0x455   :  { %v1164_v48 = vsel %vm348_vm1, %v9409_v4, 0.0  ;;  %v1171_v19 = vpack.c.bf16 %v9401_v45, %v9409_v4 }
 0x456   :  { %1165 = vadd.xlane.f32.xlu0 %v1164_v48 }
 0x457   :  { %8325 = vmatmul.mubr.msk.bf16.vlgmr.msra.gmra.mrb[8].mxu1 %vm348_vm1, %v992_v10  ;;  %8333 = vmatmul.mubr.msk.bf16.vlgmr.msra.gmra.mrb[12].mxu0 %vm348_vm1, %v1171_v19 }
 0x45b   :  { %1062 = vrot.lane.b32.xlu1 %v10878_v20, %s10331_s3 }
 0x45f   :  { %1241 = vrot.lane.b32.xlu1 %v10878_v20, %s10330_s17 }
 0x46c   :  { %883 = vrot.lane.b32.xlu0 %v10878_v20, %s10327_s5 }
 0x483   :  { %640 = vadd.xlane.f32.xlu1 %v639_v9 }
 0x48b   :  { %637 = vadd.xlane.f32.xlu0 %v636_v51 }
 0x48f   :  { %646 = vadd.xlane.f32.xlu0 %v645_v60 }
 0x493   :  { %643 = vadd.xlane.f32.xlu0 %v642_v15 }
 0x4af   :  { %v803_v1 = vpop.xlane.xlu0 %802 }
 0x4b3   :  { %v984_v7 = vpop.xlane.xlu1 %983 }
 0x4b7   :  { %v1163_v59 = vpop.xlane.xlu1 %1162 }
 0x4bf   :  { %v800_v8 = vpop.xlane.xlu1 %799 }
 0x4c3   :  { %v981_v46 = vpop.xlane.xlu0 %980 }
 0x4c7   :  { %v1160_v12 = vpop.xlane.xlu0 %1159 }
 0x4cb   :  { %v806_v42 = vpop.xlane.xlu0 %805 }
 0x4cc   :  { %9410 = vrcp.f32 %v806_v42 }
 0x4cd   :  { %9412 = vrcp.f32 %v800_v8 }
 0x4ce   :  { %9414 = vrcp.f32 %v803_v1 }
 0x4cf   :  { %v809_v11 = vpop.xlane.xlu1 %808 }
 0x4d0   :  { %9416 = vrcp.f32 %v809_v11 }
 0x4d3   :  { %v990_v13 = vpop.xlane.xlu1 %989 }
 0x4d6   :  { %v9411_v47 = vpop.eup %9410 }
 0x4d7   :  { %v10892_v53 = vpop.xlane.xlu1 %1168  ;;  %v9413_v24 = vpop.eup %9412 }
 0x4d8   :  { %v9415_v29 = vpop.eup %9414 }
 0x4da   :  { %v9417_v30 = vpop.eup %9416 }
 0x4db   :  { %v10894_v43 = vpop.permute.xlu1 %1062 }
 0x4df   :  { %v987_v16 = vpop.xlane.xlu0 %986  ;;  %v10896_v54 = vpop.permute.xlu1 %1241 }
 0x4e3   :  { %v1166_v17 = vpop.xlane.xlu0 %1165 }
 0x4e7   :  { %v884_v18 = vpop.permute.xlu0 %883 }
 0x510   :  { %v641_v27 = vpop.xlane.xlu1 %640 }
 0x516   :  { %v8318_v21 = vpop.f32.mrb[8].mxu0 }
 0x517   :  { %v881_v49 = vmul.f32 %v9411_v47, %v8318_v21  ;;  %v860_v25 = vpop.f32.mrb[9].mxu0 }
 0x518   :  { %v879_v26 = vmul.f32 %v9413_v24, %v860_v25  ;;  %v8319_v3 = vpop.f32.mrb[10].mxu0  ;;  %v638_v28 = vpop.xlane.xlu0 %637 }
 0x519   :  { %9418 = vrcp.f32 %v638_v28  ;;  %v863_v55 = vpop.f32.mrb[11].mxu0  ;;  %v888_v32 = vadd.f32 %v884_v18, %v881_v49  ;;  %v882_v58 = vmul.f32 %v9417_v30, %v8319_v3 }
 0x51a   :  { %v880_v40 = vmul.f32 %v9415_v29, %v863_v55  ;;  %9420 = vrcp.f32 %v641_v27  ;;  %v886_v33 = vadd.f32 %v884_v18, %v879_v26 }
 0x51b   :  { %v892_v31 = vmax.f32 %v888_v32, 0.0  ;;  %v889_v37 = vadd.f32 %v884_v18, %v882_v58 }
 0x51c   :  { %v647_v45 = vpop.xlane.xlu0 %646  ;;  %v887_v35 = vadd.f32 %v884_v18, %v880_v40  ;;  %v890_v34 = vmax.f32 %v886_v33, 0.0 }
 0x51d   :  { %9422 = vrcp.f32 %v647_v45  ;;  %902 = vrot.lane.b32.xlu1 %v892_v31, %s10313_s26  ;;  %v893_v44 = vmax.f32 %v889_v37, 0.0  ;;  %v1277_v37 = vld [vmem:[%s12478_s22] sm:$0xff] }
 0x51e   :  { %v891_v56 = vmax.f32 %v887_v35, 0.0  ;;  %9424 = vrcp.f32 %v981_v46 }
 0x51f   :  { %9426 = vrcp.f32 %v987_v16 }
 0x520   :  { %900 = vrot.lane.b32.xlu0 %v891_v56, %s10313_s26  ;;  %v644_v50 = vpop.xlane.xlu0 %643 }
 0x521   :  { %9428 = vrcp.f32 %v644_v50  ;;  %898 = vrot.lane.b32.xlu1 %v890_v34, %s10313_s26  ;;  %v1278_v50 = vld [vmem:[%s12478_s22 + $0x8] sm:$0xff] }
 0x522   :  { %9430 = vrcp.f32 %v990_v13  ;;  %v8310_v41 = vpop.f32.mrb[4].mxu1 }
 0x523   :  { %v9419_v52 = vpop.eup %9418  ;;  %9432 = vrcp.f32 %v984_v7  ;;  %v692_v2 = vpop.f32.mrb[5].mxu1 }
 0x524   :  { %9434 = vrcp.f32 %v1160_v12  ;;  %v711_v57 = vmul.f32 %v9419_v52, %v692_v2  ;;  %v8311_v4 = vpop.f32.mrb[6].mxu1  ;;  %v9421_v48 = vpop.eup %9420 }
 0x525   :  { %v695_v10 = vpop.f32.mrb[7].mxu1  ;;  %904 = vrot.lane.b32.xlu1 %v893_v44, %s10313_s26  ;;  %9436 = vrcp.f32 %v1163_v59 }
 0x526   :  { %v721_v19 = vadd.f32 %v10878_v20, %v711_v57  ;;  %v712_v9 = vmul.f32 %v9421_v48, %v695_v10  ;;  %9438 = vrcp.f32 %v1166_v17  ;;  %v1283_v57 = vpack.c.bf16 %v1278_v50, %v1277_v37 }
 0x527   :  { %v9423_v51 = vpop.eup %9422  ;;  %9440 = vrcp.f32 %v10892_v53 }
 0x528   :  { %v725_v60 = vmax.f32 %v721_v19, 0.0  ;;  %v714_v15 = vmul.f32 %v9423_v51, %v8311_v4  ;;  %v722_v7 = vadd.f32 %v10878_v20, %v712_v9  ;;  %v9425_v1 = vpop.eup %9424  ;;  %v1280_v4 = vld [vmem:[%s12478_s22 + $0x18] sm:$0xff]  ;;  %8336 = vmatprep.subr.bf16.mxu1 %v1283_v57 }
 0x529   :  { %v9427_v8 = vpop.eup %9426  ;;  %8337 = vmatpush3.bf16.msra.mxu1 %v1283_v57 }
 0x52a   :  { %v724_v46 = vadd.f32 %v10878_v20, %v714_v15  ;;  %v726_v11 = vmax.f32 %v722_v7, 0.0  ;;  %v8326_v12 = vpop.f32.mrb[8].mxu1  ;;  %v8334_v13 = vpop.f32.mrb[12].mxu0  ;;  %730 = vst.msk [vmem:[#allocation2] sm:$0xff] %vm729_vm9, %v725_v60 }
 0x52b   :  { %v9429_v59 = vpop.eup %9428  ;;  %v1060_v42 = vmul.f32 %v9427_v8, %v8326_v12  ;;  %v1039_v16 = vpop.f32.mrb[9].mxu1  ;;  %v1340_v8 = vld [vmem:[%s12479_s18] sm:$0xff] }
 0x52c   :  { %v1218_v18 = vpop.f32.mrb[13].mxu0  ;;  %v9431_v17 = vpop.eup %9430  ;;  %v713_v47 = vmul.f32 %v9429_v59, %v8310_v41  ;;  %v728_v21 = vmax.f32 %v724_v46, 0.0  ;;  %v1058_v24 = vmul.f32 %v9425_v1, %v1039_v16  ;;  %731 = vst.msk [vmem:[#allocation2 + $0x8] sm:$0xff] %vm729_vm9, %v726_v11  ;;  %v1279_v41 = vld [vmem:[%s12478_s22 + $0x10] sm:$0xff]  ;;  %v1341_v46 = vld [vmem:[%s12479_s18 + $0x8] sm:$0xff]  ;;  %v1441_v11 = vld [vmem:[%s12480_s8] sm:$0xff] }
 0x52d   :  { %v8327_v27 = vpop.f32.mrb[10].mxu1  ;;  %v8335_v49 = vpop.f32.mrb[14].mxu0  ;;  %v1067_v28 = vadd.f32 %v10894_v43, %v1060_v42  ;;  %v1284_v10 = vpack.c.bf16 %v1280_v4, %v1279_v41  ;;  %v1442_v59 = vld [vmem:[%s12480_s8 + $0x8] sm:$0xff] }
 0x52e   :  { %v9433_v53 = vpop.eup %9432  ;;  %v1061_v25 = vmul.f32 %v9431_v17, %v8327_v27  ;;  %v1042_v26 = vpop.f32.mrb[11].mxu1  ;;  %v723_v55 = vadd.f32 %v10878_v20, %v713_v47  ;;  %733 = vst.msk [vmem:[#allocation2 + $0x18] sm:$0xff] %vm729_vm9, %v728_v21  ;;  %v1065_v45 = vadd.f32 %v10894_v43, %v1058_v24  ;;  %v9068_v42 = vpack.c.bf16 %v1442_v59, %v1441_v11 }
 0x52f   :  { %v1221_v3 = vpop.f32.mrb[15].mxu0  ;;  %v9435_v29 = vpop.eup %9434  ;;  %v1059_v32 = vmul.f32 %v9433_v53, %v1042_v26  ;;  %v1071_v40 = vmax.f32 %v1067_v28, 0.0  ;;  %8338 = vmatprep.subr.bf16.mxu1 %v1284_v10 }
 0x530   :  { %v1237_v30 = vmul.f32 %v9435_v29, %v1218_v18  ;;  %v1068_v58 = vadd.f32 %v10894_v43, %v1061_v25  ;;  %v9437_v31 = vpop.eup %9436  ;;  %v727_v33 = vmax.f32 %v723_v55, 0.0  ;;  %v1069_v44 = vmax.f32 %v1065_v45, 0.0  ;;  %8339 = vmatpush3.bf16.msra.mxu1 %v1284_v10  ;;  %v1444_v45 = vld [vmem:[%s12480_s8 + $0x18] sm:$0xff] }
 0x531   :  { %v1238_v35 = vmul.f32 %v9437_v31, %v1221_v3  ;;  %1081 = vrot.lane.b32.xlu0 %v1071_v40, %s10316_s0  ;;  %v1066_v20 = vadd.f32 %v10894_v43, %v1059_v32  ;;  %v9439_v34 = vpop.eup %9438  ;;  %9069 = vmatprep.subr.bf16.mxu1 %v9068_v42  ;;  %v1342_v40 = vld [vmem:[%s12479_s18 + $0x10] sm:$0xff] }
 0x532   :  { %v1072_v56 = vmax.f32 %v1068_v58, 0.0  ;;  %732 = vst.msk [vmem:[#allocation2 + $0x10] sm:$0xff] %vm729_vm9, %v727_v33  ;;  %v1239_v52 = vmul.f32 %v9439_v34, %v8334_v13  ;;  %v1244_v2 = vadd.f32 %v10896_v54, %v1237_v30  ;;  %v9441_v48 = vpop.eup %9440  ;;  %v9060_v13 = vpack.c.bf16 %v1341_v46, %v1340_v8  ;;  %v1343_v58 = vld [vmem:[%s12479_s18 + $0x18] sm:$0xff]  ;;  %v1443_v31 = vld [vmem:[%s12480_s8 + $0x10] sm:$0xff] }
 0x533   :  { %v1240_v19 = vmul.f32 %v9441_v48, %v8335_v49  ;;  %v1245_v9 = vadd.f32 %v10896_v54, %v1238_v35  ;;  %v1070_v43 = vmax.f32 %v1066_v20, 0.0  ;;  %v9064_v33 = vpack.c.bf16 %v1343_v58, %v1342_v40 }
 0x534   :  { %1083 = vrot.lane.b32.xlu1 %v1072_v56, %s10316_s0  ;;  %v1246_v51 = vadd.f32 %v10896_v54, %v1239_v52  ;;  %v1248_v60 = vmax.f32 %v1244_v2, 0.0  ;;  %9061 = vmatprep.subr.bf16.mxu0 %v9060_v13  ;;  %v9072_v35 = vpack.c.bf16 %v1444_v45, %v1443_v31 }
 0x535   :  { %1077 = vrot.lane.b32.xlu0 %v1069_v44, %s10316_s0  ;;  %v1247_v15 = vadd.f32 %v10896_v54, %v1240_v19  ;;  %v1249_v7 = vmax.f32 %v1245_v9, 0.0  ;;  %9063 = vmatpush3.bf16.msra.mxu0 %v9060_v13 }
 0x536   :  { %v1250_v1 = vmax.f32 %v1246_v51, 0.0  ;;  %9065 = vmatprep.subr.bf16.mxu0 %v9064_v33 }
 0x537   :  { %v1251_v12 = vmax.f32 %v1247_v15, 0.0 }
 0x538   :  { %1079 = vrot.lane.b32.xlu1 %v1070_v43, %s10316_s0 }
 0x539   :  { %1256 = vrot.lane.b32.xlu0 %v1248_v60, %s10332_s14  ;;  %9067 = vmatpush3.bf16.msra.mxu0 %v9064_v33 }
 0x53c   :  { %1258 = vrot.lane.b32.xlu1 %v1249_v7, %s10332_s14 }
 0x53d   :  { %1260 = vrot.lane.b32.xlu0 %v1250_v1, %s10332_s14 }
 0x540   :  { %1262 = vrot.lane.b32.xlu1 %v1251_v12, %s10332_s14 }
 0x58f   :  { %v903_v54 = vpop.permute.xlu1 %902 }
 0x590   :  { %913 = vst.msk [vmem:[#allocation2 + $0x10] sm:$0xff] %vm910_vm11, %v903_v54 }
 0x592   :  { %v901_v16 = vpop.permute.xlu0 %900 }
 0x593   :  { %912 = vst.msk [vmem:[#allocation2 + $0x8] sm:$0xff] %vm910_vm11, %v901_v16  ;;  %v899_v18 = vpop.permute.xlu1 %898 }
 0x594   :  { %911 = vst.msk [vmem:[#allocation2] sm:$0xff] %vm910_vm11, %v899_v18 }
 0x597   :  { %v905_v17 = vpop.permute.xlu1 %904 }
 0x598   :  { %914 = vst.msk [vmem:[#allocation2 + $0x18] sm:$0xff] %vm910_vm11, %v905_v17 }
 0x5a3   :  { %v1082_v47 = vpop.permute.xlu0 %1081 }
 0x5a4   :  { %1092 = vst.msk [vmem:[#allocation2 + $0x10] sm:$0xff] %vm1089_vm12, %v1082_v47 }
 0x5a6   :  { %v1084_v21 = vpop.permute.xlu1 %1083 }
 0x5a7   :  { %1093 = vst.msk [vmem:[#allocation2 + $0x18] sm:$0xff] %vm1089_vm12, %v1084_v21  ;;  %v1078_v24 = vpop.permute.xlu0 %1077 }
 0x5a8   :  { %1090 = vst.msk [vmem:[#allocation2] sm:$0xff] %vm1089_vm12, %v1078_v24 }
 0x5aa   :  { %v1080_v27 = vpop.permute.xlu1 %1079 }
 0x5ab   :  { %1091 = vst.msk [vmem:[#allocation2 + $0x8] sm:$0xff] %vm1089_vm12, %v1080_v27  ;;  %v1257_v49 = vpop.permute.xlu0 %1256 }
 0x5ac   :  { %1269 = vst.msk [vmem:[#allocation2] sm:$0xff] %vm1268_vm13, %v1257_v49 }
 0x5ae   :  { %v1259_v53 = vpop.permute.xlu1 %1258 }
 0x5af   :  { %1270 = vst.msk [vmem:[#allocation2 + $0x8] sm:$0xff] %vm1268_vm13, %v1259_v53  ;;  %v1261_v25 = vpop.permute.xlu0 %1260 }
 0x5b0   :  { %1271 = vst.msk [vmem:[#allocation2 + $0x10] sm:$0xff] %vm1268_vm13, %v1261_v25 }
 0x5b2   :  { %v1263_v26 = vpop.permute.xlu1 %1262 }
 0x5b3   :  { %1272 = vst.msk [vmem:[#allocation2 + $0x18] sm:$0xff] %vm1268_vm13, %v1263_v26  ;;  %v1273_v3 = vld [vmem:[#allocation2] sm:$0xff] }
 0x5b6   :  { %v1274_v28 = vld [vmem:[#allocation2 + $0x8] sm:$0xff] }
 0x5b7   :  { %v1281_v29 = vpack.c.bf16 %v1274_v28, %v1273_v3  ;;  %v1275_v55 = vld [vmem:[#allocation2 + $0x10] sm:$0xff] }
 0x5b9   :  { %8340 = vmatprep.mubr.msk.bf16.mxu1 %vm348_vm1, %v1281_v29 }
 0x5ba   :  { %v1276_v32 = vld [vmem:[#allocation2 + $0x18] sm:$0xff] }
 0x5bb   :  { %v1282_v30 = vpack.c.bf16 %v1276_v32, %v1275_v55 }
 0x5bd   :  { %8341 = vmatmul.mubr.msk.bf16.vlgmr.msra.gmra.mrb[12].mxu1 %vm348_vm1, %v1282_v30 }
 0x5be   :  { %9071 = vmatpush3.bf16.msra.mxu1 %v9068_v42 }
 0x5bf   :  { %9073 = vmatprep.subr.bf16.mxu1 %v9072_v35 }
 0x5c2   :  { %9075 = vmatpush3.bf16.msra.mxu1 %v9072_v35 }
 0x690   :  { %v8342_v56 = vpop.f32.mrb[12].mxu1 }
 0x691   :  { %v1325_v20 = vpop.f32.mrb[13].mxu1 }
 0x692   :  { %v8343_v34 = vpop.f32.mrb[14].mxu1  ;;  %8352 = vmatprep.mubr.msk.f32.mxu0 %vm348_vm1, %v1325_v20  ;;  %8366 = vmatprep.mubr.msk.f32.mxu1 %vm348_vm1, %v1325_v20 }
 0x693   :  { %v10955_v37 = vpack.c.bf16 %v8343_v34, %v8342_v56  ;;  %v1328_v50 = vpop.f32.mrb[15].mxu1 }
 0x694   :  { %v1645_v41 = vpack.c.bf16 %v1328_v50, %v1325_v20  ;;  %8353 = vmatmul.mubr.msk.f32.vlgmr.msra.gmra.mrb[16].mxu0 %vm348_vm1, %v1328_v50  ;;  %8367 = vmatmul.mubr.msk.f32.vlgmr.msra.gmra.mrb[16].mxu1 %vm348_vm1, %v1328_v50 }
 0x695   :  { %1810 = vrot.lane.b32.xlu0 %v10955_v37, %s10327_s5  ;;  %8355 = vmatprep.mubr.msk.f32.mxu0 %vm348_vm1, %v8342_v56 }
 0x696   :  { %8369 = vmatprep.mubr.msk.f32.mxu1 %vm348_vm1, %v8342_v56  ;;  %1808 = vrot.lane.b32.xlu1 %v1645_v41, %s10327_s5 }
 0x697   :  { %8372 = vmatprep.subr.bf16.mxu0 %v1645_v41 }
 0x698   :  { %8373 = vmatpush3.bf16.msra.mxu0 %v1645_v41  ;;  %8370 = vmatmul.mubr.msk.f32.gmra.mrb[18].mxu1 %vm348_vm1, %v8343_v34 }
 0x699   :  { %8356 = vmatmul.mubr.msk.f32.gmra.mrb[18].mxu0 %vm348_vm1, %v8343_v34  ;;  %8374 = vmatprep.subr.bf16.mxu0 %v10955_v37 }
 0x69a   :  { %1986 = vrot.lane.b32.xlu1 %v1645_v41, %s10331_s3 }
 0x69c   :  { %8375 = vmatpush3.bf16.msra.mxu0 %v10955_v37 }
 0x69e   :  { %2164 = vrot.lane.b32.xlu1 %v1645_v41, %s10330_s17 }
 0x707   :  { %v1811_v2 = vpop.permute.xlu0 %1810 }
 0x708   :  { %v1809_v52 = vpop.permute.xlu1 %1808 }
 0x709   :  { %8380 = vmatprep.subr.bf16.mxu1 %v1809_v52 }
 0x70a   :  { %8381 = vmatpush3.bf16.msra.mxu1 %v1809_v52 }
 0x70b   :  { %8382 = vmatprep.subr.bf16.mxu1 %v1811_v2 }
 0x70c   :  { %v10970_v44 = vpop.permute.xlu1 %1986 }
 0x70d   :  { %8388 = vmatprep.subr.bf16.mxu0 %v10970_v44 }
 0x70e   :  { %8383 = vmatpush3.bf16.msra.mxu1 %v1811_v2 }
 0x710   :  { %v10973_v57 = vpop.permute.xlu1 %2164 }
 0x711   :  { %8396 = vmatprep.subr.bf16.mxu1 %v10973_v57 }
 0x767   :  { %v8354_v4 = vpop.f32.mrb[16].mxu0  ;;  %v8368_v48 = vpop.f32.mrb[16].mxu1 }
 0x768   :  { %1733 = vperm.xlu0 %9345, %v8368_v48   ;;  %1570 = vperm.xlu1 %9344, %v8368_v48   ;;  %v1422_v10 = vpop.f32.mrb[17].mxu0  ;;  %v1511_v19 = vpop.f32.mrb[17].mxu1 }
 0x76b   :  { %v8371_v9 = vpop.f32.mrb[18].mxu1 }
 0x76c   :  { %v8357_v43 = vpop.f32.mrb[18].mxu0  ;;  %9347 = vset.pattern.permute.xlu0 %v10328_v38  ;;  %9346 = vset.pattern.permute.xlu1 %v10329_v39  ;;  %v1521_v51 = vpop.f32.mrb[19].mxu1 }
 0x76d   :  { %v1432_v60 = vpop.f32.mrb[19].mxu0  ;;  %2091 = vperm.xlu0 %9347, %v8368_v48   ;;  %1913 = vperm.xlu1 %9346, %v8368_v48  }
 0x771   :  { %9348 = vset.pattern.permute.xlu0 %v10326_v23  ;;  %9349 = vset.pattern.permute.xlu1 %v10325_v22 }
 0x772   :  { %1729 = vperm.xlu1 %9349, %v1511_v19   ;;  %1565 = vperm.xlu0 %9348, %v1511_v19  }
 0x776   :  { %9351 = vset.pattern.permute.xlu1 %v10328_v38  ;;  %9350 = vset.pattern.permute.xlu0 %v10329_v39 }
 0x777   :  { %2087 = vperm.xlu1 %9351, %v1511_v19   ;;  %1909 = vperm.xlu0 %9350, %v1511_v19  }
 0x77b   :  { %9353 = vset.pattern.permute.xlu1 %v10325_v22  ;;  %9352 = vset.pattern.permute.xlu0 %v10326_v23 }
 0x77c   :  { %1741 = vperm.xlu1 %9353, %v8371_v9   ;;  %1580 = vperm.xlu0 %9352, %v8371_v9  }
 0x780   :  { %9355 = vset.pattern.permute.xlu1 %v10328_v38  ;;  %9354 = vset.pattern.permute.xlu0 %v10329_v39 }
 0x781   :  { %2099 = vperm.xlu1 %9355, %v8371_v9   ;;  %1921 = vperm.xlu0 %9354, %v8371_v9  }
 0x785   :  { %9356 = vset.pattern.permute.xlu1 %v10326_v23 }
 0x786   :  { %1575 = vperm.xlu1 %9356, %v1521_v51  }
 0x78a   :  { %9357 = vset.pattern.permute.xlu1 %v10325_v22 }
 0x78b   :  { %1737 = vperm.xlu1 %9357, %v1521_v51  }
 0x78f   :  { %9358 = vset.pattern.permute.xlu1 %v10329_v39 }
 0x790   :  { %1917 = vperm.xlu1 %9358, %v1521_v51  }
 0x794   :  { %9359 = vset.pattern.permute.xlu1 %v10328_v38 }
 0x795   :  { %2095 = vperm.xlu1 %9359, %v1521_v51  }
 0x799   :  { %9361 = vset.pattern.permute.xlu1 %v10325_v22 }
 0x79f   :  { %1530 = vxpose.xlu0.b32.start [1/4] (short) (narrow) %v1422_v10, 8 }
 0x7a3   :  { %1531 = vxpose.xlu0.b32.cont [2/4] (short) (narrow) %v8354_v4, 8 }
 0x7a7   :  { %1532 = vxpose.xlu0.b32.cont [3/4] (short) (narrow) %v1432_v60, 8 }
 0x7ab   :  { %1533 = vxpose.xlu0.b32.end [4/4] (short) (narrow) %v8357_v43, 8 }
 0x7d4   :  { %9360 = vset.pattern.permute.xlu0 %v10326_v23 }
 0x7e7   :  { %v1734_v15 = vpop.permute.xlu0 %1733  ;;  %v1571_v7 = vpop.permute.xlu1 %1570 }
 0x7ec   :  { %v2092_v1 = vpop.permute.xlu0 %2091  ;;  %v1914_v8 = vpop.permute.xlu1 %1913 }
 0x7f1   :  { %v1566_v46 = vpop.permute.xlu0 %1565  ;;  %v1730_v11 = vpop.permute.xlu1 %1729 }
 0x7f6   :  { %v1910_v12 = vpop.permute.xlu0 %1909  ;;  %v10992_v13 = vpop.permute.xlu1 %2087 }
 0x7fb   :  { %v1581_v59 = vpop.permute.xlu0 %1580  ;;  %v10994_v42 = vpop.permute.xlu1 %1741 }
 0x800   :  { %v10996_v54 = vpop.permute.xlu0 %1921  ;;  %v2100_v24 = vpop.permute.xlu1 %2099 }
 0x81f   :  { %v1546_v16 = vpop.trf.xlu0 }
 0x820   :  { %v10999_v18 = vrot.slane %v1546_v16, %v10670_v61  ;;  %v11002_v17 = vrot.slane %v1546_v16, %v10672_v62  ;;  %v11005_v47 = vrot.slane %v1546_v16, %v10674_v63  ;;  %v11008_v21 = vrot.slane %v1546_v16, %v10676_v0 }
 0x822   :  { %v1590_v27 = vadd.f32 %v10999_v18, %v1581_v59  ;;  %v1588_v49 = vadd.f32 %v10999_v18, %v1571_v7  ;;  %v2109_v53 = vadd.f32 %v11008_v21, %v2100_v24  ;;  %v1749_v25 = vadd.f32 %v11002_v17, %v1734_v15 }
 0x823   :  { %v1929_v26 = vadd.f32 %v11005_v47, %v1914_v8  ;;  %v2107_v3 = vadd.f32 %v11008_v21, %v2092_v1  ;;  %v1587_v2 = vadd.f32 %v10999_v18, %v1566_v46  ;;  %v1748_v43 = vadd.f32 %v11002_v17, %v1730_v11 }
 0x824   :  { %vm1594_vm14 = vcmp.gt.f32.partialorder %v1590_v27, 0.0  ;;  %v1598_v28 = vmul.f32 0.2, %v1590_v27  ;;  %vm1592_vm0 = vcmp.gt.f32.partialorder %v1588_v49, 0.0  ;;  %v1596_v29 = vmul.f32 0.2, %v1588_v49 }
 0x825   :  { %vm2113_vm4 = vcmp.gt.f32.partialorder %v2109_v53, 0.0  ;;  %v2117_v55 = vmul.f32 0.2, %v2109_v53  ;;  %vm1753_vm5 = vcmp.gt.f32.partialorder %v1749_v25, 0.0  ;;  %v1757_v32 = vmul.f32 0.2, %v1749_v25 }
 0x826   :  { %v1602_v30 = vsel %vm1594_vm14, %v1590_v27, %v1598_v28  ;;  %v1600_v40 = vsel %vm1592_vm0, %v1588_v49, %v1596_v29  ;;  %vm1933_vm6 = vcmp.gt.f32.partialorder %v1929_v26, 0.0  ;;  %v1937_v58 = vmul.f32 0.2, %v1929_v26 }
 0x827   :  { %v11018_v31 = vsel %vm278_vm15, %v1602_v30, -1e+30  ;;  %v11022_v33 = vsel %vm276_vm3, %v1600_v40, -1e+30  ;;  %v2121_v45 = vsel %vm2113_vm4, %v2109_v53, %v2117_v55  ;;  %v1761_v35 = vsel %vm1753_vm5, %v1749_v25, %v1757_v32  ;;  %v1576_v25 = vpop.permute.xlu1 %1575 }
 0x828   :  { %v1616_v56 = vsel %vm348_vm1, %v11018_v31, -inf  ;;  %v1610_v20 = vsel %vm348_vm1, %v11022_v33, -inf  ;;  %v11030_v34 = vsel %vm278_vm15, %v2121_v45, -1e+30  ;;  %v11034_v50 = vsel %vm276_vm3, %v1761_v35, -1e+30 }
 0x829   :  { %1617 = vmax.xlane.f32.xlu0 %v1616_v56  ;;  %1611 = vmax.xlane.f32.xlu1 %v1610_v20  ;;  %v1941_v41 = vsel %vm1933_vm6, %v1929_v26, %v1937_v58  ;;  %v2115_v52 = vmul.f32 0.2, %v2107_v3  ;;  %vm2111_vm7 = vcmp.gt.f32.partialorder %v2107_v3, 0.0  ;;  %v2135_v4 = vsel %vm348_vm1, %v11030_v34, -inf }
 0x82a   :  { %v1771_v48 = vsel %vm348_vm1, %v11034_v50, -inf  ;;  %v11043_v10 = vsel %vm276_vm3, %v1941_v41, -1e+30  ;;  %v1595_v9 = vmul.f32 0.2, %v1587_v2  ;;  %vm1591_vm8 = vcmp.gt.f32.partialorder %v1587_v2, 0.0 }
 0x82b   :  { %v2119_v19 = vsel %vm2111_vm7, %v2107_v3, %v2115_v52  ;;  %v1951_v51 = vsel %vm348_vm1, %v11043_v10, -inf  ;;  %v1756_v7 = vmul.f32 0.2, %v1748_v43  ;;  %v1928_v1 = vadd.f32 %v11005_v47, %v1910_v12 }
 0x82c   :  { %v11050_v60 = vsel %vm276_vm3, %v2119_v19, -1e+30  ;;  %v1599_v15 = vsel %vm1591_vm8, %v1587_v2, %v1595_v9  ;;  %vm1752_vm14 = vcmp.gt.f32.partialorder %v1748_v43, 0.0  ;;  %v2106_v16 = vadd.f32 %v11008_v21, %v10992_v13 }
 0x82d   :  { %2136 = vmax.xlane.f32.xlu0 %v2135_v4  ;;  %1772 = vmax.xlane.f32.xlu1 %v1771_v48  ;;  %v2129_v8 = vsel %vm348_vm1, %v11050_v60, -inf  ;;  %v11057_v46 = vsel %vm275_vm10, %v1599_v15, -1e+30  ;;  %v1760_v11 = vsel %vm1752_vm14, %v1748_v43, %v1756_v7  ;;  %v1936_v59 = vmul.f32 0.2, %v1928_v1 }
 0x82e   :  { %vm1932_vm0 = vcmp.gt.f32.partialorder %v1928_v1, 0.0  ;;  %v1607_v24 = vsel %vm348_vm1, %v11057_v46, -inf  ;;  %v11065_v12 = vsel %vm275_vm10, %v1760_v11, -1e+30  ;;  %v2114_v49 = vmul.f32 0.2, %v2106_v16 }
 0x82f   :  { %v1940_v27 = vsel %vm1932_vm0, %v1928_v1, %v1936_v59  ;;  %v1751_v53 = vadd.f32 %v11002_v17, %v10994_v42  ;;  %vm2110_vm4 = vcmp.gt.f32.partialorder %v2106_v16, 0.0  ;;  %v1768_v26 = vsel %vm348_vm1, %v11065_v12, -inf  ;;  %v1738_v42 = vpop.permute.xlu1 %1737 }
 0x830   :  { %v11073_v13 = vsel %vm275_vm10, %v1940_v27, -1e+30  ;;  %v2118_v3 = vsel %vm2110_vm4, %v2106_v16, %v2114_v49  ;;  %v1931_v29 = vadd.f32 %v11005_v47, %v10996_v54  ;;  %v1589_v58 = vadd.f32 %v10999_v18, %v1576_v25  ;;  %v11129_v49 = vld [vmem:[#allocation12] ss:$0 sm:$0xff] }
 0x831   :  { %1952 = vmax.xlane.f32.xlu1 %v1951_v51  ;;  %v1759_v28 = vmul.f32 0.2, %v1751_v53  ;;  %vm1755_vm5 = vcmp.gt.f32.partialorder %v1751_v53, 0.0  ;;  %v1948_v55 = vsel %vm348_vm1, %v11073_v13, -inf  ;;  %v11081_v32 = vsel %vm275_vm10, %v2118_v3, -1e+30 }
 0x832   :  { %v1939_v40 = vmul.f32 0.2, %v1931_v29  ;;  %vm1935_vm6 = vcmp.gt.f32.partialorder %v1931_v29, 0.0  ;;  %v2126_v54 = vsel %vm348_vm1, %v11081_v32, -inf  ;;  %v1597_v56 = vmul.f32 0.2, %v1589_v58 }
 0x833   :  { %v1763_v30 = vsel %vm1755_vm5, %v1751_v53, %v1759_v28  ;;  %v1750_v20 = vadd.f32 %v11002_v17, %v1738_v42  ;;  %v1918_v41 = vpop.permute.xlu1 %1917  ;;  %vm1593_vm7 = vcmp.gt.f32.partialorder %v1589_v58, 0.0 }
 0x834   :  { %v11090_v45 = vsel %vm278_vm15, %v1763_v30, -1e+30  ;;  %v1943_v35 = vsel %vm1935_vm6, %v1931_v29, %v1939_v40  ;;  %v1601_v2 = vsel %vm1593_vm7, %v1589_v58, %v1597_v56  ;;  %v1930_v48 = vadd.f32 %v11005_v47, %v1918_v41 }
 0x835   :  { %2130 = vmax.xlane.f32.xlu1 %v2129_v8  ;;  %v1777_v18 = vsel %vm348_vm1, %v11090_v45, -inf  ;;  %v11097_v52 = vsel %vm278_vm15, %v1943_v35, -1e+30  ;;  %v1758_v4 = vmul.f32 0.2, %v1750_v20  ;;  %vm1754_vm8 = vcmp.gt.f32.partialorder %v1750_v20, 0.0 }
 0x836   :  { %v1957_v19 = vsel %vm348_vm1, %v11097_v52, -inf  ;;  %v11104_v17 = vsel %vm277_vm2, %v1601_v2, -1e+30  ;;  %v1938_v51 = vmul.f32 0.2, %v1930_v48  ;;  %vm1934_vm14 = vcmp.gt.f32.partialorder %v1930_v48, 0.0 }
 0x837   :  { %v2096_v9 = vpop.permute.xlu1 %2095  ;;  %v1762_v43 = vsel %vm1754_vm8, %v1750_v20, %v1758_v4  ;;  %v1613_v7 = vsel %vm348_vm1, %v11104_v17, -inf }
 0x838   :  { %v2108_v15 = vadd.f32 %v11008_v21, %v2096_v9  ;;  %v11111_v47 = vsel %vm277_vm2, %v1762_v43, -1e+30  ;;  %v1942_v1 = vsel %vm1934_vm14, %v1930_v48, %v1938_v51 }
 0x839   :  { %1608 = vmax.xlane.f32.xlu1 %v1607_v24  ;;  %v1774_v11 = vsel %vm348_vm1, %v11111_v47, -inf  ;;  %v11117_v59 = vsel %vm277_vm2, %v1942_v1, -1e+30 }
 0x83a   :  { %v2116_v8 = vmul.f32 0.2, %v2108_v15  ;;  %vm2112_vm0 = vcmp.gt.f32.partialorder %v2108_v15, 0.0  ;;  %v1954_v16 = vsel %vm348_vm1, %v11117_v59, -inf }
 0x83c   :  { %v2120_v21 = vsel %vm2112_vm0, %v2108_v15, %v2116_v8 }
 0x83d   :  { %1769 = vmax.xlane.f32.xlu1 %v1768_v26  ;;  %v11123_v24 = vsel %vm277_vm2, %v2120_v21, -1e+30 }
 0x83e   :  { %v2132_v27 = vsel %vm348_vm1, %v11123_v24, -inf }
 0x841   :  { %1949 = vmax.xlane.f32.xlu1 %v1948_v55 }
 0x843   :  { %1988 = vrot.lane.b32.xlu0 %v10955_v37, %s10331_s3 }
 0x845   :  { %2127 = vmax.xlane.f32.xlu1 %v2126_v54 }
 0x849   :  { %1778 = vmax.xlane.f32.xlu1 %v1777_v18 }
 0x84d   :  { %1958 = vmax.xlane.f32.xlu1 %v1957_v19 }
 0x851   :  { %1614 = vmax.xlane.f32.xlu1 %v1613_v7 }
 0x855   :  { %1775 = vmax.xlane.f32.xlu1 %v1774_v11 }
 0x859   :  { %1955 = vmax.xlane.f32.xlu1 %v1954_v16 }
 0x85d   :  { %2133 = vmax.xlane.f32.xlu1 %v2132_v27 }
 0x86e   :  { %2166 = vrot.lane.b32.xlu1 %v10955_v37, %s10330_s17 }
 0x872   :  { %1877 = vrot.lane.b32.xlu1 %v11129_v49, %s10327_s5 }
 0x8b6   :  { %v1612_v53 = vpop.xlane.xlu1 %1611  ;;  %v1618_v4 = vpop.xlane.xlu0 %1617 }
 0x8b7   :  { %v1620_v42 = vsub.f32 %v11022_v33, %v1612_v53  ;;  %v1622_v27 = vsub.f32 %v11018_v31, %v1618_v4 }
 0x8b9   :  { %v1625_v58 = vmul.f32 1.442695, %v1620_v42 }
 0x8ba   :  { %v1773_v25 = vpop.xlane.xlu1 %1772  ;;  %v2137_v1 = vpop.xlane.xlu0 %2136 }
 0x8bb   :  { %v1781_v26 = vsub.f32 %v11034_v50, %v1773_v25  ;;  %v2141_v16 = vsub.f32 %v11030_v34, %v2137_v1 }
 0x8bd   :  { %v1786_v3 = vmul.f32 1.442695, %v1781_v26 }
 0x8be   :  { %v1953_v28 = vpop.xlane.xlu1 %1952 }
 0x8bf   :  { %v1961_v29 = vsub.f32 %v11043_v10, %v1953_v28  ;;  %9442 = vpow2.f32 %v1786_v3 }
 0x8c1   :  { %v1966_v55 = vmul.f32 1.442695, %v1961_v29 }
 0x8c2   :  { %v2131_v30 = vpop.xlane.xlu1 %2130 }
 0x8c3   :  { %9444 = vpow2.f32 %v1966_v55  ;;  %v2139_v37 = vsub.f32 %v11050_v60, %v2131_v30  ;;  %v1629_v55 = vmul.f32 1.442695, %v1622_v27 }
 0x8c5   :  { %v2144_v40 = vmul.f32 1.442695, %v2139_v37 }
 0x8c6   :  { %v1609_v54 = vpop.xlane.xlu1 %1608 }
 0x8c7   :  { %9446 = vpow2.f32 %v2144_v40  ;;  %v1619_v35 = vsub.f32 %v11057_v46, %v1609_v54 }
 0x8c8   :  { %9448 = vpow2.f32 %v1625_v58 }
 0x8c9   :  { %v1623_v56 = vmul.f32 1.442695, %v1619_v35  ;;  %v9443_v50 = vpop.eup %9442 }
 0x8ca   :  { %v1770_v20 = vpop.xlane.xlu1 %1769  ;;  %v1795_v41 = vsel %vm348_vm1, %v9443_v50, 0.0 }
 0x8cb   :  { %9450 = vpow2.f32 %v1623_v56  ;;  %v1780_v10 = vsub.f32 %v11065_v12, %v1770_v20  ;;  %1796 = vadd.xlane.f32.xlu1 %v1795_v41 }
 0x8cd   :  { %v11140_v33 = vpop.eup %9444  ;;  %v1784_v18 = vmul.f32 1.442695, %v1780_v10 }
 0x8ce   :  { %v1950_v60 = vpop.xlane.xlu1 %1949  ;;  %v1975_v2 = vsel %vm348_vm1, %v11140_v33, 0.0 }
 0x8cf   :  { %9452 = vpow2.f32 %v1784_v18  ;;  %v1960_v46 = vsub.f32 %v11073_v13, %v1950_v60  ;;  %1976 = vadd.xlane.f32.xlu0 %v1975_v2 }
 0x8d1   :  { %v11145_v48 = vpop.eup %9446  ;;  %v1964_v19 = vmul.f32 1.442695, %v1960_v46 }
 0x8d2   :  { %v2128_v9 = vpop.xlane.xlu1 %2127  ;;  %v2153_v12 = vsel %vm348_vm1, %v11145_v48, 0.0  ;;  %v11150_v51 = vpop.eup %9448 }
 0x8d3   :  { %9454 = vpow2.f32 %v1964_v19  ;;  %v2138_v43 = vsub.f32 %v11081_v32, %v2128_v9  ;;  %2154 = vadd.xlane.f32.xlu0 %v2153_v12 }
 0x8d5   :  { %v11152_v15 = vpop.eup %9450  ;;  %v2142_v7 = vmul.f32 1.442695, %v2138_v43  ;;  %v1989_v43 = vpop.permute.xlu0 %1988 }
 0x8d6   :  { %v1779_v13 = vpop.xlane.xlu1 %1778  ;;  %v1643_v8 = vpack.c.bf16 %v11150_v51, %v11152_v15 }
 0x8d7   :  { %9456 = vpow2.f32 %v2142_v7  ;;  %v1783_v11 = vsub.f32 %v11090_v45, %v1779_v13  ;;  %v2148_v45 = vmul.f32 1.442695, %v2141_v16 }
 0x8d8   :  { %8376 = vmatprep.mubr.msk.bf16.mxu0 %vm348_vm1, %v1643_v8 }
 0x8d9   :  { %v9453_v21 = vpop.eup %9452  ;;  %v1790_v32 = vmul.f32 1.442695, %v1783_v11 }
 0x8da   :  { %v1959_v53 = vpop.xlane.xlu1 %1958  ;;  %v1792_v25 = vsel %vm348_vm1, %v9453_v21, 0.0  ;;  %v1804_v26 = vpack.c.bf16 %v9443_v50, %v9453_v21 }
 0x8db   :  { %9458 = vpow2.f32 %v1790_v32  ;;  %v1963_v3 = vsub.f32 %v11097_v52, %v1959_v53  ;;  %1793 = vadd.xlane.f32.xlu0 %v1792_v25  ;;  %v1631_v32 = vsel %vm348_vm1, %v11152_v15, 0.0 }
 0x8dc   :  { %8384 = vmatprep.mubr.msk.bf16.mxu1 %vm348_vm1, %v1804_v26 }
 0x8dd   :  { %v9455_v28 = vpop.eup %9454  ;;  %v1970_v29 = vmul.f32 1.442695, %v1963_v3 }
 0x8de   :  { %v1615_v42 = vpop.xlane.xlu1 %1614  ;;  %v1972_v34 = vsel %vm348_vm1, %v9455_v28, 0.0 }
 0x8df   :  { %9460 = vpow2.f32 %v1970_v29  ;;  %v1621_v31 = vsub.f32 %v11104_v17, %v1615_v42  ;;  %1973 = vadd.xlane.f32.xlu1 %v1972_v34 }
 0x8e0   :  { %9462 = vpow2.f32 %v2148_v45 }
 0x8e1   :  { %v9457_v30 = vpop.eup %9456  ;;  %v1627_v37 = vmul.f32 1.442695, %v1621_v31  ;;  %9464 = vpow2.f32 %v1629_v55 }
 0x8e2   :  { %v1776_v40 = vpop.xlane.xlu1 %1775  ;;  %v2150_v52 = vsel %vm348_vm1, %v9457_v30, 0.0  ;;  %v2162_v1 = vpack.c.bf16 %v11145_v48, %v9457_v30 }
 0x8e3   :  { %9466 = vpow2.f32 %v1627_v37  ;;  %v1782_v58 = vsub.f32 %v11111_v47, %v1776_v40  ;;  %2151 = vadd.xlane.f32.xlu1 %v2150_v52 }
 0x8e5   :  { %v9459_v54 = vpop.eup %9458  ;;  %v1788_v35 = vmul.f32 1.442695, %v1782_v58 }
 0x8e6   :  { %v1956_v56 = vpop.xlane.xlu1 %1955  ;;  %v1801_v50 = vsel %vm348_vm1, %v9459_v54, 0.0 }
 0x8e7   :  { %9468 = vpow2.f32 %v1788_v35  ;;  %v1962_v17 = vsub.f32 %v11117_v59, %v1956_v56  ;;  %1802 = vadd.xlane.f32.xlu0 %v1801_v50  ;;  %v1984_v59 = vpack.c.bf16 %v11140_v33, %v9455_v28 }
 0x8e9   :  { %v9461_v20 = vpop.eup %9460  ;;  %v1968_v10 = vmul.f32 1.442695, %v1962_v17 }
 0x8ea   :  { %v2134_v41 = vpop.xlane.xlu1 %2133  ;;  %v1981_v18 = vsel %vm348_vm1, %v9461_v20, 0.0  ;;  %v9463_v60 = vpop.eup %9462 }
 0x8eb   :  { %9470 = vpow2.f32 %v1968_v10  ;;  %v2140_v2 = vsub.f32 %v11123_v24, %v2134_v41  ;;  %1982 = vadd.xlane.f32.xlu0 %v1981_v18  ;;  %v9465_v47 = vpop.eup %9464  ;;  %v2159_v9 = vsel %vm348_vm1, %v9463_v60, 0.0 }
 0x8ec   :  { %v1640_v27 = vsel %vm348_vm1, %v9465_v47, 0.0 }
 0x8ed   :  { %v9467_v46 = vpop.eup %9466  ;;  %v2146_v4 = vmul.f32 1.442695, %v2140_v2 }
 0x8ee   :  { %v1644_v19 = vpack.c.bf16 %v9465_v47, %v9467_v46  ;;  %v2167_v8 = vpop.permute.xlu1 %2166  ;;  %v1637_v48 = vsel %vm348_vm1, %v9467_v46, 0.0 }
 0x8ef   :  { %9472 = vpow2.f32 %v2146_v4  ;;  %2160 = vadd.xlane.f32.xlu0 %v2159_v9 }
 0x8f0   :  { %8377 = vmatmul.mubr.msk.bf16.vlgmr.msra.gmra.mrb[20].mxu0 %vm348_vm1, %v1644_v19 }
 0x8f1   :  { %v9469_v12 = vpop.eup %9468  ;;  %8389 = vmatpush3.bf16.msra.mxu0 %v10970_v44  ;;  %8392 = vmatprep.mubr.msk.bf16.mxu0 %vm348_vm1, %v1984_v59 }
 0x8f2   :  { %v1805_v24 = vpack.c.bf16 %v9459_v54, %v9469_v12  ;;  %8390 = vmatprep.subr.bf16.mxu0 %v1989_v43  ;;  %v1798_v7 = vsel %vm348_vm1, %v9469_v12, 0.0  ;;  %v11195_v3 = vpop.permute.xlu1 %1877 }
 0x8f3   :  { %1799 = vadd.xlane.f32.xlu0 %v1798_v7 }
 0x8f4   :  { %8385 = vmatmul.mubr.msk.bf16.vlgmr.msra.gmra.mrb[20].mxu1 %vm348_vm1, %v1805_v24 }
 0x8f5   :  { %v9471_v13 = vpop.eup %9470  ;;  %8391 = vmatpush3.bf16.msra.mxu0 %v1989_v43  ;;  %8397 = vmatpush3.bf16.msra.mxu1 %v10973_v57  ;;  %v1634_v57 = vsel %vm348_vm1, %v11150_v51, 0.0 }
 0x8f6   :  { %8398 = vmatprep.subr.bf16.mxu1 %v2167_v8  ;;  %8400 = vmatprep.mubr.msk.bf16.mxu1 %vm348_vm1, %v2162_v1  ;;  %v1978_v44 = vsel %vm348_vm1, %v9471_v13, 0.0  ;;  %v1985_v33 = vpack.c.bf16 %v9461_v20, %v9471_v13 }
 0x8f7   :  { %1979 = vadd.xlane.f32.xlu1 %v1978_v44 }
 0x8f8   :  { %8393 = vmatmul.mubr.msk.bf16.vlgmr.msra.gmra.mrb[24].mxu0 %vm348_vm1, %v1985_v33 }
 0x8f9   :  { %v9473_v11 = vpop.eup %9472  ;;  %8399 = vmatpush3.bf16.msra.mxu1 %v2167_v8 }
 0x8fa   :  { %v2156_v21 = vsel %vm348_vm1, %v9473_v11, 0.0  ;;  %v2163_v16 = vpack.c.bf16 %v9463_v60, %v9473_v11 }
 0x8fb   :  { %2157 = vadd.xlane.f32.xlu1 %v2156_v21 }
 0x8fc   :  { %8401 = vmatmul.mubr.msk.bf16.vlgmr.msra.gmra.mrb[24].mxu1 %vm348_vm1, %v2163_v16 }
 0x909   :  { %2055 = vrot.lane.b32.xlu0 %v11129_v49, %s10331_s3 }
 0x90c   :  { %2233 = vrot.lane.b32.xlu1 %v11129_v49, %s10330_s17 }
 0x928   :  { %1635 = vadd.xlane.f32.xlu0 %v1634_v57 }
 0x92c   :  { %1638 = vadd.xlane.f32.xlu0 %v1637_v48 }
 0x930   :  { %1632 = vadd.xlane.f32.xlu1 %v1631_v32 }
 0x934   :  { %1641 = vadd.xlane.f32.xlu1 %v1640_v27 }
 0x958   :  { %v1797_v45 = vpop.xlane.xlu1 %1796 }
 0x95c   :  { %v1977_v53 = vpop.xlane.xlu0 %1976 }
 0x960   :  { %v2155_v25 = vpop.xlane.xlu0 %2154 }
 0x968   :  { %v1794_v26 = vpop.xlane.xlu0 %1793 }
 0x96c   :  { %v1974_v51 = vpop.xlane.xlu1 %1973 }
 0x970   :  { %v2152_v42 = vpop.xlane.xlu1 %2151 }
 0x974   :  { %v1803_v28 = vpop.xlane.xlu0 %1802 }
 0x978   :  { %v1983_v29 = vpop.xlane.xlu0 %1982 }
 0x97c   :  { %v11197_v55 = vpop.xlane.xlu0 %2160 }
 0x980   :  { %v1800_v34 = vpop.xlane.xlu0 %1799 }
 0x984   :  { %v1980_v31 = vpop.xlane.xlu1 %1979  ;;  %v11199_v30 = vpop.permute.xlu0 %2055 }
 0x988   :  { %v2158_v15 = vpop.xlane.xlu1 %2157 }
 0x98c   :  { %v11201_v40 = vpop.permute.xlu1 %2233 }
 0x9b5   :  { %v1636_v37 = vpop.xlane.xlu0 %1635 }
 0x9b9   :  { %v1639_v52 = vpop.xlane.xlu0 %1638 }
 0x9ba   :  { %9474 = vrcp.f32 %v1639_v52 }
 0x9bb   :  { %9476 = vrcp.f32 %v1794_v26 }
 0x9bc   :  { %9478 = vrcp.f32 %v1636_v37 }
 0x9bd   :  { %9480 = vrcp.f32 %v1800_v34  ;;  %v1633_v58 = vpop.xlane.xlu1 %1632 }
 0x9be   :  { %9482 = vrcp.f32 %v1633_v58 }
 0x9bf   :  { %9484 = vrcp.f32 %v1803_v28 }
 0x9c0   :  { %9486 = vrcp.f32 %v1797_v45 }
 0x9c1   :  { %9488 = vrcp.f32 %v1980_v31  ;;  %v1642_v54 = vpop.xlane.xlu1 %1641 }
 0x9c2   :  { %9490 = vrcp.f32 %v1642_v54 }
 0x9c3   :  { %9492 = vrcp.f32 %v1983_v29  ;;  %v8378_v35 = vpop.f32.mrb[20].mxu0 }
 0x9c4   :  { %v9475_v56 = vpop.eup %9474  ;;  %v1687_v50 = vpop.f32.mrb[21].mxu0  ;;  %9494 = vrcp.f32 %v1974_v51 }
 0x9c5   :  { %v9477_v17 = vpop.eup %9476  ;;  %v1708_v20 = vmul.f32 %v9475_v56, %v8378_v35  ;;  %v8379_v10 = vpop.f32.mrb[22].mxu0  ;;  %9496 = vrcp.f32 %v1977_v53 }
 0x9c6   :  { %v9479_v41 = vpop.eup %9478  ;;  %v1690_v18 = vpop.f32.mrb[23].mxu0  ;;  %9498 = vrcp.f32 %v2152_v42 }
 0x9c7   :  { %v9481_v60 = vpop.eup %9480  ;;  %v1718_v2 = vadd.f32 %v11129_v49, %v1708_v20  ;;  %v1707_v47 = vmul.f32 %v9479_v41, %v1690_v18  ;;  %v8386_v46 = vpop.f32.mrb[20].mxu1  ;;  %9500 = vrcp.f32 %v2155_v25 }
 0x9c8   :  { %v9483_v4 = vpop.eup %9482  ;;  %v1875_v19 = vmul.f32 %v9481_v60, %v8386_v46  ;;  %v1854_v9 = vpop.f32.mrb[21].mxu1  ;;  %9502 = vrcp.f32 %v2158_v15 }
 0x9c9   :  { %v9485_v59 = vpop.eup %9484  ;;  %v1722_v12 = vmax.f32 %v1718_v2, 0.0  ;;  %v1706_v43 = vmul.f32 %v9483_v4, %v1687_v50  ;;  %v1717_v24 = vadd.f32 %v11129_v49, %v1707_v47  ;;  %v1873_v7 = vmul.f32 %v9477_v17, %v1854_v9  ;;  %v8387_v1 = vpop.f32.mrb[22].mxu1 }
 0x9ca   :  { %v9487_v13 = vpop.eup %9486  ;;  %v1882_v8 = vadd.f32 %v11195_v3, %v1875_v19  ;;  %v1876_v44 = vmul.f32 %v9485_v59, %v8387_v1  ;;  %v1857_v33 = vpop.f32.mrb[23].mxu1  ;;  %9504 = vrcp.f32 %v11197_v55 }
 0x9cb   :  { %v9489_v11 = vpop.eup %9488  ;;  %1726 = vst.msk [vmem:[#allocation3 + $0x10] sm:$0xff] %vm729_vm9, %v1722_v12  ;;  %v1716_v21 = vadd.f32 %v11129_v49, %v1706_v43  ;;  %v1721_v16 = vmax.f32 %v1717_v24, 0.0  ;;  %v1880_v57 = vadd.f32 %v11195_v3, %v1873_v7  ;;  %v1874_v48 = vmul.f32 %v9487_v13, %v1857_v33  ;;  %v8394_v32 = vpop.f32.mrb[24].mxu0  ;;  %v2268_v43 = vld [vmem:[#allocation14] sm:$0xff]  ;;  %v2269_v24 = vld [vmem:[#allocation14 + $0x8] sm:$0xff]  ;;  %v2270_v7 = vld [vmem:[#allocation14 + $0x10] sm:$0xff] }
 0x9cc   :  { %v9491_v27 = vpop.eup %9490  ;;  %v1886_v53 = vmax.f32 %v1882_v8, 0.0  ;;  %v1883_v26 = vadd.f32 %v11195_v3, %v1876_v44  ;;  %v2053_v25 = vmul.f32 %v9489_v11, %v8394_v32  ;;  %v2032_v28 = vpop.f32.mrb[25].mxu0  ;;  %v2274_v1 = vpack.c.bf16 %v2269_v24, %v2268_v43  ;;  %v2271_v13 = vld [vmem:[#allocation14 + $0x18] sm:$0xff] }
 0x9cd   :  { %v9493_v45 = vpop.eup %9492  ;;  %v1720_v29 = vmax.f32 %v1716_v21, 0.0  ;;  %v1709_v51 = vmul.f32 %v9491_v27, %v8379_v10  ;;  %1725 = vst.msk [vmem:[#allocation3 + $0x8] sm:$0xff] %vm729_vm9, %v1721_v16  ;;  %v1884_v42 = vmax.f32 %v1880_v57, 0.0  ;;  %v1881_v34 = vadd.f32 %v11195_v3, %v1874_v48  ;;  %v8395_v31 = vpop.f32.mrb[26].mxu0 }
 0x9ce   :  { %v2054_v37 = vmul.f32 %v9493_v45, %v8395_v31  ;;  %v2035_v52 = vpop.f32.mrb[27].mxu0  ;;  %1896 = vrot.lane.b32.xlu1 %v1886_v53, %s10313_s26  ;;  %v9495_v15 = vpop.eup %9494  ;;  %v2060_v50 = vadd.f32 %v11199_v30, %v2053_v25  ;;  %v1887_v55 = vmax.f32 %v1883_v26, 0.0  ;;  %v2275_v21 = vpack.c.bf16 %v2271_v13, %v2270_v7  ;;  %8404 = vmatprep.subr.bf16.mxu0 %v2274_v1  ;;  %v2331_v25 = vld [vmem:[%s12481_s23] sm:$0xff] }
 0x9cf   :  { %1724 = vst.msk [vmem:[#allocation3] sm:$0xff] %vm729_vm9, %v1720_v29  ;;  %v1719_v58 = vadd.f32 %v11129_v49, %v1709_v51  ;;  %v1885_v54 = vmax.f32 %v1881_v34, 0.0  ;;  %v8402_v35 = vpop.f32.mrb[24].mxu1  ;;  %1892 = vrot.lane.b32.xlu0 %v1884_v42, %s10313_s26  ;;  %v9497_v56 = vpop.eup %9496  ;;  %v2051_v3 = vmul.f32 %v9495_v15, %v2032_v28  ;;  %8405 = vmatpush3.bf16.msra.mxu0 %v2274_v1  ;;  %v2332_v28 = vld [vmem:[%s12481_s23 + $0x8] sm:$0xff]  ;;  %v2432_v45 = vld [vmem:[%s12482_s6] sm:$0xff] }
 0x9d0   :  { %v2210_v17 = vpop.f32.mrb[25].mxu1  ;;  %v2061_v10 = vadd.f32 %v11199_v30, %v2054_v37  ;;  %v2052_v41 = vmul.f32 %v9497_v56, %v2035_v52  ;;  %v9499_v60 = vpop.eup %9498  ;;  %v2064_v47 = vmax.f32 %v2060_v50, 0.0  ;;  %8406 = vmatprep.subr.bf16.mxu0 %v2275_v21  ;;  %v9076_v51 = vpack.c.bf16 %v2332_v28, %v2331_v25  ;;  %v2433_v42 = vld [vmem:[%s12482_s6 + $0x8] sm:$0xff] }
 0x9d1   :  { %v1723_v20 = vmax.f32 %v1719_v58, 0.0  ;;  %v8403_v18 = vpop.f32.mrb[26].mxu1  ;;  %v9501_v49 = vpop.eup %9500  ;;  %v2058_v46 = vadd.f32 %v11199_v30, %v2051_v3  ;;  %v2229_v4 = vmul.f32 %v9499_v60, %v2210_v17  ;;  %v9084_v34 = vpack.c.bf16 %v2433_v42, %v2432_v45 }
 0x9d2   :  { %v2213_v2 = vpop.f32.mrb[27].mxu1  ;;  %1894 = vrot.lane.b32.xlu1 %v1885_v54, %s10313_s26  ;;  %v2065_v19 = vmax.f32 %v2061_v10, 0.0  ;;  %v2059_v9 = vadd.f32 %v11199_v30, %v2052_v41  ;;  %v9503_v12 = vpop.eup %9502  ;;  %9077 = vmatprep.subr.bf16.mxu1 %v9076_v51 }
 0x9d3   :  { %1727 = vst.msk [vmem:[#allocation3 + $0x18] sm:$0xff] %vm729_vm9, %v1723_v20  ;;  %1898 = vrot.lane.b32.xlu0 %v1887_v55, %s10313_s26  ;;  %v2230_v59 = vmul.f32 %v9501_v49, %v2213_v2  ;;  %v2062_v44 = vmax.f32 %v2058_v46, 0.0  ;;  %v2231_v33 = vmul.f32 %v9503_v12, %v8402_v35  ;;  %v2236_v11 = vadd.f32 %v11201_v40, %v2229_v4  ;;  %v2333_v2 = vld [vmem:[%s12481_s23 + $0x10] sm:$0xff]  ;;  %v2334_v49 = vld [vmem:[%s12481_s23 + $0x18] sm:$0xff] }
 0x9d4   :  { %v9505_v8 = vpop.eup %9504  ;;  %v2063_v16 = vmax.f32 %v2059_v9, 0.0  ;;  %8407 = vmatpush3.bf16.msra.mxu0 %v2275_v21  ;;  %9079 = vmatpush3.bf16.msra.mxu1 %v9076_v51  ;;  %v9080_v46 = vpack.c.bf16 %v2334_v49, %v2333_v2  ;;  %v2435_v4 = vld [vmem:[%s12482_s6 + $0x18] sm:$0xff] }
 0x9d5   :  { %v2232_v30 = vmul.f32 %v9505_v8, %v8403_v18  ;;  %v2237_v57 = vadd.f32 %v11201_v40, %v2230_v59  ;;  %v2238_v48 = vadd.f32 %v11201_v40, %v2231_v33  ;;  %v2240_v32 = vmax.f32 %v2236_v11, 0.0  ;;  %9085 = vmatprep.subr.bf16.mxu0 %v9084_v34 }
 0x9d6   :  { %2074 = vrot.lane.b32.xlu1 %v2064_v47, %s10316_s0  ;;  %v2434_v47 = vld [vmem:[%s12482_s6 + $0x10] sm:$0xff]  ;;  %9081 = vmatprep.subr.bf16.mxu1 %v9080_v46 }
 0x9d7   :  { %2076 = vrot.lane.b32.xlu0 %v2065_v19, %s10316_s0  ;;  %v2239_v27 = vadd.f32 %v11201_v40, %v2232_v30  ;;  %v2241_v53 = vmax.f32 %v2237_v57, 0.0  ;;  %v2242_v26 = vmax.f32 %v2238_v48, 0.0  ;;  %v9088_v19 = vpack.c.bf16 %v2435_v4, %v2434_v47 }
 0x9d8   :  { %9083 = vmatpush3.bf16.msra.mxu1 %v9080_v46 }
 0x9d9   :  { %v2243_v29 = vmax.f32 %v2239_v27, 0.0 }
 0x9da   :  { %2070 = vrot.lane.b32.xlu1 %v2062_v44, %s10316_s0 }
 0x9db   :  { %2072 = vrot.lane.b32.xlu0 %v2063_v16, %s10316_s0 }
 0x9de   :  { %2248 = vrot.lane.b32.xlu1 %v2240_v32, %s10332_s14 }
 0x9df   :  { %2250 = vrot.lane.b32.xlu0 %v2241_v53, %s10332_s14 }
 0x9e2   :  { %2252 = vrot.lane.b32.xlu1 %v2242_v26, %s10332_s14 }
 0x9e3   :  { %2254 = vrot.lane.b32.xlu0 %v2243_v29, %s10332_s14 }
 0xa40   :  { %v1897_v40 = vpop.permute.xlu1 %1896 }
 0xa41   :  { %1906 = vst.msk [vmem:[#allocation3 + $0x10] sm:$0xff] %vm910_vm11, %v1897_v40  ;;  %v1893_v31 = vpop.permute.xlu0 %1892 }
 0xa42   :  { %1904 = vst.msk [vmem:[#allocation3] sm:$0xff] %vm910_vm11, %v1893_v31 }
 0xa44   :  { %v1895_v37 = vpop.permute.xlu1 %1894 }
 0xa45   :  { %1905 = vst.msk [vmem:[#allocation3 + $0x8] sm:$0xff] %vm910_vm11, %v1895_v37  ;;  %v1899_v52 = vpop.permute.xlu0 %1898 }
 0xa46   :  { %1907 = vst.msk [vmem:[#allocation3 + $0x18] sm:$0xff] %vm910_vm11, %v1899_v52 }
 0xa48   :  { %v2075_v15 = vpop.permute.xlu1 %2074 }
 0xa49   :  { %2084 = vst.msk [vmem:[#allocation3 + $0x10] sm:$0xff] %vm1089_vm12, %v2075_v15  ;;  %v2077_v58 = vpop.permute.xlu0 %2076 }
 0xa4a   :  { %2085 = vst.msk [vmem:[#allocation3 + $0x18] sm:$0xff] %vm1089_vm12, %v2077_v58 }
 0xa4c   :  { %v2071_v54 = vpop.permute.xlu1 %2070 }
 0xa4d   :  { %2082 = vst.msk [vmem:[#allocation3] sm:$0xff] %vm1089_vm12, %v2071_v54  ;;  %v2073_v35 = vpop.permute.xlu0 %2072 }
 0xa4e   :  { %2083 = vst.msk [vmem:[#allocation3 + $0x8] sm:$0xff] %vm1089_vm12, %v2073_v35 }
 0xa50   :  { %v2249_v56 = vpop.permute.xlu1 %2248 }
 0xa51   :  { %2260 = vst.msk [vmem:[#allocation3] sm:$0xff] %vm1268_vm13, %v2249_v56  ;;  %v2251_v50 = vpop.permute.xlu0 %2250 }
 0xa52   :  { %2261 = vst.msk [vmem:[#allocation3 + $0x8] sm:$0xff] %vm1268_vm13, %v2251_v50 }
 0xa54   :  { %v2253_v3 = vpop.permute.xlu1 %2252 }
 0xa55   :  { %2262 = vst.msk [vmem:[#allocation3 + $0x10] sm:$0xff] %vm1268_vm13, %v2253_v3  ;;  %v2255_v17 = vpop.permute.xlu0 %2254 }
 0xa56   :  { %2263 = vst.msk [vmem:[#allocation3 + $0x18] sm:$0xff] %vm1268_vm13, %v2255_v17 }
 0xa58   :  { %v2264_v20 = vld [vmem:[#allocation3] sm:$0xff] }
 0xa59   :  { %v2265_v55 = vld [vmem:[#allocation3 + $0x8] sm:$0xff] }
 0xa5a   :  { %v2272_v10 = vpack.c.bf16 %v2265_v55, %v2264_v20 }
 0xa5c   :  { %8408 = vmatprep.mubr.msk.bf16.mxu0 %vm348_vm1, %v2272_v10  ;;  %v2266_v41 = vld [vmem:[#allocation3 + $0x10] sm:$0xff] }
 0xa5d   :  { %v2267_v18 = vld [vmem:[#allocation3 + $0x18] sm:$0xff] }
 0xa5e   :  { %v2273_v60 = vpack.c.bf16 %v2267_v18, %v2266_v41 }
 0xa60   :  { %8409 = vmatmul.mubr.msk.bf16.vlgmr.msra.gmra.mrb[28].mxu0 %vm348_vm1, %v2273_v60 }
 0xa61   :  { %9087 = vmatpush3.bf16.msra.mxu0 %v9084_v34 }
 0xa62   :  { %9089 = vmatprep.subr.bf16.mxu0 %v9088_v19 }
 0xa65   :  { %9091 = vmatpush3.bf16.msra.mxu0 %v9088_v19 }
 0xb33   :  { %v8410_v9 = vpop.f32.mrb[28].mxu0 }
 0xb34   :  { %v2316_v59 = vpop.f32.mrb[29].mxu0 }
 0xb35   :  { %v8411_v12 = vpop.f32.mrb[30].mxu0  ;;  %8420 = vmatprep.mubr.msk.f32.mxu1 %vm348_vm1, %v2316_v59  ;;  %8434 = vmatprep.mubr.msk.f32.mxu0 %vm348_vm1, %v2316_v59 }
 0xb36   :  { %v11260_v43 = vpack.c.bf16 %v8411_v12, %v8410_v9  ;;  %v2319_v24 = vpop.f32.mrb[31].mxu0 }
 0xb37   :  { %v11262_v7 = vpack.c.bf16 %v2319_v24, %v2316_v59  ;;  %8421 = vmatmul.mubr.msk.f32.vlgmr.msra.gmra.mrb[28].mxu1 %vm348_vm1, %v2319_v24  ;;  %8435 = vmatmul.mubr.msk.f32.vlgmr.msra.gmra.mrb[32].mxu0 %vm348_vm1, %v2319_v24 }
 0xb38   :  { %2801 = vrot.lane.b32.xlu1 %v11260_v43, %s10327_s5  ;;  %8423 = vmatprep.mubr.msk.f32.mxu1 %vm348_vm1, %v8410_v9 }
 0xb39   :  { %8437 = vmatprep.mubr.msk.f32.mxu0 %vm348_vm1, %v8410_v9  ;;  %2799 = vrot.lane.b32.xlu0 %v11262_v7, %s10327_s5 }
 0xb3a   :  { %8440 = vmatprep.subr.bf16.mxu1 %v11262_v7 }
 0xb3b   :  { %8441 = vmatpush3.bf16.msra.mxu1 %v11262_v7  ;;  %8438 = vmatmul.mubr.msk.f32.gmra.mrb[34].mxu0 %vm348_vm1, %v8411_v12 }
 0xb3c   :  { %8424 = vmatmul.mubr.msk.f32.gmra.mrb[30].mxu1 %vm348_vm1, %v8411_v12  ;;  %8442 = vmatprep.subr.bf16.mxu1 %v11260_v43 }
 0xb3f   :  { %8443 = vmatpush3.bf16.msra.mxu1 %v11260_v43 }
 0xbaa   :  { %v2802_v13 = vpop.permute.xlu1 %2801 }
 0xbab   :  { %v2800_v1 = vpop.permute.xlu0 %2799 }
 0xbac   :  { %8448 = vmatprep.subr.bf16.mxu0 %v2800_v1 }
 0xbad   :  { %8449 = vmatpush3.bf16.msra.mxu0 %v2800_v1 }
 0xbae   :  { %8450 = vmatprep.subr.bf16.mxu0 %v2802_v13 }
 0xbb1   :  { %8451 = vmatpush3.bf16.msra.mxu0 %v2802_v13 }
 0xc0a   :  { %v8422_v8 = vpop.f32.mrb[28].mxu1  ;;  %v8436_v44 = vpop.f32.mrb[32].mxu0 }
 0xc0b   :  { %2724 = vperm.xlu1 %9361, %v8436_v44   ;;  %2561 = vperm.xlu0 %9360, %v8436_v44   ;;  %v2413_v33 = vpop.f32.mrb[29].mxu1  ;;  %v2502_v11 = vpop.f32.mrb[33].mxu0 }
 0xc0e   :  { %v8439_v21 = vpop.f32.mrb[34].mxu0 }
 0xc0f   :  { %v8425_v16 = vpop.f32.mrb[30].mxu1  ;;  %9363 = vset.pattern.permute.xlu1 %v10328_v38  ;;  %9362 = vset.pattern.permute.xlu0 %v10329_v39  ;;  %v2512_v30 = vpop.f32.mrb[35].mxu0 }
 0xc10   :  { %v2423_v57 = vpop.f32.mrb[31].mxu1  ;;  %3082 = vperm.xlu1 %9363, %v8436_v44   ;;  %2904 = vperm.xlu0 %9362, %v8436_v44  }
 0xc14   :  { %9364 = vset.pattern.permute.xlu1 %v10326_v23  ;;  %9372 = vset.pattern.permute.xlu0 %v10326_v23 }
 0xc15   :  { %2556 = vperm.xlu1 %9364, %v2502_v11   ;;  %2566 = vperm.xlu0 %9372, %v2512_v30  }
 0xc19   :  { %9365 = vset.pattern.permute.xlu1 %v10325_v22  ;;  %9373 = vset.pattern.permute.xlu0 %v10325_v22 }
 0xc1a   :  { %2720 = vperm.xlu1 %9365, %v2502_v11   ;;  %2728 = vperm.xlu0 %9373, %v2512_v30  }
 0xc1e   :  { %9366 = vset.pattern.permute.xlu1 %v10329_v39  ;;  %9374 = vset.pattern.permute.xlu0 %v10329_v39 }
 0xc1f   :  { %2900 = vperm.xlu1 %9366, %v2502_v11   ;;  %2908 = vperm.xlu0 %9374, %v2512_v30  }
 0xc23   :  { %9367 = vset.pattern.permute.xlu1 %v10328_v38  ;;  %9375 = vset.pattern.permute.xlu0 %v10328_v38 }
 0xc24   :  { %3078 = vperm.xlu1 %9367, %v2502_v11   ;;  %3086 = vperm.xlu0 %9375, %v2512_v30  }
 0xc28   :  { %9368 = vset.pattern.permute.xlu1 %v10326_v23  ;;  %3155 = vrot.lane.b32.xlu0 %v11262_v7, %s10330_s17 }
 0xc29   :  { %2571 = vperm.xlu1 %9368, %v8439_v21   ;;  %9377 = vset.pattern.permute.xlu0 %v10326_v23 }
 0xc2d   :  { %9369 = vset.pattern.permute.xlu1 %v10325_v22 }
 0xc2e   :  { %2732 = vperm.xlu1 %9369, %v8439_v21  }
 0xc32   :  { %9370 = vset.pattern.permute.xlu1 %v10329_v39 }
 0xc33   :  { %2912 = vperm.xlu1 %9370, %v8439_v21  }
 0xc37   :  { %9371 = vset.pattern.permute.xlu1 %v10328_v38 }
 0xc38   :  { %3090 = vperm.xlu1 %9371, %v8439_v21  }
 0xc61   :  { %2521 = vxpose.xlu1.b32.start [1/4] (short) (narrow) %v2413_v33, 8 }
 0xc65   :  { %2522 = vxpose.xlu1.b32.cont [2/4] (short) (narrow) %v8422_v8, 8 }
 0xc69   :  { %2523 = vxpose.xlu1.b32.cont [3/4] (short) (narrow) %v2423_v57, 8 }
 0xc6d   :  { %2524 = vxpose.xlu1.b32.end [4/4] (short) (narrow) %v8425_v16, 8 }
 0xc8a   :  { %v2562_v48 = vpop.permute.xlu0 %2561  ;;  %v2725_v38 = vpop.permute.xlu1 %2724 }
 0xc8b   :  { %2977 = vrot.lane.b32.xlu1 %v11262_v7, %s10331_s3 }
 0xc8c   :  { %9376 = vset.pattern.permute.xlu1 %v10326_v23 }
 0xc8f   :  { %v2905_v32 = vpop.permute.xlu0 %2904  ;;  %v3083_v25 = vpop.permute.xlu1 %3082 }
 0xc94   :  { %v11298_v27 = vpop.permute.xlu0 %2566  ;;  %v2557_v28 = vpop.permute.xlu1 %2556 }
 0xc99   :  { %v2729_v22 = vpop.permute.xlu0 %2728  ;;  %v2721_v45 = vpop.permute.xlu1 %2720 }
 0xc9e   :  { %v11300_v53 = vpop.permute.xlu0 %2908  ;;  %v2901_v29 = vpop.permute.xlu1 %2900 }
 0xca3   :  { %v11302_v39 = vpop.permute.xlu0 %3086  ;;  %v3079_v51 = vpop.permute.xlu1 %3078 }
 0xca7   :  { %v11304_v26 = vpop.permute.xlu0 %3155 }
 0xca8   :  { %8464 = vmatprep.subr.bf16.mxu0 %v11304_v26  ;;  %v11307_v42 = vpop.permute.xlu1 %2571 }
 0xcad   :  { %v11309_v34 = vpop.permute.xlu1 %2732 }
 0xcb2   :  { %v11311_v40 = vpop.permute.xlu1 %2912 }
 0xcb7   :  { %v11313_v31 = vpop.permute.xlu1 %3090 }
 0xce1   :  { %v2537_v37 = vpop.trf.xlu1 }
 0xce2   :  { %v11316_v52 = vrot.slane %v2537_v37, %v10670_v61  ;;  %v11319_v15 = vrot.slane %v2537_v37, %v10672_v62  ;;  %v11322_v58 = vrot.slane %v2537_v37, %v10674_v63  ;;  %v11325_v54 = vrot.slane %v2537_v37, %v10676_v0 }
 0xce4   :  { %v2741_v35 = vadd.f32 %v11319_v15, %v2729_v22  ;;  %v2579_v56 = vadd.f32 %v11316_v52, %v2562_v48  ;;  %v2740_v50 = vadd.f32 %v11319_v15, %v2725_v38  ;;  %v2920_v3 = vadd.f32 %v11322_v58, %v2905_v32 }
 0xce5   :  { %v3098_v0 = vadd.f32 %v11325_v54, %v3083_v25  ;;  %v2578_v4 = vadd.f32 %v11316_v52, %v2557_v28  ;;  %v2739_v24 = vadd.f32 %v11319_v15, %v2721_v45  ;;  %v2919_v44 = vadd.f32 %v11322_v58, %v2901_v29 }
 0xce6   :  { %vm2745_vm4 = vcmp.gt.f32.partialorder %v2741_v35, 0.0  ;;  %v2749_v61 = vmul.f32 0.2, %v2741_v35  ;;  %vm2583_vm5 = vcmp.gt.f32.partialorder %v2579_v56, 0.0  ;;  %v2587_v17 = vmul.f32 0.2, %v2579_v56 }
 0xce7   :  { %vm2744_vm6 = vcmp.gt.f32.partialorder %v2740_v50, 0.0  ;;  %v2748_v62 = vmul.f32 0.2, %v2740_v50  ;;  %v2928_v55 = vmul.f32 0.2, %v2920_v3  ;;  %vm2924_vm7 = vcmp.gt.f32.partialorder %v2920_v3, 0.0 }
 0xce8   :  { %v2753_v20 = vsel %vm2745_vm4, %v2741_v35, %v2749_v61  ;;  %v2591_v63 = vsel %vm2583_vm5, %v2579_v56, %v2587_v17  ;;  %v3106_v46 = vmul.f32 0.2, %v3098_v0  ;;  %vm3102_vm8 = vcmp.gt.f32.partialorder %v3098_v0, 0.0 }
 0xce9   :  { %v11334_v10 = vsel %vm277_vm2, %v2753_v20, -1e+30  ;;  %v11338_v41 = vsel %vm276_vm3, %v2591_v63, -1e+30  ;;  %v2752_v18 = vsel %vm2744_vm6, %v2740_v50, %v2748_v62  ;;  %v2932_v47 = vsel %vm2924_vm7, %v2920_v3, %v2928_v55 }
 0xcea   :  { %v2765_v60 = vsel %vm348_vm1, %v11334_v10, -inf  ;;  %v2601_v2 = vsel %vm348_vm1, %v11338_v41, -inf  ;;  %v11346_v49 = vsel %vm276_vm3, %v2752_v18, -1e+30  ;;  %v11353_v9 = vsel %vm276_vm3, %v2932_v47, -1e+30 }
 0xceb   :  { %2766 = vmax.xlane.f32.xlu1 %v2765_v60  ;;  %2602 = vmax.xlane.f32.xlu0 %v2601_v2  ;;  %v2762_v19 = vsel %vm348_vm1, %v11346_v49, -inf  ;;  %v3110_v59 = vsel %vm3102_vm8, %v3098_v0, %v3106_v46  ;;  %v2586_v12 = vmul.f32 0.2, %v2578_v4  ;;  %vm2582_vm14 = vcmp.gt.f32.partialorder %v2578_v4, 0.0 }
 0xcec   :  { %v2942_v7 = vsel %vm348_vm1, %v11353_v9, -inf  ;;  %v11360_v1 = vsel %vm276_vm3, %v3110_v59, -1e+30  ;;  %v2747_v8 = vmul.f32 0.2, %v2739_v24  ;;  %vm2743_vm0 = vcmp.gt.f32.partialorder %v2739_v24, 0.0 }
 0xced   :  { %v2590_v13 = vsel %vm2582_vm14, %v2578_v4, %v2586_v12  ;;  %v3120_v33 = vsel %vm348_vm1, %v11360_v1, -inf  ;;  %v2927_v16 = vmul.f32 0.2, %v2919_v44  ;;  %v3097_v30 = vadd.f32 %v11325_v54, %v3079_v51 }
 0xcee   :  { %v11367_v11 = vsel %vm275_vm10, %v2590_v13, -1e+30  ;;  %v2751_v21 = vsel %vm2743_vm0, %v2739_v24, %v2747_v8  ;;  %vm2923_vm4 = vcmp.gt.f32.partialorder %v2919_v44, 0.0  ;;  %v2581_v22 = vadd.f32 %v11316_v52, %v11307_v42 }
 0xcef   :  { %2763 = vmax.xlane.f32.xlu0 %v2762_v19  ;;  %v2598_v6 = vsel %vm348_vm1, %v11367_v11, -inf  ;;  %v11374_v57 = vsel %vm275_vm10, %v2751_v21, -1e+30  ;;  %v2931_v48 = vsel %vm2923_vm4, %v2919_v44, %v2927_v16  ;;  %v3105_v32 = vmul.f32 0.2, %v3097_v30 }
 0xcf0   :  { %vm3101_vm3 = vcmp.gt.f32.partialorder %v3097_v30, 0.0  ;;  %v2759_v25 = vsel %vm348_vm1, %v11374_v57, -inf  ;;  %v11387_v28 = vsel %vm275_vm10, %v2931_v48, -1e+30  ;;  %v2589_v29 = vmul.f32 0.2, %v2581_v22 }
 0xcf1   :  { %v3109_v45 = vsel %vm3101_vm3, %v3097_v30, %v3105_v32  ;;  %v2742_v51 = vadd.f32 %v11319_v15, %v11309_v34  ;;  %vm2585_vm5 = vcmp.gt.f32.partialorder %v2581_v22, 0.0  ;;  %v2939_v42 = vsel %vm348_vm1, %v11387_v28, -inf }
 0xcf2   :  { %v11395_v37 = vsel %vm275_vm10, %v3109_v45, -1e+30  ;;  %v2593_v35 = vsel %vm2585_vm5, %v2581_v22, %v2589_v29  ;;  %v2922_v50 = vadd.f32 %v11322_v58, %v11311_v40  ;;  %v3100_v36 = vadd.f32 %v11325_v54, %v11313_v31 }
 0xcf3   :  { %2943 = vmax.xlane.f32.xlu0 %v2942_v7  ;;  %v2750_v56 = vmul.f32 0.2, %v2742_v51  ;;  %vm2746_vm6 = vcmp.gt.f32.partialorder %v2742_v51, 0.0  ;;  %v3117_v3 = vsel %vm348_vm1, %v11395_v37, -inf  ;;  %v11403_v34 = vsel %vm278_vm15, %v2593_v35, -1e+30 }
 0xcf4   :  { %v2930_v61 = vmul.f32 0.2, %v2922_v50  ;;  %vm2926_vm10 = vcmp.gt.f32.partialorder %v2922_v50, 0.0  ;;  %v2607_v17 = vsel %vm348_vm1, %v11403_v34, -inf  ;;  %v3108_v20 = vmul.f32 0.2, %v3100_v36 }
 0xcf5   :  { %v2754_v15 = vsel %vm2746_vm6, %v2742_v51, %v2750_v56  ;;  %v2580_v63 = vadd.f32 %v11316_v52, %v11298_v27  ;;  %vm3104_vm7 = vcmp.gt.f32.partialorder %v3100_v36, 0.0  ;;  %v2921_v60 = vadd.f32 %v11322_v58, %v11300_v53 }
 0xcf6   :  { %v11411_v40 = vsel %vm278_vm15, %v2754_v15, -1e+30  ;;  %v2934_v62 = vsel %vm2926_vm10, %v2922_v50, %v2930_v61  ;;  %v3112_v0 = vsel %vm3104_vm7, %v3100_v36, %v3108_v20  ;;  %v3099_v46 = vadd.f32 %v11325_v54, %v11302_v39 }
 0xcf7   :  { %3121 = vmax.xlane.f32.xlu0 %v3120_v33  ;;  %v2768_v55 = vsel %vm348_vm1, %v11411_v40, -inf  ;;  %v11419_v31 = vsel %vm278_vm15, %v2934_v62, -1e+30  ;;  %v2588_v18 = vmul.f32 0.2, %v2580_v63  ;;  %vm2584_vm8 = vcmp.gt.f32.partialorder %v2580_v63, 0.0 }
 0xcf8   :  { %v2948_v2 = vsel %vm348_vm1, %v11419_v31, -inf  ;;  %v11427_v27 = vsel %vm278_vm15, %v3112_v0, -1e+30  ;;  %v2929_v47 = vmul.f32 0.2, %v2921_v60  ;;  %vm2925_vm14 = vcmp.gt.f32.partialorder %v2921_v60, 0.0 }
 0xcf9   :  { %v2592_v52 = vsel %vm2584_vm8, %v2580_v63, %v2588_v18  ;;  %v3126_v4 = vsel %vm348_vm1, %v11427_v27, -inf  ;;  %v3107_v19 = vmul.f32 0.2, %v3099_v46  ;;  %vm3103_vm0 = vcmp.gt.f32.partialorder %v3099_v46, 0.0 }
 0xcfa   :  { %v11435_v53 = vsel %vm277_vm2, %v2592_v52, -1e+30  ;;  %v2933_v58 = vsel %vm2925_vm14, %v2921_v60, %v2929_v47  ;;  %vm10334_vm15 = vmmov 0  }
 0xcfb   :  { %2599 = vmax.xlane.f32.xlu0 %v2598_v6  ;;  %v2604_v14 = vsel %vm348_vm1, %v11435_v53, -inf  ;;  %v11441_v59 = vsel %vm277_vm2, %v2933_v58, -1e+30  ;;  %v3111_v39 = vsel %vm3103_vm0, %v3099_v46, %v3107_v19 }
 0xcfc   :  { %2979 = vrot.lane.b32.xlu1 %v11260_v43, %s10331_s3  ;;  %v2945_v54 = vsel %vm348_vm1, %v11441_v59, -inf  ;;  %v11447_v12 = vsel %vm277_vm2, %v3111_v39, -1e+30  ;;  %vm3284_vm2 = vcmask 392192  }
 0xcfd   :  { %v11380_v38 = vpop.permute.xlu1 %2977  ;;  %v3123_v24 = vsel %vm348_vm1, %v11447_v12, -inf }
 0xcfe   :  { %8456 = vmatprep.subr.bf16.mxu1 %v11380_v38 }
 0xcff   :  { %2760 = vmax.xlane.f32.xlu0 %v2759_v25 }
 0xd03   :  { %2940 = vmax.xlane.f32.xlu0 %v2939_v42 }
 0xd07   :  { %3118 = vmax.xlane.f32.xlu0 %v3117_v3 }
 0xd0b   :  { %2608 = vmax.xlane.f32.xlu0 %v2607_v17 }
 0xd0f   :  { %2769 = vmax.xlane.f32.xlu0 %v2768_v55 }
 0xd13   :  { %2949 = vmax.xlane.f32.xlu0 %v2948_v2 }
 0xd17   :  { %3127 = vmax.xlane.f32.xlu0 %v3126_v4 }
 0xd1b   :  { %2605 = vmax.xlane.f32.xlu0 %v2604_v14 }
 0xd1f   :  { %2946 = vmax.xlane.f32.xlu0 %v2945_v54 }
 0xd23   :  { %3124 = vmax.xlane.f32.xlu0 %v3123_v24 }
 0xd39   :  { %3157 = vrot.lane.b32.xlu0 %v11260_v43, %s10330_s17 }
 0xd78   :  { %v2603_v7 = vpop.xlane.xlu0 %2602 }
 0xd79   :  { %v2611_v5 = vsub.f32 %v11338_v41, %v2603_v7 }
 0xd7b   :  { %v2616_v32 = vmul.f32 1.442695, %v2611_v5 }
 0xd7c   :  { %v2764_v13 = vpop.xlane.xlu0 %2763 }
 0xd7d   :  { %v2772_v8 = vsub.f32 %v11346_v49, %v2764_v13 }
 0xd7f   :  { %v2777_v44 = vmul.f32 1.442695, %v2772_v8 }
 0xd80   :  { %v2944_v33 = vpop.xlane.xlu0 %2943 }
 0xd81   :  { %9506 = vpow2.f32 %v2777_v44  ;;  %v2952_v21 = vsub.f32 %v11353_v9, %v2944_v33 }
 0xd83   :  { %v2957_v16 = vmul.f32 1.442695, %v2952_v21 }
 0xd84   :  { %v3122_v30 = vpop.xlane.xlu0 %3121 }
 0xd85   :  { %9508 = vpow2.f32 %v2957_v16  ;;  %v3130_v6 = vsub.f32 %v11360_v1, %v3122_v30  ;;  %v2767_v1 = vpop.xlane.xlu1 %2766 }
 0xd86   :  { %v2773_v50 = vsub.f32 %v11334_v10, %v2767_v1  ;;  %v3275_v1 = vld [vmem:[%s12483_s9] sm:$0xff] }
 0xd87   :  { %v3135_v48 = vmul.f32 1.442695, %v3130_v6 }
 0xd88   :  { %v2600_v22 = vpop.xlane.xlu0 %2599  ;;  %v2779_v62 = vmul.f32 1.442695, %v2773_v50 }
 0xd89   :  { %9510 = vpow2.f32 %v3135_v48  ;;  %v2610_v43 = vsub.f32 %v11367_v11, %v2600_v22  ;;  %v7651_v22 = vld [vmem:[%s12483_s9 + $0x38] sm:$0xff] }
 0xd8a   :  { %9512 = vpow2.f32 %v2616_v32  ;;  %v7650_v32 = vld [vmem:[%s12483_s9 + $0x30] sm:$0xff] }
 0xd8b   :  { %v9507_v25 = vpop.eup %9506  ;;  %v2614_v49 = vmul.f32 1.442695, %v2610_v43 }
 0xd8c   :  { %v2761_v45 = vpop.xlane.xlu0 %2760  ;;  %v2786_v29 = vsel %vm348_vm1, %v9507_v25, 0.0 }
 0xd8d   :  { %9514 = vpow2.f32 %v2614_v49  ;;  %v2771_v9 = vsub.f32 %v11374_v57, %v2761_v45  ;;  %2787 = vadd.xlane.f32.xlu0 %v2786_v29  ;;  %v11497_v49 = vpack.c.bf16 %v7651_v22, %v7650_v32  ;;  %v3257_v32 = vld [vmem:[#allocation2 + $0x10] sm:$0xff] }
 0xd8f   :  { %v11460_v41 = vpop.eup %9508  ;;  %v2775_v51 = vmul.f32 1.442695, %v2771_v9 }
 0xd90   :  { %v2941_v42 = vpop.xlane.xlu0 %2940  ;;  %v2966_v35 = vsel %vm348_vm1, %v11460_v41, 0.0 }
 0xd91   :  { %9516 = vpow2.f32 %v2775_v51  ;;  %v2951_v11 = vsub.f32 %v11387_v28, %v2941_v42  ;;  %2967 = vadd.xlane.f32.xlu1 %v2966_v35  ;;  %v3276_v42 = vld [vmem:[%s12483_s9 + $0x8] sm:$0xff] }
 0xd92   :  { %v11515_v50 = vpack.c.bf16 %v3276_v42, %v3275_v1  ;;  %v3531_v42 = vld [vmem:[#allocation17 + $0x40] sm:$0xff] }
 0xd93   :  { %v9511_v56 = vpop.eup %9510  ;;  %v2955_v3 = vmul.f32 1.442695, %v2951_v11  ;;  %v2980_v11 = vpop.permute.xlu1 %2979 }
 0xd94   :  { %v3119_v15 = vpop.xlane.xlu0 %3118  ;;  %v3144_v57 = vsel %vm348_vm1, %v9511_v56, 0.0  ;;  %v11468_v36 = vpop.eup %9512 }
 0xd95   :  { %9518 = vpow2.f32 %v2955_v3  ;;  %v3129_v61 = vsub.f32 %v11395_v37, %v3119_v15  ;;  %3145 = vadd.xlane.f32.xlu1 %v3144_v57  ;;  %v3277_v3 = vld [vmem:[%s12483_s9 + $0x10] sm:$0xff]  ;;  %v7652_v15 = vld [vmem:[%s12483_s9 + $0x40] sm:$0xff]  ;;  %v7653_v57 = vld [vmem:[%s12483_s9 + $0x48] sm:$0xff] }
 0xd97   :  { %v11470_v17 = vpop.eup %9514  ;;  %v3133_v20 = vmul.f32 1.442695, %v3129_v61 }
 0xd98   :  { %v2609_v63 = vpop.xlane.xlu0 %2608  ;;  %v2634_v28 = vpack.c.bf16 %v11468_v36, %v11470_v17 }
 0xd99   :  { %9520 = vpow2.f32 %v3133_v20  ;;  %v2613_v19 = vsub.f32 %v11403_v34, %v2609_v63 }
 0xd9a   :  { %8444 = vmatprep.mubr.msk.bf16.mxu1 %vm348_vm1, %v2634_v28  ;;  %9522 = vpow2.f32 %v2779_v62  ;;  %v11525_v28 = vpack.c.bf16 %v7653_v57, %v7652_v15  ;;  %v3533_v15 = vld [vmem:[#allocation17 + $0x50] sm:$0xff]  ;;  %v3534_v57 = vld [vmem:[#allocation17 + $0x58] sm:$0xff] }
 0xd9b   :  { %v9517_v10 = vpop.eup %9516  ;;  %v2620_v7 = vmul.f32 1.442695, %v2613_v19 }
 0xd9c   :  { %v2770_v55 = vpop.xlane.xlu0 %2769  ;;  %v2783_v0 = vsel %vm348_vm1, %v9517_v10, 0.0  ;;  %v2795_v37 = vpack.c.bf16 %v9507_v25, %v9517_v10  ;;  %v3279_v10 = vld [vmem:[%s12483_s9 + $0x20] sm:$0xff] }
 0xd9d   :  { %v2774_v18 = vsub.f32 %v11411_v40, %v2770_v55  ;;  %2784 = vadd.xlane.f32.xlu1 %v2783_v0  ;;  %v3280_v55 = vld [vmem:[%s12483_s9 + $0x28] sm:$0xff]  ;;  %v7654_v0 = vld [vmem:[%s12483_s9 + $0x50] sm:$0xff] }
 0xd9e   :  { %8452 = vmatprep.mubr.msk.bf16.mxu0 %vm348_vm1, %v2795_v37  ;;  %v7655_v37 = vld [vmem:[%s12483_s9 + $0x58] sm:$0xff] }
 0xd9f   :  { %v11478_v60 = vpop.eup %9518  ;;  %v2781_v2 = vmul.f32 1.442695, %v2774_v18  ;;  %v11535_v18 = vld [vmem:[#allocation15] ss:$0 sm:$0xff] }
 0xda0   :  { %v2950_v52 = vpop.xlane.xlu0 %2949  ;;  %v2963_v47 = vsel %vm348_vm1, %v11478_v60, 0.0  ;;  %v2975_v51 = vpack.c.bf16 %v11460_v41, %v11478_v60  ;;  %v3278_v41 = vld [vmem:[%s12483_s9 + $0x18] sm:$0xff]  ;;  %v11539_v60 = vpack.c.bf16 %v3280_v55, %v3279_v10  ;;  %v2625_v10 = vsel %vm348_vm1, %v11468_v36, 0.0 }
 0xda1   :  { %9524 = vpow2.f32 %v2781_v2  ;;  %v2954_v46 = vsub.f32 %v11419_v31, %v2950_v52  ;;  %2964 = vadd.xlane.f32.xlu0 %v2963_v47  ;;  %v11521_v62 = vpack.c.bf16 %v3278_v41, %v3277_v3  ;;  %v11541_v2 = vpack.c.bf16 %v7655_v37, %v7654_v0  ;;  %v3267_v52 = vld [vmem:[#allocation17] sm:$0xff]  ;;  %v3268_v47 = vld [vmem:[#allocation17 + $0x8] sm:$0xff] }
 0xda2   :  { %v2622_v36 = vsel %vm348_vm1, %v11470_v17, 0.0 }
 0xda3   :  { %v9521_v4 = vpop.eup %9520  ;;  %v2961_v58 = vmul.f32 1.442695, %v2954_v46  ;;  %v3404_v46 = vld [vmem:[#allocation17 + $0x20] sm:$0xff] }
 0xda4   :  { %v3128_v14 = vpop.xlane.xlu0 %3127  ;;  %v3141_v40 = vsel %vm348_vm1, %v9521_v4, 0.0  ;;  %v9523_v39 = vpop.eup %9522  ;;  %v3153_v5 = vpack.c.bf16 %v9511_v56, %v9521_v4  ;;  %v3405_v4 = vld [vmem:[#allocation17 + $0x28] sm:$0xff] }
 0xda5   :  { %9526 = vpow2.f32 %v2961_v58  ;;  %v3132_v54 = vsub.f32 %v11427_v27, %v3128_v14  ;;  %3142 = vadd.xlane.f32.xlu0 %v3141_v40  ;;  %v2789_v8 = vsel %vm348_vm1, %v9523_v39, 0.0  ;;  %v11551_v58 = vpack.c.bf16 %v3268_v47, %v3267_v52  ;;  %v3256_v14 = vld [vmem:[#allocation2 + $0x8] sm:$0xff] }
 0xda6   :  { %v11553_v19 = vpack.c.bf16 %v3405_v4, %v3404_v46  ;;  %v3269_v40 = vld [vmem:[#allocation17 + $0x10] sm:$0xff] }
 0xda7   :  { %v3139_v24 = vmul.f32 1.442695, %v3132_v54  ;;  %v3406_v54 = vld [vmem:[#allocation17 + $0x30] sm:$0xff] }
 0xda8   :  { %v2606_v13 = vpop.xlane.xlu0 %2605 }
 0xda9   :  { %9528 = vpow2.f32 %v3139_v24  ;;  %v2612_v31 = vsub.f32 %v11435_v53, %v2606_v13  ;;  %2790 = vadd.xlane.f32.xlu0 %v2789_v8  ;;  %v3407_v24 = vld [vmem:[#allocation17 + $0x38] sm:$0xff] }
 0xdaa   :  { %9530 = vpow2.f32 %v2620_v7  ;;  %v3255_v7 = vld [vmem:[#allocation2] sm:$0xff] }
 0xdab   :  { %v9525_v44 = vpop.eup %9524  ;;  %v2618_v33 = vmul.f32 1.442695, %v2612_v31  ;;  %v11561_v13 = vpack.c.bf16 %v3256_v14, %v3255_v7  ;;  %v11565_v31 = vpack.c.bf16 %v3407_v24, %v3406_v54 }
 0xdac   :  { %v2796_v34 = vpack.c.bf16 %v9525_v44, %v9523_v39  ;;  %v2947_v21 = vpop.xlane.xlu0 %2946  ;;  %v2792_v16 = vsel %vm348_vm1, %v9525_v44, 0.0  ;;  %v3270_v39 = vld [vmem:[#allocation17 + $0x18] sm:$0xff]  ;;  %v7659_v44 = vld [vmem:[%s12483_s9 + $0x60] sm:$0xff] }
 0xdad   :  { %9532 = vpow2.f32 %v2618_v33  ;;  %v2953_v27 = vsub.f32 %v11441_v59, %v2947_v21  ;;  %2793 = vadd.xlane.f32.xlu1 %v2792_v16  ;;  %v11563_v8 = vpack.c.bf16 %v3270_v39, %v3269_v40  ;;  %v7660_v33 = vld [vmem:[%s12483_s9 + $0x68] sm:$0xff]  ;;  %v7669_v21 = vld [vmem:[%s12483_s9 + $0x98] sm:$0xff] }
 0xdae   :  { %8453 = vmatmul.mubr.msk.bf16.vlgmr.msra.gmra.mrb[36].mxu0 %vm348_vm1, %v2796_v34  ;;  %v7668_v34 = vld [vmem:[%s12483_s9 + $0x90] sm:$0xff]  ;;  %v11579_v16 = vpack.c.bf16 %v7660_v33, %v7659_v44 }
 0xdaf   :  { %v9527_v30 = vpop.eup %9526  ;;  %v2959_v6 = vmul.f32 1.442695, %v2953_v27  ;;  %8465 = vmatpush3.bf16.msra.mxu0 %v11304_v26  ;;  %8468 = vmatprep.mubr.msk.bf16.mxu0 %vm348_vm1, %v3153_v5  ;;  %v11583_v27 = vpack.c.bf16 %v7669_v21, %v7668_v34  ;;  %v3258_v5 = vld [vmem:[#allocation2 + $0x18] sm:$0xff] }
 0xdb0   :  { %v3125_v53 = vpop.xlane.xlu0 %3124  ;;  %v2972_v48 = vsel %vm348_vm1, %v9527_v30, 0.0  ;;  %v11595_v22 = vpack.c.bf16 %v3258_v5, %v3257_v32 }
 0xdb1   :  { %9534 = vpow2.f32 %v2959_v6  ;;  %v3131_v43 = vsub.f32 %v11447_v12, %v3125_v53  ;;  %2973 = vadd.xlane.f32.xlu1 %v2972_v48  ;;  %v7662_v6 = vld [vmem:[%s12483_s9 + $0x78] sm:$0xff]  ;;  %v7670_v53 = vld [vmem:[%s12483_s9 + $0xa0] sm:$0xff]  ;;  %v7671_v48 = vld [vmem:[%s12483_s9 + $0xa8] sm:$0xff] }
 0xdb3   :  { %v9529_v59 = vpop.eup %9528  ;;  %v3137_v25 = vmul.f32 1.442695, %v3131_v43 }
 0xdb4   :  { %v3158_v45 = vpop.permute.xlu0 %3157  ;;  %v3150_v26 = vsel %vm348_vm1, %v9529_v59, 0.0  ;;  %v11500_v29 = vpop.eup %9530 }
 0xdb5   :  { %9536 = vpow2.f32 %v3137_v25  ;;  %3151 = vadd.xlane.f32.xlu1 %v3150_v26  ;;  %8466 = vmatprep.subr.bf16.mxu0 %v3158_v45  ;;  %v7663_v25 = vld [vmem:[%s12483_s9 + $0x80] sm:$0xff]  ;;  %v7672_v26 = vld [vmem:[%s12483_s9 + $0xb0] sm:$0xff]  ;;  %v2631_v55 = vsel %vm348_vm1, %v11500_v29, 0.0 }
 0xdb6   :  { %8467 = vmatpush3.bf16.msra.mxu0 %v3158_v45  ;;  %v7664_v45 = vld [vmem:[%s12483_s9 + $0x88] sm:$0xff] }
 0xdb7   :  { %v11502_v9 = vpop.eup %9532  ;;  %8490 = vmatprep.subr.bf16.mxu0 %v11497_v49 }
 0xdb8   :  { %v2635_v12 = vpack.c.bf16 %v11500_v29, %v11502_v9  ;;  %v2628_v17 = vsel %vm348_vm1, %v11502_v9, 0.0 }
 0xdba   :  { %8445 = vmatmul.mubr.msk.bf16.vlgmr.msra.gmra.mrb[32].mxu1 %vm348_vm1, %v2635_v12  ;;  %v7673_v12 = vld [vmem:[%s12483_s9 + $0xb8] sm:$0xff] }
 0xdbb   :  { %v9535_v35 = vpop.eup %9534  ;;  %8457 = vmatpush3.bf16.msra.mxu1 %v11380_v38  ;;  %8460 = vmatprep.mubr.msk.bf16.mxu1 %vm348_vm1, %v2975_v51  ;;  %v11613_v51 = vpack.c.bf16 %v7664_v45, %v7663_v25  ;;  %v11615_v1 = vpack.c.bf16 %v7673_v12, %v7672_v26 }
 0xdbc   :  { %8458 = vmatprep.subr.bf16.mxu1 %v2980_v11  ;;  %v2969_v56 = vsel %vm348_vm1, %v9535_v35, 0.0  ;;  %v2976_v20 = vpack.c.bf16 %v9527_v30, %v9535_v35  ;;  %v7661_v30 = vld [vmem:[%s12483_s9 + $0x70] sm:$0xff]  ;;  %v3532_v35 = vld [vmem:[#allocation17 + $0x48] sm:$0xff] }
 0xdbd   :  { %2970 = vadd.xlane.f32.xlu0 %v2969_v56  ;;  %v11597_v43 = vpack.c.bf16 %v7662_v6, %v7661_v30  ;;  %v3659_v56 = vld [vmem:[#allocation17 + $0x68] sm:$0xff]  ;;  %v11623_v3 = vpack.c.bf16 %v3532_v35, %v3531_v42 }
 0xdbf   :  { %v9537_v61 = vpop.eup %9536  ;;  %8459 = vmatpush3.bf16.msra.mxu1 %v2980_v11  ;;  %v3658_v11 = vld [vmem:[#allocation17 + $0x60] sm:$0xff] }
 0xdc0   :  { %v3147_v38 = vsel %vm348_vm1, %v9537_v61, 0.0  ;;  %8472 = vmatprep.subr.bf16.mxu1 %v11515_v50  ;;  %v3154_v63 = vpack.c.bf16 %v9529_v59, %v9537_v61  ;;  %v11599_v59 = vpack.c.bf16 %v7671_v48, %v7670_v53  ;;  %v11625_v41 = vpack.c.bf16 %v3659_v56, %v3658_v11  ;;  %v3660_v61 = vld [vmem:[#allocation17 + $0x70] sm:$0xff] }
 0xdc1   :  { %3148 = vadd.xlane.f32.xlu0 %v3147_v38  ;;  %v3661_v38 = vld [vmem:[#allocation17 + $0x78] sm:$0xff] }
 0xdc2   :  { %8461 = vmatmul.mubr.msk.bf16.vlgmr.msra.gmra.mrb[36].mxu1 %vm348_vm1, %v2976_v20  ;;  %8469 = vmatmul.mubr.msk.bf16.vlgmr.msra.gmra.mrb[40].mxu0 %vm348_vm1, %v3154_v63  ;;  %v11631_v20 = vpack.c.bf16 %v3534_v57, %v3533_v15  ;;  %v11633_v63 = vpack.c.bf16 %v3661_v38, %v3660_v61 }
 0xdc3   :  { %8473 = vmatpush3.bf16.msra.mxu1 %v11515_v50  ;;  %8491 = vmatpush3.bf16.msra.mxu0 %v11497_v49 }
 0xdc4   :  { %8474 = vmatprep.subr.bf16.mxu1 %v11521_v62  ;;  %8492 = vmatprep.subr.bf16.mxu0 %v11525_v28 }
 0xdc5   :  { %8478 = vmatprep.mubr.bf16.mxu1 %v10326_v23  ;;  %8496 = vmatprep.mubr.bf16.mxu0 %v10326_v23 }
 0xdc6   :  { %3046 = vrot.lane.b32.xlu1 %v11535_v18, %s10331_s3 }
 0xdc7   :  { %8475 = vmatpush3.bf16.msra.mxu1 %v11521_v62  ;;  %8493 = vmatpush3.bf16.msra.mxu0 %v11525_v28 }
 0xdc8   :  { %8476 = vmatprep.subr.bf16.mxu1 %v11539_v60  ;;  %8494 = vmatprep.subr.bf16.mxu0 %v11541_v2 }
 0xdca   :  { %3224 = vrot.lane.b32.xlu1 %v11535_v18, %s10330_s17 }
 0xdcb   :  { %8477 = vmatpush3.bf16.msra.mxu1 %v11539_v60  ;;  %8495 = vmatpush3.bf16.msra.mxu0 %v11541_v2 }
 0xdcc   :  { %8482 = vmatprep.subr.bf16.mxu1 %v11551_v58  ;;  %8500 = vmatprep.subr.bf16.mxu0 %v11553_v19 }
 0xdce   :  { %8479 = vmatmul.mubr.bf16.vlgmr.msra.gmra.mrb[40].mxu1 %v10326_v23  ;;  %8497 = vmatmul.mubr.bf16.vlgmr.msra.gmra.mrb[44].mxu0 %v10326_v23 }
 0xdcf   :  { %8483 = vmatpush3.bf16.msra.mxu1 %v11551_v58  ;;  %8486 = vmatprep.mubr.msk.bf16.mxu1 %vm348_vm1, %v11561_v13 }
 0xdd0   :  { %8501 = vmatpush3.bf16.msra.mxu0 %v11553_v19  ;;  %8504 = vmatprep.mubr.msk.bf16.mxu0 %vm348_vm1, %v11561_v13 }
 0xdd1   :  { %8484 = vmatprep.subr.bf16.mxu1 %v11563_v8  ;;  %8502 = vmatprep.subr.bf16.mxu0 %v11565_v31 }
 0xdd3   :  { %8485 = vmatpush3.bf16.msra.mxu1 %v11563_v8 }
 0xdd4   :  { %8503 = vmatpush3.bf16.msra.mxu0 %v11565_v31  ;;  %8508 = vmatprep.subr.bf16.mxu1 %v11579_v16 }
 0xdd5   :  { %8526 = vmatprep.subr.bf16.mxu0 %v11583_v27 }
 0xdd7   :  { %2868 = vrot.lane.b32.xlu0 %v11535_v18, %s10327_s5 }
 0xdda   :  { %8487 = vmatmul.mubr.msk.bf16.vlgmr.msra.gmra.mrb[40].mxu1 %vm348_vm1, %v11595_v22  ;;  %8505 = vmatmul.mubr.msk.bf16.vlgmr.msra.gmra.mrb[44].mxu0 %vm348_vm1, %v11595_v22 }
 0xddb   :  { %8509 = vmatpush3.bf16.msra.mxu1 %v11579_v16  ;;  %8527 = vmatpush3.bf16.msra.mxu0 %v11583_v27 }
 0xddc   :  { %8510 = vmatprep.subr.bf16.mxu1 %v11597_v43  ;;  %8528 = vmatprep.subr.bf16.mxu0 %v11599_v59 }
 0xddd   :  { %8514 = vmatprep.mubr.bf16.mxu1 %v10326_v23  ;;  %8532 = vmatprep.mubr.bf16.mxu0 %v10326_v23 }
 0xddf   :  { %8511 = vmatpush3.bf16.msra.mxu1 %v11597_v43  ;;  %8529 = vmatpush3.bf16.msra.mxu0 %v11599_v59 }
 0xde0   :  { %8512 = vmatprep.subr.bf16.mxu1 %v11613_v51  ;;  %8530 = vmatprep.subr.bf16.mxu0 %v11615_v1 }
 0xde3   :  { %8513 = vmatpush3.bf16.msra.mxu1 %v11613_v51  ;;  %8531 = vmatpush3.bf16.msra.mxu0 %v11615_v1 }
 0xde4   :  { %8518 = vmatprep.subr.bf16.mxu1 %v11623_v3  ;;  %8536 = vmatprep.subr.bf16.mxu0 %v11625_v41 }
 0xde6   :  { %8515 = vmatmul.mubr.bf16.vlgmr.msra.gmra.mrb[44].mxu1 %v10326_v23  ;;  %8533 = vmatmul.mubr.bf16.vlgmr.msra.gmra.mrb[48].mxu0 %v10326_v23 }
 0xde7   :  { %8519 = vmatpush3.bf16.msra.mxu1 %v11623_v3  ;;  %8522 = vmatprep.mubr.msk.bf16.mxu1 %vm348_vm1, %v11561_v13 }
 0xde8   :  { %8537 = vmatpush3.bf16.msra.mxu0 %v11625_v41  ;;  %8540 = vmatprep.mubr.msk.bf16.mxu0 %vm348_vm1, %v11561_v13 }
 0xde9   :  { %8520 = vmatprep.subr.bf16.mxu1 %v11631_v20  ;;  %8538 = vmatprep.subr.bf16.mxu0 %v11633_v63 }
 0xdeb   :  { %8521 = vmatpush3.bf16.msra.mxu1 %v11631_v20 }
 0xdec   :  { %8539 = vmatpush3.bf16.msra.mxu0 %v11633_v63  ;;  %8544 = vmatprep.subr.bf16.mxu1 %v11515_v50 }
 0xded   :  { %8562 = vmatprep.subr.bf16.mxu0 %v11497_v49 }
 0xdee   :  { %2626 = vadd.xlane.f32.xlu1 %v2625_v10 }
 0xdf2   :  { %8523 = vmatmul.mubr.msk.bf16.vlgmr.msra.gmra.mrb[44].mxu1 %vm348_vm1, %v11595_v22  ;;  %8541 = vmatmul.mubr.msk.bf16.vlgmr.msra.gmra.mrb[48].mxu0 %vm348_vm1, %v11595_v22 }
 0xdf3   :  { %8545 = vmatpush3.bf16.msra.mxu1 %v11515_v50  ;;  %8563 = vmatpush3.bf16.msra.mxu0 %v11497_v49 }
 0xdf4   :  { %8546 = vmatprep.subr.bf16.mxu1 %v11521_v62  ;;  %8564 = vmatprep.subr.bf16.mxu0 %v11525_v28 }
 0xdf6   :  { %2623 = vadd.xlane.f32.xlu0 %v2622_v36 }
 0xdf7   :  { %8547 = vmatpush3.bf16.msra.mxu1 %v11521_v62  ;;  %8565 = vmatpush3.bf16.msra.mxu0 %v11525_v28 }
 0xdf8   :  { %8548 = vmatprep.subr.bf16.mxu1 %v11539_v60  ;;  %8566 = vmatprep.subr.bf16.mxu0 %v11541_v2 }
 0xdfa   :  { %2632 = vadd.xlane.f32.xlu0 %v2631_v55 }
 0xdfb   :  { %8549 = vmatpush3.bf16.msra.mxu1 %v11539_v60  ;;  %8567 = vmatpush3.bf16.msra.mxu0 %v11541_v2 }
 0xdfc   :  { %8554 = vmatprep.subr.bf16.mxu1 %v11551_v58  ;;  %8572 = vmatprep.subr.bf16.mxu0 %v11553_v19 }
 0xdfe   :  { %2629 = vadd.xlane.f32.xlu0 %v2628_v17 }
 0xe1a   :  { %v2788_v52 = vpop.xlane.xlu0 %2787 }
 0xe1e   :  { %v2968_v0 = vpop.xlane.xlu1 %2967 }
 0xe22   :  { %v3146_v37 = vpop.xlane.xlu1 %3145 }
 0xe2a   :  { %v2785_v47 = vpop.xlane.xlu1 %2784 }
 0xe2e   :  { %v2965_v46 = vpop.xlane.xlu0 %2964 }
 0xe32   :  { %v3143_v29 = vpop.xlane.xlu0 %3142 }
 0xe36   :  { %v2791_v40 = vpop.xlane.xlu0 %2790 }
 0xe37   :  { %9538 = vrcp.f32 %v2791_v40 }
 0xe38   :  { %9540 = vrcp.f32 %v2785_v47 }
 0xe39   :  { %9542 = vrcp.f32 %v2788_v52 }
 0xe3a   :  { %v2794_v4 = vpop.xlane.xlu1 %2793 }
 0xe3b   :  { %9544 = vrcp.f32 %v2794_v4 }
 0xe3e   :  { %v2974_v14 = vpop.xlane.xlu1 %2973 }
 0xe41   :  { %v9539_v33 = vpop.eup %9538 }
 0xe42   :  { %v11673_v39 = vpop.xlane.xlu1 %3151  ;;  %v9541_v21 = vpop.eup %9540 }
 0xe43   :  { %v9543_v25 = vpop.eup %9542 }
 0xe45   :  { %v9545_v12 = vpop.eup %9544 }
 0xe46   :  { %v11675_v24 = vpop.permute.xlu1 %3046 }
 0xe4a   :  { %v2971_v54 = vpop.xlane.xlu0 %2970  ;;  %v11677_v9 = vpop.permute.xlu1 %3224 }
 0xe4e   :  { %v3149_v7 = vpop.xlane.xlu0 %3148 }
 0xe52   :  { %v2869_v44 = vpop.permute.xlu0 %2868 }
 0xe7b   :  { %v2627_v5 = vpop.xlane.xlu1 %2626 }
 0xe81   :  { %v8454_v34 = vpop.f32.mrb[36].mxu0 }
 0xe82   :  { %v2866_v30 = vmul.f32 %v9539_v33, %v8454_v34  ;;  %v2845_v6 = vpop.f32.mrb[37].mxu0 }
 0xe83   :  { %v2864_v53 = vmul.f32 %v9541_v21, %v2845_v6  ;;  %v8455_v48 = vpop.f32.mrb[38].mxu0  ;;  %v2624_v32 = vpop.xlane.xlu0 %2623 }
 0xe84   :  { %v2873_v45 = vadd.f32 %v2869_v44, %v2866_v30  ;;  %9546 = vrcp.f32 %v2624_v32  ;;  %v2848_v26 = vpop.f32.mrb[39].mxu0  ;;  %v2867_v56 = vmul.f32 %v9545_v12, %v8455_v48 }
 0xe85   :  { %v2865_v42 = vmul.f32 %v9543_v25, %v2848_v26  ;;  %9548 = vrcp.f32 %v2627_v5  ;;  %v2871_v11 = vadd.f32 %v2869_v44, %v2864_v53 }
 0xe86   :  { %v2877_v35 = vmax.f32 %v2873_v45, 0.0  ;;  %v2874_v10 = vadd.f32 %v2869_v44, %v2867_v56 }
 0xe87   :  { %v2872_v15 = vadd.f32 %v2869_v44, %v2865_v42  ;;  %v2633_v57 = vpop.xlane.xlu0 %2632  ;;  %v2875_v38 = vmax.f32 %v2871_v11, 0.0 }
 0xe88   :  { %9550 = vrcp.f32 %v2633_v57  ;;  %2887 = vrot.lane.b32.xlu1 %v2877_v35, %s10313_s26  ;;  %v2878_v52 = vmax.f32 %v2874_v10, 0.0 }
 0xe89   :  { %v2876_v61 = vmax.f32 %v2872_v15, 0.0  ;;  %9552 = vrcp.f32 %v2965_v46 }
 0xe8a   :  { %9554 = vrcp.f32 %v2971_v54 }
 0xe8b   :  { %2885 = vrot.lane.b32.xlu0 %v2876_v61, %s10313_s26  ;;  %v2630_v36 = vpop.xlane.xlu0 %2629 }
 0xe8c   :  { %9556 = vrcp.f32 %v2630_v36  ;;  %2883 = vrot.lane.b32.xlu1 %v2875_v38, %s10313_s26 }
 0xe8d   :  { %9558 = vrcp.f32 %v2974_v14  ;;  %v8446_v55 = vpop.f32.mrb[32].mxu1 }
 0xe8e   :  { %v9547_v17 = vpop.eup %9546  ;;  %9560 = vrcp.f32 %v2968_v0  ;;  %v2678_v47 = vpop.f32.mrb[33].mxu1 }
 0xe8f   :  { %9562 = vrcp.f32 %v3143_v29  ;;  %v2697_v4 = vmul.f32 %v9547_v17, %v2678_v47  ;;  %v8447_v40 = vpop.f32.mrb[34].mxu1  ;;  %v9549_v33 = vpop.eup %9548 }
 0xe90   :  { %v2681_v46 = vpop.f32.mrb[35].mxu1  ;;  %2889 = vrot.lane.b32.xlu1 %v2878_v52, %s10313_s26  ;;  %9564 = vrcp.f32 %v3146_v37  ;;  %s12484_s26 = sld [smem:[#allocation39_spill]] }
 0xe91   :  { %v2707_v54 = vadd.f32 %v11535_v18, %v2697_v4  ;;  %v2698_v44 = vmul.f32 %v9549_v33, %v2681_v46  ;;  %9566 = vrcp.f32 %v3149_v7 }
 0xe92   :  { %v9551_v34 = vpop.eup %9550  ;;  %9568 = vrcp.f32 %v11673_v39 }
 0xe93   :  { %v2711_v21 = vmax.f32 %v2707_v54, 0.0  ;;  %v2700_v14 = vmul.f32 %v9551_v34, %v8447_v40  ;;  %v2708_v5 = vadd.f32 %v11535_v18, %v2698_v44  ;;  %v9553_v0 = vpop.eup %9552 }
 0xe94   :  { %v9555_v30 = vpop.eup %9554 }
 0xe95   :  { %2715 = vst.msk [vmem:[#allocation4] sm:$0xff] %vm729_vm9, %v2711_v21  ;;  %v2710_v29 = vadd.f32 %v11535_v18, %v2700_v14  ;;  %v2712_v6 = vmax.f32 %v2708_v5, 0.0  ;;  %v8462_v53 = vpop.f32.mrb[36].mxu1  ;;  %v8470_v37 = vpop.f32.mrb[40].mxu0 }
 0xe96   :  { %v9557_v48 = vpop.eup %9556  ;;  %v3044_v32 = vmul.f32 %v9555_v30, %v8462_v53  ;;  %v3023_v25 = vpop.f32.mrb[37].mxu1 }
 0xe97   :  { %v3201_v45 = vpop.f32.mrb[41].mxu0  ;;  %v9559_v7 = vpop.eup %9558  ;;  %v2699_v26 = vmul.f32 %v9557_v48, %v8446_v55  ;;  %v2714_v12 = vmax.f32 %v2710_v29, 0.0  ;;  %2716 = vst.msk [vmem:[#allocation4 + $0x8] sm:$0xff] %vm729_vm9, %v2712_v6  ;;  %v3042_v42 = vmul.f32 %v9553_v0, %v3023_v25  ;;  %v11710_v25 = vld [vmem:[#allocation18 + $0x1] ss:$0 sm:$0xff] }
 0xe98   :  { %v8463_v35 = vpop.f32.mrb[38].mxu1  ;;  %v8471_v11 = vpop.f32.mrb[42].mxu0  ;;  %v3051_v56 = vadd.f32 %v11675_v24, %v3044_v32  ;;  %v11708_v32 = vld [vmem:[#allocation18] ss:$0 sm:$0xff] }
 0xe99   :  { %v9561_v39 = vpop.eup %9560  ;;  %v3045_v15 = vmul.f32 %v9559_v7, %v8463_v35  ;;  %v3026_v57 = vpop.f32.mrb[39].mxu1  ;;  %v2709_v10 = vadd.f32 %v11535_v18, %v2699_v26  ;;  %2718 = vst.msk [vmem:[#allocation4 + $0x18] sm:$0xff] %vm729_vm9, %v2714_v12  ;;  %v3049_v55 = vadd.f32 %v11675_v24, %v3042_v42 }
 0xe9a   :  { %v3204_v61 = vpop.f32.mrb[43].mxu0  ;;  %v9563_v38 = vpop.eup %9562  ;;  %v3043_v36 = vmul.f32 %v9561_v39, %v3026_v57  ;;  %v3055_v17 = vmax.f32 %v3051_v56, 0.0 }
 0xe9b   :  { %v3220_v52 = vmul.f32 %v9563_v38, %v3201_v45  ;;  %v3052_v47 = vadd.f32 %v11675_v24, %v3045_v15  ;;  %v9565_v4 = vpop.eup %9564  ;;  %v2713_v40 = vmax.f32 %v2709_v10, 0.0  ;;  %v3053_v34 = vmax.f32 %v3049_v55, 0.0 }
 0xe9c   :  { %v3050_v46 = vadd.f32 %v11675_v24, %v3043_v36  ;;  %v3221_v54 = vmul.f32 %v9565_v4, %v3204_v61  ;;  %3065 = vrot.lane.b32.xlu0 %v3055_v17, %s10316_s0  ;;  %v9567_v44 = vpop.eup %9566 }
 0xe9d   :  { %v3056_v33 = vmax.f32 %v3052_v47, 0.0  ;;  %2717 = vst.msk [vmem:[#allocation4 + $0x10] sm:$0xff] %vm729_vm9, %v2713_v40  ;;  %v3222_v18 = vmul.f32 %v9567_v44, %v8470_v37  ;;  %v3227_v21 = vadd.f32 %v11677_v9, %v3220_v52  ;;  %v9569_v14 = vpop.eup %9568  ;;  %vm7538_vm9 = vcmask 58368  }
 0xe9e   :  { %v3223_v5 = vmul.f32 %v9569_v14, %v8471_v11  ;;  %v3054_v0 = vmax.f32 %v3050_v46, 0.0  ;;  %v3228_v30 = vadd.f32 %v11677_v9, %v3221_v54 }
 0xe9f   :  { %3067 = vrot.lane.b32.xlu1 %v3056_v33, %s10316_s0  ;;  %v3229_v24 = vadd.f32 %v11677_v9, %v3222_v18  ;;  %v3231_v29 = vmax.f32 %v3227_v21, 0.0 }
 0xea0   :  { %3061 = vrot.lane.b32.xlu0 %v3053_v34, %s10316_s0  ;;  %v3230_v6 = vadd.f32 %v11677_v9, %v3223_v5  ;;  %v3232_v53 = vmax.f32 %v3228_v30, 0.0 }
 0xea1   :  { %v3233_v37 = vmax.f32 %v3229_v24, 0.0 }
 0xea2   :  { %v3234_v48 = vmax.f32 %v3230_v6, 0.0 }
 0xea3   :  { %3063 = vrot.lane.b32.xlu1 %v3054_v0, %s10316_s0  ;;  %s12486_s0 = sld [smem:[#allocation41_spill]] }
 0xea4   :  { %3239 = vrot.lane.b32.xlu0 %v3231_v29, %s10332_s14 }
 0xea7   :  { %3241 = vrot.lane.b32.xlu1 %v3232_v53, %s10332_s14 }
 0xea8   :  { %3243 = vrot.lane.b32.xlu0 %v3233_v37, %s10332_s14 }
 0xeab   :  { %3245 = vrot.lane.b32.xlu1 %v3234_v48, %s10332_s14 }
 0xead   :  { %v8488_v45 = vpop.f32.mrb[40].mxu1  ;;  %v8506_v7 = vpop.f32.mrb[44].mxu0 }
 0xeae   :  { %v3401_v26 = vadd.f32 %v8488_v45, %v11708_v32  ;;  %v3528_v9 = vadd.f32 %v8506_v7, %v11710_v25  ;;  %v3377_v12 = vpop.f32.mrb[41].mxu1  ;;  %v3503_v42 = vpop.f32.mrb[45].mxu0  ;;  %v11720_v45 = vld [vmem:[#allocation18 + $0x2] ss:$0 sm:$0xff]  ;;  %v11722_v7 = vld [vmem:[#allocation18 + $0x3] ss:$0 sm:$0xff] }
 0xeaf   :  { %v3399_v35 = vadd.f32 %v11708_v32, %v3377_v12  ;;  %v3526_v11 = vadd.f32 %v11710_v25, %v3503_v42  ;;  %v8489_v39 = vpop.f32.mrb[42].mxu1  ;;  %v8507_v56 = vpop.f32.mrb[46].mxu0 }
 0xeb0   :  { %v7679_v15 = vmul.f32 -1.442695, %v3401_v26  ;;  %v7683_v57 = vmul.f32 -1.442695, %v3528_v9  ;;  %v3402_v61 = vadd.f32 %v8489_v39, %v11708_v32  ;;  %v3529_v38 = vadd.f32 %v8507_v56, %v11710_v25  ;;  %v3380_v10 = vpop.f32.mrb[43].mxu1  ;;  %v3506_v36 = vpop.f32.mrb[47].mxu0 }
 0xeb1   :  { %v7677_v17 = vmul.f32 -1.442695, %v3399_v35  ;;  %v7681_v55 = vmul.f32 -1.442695, %v3526_v11  ;;  %v3400_v52 = vadd.f32 %v11708_v32, %v3380_v10  ;;  %v3527_v47 = vadd.f32 %v11710_v25, %v3506_v36 }
 0xeb2   :  { %9570 = vpow2.f32 %v7679_v15  ;;  %v7680_v4 = vmul.f32 -1.442695, %v3402_v61  ;;  %v7684_v40 = vmul.f32 -1.442695, %v3529_v38 }
 0xeb3   :  { %9572 = vpow2.f32 %v7683_v57  ;;  %v7678_v33 = vmul.f32 -1.442695, %v3400_v52  ;;  %v7682_v46 = vmul.f32 -1.442695, %v3527_v47 }
 0xeb4   :  { %9574 = vpow2.f32 %v7677_v17 }
 0xeb5   :  { %9576 = vpow2.f32 %v7681_v55 }
 0xeb6   :  { %9578 = vpow2.f32 %v7680_v4 }
 0xeb7   :  { %9580 = vpow2.f32 %v7684_v40 }
 0xeb8   :  { %9582 = vpow2.f32 %v7678_v33 }
 0xeb9   :  { %9584 = vpow2.f32 %v7682_v46 }
 0xebc   :  { %v9571_v54 = vpop.eup %9570 }
 0xebd   :  { %v9573_v44 = vpop.eup %9572  ;;  %v3798_v18 = vadd.f32 1.0, %v9571_v54 }
 0xebe   :  { %v9575_v34 = vpop.eup %9574  ;;  %v3822_v21 = vadd.f32 1.0, %v9573_v44 }
 0xebf   :  { %v9577_v14 = vpop.eup %9576  ;;  %v3796_v5 = vadd.f32 1.0, %v9575_v34  ;;  %9586 = vrcp.f32 %v3798_v18 }
 0xec0   :  { %v9579_v0 = vpop.eup %9578  ;;  %v3820_v30 = vadd.f32 1.0, %v9577_v14  ;;  %9588 = vrcp.f32 %v3822_v21 }
 0xec1   :  { %v9581_v24 = vpop.eup %9580  ;;  %v3799_v29 = vadd.f32 1.0, %v9579_v0  ;;  %9590 = vrcp.f32 %v3796_v5 }
 0xec2   :  { %v9583_v6 = vpop.eup %9582  ;;  %v3823_v53 = vadd.f32 1.0, %v9581_v24  ;;  %9592 = vrcp.f32 %v3820_v30 }
 0xec3   :  { %v9585_v37 = vpop.eup %9584  ;;  %v3797_v48 = vadd.f32 1.0, %v9583_v6  ;;  %9594 = vrcp.f32 %v3799_v29 }
 0xec4   :  { %v3821_v26 = vadd.f32 1.0, %v9585_v37  ;;  %9596 = vrcp.f32 %v3823_v53 }
 0xec5   :  { %v8524_v9 = vpop.f32.mrb[44].mxu1  ;;  %v8542_v12 = vpop.f32.mrb[48].mxu0  ;;  %9598 = vrcp.f32 %v3797_v48 }
 0xec6   :  { %v3655_v42 = vadd.f32 %v8524_v9, %v11720_v45  ;;  %v3782_v35 = vadd.f32 %v8542_v12, %v11722_v7  ;;  %v3630_v11 = vpop.f32.mrb[45].mxu1  ;;  %v3757_v39 = vpop.f32.mrb[49].mxu0  ;;  %9600 = vrcp.f32 %v3821_v26 }
 0xec7   :  { %v3653_v56 = vadd.f32 %v11720_v45, %v3630_v11  ;;  %v3780_v15 = vadd.f32 %v11722_v7, %v3757_v39  ;;  %v8525_v57 = vpop.f32.mrb[46].mxu1  ;;  %v8543_v61 = vpop.f32.mrb[50].mxu0 }
 0xec8   :  { %9602 = vtanh.f32 %v3655_v42  ;;  %v7687_v38 = vmul.f32 -1.442695, %v3782_v35  ;;  %v3656_v10 = vadd.f32 %v8525_v57, %v11720_v45  ;;  %v3783_v36 = vadd.f32 %v8543_v61, %v11722_v7  ;;  %v3633_v17 = vpop.f32.mrb[47].mxu1  ;;  %v3760_v55 = vpop.f32.mrb[51].mxu0 }
 0xec9   :  { %9604 = vtanh.f32 %v3653_v56  ;;  %v7685_v52 = vmul.f32 -1.442695, %v3780_v15  ;;  %v3781_v47 = vadd.f32 %v11722_v7, %v3760_v55  ;;  %v9587_v4 = vpop.eup %9586  ;;  %v3654_v33 = vadd.f32 %v11720_v45, %v3633_v17 }
 0xeca   :  { %9606 = vpow2.f32 %v7687_v38  ;;  %v7688_v40 = vmul.f32 -1.442695, %v3783_v36  ;;  %v9589_v46 = vpop.eup %9588 }
 0xecb   :  { %9608 = vpow2.f32 %v7685_v52  ;;  %v7686_v54 = vmul.f32 -1.442695, %v3781_v47  ;;  %v9591_v44 = vpop.eup %9590  ;;  %v3862_v24 = vmul.f32 0.0, %v9589_v46 }
 0xecc   :  { %9610 = vtanh.f32 %v3656_v10  ;;  %v9593_v18 = vpop.eup %9592 }
 0xecd   :  { %9612 = vpow2.f32 %v7688_v40  ;;  %v9595_v34 = vpop.eup %9594  ;;  %v3860_v53 = vmul.f32 0.0, %v9593_v18 }
 0xece   :  { %9614 = vtanh.f32 %v3654_v33  ;;  %v9597_v21 = vpop.eup %9596 }
 0xecf   :  { %9616 = vpow2.f32 %v7686_v54  ;;  %v9599_v14 = vpop.eup %9598  ;;  %v3863_v39 = vmul.f32 0.0, %v9597_v21 }
 0xed0   :  { %v9601_v5 = vpop.eup %9600 }
 0xed1   :  { %v3861_v38 = vmul.f32 0.0, %v9601_v5  ;;  %v3259_v5 = vld [vmem:[#allocation3] sm:$0xff] }
 0xed2   :  { %v9603_v0 = vpop.eup %9602 }
 0xed3   :  { %v9605_v30 = vpop.eup %9604  ;;  %v3866_v29 = vmul.f32 %v9603_v0, %v9587_v4  ;;  %v3260_v0 = vld [vmem:[#allocation3 + $0x8] sm:$0xff] }
 0xed4   :  { %v9607_v6 = vpop.eup %9606  ;;  %v3864_v37 = vmul.f32 %v9605_v30, %v9591_v44 }
 0xed5   :  { %v9609_v48 = vpop.eup %9608  ;;  %v11732_v26 = vadd.f32 %v3866_v29, %v3862_v24  ;;  %v3850_v9 = vadd.f32 1.0, %v9607_v6  ;;  %v11758_v29 = vpack.c.bf16 %v3260_v0, %v3259_v5  ;;  %v3261_v6 = vld [vmem:[#allocation3 + $0x10] sm:$0xff] }
 0xed6   :  { %v9611_v12 = vpop.eup %9610  ;;  %v11734_v42 = vadd.f32 %v3864_v37, %v3860_v53  ;;  %v3848_v35 = vadd.f32 1.0, %v9609_v48  ;;  %v3262_v53 = vld [vmem:[#allocation3 + $0x18] sm:$0xff] }
 0xed7   :  { %v9613_v11 = vpop.eup %9612  ;;  %9618 = vtanh.f32 %v11732_v26  ;;  %v3867_v56 = vmul.f32 %v9611_v12, %v9595_v34  ;;  %v11774_v37 = vpack.c.bf16 %v3262_v53, %v3261_v6 }
 0xed8   :  { %v9615_v15 = vpop.eup %9614  ;;  %9620 = vrcp.f32 %v3850_v9  ;;  %v3851_v57 = vadd.f32 1.0, %v9613_v11 }
 0xed9   :  { %v9617_v61 = vpop.eup %9616  ;;  %9622 = vtanh.f32 %v11734_v42  ;;  %v11738_v10 = vadd.f32 %v3867_v56, %v3863_v39  ;;  %v3865_v36 = vmul.f32 %v9615_v15, %v9599_v14 }
 0xeda   :  { %9624 = vrcp.f32 %v3848_v35  ;;  %v3849_v17 = vadd.f32 1.0, %v9617_v61 }
 0xedb   :  { %9626 = vtanh.f32 %v11738_v10  ;;  %v11741_v55 = vadd.f32 %v3865_v36, %v3861_v38 }
 0xedc   :  { %9628 = vrcp.f32 %v3851_v57 }
 0xedd   :  { %9630 = vtanh.f32 %v11741_v55 }
 0xede   :  { %9632 = vrcp.f32 %v3849_v17 }
 0xee1   :  { %v9619_v52 = vpop.eup %9618 }
 0xee2   :  { %v9621_v47 = vpop.eup %9620 }
 0xee3   :  { %v9623_v4 = vpop.eup %9622  ;;  %v11750_v14 = vmul.f32 %v9621_v47, %v9619_v52 }
 0xee4   :  { %v9625_v40 = vpop.eup %9624 }
 0xee5   :  { %v9627_v33 = vpop.eup %9626  ;;  %v11746_v34 = vmul.f32 %v9625_v40, %v9623_v4 }
 0xee6   :  { %v9629_v46 = vpop.eup %9628 }
 0xee7   :  { %v9631_v54 = vpop.eup %9630  ;;  %v11744_v18 = vmul.f32 %v9629_v46, %v9627_v33 }
 0xee8   :  { %v9633_v44 = vpop.eup %9632 }
 0xee9   :  { %v11748_v21 = vmul.f32 %v9633_v44, %v9631_v54  ;;  %v3883_v24 = vpack.c.bf16 %v11744_v18, %v11750_v14 }
 0xeeb   :  { %v3882_v30 = vpack.c.bf16 %v11748_v21, %v11746_v34 }
 0xeed   :  { %8550 = vmatprep.mubr.msk.bf16.mxu1 %vm3284_vm2, %v3882_v30  ;;  %8568 = vmatprep.mubr.msk.bf16.mxu0 %vm3284_vm2, %v3882_v30 }
 0xeee   :  { %8551 = vmatmul.mubr.msk.bf16.vlgmr.msra.gmra.mrb[48].mxu1 %vm3284_vm2, %v3883_v24  ;;  %8569 = vmatmul.mubr.msk.bf16.vlgmr.msra.gmra.mrb[52].mxu0 %vm3284_vm2, %v3883_v24 }
 0xeef   :  { %8555 = vmatpush3.bf16.msra.mxu1 %v11551_v58  ;;  %8558 = vmatprep.mubr.msk.bf16.mxu1 %vm348_vm1, %v11758_v29 }
 0xef0   :  { %8573 = vmatpush3.bf16.msra.mxu0 %v11553_v19  ;;  %8576 = vmatprep.mubr.msk.bf16.mxu0 %vm348_vm1, %v11758_v29 }
 0xef1   :  { %8556 = vmatprep.subr.bf16.mxu1 %v11563_v8  ;;  %8574 = vmatprep.subr.bf16.mxu0 %v11565_v31 }
 0xef3   :  { %8557 = vmatpush3.bf16.msra.mxu1 %v11563_v8 }
 0xef4   :  { %8575 = vmatpush3.bf16.msra.mxu0 %v11565_v31  ;;  %8580 = vmatprep.subr.bf16.mxu1 %v11579_v16 }
 0xef5   :  { %8598 = vmatprep.subr.bf16.mxu0 %v11583_v27 }
 0xefa   :  { %8559 = vmatmul.mubr.msk.bf16.vlgmr.msra.gmra.mrb[48].mxu1 %vm348_vm1, %v11774_v37  ;;  %8577 = vmatmul.mubr.msk.bf16.vlgmr.msra.gmra.mrb[52].mxu0 %vm348_vm1, %v11774_v37  ;;  %v2888_v48 = vpop.permute.xlu1 %2887 }
 0xefb   :  { %8581 = vmatpush3.bf16.msra.mxu1 %v11579_v16  ;;  %8599 = vmatpush3.bf16.msra.mxu0 %v11583_v27  ;;  %2897 = vst.msk [vmem:[#allocation4 + $0x10] sm:$0xff] %vm910_vm11, %v2888_v48 }
 0xefc   :  { %8586 = vmatprep.mubr.msk.bf16.mxu1 %vm3284_vm2, %v3882_v30  ;;  %8604 = vmatprep.mubr.msk.bf16.mxu0 %vm3284_vm2, %v3882_v30 }
 0xefd   :  { %8582 = vmatprep.subr.bf16.mxu1 %v11597_v43  ;;  %8600 = vmatprep.subr.bf16.mxu0 %v11599_v59  ;;  %v2886_v9 = vpop.permute.xlu0 %2885 }
 0xefe   :  { %2896 = vst.msk [vmem:[#allocation4 + $0x8] sm:$0xff] %vm910_vm11, %v2886_v9  ;;  %v2884_v12 = vpop.permute.xlu1 %2883 }
 0xeff   :  { %8583 = vmatpush3.bf16.msra.mxu1 %v11597_v43  ;;  %8601 = vmatpush3.bf16.msra.mxu0 %v11599_v59  ;;  %2895 = vst.msk [vmem:[#allocation4] sm:$0xff] %vm910_vm11, %v2884_v12 }
 0xf00   :  { %8584 = vmatprep.subr.bf16.mxu1 %v11613_v51  ;;  %8602 = vmatprep.subr.bf16.mxu0 %v11615_v1 }
 0xf02   :  { %v2890_v35 = vpop.permute.xlu1 %2889 }
 0xf03   :  { %8585 = vmatpush3.bf16.msra.mxu1 %v11613_v51  ;;  %8603 = vmatpush3.bf16.msra.mxu0 %v11615_v1  ;;  %2898 = vst.msk [vmem:[#allocation4 + $0x18] sm:$0xff] %vm910_vm11, %v2890_v35 }
 0xf04   :  { %8590 = vmatprep.subr.bf16.mxu1 %v11623_v3  ;;  %8608 = vmatprep.subr.bf16.mxu0 %v11625_v41 }
 0xf06   :  { %8587 = vmatmul.mubr.msk.bf16.vlgmr.msra.gmra.mrb[52].mxu1 %vm3284_vm2, %v3883_v24  ;;  %8605 = vmatmul.mubr.msk.bf16.vlgmr.msra.gmra.mrb[56].mxu0 %vm3284_vm2, %v3883_v24 }
 0xf07   :  { %8591 = vmatpush3.bf16.msra.mxu1 %v11623_v3  ;;  %8594 = vmatprep.mubr.msk.bf16.mxu1 %vm348_vm1, %v11758_v29 }
 0xf08   :  { %8609 = vmatpush3.bf16.msra.mxu0 %v11625_v41  ;;  %8612 = vmatprep.mubr.msk.bf16.mxu0 %vm348_vm1, %v11758_v29 }
 0xf09   :  { %8592 = vmatprep.subr.bf16.mxu1 %v11631_v20  ;;  %8610 = vmatprep.subr.bf16.mxu0 %v11633_v63 }
 0xf0b   :  { %8593 = vmatpush3.bf16.msra.mxu1 %v11631_v20 }
 0xf0c   :  { %8611 = vmatpush3.bf16.msra.mxu0 %v11633_v63  ;;  %8616 = vmatprep.subr.bf16.mxu1 %v11515_v50 }
 0xf0d   :  { %8634 = vmatprep.subr.bf16.mxu0 %v11497_v49 }
 0xf0e   :  { %v3066_v11 = vpop.permute.xlu0 %3065 }
 0xf0f   :  { %3075 = vst.msk [vmem:[#allocation4 + $0x10] sm:$0xff] %vm1089_vm12, %v3066_v11 }
 0xf11   :  { %v3068_v39 = vpop.permute.xlu1 %3067 }
 0xf12   :  { %3076 = vst.msk [vmem:[#allocation4 + $0x18] sm:$0xff] %vm1089_vm12, %v3068_v39  ;;  %8595 = vmatmul.mubr.msk.bf16.vlgmr.msra.gmra.mrb[52].mxu1 %vm348_vm1, %v11774_v37  ;;  %8613 = vmatmul.mubr.msk.bf16.vlgmr.msra.gmra.mrb[56].mxu0 %vm348_vm1, %v11774_v37  ;;  %v3062_v56 = vpop.permute.xlu0 %3061 }
 0xf13   :  { %3073 = vst.msk [vmem:[#allocation4] sm:$0xff] %vm1089_vm12, %v3062_v56  ;;  %8617 = vmatpush3.bf16.msra.mxu1 %v11515_v50  ;;  %8635 = vmatpush3.bf16.msra.mxu0 %v11497_v49 }
 0xf14   :  { %8618 = vmatprep.subr.bf16.mxu1 %v11521_v62  ;;  %8636 = vmatprep.subr.bf16.mxu0 %v11525_v28 }
 0xf15   :  { %v3064_v15 = vpop.permute.xlu1 %3063 }
 0xf16   :  { %3074 = vst.msk [vmem:[#allocation4 + $0x8] sm:$0xff] %vm1089_vm12, %v3064_v15  ;;  %v3240_v57 = vpop.permute.xlu0 %3239 }
 0xf17   :  { %3251 = vst.msk [vmem:[#allocation4] sm:$0xff] %vm1268_vm13, %v3240_v57  ;;  %8619 = vmatpush3.bf16.msra.mxu1 %v11521_v62  ;;  %8637 = vmatpush3.bf16.msra.mxu0 %v11525_v28 }
 0xf18   :  { %8620 = vmatprep.subr.bf16.mxu1 %v11539_v60  ;;  %8638 = vmatprep.subr.bf16.mxu0 %v11541_v2 }
 0xf19   :  { %v3242_v61 = vpop.permute.xlu1 %3241 }
 0xf1a   :  { %3252 = vst.msk [vmem:[#allocation4 + $0x8] sm:$0xff] %vm1268_vm13, %v3242_v61  ;;  %v3244_v49 = vpop.permute.xlu0 %3243 }
 0xf1b   :  { %3253 = vst.msk [vmem:[#allocation4 + $0x10] sm:$0xff] %vm1268_vm13, %v3244_v49  ;;  %8621 = vmatpush3.bf16.msra.mxu1 %v11539_v60  ;;  %8639 = vmatpush3.bf16.msra.mxu0 %v11541_v2 }
 0xf1c   :  { %8626 = vmatprep.subr.bf16.mxu1 %v11551_v58  ;;  %8644 = vmatprep.subr.bf16.mxu0 %v11553_v19 }
 0xf1d   :  { %v3246_v50 = vpop.permute.xlu1 %3245 }
 0xf1e   :  { %3254 = vst.msk [vmem:[#allocation4 + $0x18] sm:$0xff] %vm1268_vm13, %v3246_v50 }
 0xfcd   :  { %v8560_v62 = vpop.f32.mrb[48].mxu1  ;;  %v8578_v28 = vpop.f32.mrb[52].mxu0 }
 0xfce   :  { %v3996_v38 = vadd.f32 %v8560_v62, %v11708_v32  ;;  %v4098_v36 = vadd.f32 %v8578_v28, %v11710_v25  ;;  %v3979_v17 = vpop.f32.mrb[49].mxu1  ;;  %v4081_v52 = vpop.f32.mrb[53].mxu0 }
 0xfcf   :  { %v3994_v47 = vadd.f32 %v11708_v32, %v3979_v17  ;;  %v4096_v60 = vadd.f32 %v11710_v25, %v4081_v52  ;;  %v8561_v2 = vpop.f32.mrb[50].mxu1  ;;  %v8579_v4 = vpop.f32.mrb[54].mxu0 }
 0xfd0   :  { %v7707_v40 = vmul.f32 -1.442695, %v3996_v38  ;;  %v7711_v33 = vmul.f32 -1.442695, %v4098_v36  ;;  %v3997_v46 = vadd.f32 %v8561_v2, %v11708_v32  ;;  %v4099_v54 = vadd.f32 %v8579_v4, %v11710_v25  ;;  %v3982_v44 = vpop.f32.mrb[51].mxu1  ;;  %v4084_v5 = vpop.f32.mrb[55].mxu0 }
 0xfd1   :  { %v7705_v0 = vmul.f32 -1.442695, %v3994_v47  ;;  %v7709_v30 = vmul.f32 -1.442695, %v4096_v60  ;;  %v3995_v24 = vadd.f32 %v11708_v32, %v3982_v44  ;;  %v4097_v6 = vadd.f32 %v11710_v25, %v4084_v5 }
 0xfd2   :  { %9634 = vpow2.f32 %v7707_v40  ;;  %v7708_v53 = vmul.f32 -1.442695, %v3997_v46  ;;  %v7712_v48 = vmul.f32 -1.442695, %v4099_v54 }
 0xfd3   :  { %9636 = vpow2.f32 %v7711_v33  ;;  %v7706_v9 = vmul.f32 -1.442695, %v3995_v24  ;;  %v7710_v12 = vmul.f32 -1.442695, %v4097_v6 }
 0xfd4   :  { %9638 = vpow2.f32 %v7705_v0 }
 0xfd5   :  { %9640 = vpow2.f32 %v7709_v30 }
 0xfd6   :  { %9642 = vpow2.f32 %v7708_v53 }
 0xfd7   :  { %9644 = vpow2.f32 %v7712_v48 }
 0xfd8   :  { %9646 = vpow2.f32 %v7706_v9 }
 0xfd9   :  { %9648 = vpow2.f32 %v7710_v12 }
 0xfdc   :  { %v9635_v35 = vpop.eup %9634 }
 0xfdd   :  { %v9637_v11 = vpop.eup %9636  ;;  %v4318_v39 = vadd.f32 1.0, %v9635_v35 }
 0xfde   :  { %v9639_v56 = vpop.eup %9638  ;;  %v4342_v15 = vadd.f32 1.0, %v9637_v11 }
 0xfdf   :  { %v9641_v32 = vpop.eup %9640  ;;  %v4316_v57 = vadd.f32 1.0, %v9639_v56  ;;  %9650 = vrcp.f32 %v4318_v39 }
 0xfe0   :  { %v9643_v25 = vpop.eup %9642  ;;  %v4340_v61 = vadd.f32 1.0, %v9641_v32  ;;  %9652 = vrcp.f32 %v4342_v15 }
 0xfe1   :  { %v9645_v49 = vpop.eup %9644  ;;  %v4319_v50 = vadd.f32 1.0, %v9643_v25  ;;  %9654 = vrcp.f32 %v4316_v57 }
 0xfe2   :  { %v9647_v62 = vpop.eup %9646  ;;  %v4343_v28 = vadd.f32 1.0, %v9645_v49  ;;  %9656 = vrcp.f32 %v4340_v61 }
 0xfe3   :  { %v9649_v38 = vpop.eup %9648  ;;  %v4317_v36 = vadd.f32 1.0, %v9647_v62  ;;  %9658 = vrcp.f32 %v4319_v50 }
 0xfe4   :  { %v4341_v17 = vadd.f32 1.0, %v9649_v38  ;;  %9660 = vrcp.f32 %v4343_v28 }
 0xfe5   :  { %v8596_v52 = vpop.f32.mrb[52].mxu1  ;;  %v8614_v47 = vpop.f32.mrb[56].mxu0  ;;  %9662 = vrcp.f32 %v4317_v36 }
 0xfe6   :  { %v4200_v60 = vadd.f32 %v8596_v52, %v11720_v45  ;;  %v4302_v2 = vadd.f32 %v8614_v47, %v11722_v7  ;;  %v4183_v4 = vpop.f32.mrb[53].mxu1  ;;  %v4285_v40 = vpop.f32.mrb[57].mxu0  ;;  %9664 = vrcp.f32 %v4341_v17 }
 0xfe7   :  { %v4198_v33 = vadd.f32 %v11720_v45, %v4183_v4  ;;  %v4300_v46 = vadd.f32 %v11722_v7, %v4285_v40  ;;  %v8597_v54 = vpop.f32.mrb[54].mxu1  ;;  %v8615_v44 = vpop.f32.mrb[58].mxu0 }
 0xfe8   :  { %9666 = vtanh.f32 %v4200_v60  ;;  %v7715_v5 = vmul.f32 -1.442695, %v4302_v2  ;;  %v4201_v0 = vadd.f32 %v8597_v54, %v11720_v45  ;;  %v4303_v30 = vadd.f32 %v8615_v44, %v11722_v7  ;;  %v4186_v24 = vpop.f32.mrb[55].mxu1  ;;  %v4288_v6 = vpop.f32.mrb[59].mxu0 }
 0xfe9   :  { %9668 = vtanh.f32 %v4198_v33  ;;  %v7713_v53 = vmul.f32 -1.442695, %v4300_v46  ;;  %v4301_v48 = vadd.f32 %v11722_v7, %v4288_v6  ;;  %v9651_v9 = vpop.eup %9650  ;;  %v4199_v35 = vadd.f32 %v11720_v45, %v4186_v24 }
 0xfea   :  { %9670 = vpow2.f32 %v7715_v5  ;;  %v7716_v12 = vmul.f32 -1.442695, %v4303_v30  ;;  %v9653_v11 = vpop.eup %9652 }
 0xfeb   :  { %9672 = vpow2.f32 %v7713_v53  ;;  %v7714_v39 = vmul.f32 -1.442695, %v4301_v48  ;;  %v9655_v56 = vpop.eup %9654  ;;  %v4382_v50 = vmul.f32 %v9653_v11, %v11732_v26 }
 0xfec   :  { %9674 = vtanh.f32 %v4201_v0  ;;  %v9657_v15 = vpop.eup %9656 }
 0xfed   :  { %9676 = vpow2.f32 %v7716_v12  ;;  %v9659_v32 = vpop.eup %9658  ;;  %v4380_v45 = vmul.f32 %v9657_v15, %v11734_v42  ;;  %v3264_v15 = vld [vmem:[#allocation4 + $0x8] sm:$0xff] }
 0xfee   :  { %9678 = vtanh.f32 %v4199_v35  ;;  %v9661_v57 = vpop.eup %9660 }
 0xfef   :  { %9680 = vpow2.f32 %v7714_v39  ;;  %v9663_v25 = vpop.eup %9662  ;;  %v4383_v40 = vmul.f32 %v9661_v57, %v11738_v10 }
 0xff0   :  { %v9665_v61 = vpop.eup %9664 }
 0xff1   :  { %v4381_v42 = vmul.f32 %v9665_v61, %v11741_v55 }
 0xff2   :  { %v9667_v49 = vpop.eup %9666 }
 0xff3   :  { %v9669_v7 = vpop.eup %9668  ;;  %v4386_v62 = vmul.f32 %v9667_v49, %v9651_v9  ;;  %v3265_v49 = vld [vmem:[#allocation4 + $0x10] sm:$0xff] }
 0xff4   :  { %v9671_v28 = vpop.eup %9670  ;;  %v4384_v38 = vmul.f32 %v9669_v7, %v9655_v56 }
 0xff5   :  { %v9673_v36 = vpop.eup %9672  ;;  %v11854_v17 = vadd.f32 %v4386_v62, %v4382_v50  ;;  %v4370_v52 = vadd.f32 1.0, %v9671_v28  ;;  %v4930_v62 = vld [vmem:[%s12484_s26 + $0x20] sm:$0xff]  ;;  %v4931_v28 = vld [vmem:[%s12484_s26 + $0x28] sm:$0xff] }
 0xff6   :  { %v9675_v47 = vpop.eup %9674  ;;  %v11856_v60 = vadd.f32 %v4384_v38, %v4380_v45  ;;  %v4368_v2 = vadd.f32 1.0, %v9673_v36  ;;  %v7752_v45 = vld [vmem:[%s12484_s26 + $0x50] sm:$0xff]  ;;  %v7753_v38 = vld [vmem:[%s12484_s26 + $0x58] sm:$0xff] }
 0xff7   :  { %v9677_v4 = vpop.eup %9676  ;;  %9682 = vtanh.f32 %v11854_v17  ;;  %v4387_v33 = vmul.f32 %v9675_v47, %v9659_v32  ;;  %v4920_v36 = vld [vmem:[#allocation20] sm:$0xff] }
 0xff8   :  { %v9679_v26 = vpop.eup %9678  ;;  %9684 = vrcp.f32 %v4370_v52  ;;  %v4371_v46 = vadd.f32 1.0, %v9677_v4  ;;  %v4921_v52 = vld [vmem:[#allocation20 + $0x8] sm:$0xff]  ;;  %v5045_v47 = vld [vmem:[#allocation20 + $0x20] sm:$0xff] }
 0xff9   :  { %v9681_v54 = vpop.eup %9680  ;;  %9686 = vtanh.f32 %v11856_v60  ;;  %v11862_v44 = vadd.f32 %v4387_v33, %v4383_v40  ;;  %v4385_v5 = vmul.f32 %v9679_v26, %v9663_v25  ;;  %v3263_v25 = vld [vmem:[#allocation4] sm:$0xff]  ;;  %v11970_v4 = vpack.c.bf16 %v4921_v52, %v4920_v36  ;;  %v4922_v33 = vld [vmem:[#allocation20 + $0x10] sm:$0xff]  ;;  %v4923_v26 = vld [vmem:[#allocation20 + $0x18] sm:$0xff] }
 0xffa   :  { %9688 = vrcp.f32 %v4368_v2  ;;  %v4369_v0 = vadd.f32 1.0, %v9681_v54  ;;  %v11882_v61 = vpack.c.bf16 %v3264_v15, %v3263_v25  ;;  %v5046_v2 = vld [vmem:[#allocation20 + $0x28] sm:$0xff]  ;;  %v5048_v54 = vld [vmem:[#allocation20 + $0x38] sm:$0xff] }
 0xffb   :  { %9690 = vtanh.f32 %v11862_v44  ;;  %v11865_v30 = vadd.f32 %v4385_v5, %v4381_v42  ;;  %v11972_v40 = vpack.c.bf16 %v5046_v2, %v5045_v47  ;;  %v11978_v42 = vpack.c.bf16 %v4923_v26, %v4922_v33  ;;  %v7769_v15 = vld [vmem:[%s12484_s26 + $0xa8] sm:$0xff]  ;;  %v7761_v25 = vld [vmem:[%s12484_s26 + $0x80] sm:$0xff]  ;;  %v5302_v36 = vld [vmem:[#allocation20 + $0x78] sm:$0xff] }
 0xffc   :  { %9692 = vrcp.f32 %v4371_v46  ;;  %v5047_v46 = vld [vmem:[#allocation20 + $0x30] sm:$0xff]  ;;  %v9987_v33 = vld [vmem:[#allocation18 + $0x1] ss:$0 sm:$0xff] }
 0xffd   :  { %9694 = vtanh.f32 %v11865_v30  ;;  %v11980_v5 = vpack.c.bf16 %v5048_v54, %v5047_v46 }
 0xffe   :  { %9696 = vrcp.f32 %v4369_v0  ;;  %v7757_v0 = vld [vmem:[%s12484_s26 + $0x60] sm:$0xff] }
0x1001   :  { %v9683_v10 = vpop.eup %9682 }
0x1002   :  { %v9685_v24 = vpop.eup %9684 }
0x1003   :  { %v9687_v6 = vpop.eup %9686  ;;  %v11874_v56 = vmul.f32 %v9685_v24, %v9683_v10  ;;  %v7758_v10 = vld [vmem:[%s12484_s26 + $0x68] sm:$0xff]  ;;  %v7766_v24 = vld [vmem:[%s12484_s26 + $0x90] sm:$0xff] }
0x1004   :  { %v9689_v53 = vpop.eup %9688 }
0x1005   :  { %v9691_v55 = vpop.eup %9690  ;;  %v11870_v11 = vmul.f32 %v9689_v53, %v9687_v6  ;;  %v7767_v6 = vld [vmem:[%s12484_s26 + $0x98] sm:$0xff]  ;;  %v11994_v53 = vpack.c.bf16 %v7758_v10, %v7757_v0 }
0x1006   :  { %v9693_v48 = vpop.eup %9692 }
0x1007   :  { %v9695_v9 = vpop.eup %9694  ;;  %v11868_v35 = vmul.f32 %v9693_v48, %v9691_v55  ;;  %v11998_v55 = vpack.c.bf16 %v7767_v6, %v7766_v24  ;;  %v7759_v48 = vld [vmem:[%s12484_s26 + $0x70] sm:$0xff] }
0x1008   :  { %v9697_v12 = vpop.eup %9696 }
0x1009   :  { %v11872_v39 = vmul.f32 %v9697_v12, %v9695_v9  ;;  %v4403_v57 = vpack.c.bf16 %v11868_v35, %v11874_v56  ;;  %v7760_v9 = vld [vmem:[%s12484_s26 + $0x78] sm:$0xff]  ;;  %v7768_v12 = vld [vmem:[%s12484_s26 + $0xa0] sm:$0xff] }
0x100b   :  { %v4402_v32 = vpack.c.bf16 %v11872_v39, %v11870_v11 }
0x100d   :  { %8622 = vmatprep.mubr.msk.bf16.mxu1 %vm3284_vm2, %v4402_v32  ;;  %8640 = vmatprep.mubr.msk.bf16.mxu0 %vm3284_vm2, %v4402_v32 }
0x100e   :  { %8623 = vmatmul.mubr.msk.bf16.vlgmr.msra.gmra.mrb[56].mxu1 %vm3284_vm2, %v4403_v57  ;;  %8641 = vmatmul.mubr.msk.bf16.vlgmr.msra.gmra.mrb[60].mxu0 %vm3284_vm2, %v4403_v57 }
0x100f   :  { %8627 = vmatpush3.bf16.msra.mxu1 %v11551_v58  ;;  %8630 = vmatprep.mubr.msk.bf16.mxu1 %vm348_vm1, %v11882_v61  ;;  %v3266_v58 = vld [vmem:[#allocation4 + $0x18] sm:$0xff] }
0x1010   :  { %8645 = vmatpush3.bf16.msra.mxu0 %v11553_v19  ;;  %8648 = vmatprep.mubr.msk.bf16.mxu0 %vm348_vm1, %v11882_v61  ;;  %v11898_v7 = vpack.c.bf16 %v3266_v58, %v3265_v49  ;;  %v4926_v19 = vld [vmem:[%s12484_s26] sm:$0xff]  ;;  %v7762_v58 = vld [vmem:[%s12484_s26 + $0x88] sm:$0xff]  ;;  %v7770_v49 = vld [vmem:[%s12484_s26 + $0xb0] sm:$0xff] }
0x1011   :  { %8628 = vmatprep.subr.bf16.mxu1 %v11563_v8  ;;  %8646 = vmatprep.subr.bf16.mxu0 %v11565_v31 }
0x1013   :  { %8629 = vmatpush3.bf16.msra.mxu1 %v11563_v8  ;;  %v4927_v8 = vld [vmem:[%s12484_s26 + $0x8] sm:$0xff] }
0x1014   :  { %8647 = vmatpush3.bf16.msra.mxu0 %v11565_v31  ;;  %8652 = vmatprep.subr.bf16.mxu1 %v11579_v16  ;;  %v7748_v31 = vld [vmem:[%s12484_s26 + $0x30] sm:$0xff] }
0x1015   :  { %8670 = vmatprep.subr.bf16.mxu0 %v11583_v27 }
0x101a   :  { %8631 = vmatmul.mubr.msk.bf16.vlgmr.msra.gmra.mrb[56].mxu1 %vm348_vm1, %v11898_v7  ;;  %8649 = vmatmul.mubr.msk.bf16.vlgmr.msra.gmra.mrb[60].mxu0 %vm348_vm1, %v11898_v7 }
0x101b   :  { %8653 = vmatpush3.bf16.msra.mxu1 %v11579_v16  ;;  %8671 = vmatpush3.bf16.msra.mxu0 %v11583_v27  ;;  %v7749_v16 = vld [vmem:[%s12484_s26 + $0x38] sm:$0xff]  ;;  %v11930_v27 = vpack.c.bf16 %v4927_v8, %v4926_v19  ;;  %v12024_v8 = vpack.c.bf16 %v7762_v58, %v7761_v25 }
0x101c   :  { %8658 = vmatprep.mubr.msk.bf16.mxu1 %vm3284_vm2, %v4402_v32  ;;  %8676 = vmatprep.mubr.msk.bf16.mxu0 %vm3284_vm2, %v4402_v32  ;;  %v12008_v32 = vpack.c.bf16 %v7760_v9, %v7759_v48  ;;  %v7771_v19 = vld [vmem:[%s12484_s26 + $0xb8] sm:$0xff] }
0x101d   :  { %8654 = vmatprep.subr.bf16.mxu1 %v11597_v43  ;;  %8672 = vmatprep.subr.bf16.mxu0 %v11599_v59 }
0x101f   :  { %8655 = vmatpush3.bf16.msra.mxu1 %v11597_v43  ;;  %8673 = vmatpush3.bf16.msra.mxu0 %v11599_v59  ;;  %v11934_v43 = vpack.c.bf16 %v7749_v16, %v7748_v31  ;;  %v4928_v59 = vld [vmem:[%s12484_s26 + $0x10] sm:$0xff]  ;;  %v12026_v31 = vpack.c.bf16 %v7771_v19, %v7770_v49  ;;  %v5172_v16 = vld [vmem:[#allocation20 + $0x40] sm:$0xff] }
0x1020   :  { %8656 = vmatprep.subr.bf16.mxu1 %v11613_v51  ;;  %8674 = vmatprep.subr.bf16.mxu0 %v11615_v1 }
0x1023   :  { %8657 = vmatpush3.bf16.msra.mxu1 %v11613_v51  ;;  %8675 = vmatpush3.bf16.msra.mxu0 %v11615_v1  ;;  %v4929_v51 = vld [vmem:[%s12484_s26 + $0x18] sm:$0xff]  ;;  %v7750_v1 = vld [vmem:[%s12484_s26 + $0x40] sm:$0xff] }
0x1024   :  { %8662 = vmatprep.subr.bf16.mxu1 %v11623_v3  ;;  %8680 = vmatprep.subr.bf16.mxu0 %v11625_v41 }
0x1026   :  { %8659 = vmatmul.mubr.msk.bf16.vlgmr.msra.gmra.mrb[60].mxu1 %vm3284_vm2, %v4403_v57  ;;  %8677 = vmatmul.mubr.msk.bf16.vlgmr.msra.gmra.mrb[64].mxu0 %vm3284_vm2, %v4403_v57  ;;  %v12010_v57 = vpack.c.bf16 %v7769_v15, %v7768_v12 }
0x1027   :  { %8663 = vmatpush3.bf16.msra.mxu1 %v11623_v3  ;;  %8666 = vmatprep.mubr.msk.bf16.mxu1 %vm348_vm1, %v11882_v61  ;;  %v7751_v3 = vld [vmem:[%s12484_s26 + $0x48] sm:$0xff] }
0x1028   :  { %8681 = vmatpush3.bf16.msra.mxu0 %v11625_v41  ;;  %8684 = vmatprep.mubr.msk.bf16.mxu0 %vm348_vm1, %v11882_v61  ;;  %v11944_v41 = vpack.c.bf16 %v4929_v51, %v4928_v59  ;;  %v11946_v50 = vpack.c.bf16 %v7751_v3, %v7750_v1  ;;  %v5173_v59 = vld [vmem:[#allocation20 + $0x48] sm:$0xff]  ;;  %v5299_v51 = vld [vmem:[#allocation20 + $0x60] sm:$0xff] }
0x1029   :  { %8664 = vmatprep.subr.bf16.mxu1 %v11631_v20  ;;  %8682 = vmatprep.subr.bf16.mxu0 %v11633_v63  ;;  %v5300_v1 = vld [vmem:[#allocation20 + $0x68] sm:$0xff]  ;;  %v12034_v3 = vpack.c.bf16 %v5173_v59, %v5172_v16 }
0x102b   :  { %8665 = vmatpush3.bf16.msra.mxu1 %v11631_v20  ;;  %v11960_v20 = vpack.c.bf16 %v4931_v28, %v4930_v62  ;;  %v12036_v62 = vpack.c.bf16 %v5300_v1, %v5299_v51  ;;  %v5174_v28 = vld [vmem:[#allocation20 + $0x50] sm:$0xff] }
0x102c   :  { %8683 = vmatpush3.bf16.msra.mxu0 %v11633_v63  ;;  %8688 = vmatprep.subr.bf16.mxu1 %v11930_v27  ;;  %v11962_v63 = vpack.c.bf16 %v7753_v38, %v7752_v45  ;;  %v5175_v45 = vld [vmem:[#allocation20 + $0x58] sm:$0xff]  ;;  %v5301_v38 = vld [vmem:[#allocation20 + $0x70] sm:$0xff] }
0x102d   :  { %8706 = vmatprep.subr.bf16.mxu0 %v11934_v43  ;;  %v12042_v52 = vpack.c.bf16 %v5175_v45, %v5174_v28  ;;  %v12044_v47 = vpack.c.bf16 %v5302_v36, %v5301_v38 }
0x1032   :  { %8667 = vmatmul.mubr.msk.bf16.vlgmr.msra.gmra.mrb[60].mxu1 %vm348_vm1, %v11898_v7  ;;  %8685 = vmatmul.mubr.msk.bf16.vlgmr.msra.gmra.mrb[64].mxu0 %vm348_vm1, %v11898_v7 }
0x1033   :  { %8689 = vmatpush3.bf16.msra.mxu1 %v11930_v27  ;;  %8707 = vmatpush3.bf16.msra.mxu0 %v11934_v43 }
0x1034   :  { %8690 = vmatprep.subr.bf16.mxu1 %v11944_v41  ;;  %8708 = vmatprep.subr.bf16.mxu0 %v11946_v50 }
0x1035   :  { %8694 = vmatprep.mubr.bf16.mxu1 %v10326_v23  ;;  %8712 = vmatprep.mubr.bf16.mxu0 %v10326_v23 }
0x1037   :  { %8691 = vmatpush3.bf16.msra.mxu1 %v11944_v41  ;;  %8709 = vmatpush3.bf16.msra.mxu0 %v11946_v50 }
0x1038   :  { %8692 = vmatprep.subr.bf16.mxu1 %v11960_v20  ;;  %8710 = vmatprep.subr.bf16.mxu0 %v11962_v63 }
0x103b   :  { %8693 = vmatpush3.bf16.msra.mxu1 %v11960_v20  ;;  %8711 = vmatpush3.bf16.msra.mxu0 %v11962_v63 }
0x103c   :  { %8698 = vmatprep.subr.bf16.mxu1 %v11970_v4  ;;  %8716 = vmatprep.subr.bf16.mxu0 %v11972_v40 }
0x103e   :  { %8695 = vmatmul.mubr.bf16.vlgmr.msra.gmra.mrb[64].mxu1 %v10326_v23  ;;  %8713 = vmatmul.mubr.bf16.vlgmr.msra.gmra.mrb[68].mxu0 %v10326_v23 }
0x103f   :  { %8699 = vmatpush3.bf16.msra.mxu1 %v11970_v4  ;;  %8702 = vmatprep.mubr.msk.bf16.mxu1 %vm348_vm1, %v11882_v61 }
0x1040   :  { %8717 = vmatpush3.bf16.msra.mxu0 %v11972_v40  ;;  %8720 = vmatprep.mubr.msk.bf16.mxu0 %vm348_vm1, %v11882_v61 }
0x1041   :  { %8700 = vmatprep.subr.bf16.mxu1 %v11978_v42  ;;  %8718 = vmatprep.subr.bf16.mxu0 %v11980_v5 }
0x1043   :  { %8701 = vmatpush3.bf16.msra.mxu1 %v11978_v42 }
0x1044   :  { %8719 = vmatpush3.bf16.msra.mxu0 %v11980_v5  ;;  %8724 = vmatprep.subr.bf16.mxu1 %v11994_v53 }
0x1045   :  { %8742 = vmatprep.subr.bf16.mxu0 %v11998_v55 }
0x104a   :  { %8703 = vmatmul.mubr.msk.bf16.vlgmr.msra.gmra.mrb[64].mxu1 %vm348_vm1, %v11898_v7  ;;  %8721 = vmatmul.mubr.msk.bf16.vlgmr.msra.gmra.mrb[68].mxu0 %vm348_vm1, %v11898_v7 }
0x104b   :  { %8725 = vmatpush3.bf16.msra.mxu1 %v11994_v53  ;;  %8743 = vmatpush3.bf16.msra.mxu0 %v11998_v55 }
0x104c   :  { %8726 = vmatprep.subr.bf16.mxu1 %v12008_v32  ;;  %8744 = vmatprep.subr.bf16.mxu0 %v12010_v57 }
0x104d   :  { %8730 = vmatprep.mubr.bf16.mxu1 %v10326_v23  ;;  %8748 = vmatprep.mubr.bf16.mxu0 %v10326_v23 }
0x104f   :  { %8727 = vmatpush3.bf16.msra.mxu1 %v12008_v32  ;;  %8745 = vmatpush3.bf16.msra.mxu0 %v12010_v57 }
0x1050   :  { %8728 = vmatprep.subr.bf16.mxu1 %v12024_v8  ;;  %8746 = vmatprep.subr.bf16.mxu0 %v12026_v31 }
0x1053   :  { %8729 = vmatpush3.bf16.msra.mxu1 %v12024_v8  ;;  %8747 = vmatpush3.bf16.msra.mxu0 %v12026_v31 }
0x1054   :  { %8734 = vmatprep.subr.bf16.mxu1 %v12034_v3  ;;  %8752 = vmatprep.subr.bf16.mxu0 %v12036_v62 }
0x1056   :  { %8731 = vmatmul.mubr.bf16.vlgmr.msra.gmra.mrb[68].mxu1 %v10326_v23  ;;  %8749 = vmatmul.mubr.bf16.vlgmr.msra.gmra.mrb[72].mxu0 %v10326_v23 }
0x1057   :  { %8735 = vmatpush3.bf16.msra.mxu1 %v12034_v3  ;;  %8738 = vmatprep.mubr.msk.bf16.mxu1 %vm348_vm1, %v11882_v61 }
0x1058   :  { %8753 = vmatpush3.bf16.msra.mxu0 %v12036_v62  ;;  %8756 = vmatprep.mubr.msk.bf16.mxu0 %vm348_vm1, %v11882_v61 }
0x1059   :  { %8736 = vmatprep.subr.bf16.mxu1 %v12042_v52  ;;  %8754 = vmatprep.subr.bf16.mxu0 %v12044_v47 }
0x105b   :  { %8737 = vmatpush3.bf16.msra.mxu1 %v12042_v52 }
0x105c   :  { %8755 = vmatpush3.bf16.msra.mxu0 %v12044_v47  ;;  %8760 = vmatprep.subr.bf16.mxu1 %v11930_v27 }
0x105d   :  { %8778 = vmatprep.subr.bf16.mxu0 %v11934_v43 }
0x1062   :  { %8739 = vmatmul.mubr.msk.bf16.vlgmr.msra.gmra.mrb[68].mxu1 %vm348_vm1, %v11898_v7  ;;  %8757 = vmatmul.mubr.msk.bf16.vlgmr.msra.gmra.mrb[72].mxu0 %vm348_vm1, %v11898_v7  ;;  %v9986_v7 = vld [vmem:[#allocation18] ss:$0 sm:$0xff] }
0x1063   :  { %8761 = vmatpush3.bf16.msra.mxu1 %v11930_v27  ;;  %8779 = vmatpush3.bf16.msra.mxu0 %v11934_v43 }
0x1064   :  { %8762 = vmatprep.subr.bf16.mxu1 %v11944_v41  ;;  %8780 = vmatprep.subr.bf16.mxu0 %v11946_v50 }
0x1067   :  { %8763 = vmatpush3.bf16.msra.mxu1 %v11944_v41  ;;  %8781 = vmatpush3.bf16.msra.mxu0 %v11946_v50 }
0x1068   :  { %8764 = vmatprep.subr.bf16.mxu1 %v11960_v20  ;;  %8782 = vmatprep.subr.bf16.mxu0 %v11962_v63 }
0x106b   :  { %8765 = vmatpush3.bf16.msra.mxu1 %v11960_v20  ;;  %8783 = vmatpush3.bf16.msra.mxu0 %v11962_v63 }
0x106c   :  { %8770 = vmatprep.subr.bf16.mxu1 %v11970_v4  ;;  %8788 = vmatprep.subr.bf16.mxu0 %v11972_v40 }
0x10ed   :  { %v8632_v23 = vpop.f32.mrb[56].mxu1  ;;  %v8650_v61 = vpop.f32.mrb[60].mxu0 }
0x10ee   :  { %v4516_v2 = vadd.f32 %v9986_v7, %v8632_v23  ;;  %v4618_v26 = vadd.f32 %v9987_v33, %v8650_v61  ;;  %v4499_v46 = vpop.f32.mrb[57].mxu1  ;;  %v4601_v54 = vpop.f32.mrb[61].mxu0 }
0x10ef   :  { %v4514_v0 = vadd.f32 %v9986_v7, %v4499_v46  ;;  %v4616_v10 = vadd.f32 %v9987_v33, %v4601_v54  ;;  %v8633_v24 = vpop.f32.mrb[58].mxu1  ;;  %v8651_v6 = vpop.f32.mrb[62].mxu0 }
0x10f0   :  { %v7735_v48 = vmul.f32 -1.442695, %v4516_v2  ;;  %v7739_v9 = vmul.f32 -1.442695, %v4618_v26  ;;  %v4517_v12 = vadd.f32 %v9986_v7, %v8633_v24  ;;  %v4619_v15 = vadd.f32 %v9987_v33, %v8651_v6  ;;  %v4502_v25 = vpop.f32.mrb[59].mxu1  ;;  %v4604_v58 = vpop.f32.mrb[63].mxu0 }
0x10f1   :  { %v7733_v49 = vmul.f32 -1.442695, %v4514_v0  ;;  %v7737_v19 = vmul.f32 -1.442695, %v4616_v10  ;;  %v4515_v16 = vadd.f32 %v9986_v7, %v4502_v25  ;;  %v4617_v59 = vadd.f32 %v9987_v33, %v4604_v58  ;;  %v9988_v25 = vld [vmem:[#allocation18 + $0x2] ss:$0 sm:$0xff] }
0x10f2   :  { %9698 = vpow2.f32 %v7735_v48  ;;  %v7736_v51 = vmul.f32 -1.442695, %v4517_v12  ;;  %v7740_v1 = vmul.f32 -1.442695, %v4619_v15 }
0x10f3   :  { %9700 = vpow2.f32 %v7739_v9  ;;  %v7734_v28 = vmul.f32 -1.442695, %v4515_v16  ;;  %v7738_v45 = vmul.f32 -1.442695, %v4617_v59 }
0x10f4   :  { %9702 = vpow2.f32 %v7733_v49  ;;  %v9989_v49 = vld [vmem:[#allocation18 + $0x3] ss:$0 sm:$0xff] }
0x10f5   :  { %9704 = vpow2.f32 %v7737_v19 }
0x10f6   :  { %9706 = vpow2.f32 %v7736_v51 }
0x10f7   :  { %9708 = vpow2.f32 %v7740_v1 }
0x10f8   :  { %9710 = vpow2.f32 %v7734_v28 }
0x10f9   :  { %9712 = vpow2.f32 %v7738_v45 }
0x10fc   :  { %v9699_v38 = vpop.eup %9698 }
0x10fd   :  { %v9701_v36 = vpop.eup %9700  ;;  %v4838_v23 = vadd.f32 1.0, %v9699_v38 }
0x10fe   :  { %v9703_v61 = vpop.eup %9702  ;;  %v4862_v2 = vadd.f32 1.0, %v9701_v36 }
0x10ff   :  { %v9705_v26 = vpop.eup %9704  ;;  %v4836_v7 = vadd.f32 1.0, %v9703_v61  ;;  %9714 = vrcp.f32 %v4838_v23 }
0x1100   :  { %v9707_v33 = vpop.eup %9706  ;;  %v4860_v46 = vadd.f32 1.0, %v9705_v26  ;;  %9716 = vrcp.f32 %v4862_v2 }
0x1101   :  { %v9709_v54 = vpop.eup %9708  ;;  %v4839_v0 = vadd.f32 1.0, %v9707_v33  ;;  %9718 = vrcp.f32 %v4836_v7 }
0x1102   :  { %v9711_v10 = vpop.eup %9710  ;;  %v4863_v24 = vadd.f32 1.0, %v9709_v54  ;;  %9720 = vrcp.f32 %v4860_v46 }
0x1103   :  { %v9713_v6 = vpop.eup %9712  ;;  %v4837_v48 = vadd.f32 1.0, %v9711_v10  ;;  %9722 = vrcp.f32 %v4839_v0 }
0x1104   :  { %v4861_v9 = vadd.f32 1.0, %v9713_v6  ;;  %9724 = vrcp.f32 %v4863_v24 }
0x1105   :  { %v8668_v12 = vpop.f32.mrb[60].mxu1  ;;  %v8686_v15 = vpop.f32.mrb[64].mxu0  ;;  %9726 = vrcp.f32 %v4837_v48 }
0x1106   :  { %v4720_v58 = vadd.f32 %v9988_v25, %v8668_v12  ;;  %v4822_v19 = vadd.f32 %v9989_v49, %v8686_v15  ;;  %v4703_v16 = vpop.f32.mrb[61].mxu1  ;;  %v4805_v59 = vpop.f32.mrb[65].mxu0  ;;  %9728 = vrcp.f32 %v4861_v9 }
0x1107   :  { %v4718_v51 = vadd.f32 %v9988_v25, %v4703_v16  ;;  %v4820_v1 = vadd.f32 %v9989_v49, %v4805_v59  ;;  %v8669_v28 = vpop.f32.mrb[62].mxu1  ;;  %v8687_v45 = vpop.f32.mrb[66].mxu0 }
0x1108   :  { %9730 = vtanh.f32 %v4720_v58  ;;  %v7743_v38 = vmul.f32 -1.442695, %v4822_v19  ;;  %v4721_v36 = vadd.f32 %v9988_v25, %v8669_v28  ;;  %v4823_v23 = vadd.f32 %v9989_v49, %v8687_v45  ;;  %v4706_v61 = vpop.f32.mrb[63].mxu1  ;;  %v4808_v2 = vpop.f32.mrb[67].mxu0 }
0x1109   :  { %9732 = vtanh.f32 %v4718_v51  ;;  %v7741_v26 = vmul.f32 -1.442695, %v4820_v1  ;;  %v4821_v7 = vadd.f32 %v9989_v49, %v4808_v2  ;;  %v9715_v33 = vpop.eup %9714  ;;  %v4719_v54 = vadd.f32 %v9988_v25, %v4706_v61 }
0x110a   :  { %9734 = vpow2.f32 %v7743_v38  ;;  %v7744_v46 = vmul.f32 -1.442695, %v4823_v23  ;;  %v9717_v0 = vpop.eup %9716 }
0x110b   :  { %9736 = vpow2.f32 %v7741_v26  ;;  %v7742_v10 = vmul.f32 -1.442695, %v4821_v7  ;;  %v9719_v24 = vpop.eup %9718  ;;  %v4902_v49 = vmul.f32 %v9717_v0, %v11854_v17 }
0x110c   :  { %9738 = vtanh.f32 %v4721_v36  ;;  %v9721_v6 = vpop.eup %9720 }
0x110d   :  { %9740 = vpow2.f32 %v7744_v46  ;;  %v9723_v48 = vpop.eup %9722  ;;  %v4900_v25 = vmul.f32 %v9721_v6, %v11856_v60  ;;  %v12082_v6 = vld [vmem:[#allocation21 + $0x1] ss:$0 sm:$0xff] }
0x110e   :  { %9742 = vtanh.f32 %v4719_v54  ;;  %v9725_v9 = vpop.eup %9724 }
0x110f   :  { %9744 = vpow2.f32 %v7742_v10  ;;  %v9727_v12 = vpop.eup %9726  ;;  %v4903_v2 = vmul.f32 %v9725_v9, %v11862_v44 }
0x1110   :  { %v9729_v15 = vpop.eup %9728 }
0x1112   :  { %v9731_v58 = vpop.eup %9730 }
0x1113   :  { %v9733_v19 = vpop.eup %9732  ;;  %v4906_v16 = vmul.f32 %v9731_v58, %v9715_v33  ;;  %v4901_v33 = vmul.f32 %v9729_v15, %v11865_v30 }
0x1114   :  { %v9735_v59 = vpop.eup %9734  ;;  %v4904_v51 = vmul.f32 %v9733_v19, %v9719_v24  ;;  %v12080_v24 = vld [vmem:[#allocation21] ss:$0 sm:$0xff] }
0x1115   :  { %v9737_v1 = vpop.eup %9736  ;;  %v4910_v28 = vadd.f32 %v4906_v16, %v4902_v49  ;;  %v4890_v45 = vadd.f32 1.0, %v9735_v59 }
0x1116   :  { %v9739_v38 = vpop.eup %9738  ;;  %v4908_v36 = vadd.f32 %v4904_v51, %v4900_v25  ;;  %v4888_v23 = vadd.f32 1.0, %v9737_v1 }
0x1117   :  { %v9741_v61 = vpop.eup %9740  ;;  %9746 = vtanh.f32 %v4910_v28  ;;  %v4907_v26 = vmul.f32 %v9739_v38, %v9723_v48 }
0x1118   :  { %v9743_v7 = vpop.eup %9742  ;;  %9748 = vrcp.f32 %v4890_v45  ;;  %v4891_v46 = vadd.f32 1.0, %v9741_v61 }
0x1119   :  { %v9745_v17 = vpop.eup %9744  ;;  %9750 = vtanh.f32 %v4908_v36  ;;  %v4911_v60 = vadd.f32 %v4907_v26, %v4903_v2  ;;  %v4905_v54 = vmul.f32 %v9743_v7, %v9727_v12 }
0x111a   :  { %9752 = vrcp.f32 %v4888_v23  ;;  %v4889_v0 = vadd.f32 1.0, %v9745_v17 }
0x111b   :  { %9754 = vtanh.f32 %v4911_v60  ;;  %v4909_v10 = vadd.f32 %v4905_v54, %v4901_v33 }
0x111c   :  { %9756 = vrcp.f32 %v4891_v46 }
0x111d   :  { %9758 = vtanh.f32 %v4909_v10  ;;  %v8704_v44 = vpop.f32.mrb[64].mxu1  ;;  %v8722_v48 = vpop.f32.mrb[68].mxu0 }
0x111e   :  { %9760 = vrcp.f32 %v4889_v0  ;;  %v5042_v9 = vadd.f32 %v8704_v44, %v12080_v24  ;;  %v5169_v30 = vadd.f32 %v8722_v48, %v12082_v6  ;;  %v5018_v15 = vpop.f32.mrb[65].mxu1  ;;  %v5144_v58 = vpop.f32.mrb[69].mxu0 }
0x111f   :  { %v5040_v12 = vadd.f32 %v12080_v24, %v5018_v15  ;;  %v5167_v19 = vadd.f32 %v12082_v6, %v5144_v58  ;;  %v8705_v49 = vpop.f32.mrb[66].mxu1  ;;  %v8723_v16 = vpop.f32.mrb[70].mxu0 }
0x1120   :  { %v7777_v59 = vmul.f32 -1.442695, %v5042_v9  ;;  %v7781_v25 = vmul.f32 -1.442695, %v5169_v30  ;;  %v5043_v51 = vadd.f32 %v8705_v49, %v12080_v24  ;;  %v5170_v1 = vadd.f32 %v8723_v16, %v12082_v6  ;;  %v5021_v28 = vpop.f32.mrb[67].mxu1  ;;  %v5147_v45 = vpop.f32.mrb[71].mxu0 }
0x1121   :  { %v9747_v38 = vpop.eup %9746  ;;  %v7775_v36 = vmul.f32 -1.442695, %v5040_v12  ;;  %v7779_v23 = vmul.f32 -1.442695, %v5167_v19  ;;  %v5041_v61 = vadd.f32 %v12080_v24, %v5021_v28  ;;  %v5168_v2 = vadd.f32 %v12082_v6, %v5147_v45 }
0x1122   :  { %v9749_v26 = vpop.eup %9748  ;;  %9762 = vpow2.f32 %v7777_v59  ;;  %v7778_v7 = vmul.f32 -1.442695, %v5043_v51  ;;  %v7782_v17 = vmul.f32 -1.442695, %v5170_v1 }
0x1123   :  { %v9751_v46 = vpop.eup %9750  ;;  %9764 = vpow2.f32 %v7781_v25  ;;  %v12092_v33 = vmul.f32 %v9749_v26, %v9747_v38  ;;  %v7776_v54 = vmul.f32 -1.442695, %v5041_v61  ;;  %v7780_v10 = vmul.f32 -1.442695, %v5168_v2  ;;  %v12100_v26 = vld [vmem:[#allocation21 + $0x2] ss:$0 sm:$0xff] }
0x1124   :  { %v9753_v60 = vpop.eup %9752  ;;  %9766 = vpow2.f32 %v7775_v36 }
0x1125   :  { %v9755_v0 = vpop.eup %9754  ;;  %9768 = vpow2.f32 %v7779_v23  ;;  %v12094_v44 = vmul.f32 %v9753_v60, %v9751_v46 }
0x1126   :  { %v9757_v48 = vpop.eup %9756  ;;  %9770 = vpow2.f32 %v7778_v7  ;;  %v12102_v7 = vld [vmem:[#allocation21 + $0x3] ss:$0 sm:$0xff] }
0x1127   :  { %v9759_v9 = vpop.eup %9758  ;;  %9772 = vpow2.f32 %v7782_v17  ;;  %v12096_v30 = vmul.f32 %v9757_v48, %v9755_v0 }
0x1128   :  { %v9761_v15 = vpop.eup %9760  ;;  %9774 = vpow2.f32 %v7776_v54 }
0x1129   :  { %12485 = vst [vmem:[#allocation44_spill] sm:$0xff] %v12096_v30  ;;  %v12098_v58 = vmul.f32 %v9761_v15, %v9759_v9  ;;  %9776 = vpow2.f32 %v7780_v10 }
0x112c   :  { %v9763_v12 = vpop.eup %9762 }
0x112d   :  { %v9765_v19 = vpop.eup %9764  ;;  %v5439_v49 = vadd.f32 1.0, %v9763_v12 }
0x112e   :  { %v9767_v16 = vpop.eup %9766  ;;  %v5463_v59 = vadd.f32 1.0, %v9765_v19 }
0x112f   :  { %v9769_v25 = vpop.eup %9768  ;;  %v5437_v51 = vadd.f32 1.0, %v9767_v16  ;;  %9778 = vrcp.f32 %v5439_v49 }
0x1130   :  { %v9771_v1 = vpop.eup %9770  ;;  %v5461_v28 = vadd.f32 1.0, %v9769_v25  ;;  %9780 = vrcp.f32 %v5463_v59 }
0x1131   :  { %v9773_v45 = vpop.eup %9772  ;;  %v5440_v38 = vadd.f32 1.0, %v9771_v1  ;;  %9782 = vrcp.f32 %v5437_v51 }
0x1132   :  { %v9775_v36 = vpop.eup %9774  ;;  %v5464_v23 = vadd.f32 1.0, %v9773_v45  ;;  %9784 = vrcp.f32 %v5461_v28 }
0x1133   :  { %v9777_v61 = vpop.eup %9776  ;;  %v5438_v2 = vadd.f32 1.0, %v9775_v36  ;;  %9786 = vrcp.f32 %v5440_v38 }
0x1134   :  { %v5462_v46 = vadd.f32 1.0, %v9777_v61  ;;  %9788 = vrcp.f32 %v5464_v23 }
0x1135   :  { %v8740_v17 = vpop.f32.mrb[68].mxu1  ;;  %v8758_v60 = vpop.f32.mrb[72].mxu0  ;;  %9790 = vrcp.f32 %v5438_v2 }
0x1136   :  { %v5296_v54 = vadd.f32 %v8740_v17, %v12100_v26  ;;  %v5423_v0 = vadd.f32 %v8758_v60, %v12102_v7  ;;  %v5271_v10 = vpop.f32.mrb[69].mxu1  ;;  %v5398_v48 = vpop.f32.mrb[73].mxu0  ;;  %9792 = vrcp.f32 %v5462_v46 }
0x1137   :  { %v5294_v9 = vadd.f32 %v12100_v26, %v5271_v10  ;;  %v5421_v15 = vadd.f32 %v12102_v7, %v5398_v48  ;;  %v8741_v12 = vpop.f32.mrb[70].mxu1  ;;  %v8759_v19 = vpop.f32.mrb[74].mxu0 }
0x1138   :  { %9794 = vtanh.f32 %v5296_v54  ;;  %v7785_v49 = vmul.f32 -1.442695, %v5423_v0  ;;  %v5297_v16 = vadd.f32 %v8741_v12, %v12100_v26  ;;  %v5424_v59 = vadd.f32 %v8759_v19, %v12102_v7  ;;  %v5274_v25 = vpop.f32.mrb[71].mxu1  ;;  %v5401_v51 = vpop.f32.mrb[75].mxu0 }
0x1139   :  { %9796 = vtanh.f32 %v5294_v9  ;;  %v7783_v1 = vmul.f32 -1.442695, %v5421_v15  ;;  %v5422_v28 = vadd.f32 %v12102_v7, %v5401_v51  ;;  %v9779_v45 = vpop.eup %9778  ;;  %v5295_v36 = vadd.f32 %v12100_v26, %v5274_v25 }
0x113a   :  { %9798 = vpow2.f32 %v7785_v49  ;;  %v7786_v38 = vmul.f32 -1.442695, %v5424_v59  ;;  %v9781_v23 = vpop.eup %9780 }
0x113b   :  { %9800 = vpow2.f32 %v7783_v1  ;;  %v7784_v61 = vmul.f32 -1.442695, %v5422_v28  ;;  %v9783_v2 = vpop.eup %9782  ;;  %v5503_v9 = vmul.f32 0.0, %v9781_v23 }
0x113c   :  { %9802 = vtanh.f32 %v5297_v16  ;;  %v9785_v46 = vpop.eup %9784 }
0x113d   :  { %9804 = vpow2.f32 %v7786_v38  ;;  %v9787_v17 = vpop.eup %9786  ;;  %v5501_v19 = vmul.f32 0.0, %v9785_v46 }
0x113e   :  { %9806 = vtanh.f32 %v5295_v36  ;;  %v9789_v60 = vpop.eup %9788 }
0x113f   :  { %9808 = vpow2.f32 %v7784_v61  ;;  %v9791_v54 = vpop.eup %9790  ;;  %v5504_v36 = vmul.f32 0.0, %v9789_v60 }
0x1140   :  { %v9793_v0 = vpop.eup %9792 }
0x1142   :  { %v9795_v10 = vpop.eup %9794 }
0x1143   :  { %v9797_v48 = vpop.eup %9796  ;;  %v5507_v15 = vmul.f32 %v9795_v10, %v9779_v45  ;;  %v5502_v10 = vmul.f32 0.0, %v9793_v0 }
0x1144   :  { %v9799_v12 = vpop.eup %9798  ;;  %v5505_v49 = vmul.f32 %v9797_v48, %v9783_v2 }
0x1145   :  { %v9801_v59 = vpop.eup %9800  ;;  %v12112_v25 = vadd.f32 %v5507_v15, %v5503_v9  ;;  %v5491_v51 = vadd.f32 1.0, %v9799_v12 }
0x1146   :  { %v9803_v16 = vpop.eup %9802  ;;  %v12114_v1 = vadd.f32 %v5505_v49, %v5501_v19  ;;  %v5489_v28 = vadd.f32 1.0, %v9801_v59 }
0x1147   :  { %v9805_v38 = vpop.eup %9804  ;;  %9810 = vtanh.f32 %v12112_v25  ;;  %v5508_v61 = vmul.f32 %v9803_v16, %v9787_v17 }
0x1148   :  { %v9807_v30 = vpop.eup %9806  ;;  %9812 = vrcp.f32 %v5491_v51  ;;  %v5492_v23 = vadd.f32 1.0, %v9805_v38 }
0x1149   :  { %v9809_v45 = vpop.eup %9808  ;;  %9814 = vtanh.f32 %v12114_v1  ;;  %v12118_v2 = vadd.f32 %v5508_v61, %v5504_v36  ;;  %v5506_v46 = vmul.f32 %v9807_v30, %v9791_v54 }
0x114a   :  { %9816 = vrcp.f32 %v5489_v28  ;;  %v5490_v48 = vadd.f32 1.0, %v9809_v45 }
0x114b   :  { %9818 = vtanh.f32 %v12118_v2  ;;  %v12121_v9 = vadd.f32 %v5506_v46, %v5502_v10 }
0x114c   :  { %9820 = vrcp.f32 %v5492_v23 }
0x114d   :  { %9822 = vtanh.f32 %v12121_v9 }
0x114e   :  { %9824 = vrcp.f32 %v5490_v48 }
0x1151   :  { %v9811_v17 = vpop.eup %9810 }
0x1152   :  { %v9813_v60 = vpop.eup %9812 }
0x1153   :  { %v9815_v15 = vpop.eup %9814  ;;  %v12130_v16 = vmul.f32 %v9813_v60, %v9811_v17 }
0x1154   :  { %v9817_v12 = vpop.eup %9816 }
0x1155   :  { %v9819_v0 = vpop.eup %9818  ;;  %v12126_v30 = vmul.f32 %v9817_v12, %v9815_v15 }
0x1156   :  { %v9821_v19 = vpop.eup %9820 }
0x1157   :  { %v9823_v49 = vpop.eup %9822  ;;  %v12124_v51 = vmul.f32 %v9821_v19, %v9819_v0 }
0x1158   :  { %v9825_v59 = vpop.eup %9824 }
0x1159   :  { %v12128_v54 = vmul.f32 %v9825_v59, %v9823_v49  ;;  %v5522_v38 = vpack.c.bf16 %v12124_v51, %v12130_v16 }
0x115b   :  { %v5521_v28 = vpack.c.bf16 %v12128_v54, %v12126_v30 }
0x115d   :  { %8766 = vmatprep.mubr.msk.bf16.mxu1 %vm3284_vm2, %v5521_v28  ;;  %8784 = vmatprep.mubr.msk.bf16.mxu0 %vm3284_vm2, %v5521_v28 }
0x115e   :  { %8767 = vmatmul.mubr.msk.bf16.vlgmr.msra.gmra.mrb[72].mxu1 %vm3284_vm2, %v5522_v38  ;;  %8785 = vmatmul.mubr.msk.bf16.vlgmr.msra.gmra.mrb[76].mxu0 %vm3284_vm2, %v5522_v38 }
0x115f   :  { %8771 = vmatpush3.bf16.msra.mxu1 %v11970_v4  ;;  %8774 = vmatprep.mubr.msk.bf16.mxu1 %vm348_vm1, %v11758_v29 }
0x1160   :  { %8789 = vmatpush3.bf16.msra.mxu0 %v11972_v40  ;;  %8792 = vmatprep.mubr.msk.bf16.mxu0 %vm348_vm1, %v11758_v29 }
0x1161   :  { %8772 = vmatprep.subr.bf16.mxu1 %v11978_v42  ;;  %8790 = vmatprep.subr.bf16.mxu0 %v11980_v5 }
0x1163   :  { %8773 = vmatpush3.bf16.msra.mxu1 %v11978_v42 }
0x1164   :  { %8791 = vmatpush3.bf16.msra.mxu0 %v11980_v5  ;;  %8796 = vmatprep.subr.bf16.mxu1 %v11994_v53 }
0x1165   :  { %8814 = vmatprep.subr.bf16.mxu0 %v11998_v55 }
0x116a   :  { %8775 = vmatmul.mubr.msk.bf16.vlgmr.msra.gmra.mrb[72].mxu1 %vm348_vm1, %v11774_v37  ;;  %8793 = vmatmul.mubr.msk.bf16.vlgmr.msra.gmra.mrb[76].mxu0 %vm348_vm1, %v11774_v37 }
0x116b   :  { %8797 = vmatpush3.bf16.msra.mxu1 %v11994_v53  ;;  %8815 = vmatpush3.bf16.msra.mxu0 %v11998_v55 }
0x116c   :  { %8802 = vmatprep.mubr.msk.bf16.mxu1 %vm3284_vm2, %v5521_v28  ;;  %8820 = vmatprep.mubr.msk.bf16.mxu0 %vm3284_vm2, %v5521_v28 }
0x116d   :  { %8798 = vmatprep.subr.bf16.mxu1 %v12008_v32  ;;  %8816 = vmatprep.subr.bf16.mxu0 %v12010_v57 }
0x116f   :  { %8799 = vmatpush3.bf16.msra.mxu1 %v12008_v32  ;;  %8817 = vmatpush3.bf16.msra.mxu0 %v12010_v57 }
0x1170   :  { %8800 = vmatprep.subr.bf16.mxu1 %v12024_v8  ;;  %8818 = vmatprep.subr.bf16.mxu0 %v12026_v31 }
0x1173   :  { %8801 = vmatpush3.bf16.msra.mxu1 %v12024_v8  ;;  %8819 = vmatpush3.bf16.msra.mxu0 %v12026_v31 }
0x1174   :  { %8806 = vmatprep.subr.bf16.mxu1 %v12034_v3  ;;  %8824 = vmatprep.subr.bf16.mxu0 %v12036_v62 }
0x1176   :  { %8803 = vmatmul.mubr.msk.bf16.vlgmr.msra.gmra.mrb[76].mxu1 %vm3284_vm2, %v5522_v38  ;;  %8821 = vmatmul.mubr.msk.bf16.vlgmr.msra.gmra.mrb[80].mxu0 %vm3284_vm2, %v5522_v38 }
0x1177   :  { %8807 = vmatpush3.bf16.msra.mxu1 %v12034_v3  ;;  %8810 = vmatprep.mubr.msk.bf16.mxu1 %vm348_vm1, %v11758_v29 }
0x1178   :  { %8825 = vmatpush3.bf16.msra.mxu0 %v12036_v62  ;;  %8828 = vmatprep.mubr.msk.bf16.mxu0 %vm348_vm1, %v11758_v29 }
0x1179   :  { %8808 = vmatprep.subr.bf16.mxu1 %v12042_v52  ;;  %8826 = vmatprep.subr.bf16.mxu0 %v12044_v47 }
0x117b   :  { %8809 = vmatpush3.bf16.msra.mxu1 %v12042_v52 }
0x117c   :  { %8827 = vmatpush3.bf16.msra.mxu0 %v12044_v47  ;;  %8832 = vmatprep.subr.bf16.mxu1 %v11930_v27 }
0x117d   :  { %8850 = vmatprep.subr.bf16.mxu0 %v11934_v43 }
0x1182   :  { %8811 = vmatmul.mubr.msk.bf16.vlgmr.msra.gmra.mrb[76].mxu1 %vm348_vm1, %v11774_v37  ;;  %8829 = vmatmul.mubr.msk.bf16.vlgmr.msra.gmra.mrb[80].mxu0 %vm348_vm1, %v11774_v37 }
0x1183   :  { %8833 = vmatpush3.bf16.msra.mxu1 %v11930_v27  ;;  %8851 = vmatpush3.bf16.msra.mxu0 %v11934_v43 }
0x1184   :  { %8834 = vmatprep.subr.bf16.mxu1 %v11944_v41  ;;  %8852 = vmatprep.subr.bf16.mxu0 %v11946_v50 }
0x1187   :  { %8835 = vmatpush3.bf16.msra.mxu1 %v11944_v41  ;;  %8853 = vmatpush3.bf16.msra.mxu0 %v11946_v50 }
0x1188   :  { %8836 = vmatprep.subr.bf16.mxu1 %v11960_v20  ;;  %8854 = vmatprep.subr.bf16.mxu0 %v11962_v63 }
0x118b   :  { %8837 = vmatpush3.bf16.msra.mxu1 %v11960_v20  ;;  %8855 = vmatpush3.bf16.msra.mxu0 %v11962_v63 }
0x118c   :  { %8842 = vmatprep.subr.bf16.mxu1 %v11970_v4  ;;  %8860 = vmatprep.subr.bf16.mxu0 %v11972_v40 }
0x123d   :  { %v8776_v29 = vpop.f32.mrb[72].mxu1  ;;  %v8794_v37 = vpop.f32.mrb[76].mxu0 }
0x123e   :  { %v5629_v27 = vadd.f32 %v8776_v29, %v12080_v24  ;;  %v5731_v43 = vadd.f32 %v8794_v37, %v12082_v6  ;;  %v5612_v41 = vpop.f32.mrb[73].mxu1  ;;  %v5714_v50 = vpop.f32.mrb[77].mxu0 }
0x123f   :  { %v5627_v36 = vadd.f32 %v12080_v24, %v5612_v41  ;;  %v5729_v61 = vadd.f32 %v12082_v6, %v5714_v50  ;;  %v8777_v23 = vpop.f32.mrb[74].mxu1  ;;  %v8795_v20 = vpop.f32.mrb[78].mxu0 }
0x1240   :  { %v7805_v45 = vmul.f32 -1.442695, %v5629_v27  ;;  %v7809_v63 = vmul.f32 -1.442695, %v5731_v43  ;;  %v5630_v10 = vadd.f32 %v8777_v23, %v12080_v24  ;;  %v5732_v46 = vadd.f32 %v8795_v20, %v12082_v6  ;;  %v5615_v48 = vpop.f32.mrb[75].mxu1  ;;  %v5717_v17 = vpop.f32.mrb[79].mxu0 }
0x1241   :  { %v7803_v60 = vmul.f32 -1.442695, %v5627_v36  ;;  %v7807_v15 = vmul.f32 -1.442695, %v5729_v61  ;;  %v5628_v12 = vadd.f32 %v12080_v24, %v5615_v48  ;;  %v5730_v0 = vadd.f32 %v12082_v6, %v5717_v17 }
0x1242   :  { %9826 = vpow2.f32 %v7805_v45  ;;  %v7806_v19 = vmul.f32 -1.442695, %v5630_v10  ;;  %v7810_v49 = vmul.f32 -1.442695, %v5732_v46 }
0x1243   :  { %9828 = vpow2.f32 %v7809_v63  ;;  %v7804_v59 = vmul.f32 -1.442695, %v5628_v12  ;;  %v7808_v28 = vmul.f32 -1.442695, %v5730_v0 }
0x1244   :  { %9830 = vpow2.f32 %v7803_v60 }
0x1245   :  { %9832 = vpow2.f32 %v7807_v15 }
0x1246   :  { %9834 = vpow2.f32 %v7806_v19 }
0x1247   :  { %9836 = vpow2.f32 %v7810_v49 }
0x1248   :  { %9838 = vpow2.f32 %v7804_v59 }
0x1249   :  { %9840 = vpow2.f32 %v7808_v28 }
0x124c   :  { %v9827_v38 = vpop.eup %9826 }
0x124d   :  { %v9829_v29 = vpop.eup %9828  ;;  %v5951_v37 = vadd.f32 1.0, %v9827_v38 }
0x124e   :  { %v9831_v27 = vpop.eup %9830  ;;  %v5975_v43 = vadd.f32 1.0, %v9829_v29 }
0x124f   :  { %v9833_v41 = vpop.eup %9832  ;;  %v5949_v50 = vadd.f32 1.0, %v9831_v27  ;;  %9842 = vrcp.f32 %v5951_v37 }
0x1250   :  { %v9835_v36 = vpop.eup %9834  ;;  %v5973_v61 = vadd.f32 1.0, %v9833_v41  ;;  %9844 = vrcp.f32 %v5975_v43 }
0x1251   :  { %v9837_v23 = vpop.eup %9836  ;;  %v5952_v20 = vadd.f32 1.0, %v9835_v36  ;;  %9846 = vrcp.f32 %v5949_v50 }
0x1252   :  { %v9839_v45 = vpop.eup %9838  ;;  %v5976_v63 = vadd.f32 1.0, %v9837_v23  ;;  %9848 = vrcp.f32 %v5973_v61 }
0x1253   :  { %v9841_v10 = vpop.eup %9840  ;;  %v5950_v46 = vadd.f32 1.0, %v9839_v45  ;;  %9850 = vrcp.f32 %v5952_v20 }
0x1254   :  { %v5974_v48 = vadd.f32 1.0, %v9841_v10  ;;  %9852 = vrcp.f32 %v5976_v63 }
0x1255   :  { %v8812_v17 = vpop.f32.mrb[76].mxu1  ;;  %v8830_v60 = vpop.f32.mrb[80].mxu0  ;;  %9854 = vrcp.f32 %v5950_v46 }
0x1256   :  { %v5833_v15 = vadd.f32 %v8812_v17, %v12100_v26  ;;  %v5935_v12 = vadd.f32 %v8830_v60, %v12102_v7  ;;  %v5816_v0 = vpop.f32.mrb[77].mxu1  ;;  %v5918_v19 = vpop.f32.mrb[81].mxu0  ;;  %9856 = vrcp.f32 %v5974_v48 }
0x1257   :  { %v5831_v49 = vadd.f32 %v12100_v26, %v5816_v0  ;;  %v5933_v59 = vadd.f32 %v12102_v7, %v5918_v19  ;;  %v8813_v28 = vpop.f32.mrb[78].mxu1  ;;  %v8831_v38 = vpop.f32.mrb[82].mxu0 }
0x1258   :  { %9858 = vtanh.f32 %v5833_v15  ;;  %v7813_v29 = vmul.f32 -1.442695, %v5935_v12  ;;  %v5834_v37 = vadd.f32 %v8813_v28, %v12100_v26  ;;  %v5936_v27 = vadd.f32 %v8831_v38, %v12102_v7  ;;  %v5819_v43 = vpop.f32.mrb[79].mxu1  ;;  %v5921_v41 = vpop.f32.mrb[83].mxu0 }
0x1259   :  { %9860 = vtanh.f32 %v5831_v49  ;;  %v7811_v50 = vmul.f32 -1.442695, %v5933_v59  ;;  %v5934_v36 = vadd.f32 %v12102_v7, %v5921_v41  ;;  %v9843_v61 = vpop.eup %9842  ;;  %v5832_v20 = vadd.f32 %v12100_v26, %v5819_v43 }
0x125a   :  { %9862 = vpow2.f32 %v7813_v29  ;;  %v7814_v23 = vmul.f32 -1.442695, %v5936_v27  ;;  %v9845_v45 = vpop.eup %9844 }
0x125b   :  { %9864 = vpow2.f32 %v7811_v50  ;;  %v7812_v63 = vmul.f32 -1.442695, %v5934_v36  ;;  %v9847_v10 = vpop.eup %9846  ;;  %v6015_v19 = vmul.f32 %v9845_v45, %v12112_v25 }
0x125c   :  { %9866 = vtanh.f32 %v5834_v37  ;;  %v9849_v46 = vpop.eup %9848 }
0x125d   :  { %9868 = vpow2.f32 %v7814_v23  ;;  %v9851_v48 = vpop.eup %9850  ;;  %v6013_v28 = vmul.f32 %v9849_v46, %v12114_v1 }
0x125e   :  { %9870 = vtanh.f32 %v5832_v20  ;;  %v9853_v17 = vpop.eup %9852 }
0x125f   :  { %9872 = vpow2.f32 %v7812_v63  ;;  %v9855_v60 = vpop.eup %9854  ;;  %v6016_v23 = vmul.f32 %v9853_v17, %v12118_v2 }
0x1260   :  { %v9857_v15 = vpop.eup %9856 }
0x1261   :  { %v6014_v1 = vmul.f32 %v9857_v15, %v12121_v9 }
0x1262   :  { %v9859_v12 = vpop.eup %9858 }
0x1263   :  { %v9861_v0 = vpop.eup %9860  ;;  %v6019_v49 = vmul.f32 %v9859_v12, %v9843_v61 }
0x1264   :  { %v9863_v59 = vpop.eup %9862  ;;  %v6017_v38 = vmul.f32 %v9861_v0, %v9847_v10 }
0x1265   :  { %v9865_v29 = vpop.eup %9864  ;;  %v12218_v27 = vadd.f32 %v6019_v49, %v6015_v19  ;;  %v6003_v37 = vadd.f32 1.0, %v9863_v59 }
0x1266   :  { %v9867_v43 = vpop.eup %9866  ;;  %v12220_v41 = vadd.f32 %v6017_v38, %v6013_v28  ;;  %v6001_v50 = vadd.f32 1.0, %v9865_v29 }
0x1267   :  { %v9869_v36 = vpop.eup %9868  ;;  %9874 = vtanh.f32 %v12218_v27  ;;  %v6020_v20 = vmul.f32 %v9867_v43, %v9851_v48  ;;  %v6550_v43 = vld [vmem:[%s12487_s1 + $0x28] sm:$0xff] }
0x1268   :  { %v9871_v25 = vpop.eup %9870  ;;  %9876 = vrcp.f32 %v6003_v37  ;;  %v6004_v61 = vadd.f32 1.0, %v9869_v36 }
0x1269   :  { %v9873_v45 = vpop.eup %9872  ;;  %9878 = vtanh.f32 %v12220_v41  ;;  %v12226_v63 = vadd.f32 %v6020_v20, %v6016_v23  ;;  %v6018_v10 = vmul.f32 %v9871_v25, %v9855_v60 }
0x126a   :  { %9880 = vrcp.f32 %v6001_v50  ;;  %v6002_v46 = vadd.f32 1.0, %v9873_v45 }
0x126b   :  { %9882 = vtanh.f32 %v12226_v63  ;;  %v12229_v12 = vadd.f32 %v6018_v10, %v6014_v1 }
0x126c   :  { %9884 = vrcp.f32 %v6004_v61 }
0x126d   :  { %9886 = vtanh.f32 %v12229_v12 }
0x126e   :  { %9888 = vrcp.f32 %v6002_v46 }
0x1271   :  { %v9875_v2 = vpop.eup %9874 }
0x1272   :  { %v9877_v48 = vpop.eup %9876 }
0x1273   :  { %v9879_v17 = vpop.eup %9878  ;;  %v12232_v49 = vmul.f32 %v9877_v48, %v9875_v2 }
0x1274   :  { %v9881_v0 = vpop.eup %9880 }
0x1275   :  { %v9883_v9 = vpop.eup %9882  ;;  %v6029_v28 = vmul.f32 %v9881_v0, %v9879_v17 }
0x1276   :  { %v9885_v15 = vpop.eup %9884 }
0x1277   :  { %v9887_v19 = vpop.eup %9886  ;;  %v12234_v60 = vmul.f32 %v9885_v15, %v9883_v9 }
0x1278   :  { %v9889_v59 = vpop.eup %9888 }
0x1279   :  { %v12236_v38 = vmul.f32 %v9889_v59, %v9887_v19  ;;  %v6034_v29 = vpack.c.bf16 %v12234_v60, %v12232_v49 }
0x127b   :  { %v6033_v37 = vpack.c.bf16 %v12236_v38, %v6029_v28 }
0x127d   :  { %8838 = vmatprep.mubr.msk.bf16.mxu1 %vm3284_vm2, %v6033_v37  ;;  %8856 = vmatprep.mubr.msk.bf16.mxu0 %vm3284_vm2, %v6033_v37 }
0x127e   :  { %8839 = vmatmul.mubr.msk.bf16.vlgmr.msra.gmra.mrb[80].mxu1 %vm3284_vm2, %v6034_v29  ;;  %8857 = vmatmul.mubr.msk.bf16.vlgmr.msra.gmra.mrb[84].mxu0 %vm3284_vm2, %v6034_v29 }
0x127f   :  { %8843 = vmatpush3.bf16.msra.mxu1 %v11970_v4  ;;  %8846 = vmatprep.mubr.msk.bf16.mxu1 %vm348_vm1, %v11561_v13  ;;  %v6551_v4 = vld [vmem:[%s12486_s0] sm:$0xff] }
0x1280   :  { %8861 = vmatpush3.bf16.msra.mxu0 %v11972_v40  ;;  %8864 = vmatprep.mubr.msk.bf16.mxu0 %vm348_vm1, %v11561_v13  ;;  %v6552_v40 = vld [vmem:[%s12486_s0 + $0x8] sm:$0xff] }
0x1281   :  { %8844 = vmatprep.subr.bf16.mxu1 %v11978_v42  ;;  %8862 = vmatprep.subr.bf16.mxu0 %v11980_v5 }
0x1283   :  { %8845 = vmatpush3.bf16.msra.mxu1 %v11978_v42  ;;  %v12287_v42 = vpack.c.bf16 %v6552_v40, %v6551_v4 }
0x1284   :  { %8863 = vmatpush3.bf16.msra.mxu0 %v11980_v5  ;;  %8868 = vmatprep.subr.bf16.mxu1 %v11994_v53  ;;  %v6553_v5 = vld [vmem:[%s12486_s0 + $0x10] sm:$0xff] }
0x1285   :  { %8886 = vmatprep.subr.bf16.mxu0 %v11998_v55 }
0x128a   :  { %8847 = vmatmul.mubr.msk.bf16.vlgmr.msra.gmra.mrb[80].mxu1 %vm348_vm1, %v11595_v22  ;;  %8865 = vmatmul.mubr.msk.bf16.vlgmr.msra.gmra.mrb[84].mxu0 %vm348_vm1, %v11595_v22 }
0x128b   :  { %8869 = vmatpush3.bf16.msra.mxu1 %v11994_v53  ;;  %8887 = vmatpush3.bf16.msra.mxu0 %v11998_v55  ;;  %v6554_v53 = vld [vmem:[%s12486_s0 + $0x18] sm:$0xff] }
0x128c   :  { %8874 = vmatprep.mubr.msk.bf16.mxu1 %vm3284_vm2, %v6033_v37  ;;  %8892 = vmatprep.mubr.msk.bf16.mxu0 %vm3284_vm2, %v6033_v37  ;;  %v12295_v55 = vpack.c.bf16 %v6554_v53, %v6553_v5 }
0x128d   :  { %8870 = vmatprep.subr.bf16.mxu1 %v12008_v32  ;;  %8888 = vmatprep.subr.bf16.mxu0 %v12010_v57 }
0x128f   :  { %8871 = vmatpush3.bf16.msra.mxu1 %v12008_v32  ;;  %8889 = vmatpush3.bf16.msra.mxu0 %v12010_v57  ;;  %v6556_v32 = vld [vmem:[%s12486_s0 + $0x28] sm:$0xff] }
0x1290   :  { %8872 = vmatprep.subr.bf16.mxu1 %v12024_v8  ;;  %8890 = vmatprep.subr.bf16.mxu0 %v12026_v31 }
0x1293   :  { %8873 = vmatpush3.bf16.msra.mxu1 %v12024_v8  ;;  %8891 = vmatpush3.bf16.msra.mxu0 %v12026_v31  ;;  %v6545_v8 = vld [vmem:[%s12487_s1] sm:$0xff]  ;;  %v6546_v31 = vld [vmem:[%s12487_s1 + $0x8] sm:$0xff] }
0x1294   :  { %8878 = vmatprep.subr.bf16.mxu1 %v12034_v3  ;;  %8896 = vmatprep.subr.bf16.mxu0 %v12036_v62 }
0x1296   :  { %8875 = vmatmul.mubr.msk.bf16.vlgmr.msra.gmra.mrb[84].mxu1 %vm3284_vm2, %v6034_v29  ;;  %8893 = vmatmul.mubr.msk.bf16.vlgmr.msra.gmra.mrb[88].mxu0 %vm3284_vm2, %v6034_v29 }
0x1297   :  { %8879 = vmatpush3.bf16.msra.mxu1 %v12034_v3  ;;  %8882 = vmatprep.mubr.msk.bf16.mxu1 %vm348_vm1, %v11561_v13  ;;  %v6547_v3 = vld [vmem:[%s12487_s1 + $0x10] sm:$0xff] }
0x1298   :  { %8897 = vmatpush3.bf16.msra.mxu0 %v12036_v62  ;;  %8900 = vmatprep.mubr.msk.bf16.mxu0 %vm348_vm1, %v11561_v13  ;;  %v6555_v13 = vld [vmem:[%s12486_s0 + $0x20] sm:$0xff]  ;;  %v6548_v62 = vld [vmem:[%s12487_s1 + $0x18] sm:$0xff] }
0x1299   :  { %8880 = vmatprep.subr.bf16.mxu1 %v12042_v52  ;;  %8898 = vmatprep.subr.bf16.mxu0 %v12044_v47  ;;  %v12306_v57 = vpack.c.bf16 %v6556_v32, %v6555_v13 }
0x129b   :  { %8881 = vmatpush3.bf16.msra.mxu1 %v12042_v52  ;;  %v12322_v52 = vpack.c.bf16 %v6548_v62, %v6547_v3 }
0x129c   :  { %8899 = vmatpush3.bf16.msra.mxu0 %v12044_v47  ;;  %9093 = vmatprep.subr.bf16.mxu1 %v12287_v42  ;;  %v6549_v47 = vld [vmem:[%s12487_s1 + $0x20] sm:$0xff] }
0x129d   :  { %9117 = vmatprep.subr.bf16.mxu0 %v12287_v42  ;;  %v12334_v50 = vpack.c.bf16 %v6550_v43, %v6549_v47 }
0x12a2   :  { %8883 = vmatmul.mubr.msk.bf16.vlgmr.msra.gmra.mrb[84].mxu1 %vm348_vm1, %v11595_v22  ;;  %8901 = vmatmul.mubr.msk.bf16.vlgmr.msra.gmra.mrb[88].mxu0 %vm348_vm1, %v11595_v22  ;;  %v12314_v22 = vpack.c.bf16 %v6546_v31, %v6545_v8 }
0x12a3   :  { %9119 = vmatpush3.bf16.msra.mxu0 %v12287_v42  ;;  %8952 = vmatprep.mubr.msk.f32.mxu0 %vm3284_vm2, %v6029_v28 }
0x12a4   :  { %9121 = vmatprep.subr.bf16.mxu0 %v12295_v55  ;;  %9095 = vmatpush3.bf16.msra.mxu1 %v12287_v42 }
0x12a5   :  { %9097 = vmatprep.subr.bf16.mxu1 %v12295_v55 }
0x12a7   :  { %9123 = vmatpush3.bf16.msra.mxu0 %v12295_v55 }
0x12a8   :  { %9125 = vmatprep.subr.bf16.mxu0 %v12306_v57  ;;  %9099 = vmatpush3.bf16.msra.mxu1 %v12295_v55 }
0x12a9   :  { %9101 = vmatprep.subr.bf16.mxu1 %v12306_v57 }
0x12ab   :  { %9127 = vmatpush3.bf16.msra.mxu0 %v12306_v57 }
0x12ac   :  { %9129 = vmatprep.subr.bf16.mxu0 %v12314_v22  ;;  %9103 = vmatpush3.bf16.msra.mxu1 %v12306_v57 }
0x12ad   :  { %9105 = vmatprep.subr.bf16.mxu1 %v12314_v22 }
0x12ae   :  { %8953 = vmatmul.mubr.msk.f32.vlgmr.msra.gmra.mrb[92].mxu0 %vm3284_vm2, %v12236_v38 }
0x12af   :  { %8955 = vmatprep.mubr.msk.f32.mxu0 %vm3284_vm2, %v12232_v49  ;;  %9131 = vmatpush3.bf16.msra.mxu0 %v12314_v22 }
0x12b0   :  { %9133 = vmatprep.subr.bf16.mxu0 %v12322_v52 }
0x12b2   :  { %8956 = vmatmul.mubr.msk.f32.gmra.mrb[94].mxu0 %vm3284_vm2, %v12234_v60 }
0x12b3   :  { %9135 = vmatpush3.bf16.msra.mxu0 %v12322_v52  ;;  %8970 = vmatprep.mubr.msk.f32.mxu0 %vm3284_vm2, %v11870_v11 }
0x12b4   :  { %9137 = vmatprep.subr.bf16.mxu0 %v12334_v50 }
0x12b7   :  { %9139 = vmatpush3.bf16.msra.mxu0 %v12334_v50 }
0x12ba   :  { %8971 = vmatmul.mubr.msk.f32.vlgmr.msra.gmra.mrb[92].mxu0 %vm3284_vm2, %v11872_v39 }
0x12bb   :  { %8973 = vmatprep.mubr.msk.f32.mxu0 %vm3284_vm2, %v11874_v56 }
0x12be   :  { %8974 = vmatmul.mubr.msk.f32.gmra.mrb[94].mxu0 %vm3284_vm2, %v11868_v35 }
0x135d   :  { %v8848_v36 = vpop.f32.mrb[80].mxu1  ;;  %v8866_v23 = vpop.f32.mrb[84].mxu0 }
0x135e   :  { %v6141_v20 = vadd.f32 %v8848_v36, %v12080_v24  ;;  %v6243_v25 = vadd.f32 %v8866_v23, %v12082_v6  ;;  %v6124_v11 = vpop.f32.mrb[81].mxu1  ;;  %v6226_v61 = vpop.f32.mrb[85].mxu0 }
0x135f   :  { %v6139_v45 = vadd.f32 %v12080_v24, %v6124_v11  ;;  %v6241_v1 = vadd.f32 %v12082_v6, %v6226_v61  ;;  %v8849_v10 = vpop.f32.mrb[82].mxu1  ;;  %v8867_v39 = vpop.f32.mrb[86].mxu0 }
0x1360   :  { %v7833_v46 = vmul.f32 -1.442695, %v6141_v20  ;;  %v7837_v2 = vmul.f32 -1.442695, %v6243_v25  ;;  %v6142_v56 = vadd.f32 %v8849_v10, %v12080_v24  ;;  %v6244_v35 = vadd.f32 %v8867_v39, %v12082_v6  ;;  %v6127_v48 = vpop.f32.mrb[83].mxu1  ;;  %v6229_v17 = vpop.f32.mrb[87].mxu0 }
0x1361   :  { %v7831_v0 = vmul.f32 -1.442695, %v6139_v45  ;;  %v7835_v9 = vmul.f32 -1.442695, %v6241_v1  ;;  %v6140_v15 = vadd.f32 %v12080_v24, %v6127_v48  ;;  %v6242_v19 = vadd.f32 %v12082_v6, %v6229_v17 }
0x1362   :  { %9890 = vpow2.f32 %v7833_v46  ;;  %v7834_v49 = vmul.f32 -1.442695, %v6142_v56  ;;  %v7838_v60 = vmul.f32 -1.442695, %v6244_v35 }
0x1363   :  { %9892 = vpow2.f32 %v7837_v2  ;;  %v7832_v59 = vmul.f32 -1.442695, %v6140_v15  ;;  %v7836_v28 = vmul.f32 -1.442695, %v6242_v19 }
0x1364   :  { %9894 = vpow2.f32 %v7831_v0 }
0x1365   :  { %9896 = vpow2.f32 %v7835_v9 }
0x1366   :  { %9898 = vpow2.f32 %v7834_v49 }
0x1367   :  { %9900 = vpow2.f32 %v7838_v60 }
0x1368   :  { %9902 = vpow2.f32 %v7832_v59 }
0x1369   :  { %9904 = vpow2.f32 %v7836_v28 }
0x136c   :  { %v9891_v38 = vpop.eup %9890 }
0x136d   :  { %v9893_v29 = vpop.eup %9892  ;;  %v6463_v37 = vadd.f32 1.0, %v9891_v38 }
0x136e   :  { %v9895_v4 = vpop.eup %9894  ;;  %v6487_v40 = vadd.f32 1.0, %v9893_v29 }
0x136f   :  { %v9897_v24 = vpop.eup %9896  ;;  %v6461_v5 = vadd.f32 1.0, %v9895_v4  ;;  %9906 = vrcp.f32 %v6463_v37 }
0x1370   :  { %v9899_v6 = vpop.eup %9898  ;;  %v6485_v53 = vadd.f32 1.0, %v9897_v24  ;;  %9908 = vrcp.f32 %v6487_v40 }
0x1371   :  { %v9901_v13 = vpop.eup %9900  ;;  %v6464_v32 = vadd.f32 1.0, %v9899_v6  ;;  %9910 = vrcp.f32 %v6461_v5 }
0x1372   :  { %v9903_v8 = vpop.eup %9902  ;;  %v6488_v31 = vadd.f32 1.0, %v9901_v13  ;;  %9912 = vrcp.f32 %v6485_v53 }
0x1373   :  { %v9905_v3 = vpop.eup %9904  ;;  %v6462_v62 = vadd.f32 1.0, %v9903_v8  ;;  %9914 = vrcp.f32 %v6464_v32 }
0x1374   :  { %v6486_v47 = vadd.f32 1.0, %v9905_v3  ;;  %9916 = vrcp.f32 %v6488_v31 }
0x1375   :  { %v8884_v43 = vpop.f32.mrb[84].mxu1  ;;  %v8902_v36 = vpop.f32.mrb[88].mxu0  ;;  %9918 = vrcp.f32 %v6462_v62 }
0x1376   :  { %v6345_v23 = vadd.f32 %v8884_v43, %v12100_v26  ;;  %v6447_v20 = vadd.f32 %v8902_v36, %v12102_v7  ;;  %v6328_v25 = vpop.f32.mrb[85].mxu1  ;;  %v6430_v11 = vpop.f32.mrb[89].mxu0  ;;  %9920 = vrcp.f32 %v6486_v47 }
0x1377   :  { %v6343_v61 = vadd.f32 %v12100_v26, %v6328_v25  ;;  %v6445_v45 = vadd.f32 %v12102_v7, %v6430_v11  ;;  %v8885_v1 = vpop.f32.mrb[86].mxu1  ;;  %v8903_v10 = vpop.f32.mrb[90].mxu0 }
0x1378   :  { %9922 = vtanh.f32 %v6345_v23  ;;  %v7841_v39 = vmul.f32 -1.442695, %v6447_v20  ;;  %v6346_v46 = vadd.f32 %v8885_v1, %v12100_v26  ;;  %v6448_v2 = vadd.f32 %v8903_v10, %v12102_v7  ;;  %v6331_v56 = vpop.f32.mrb[87].mxu1  ;;  %v6433_v35 = vpop.f32.mrb[91].mxu0 }
0x1379   :  { %9924 = vtanh.f32 %v6343_v61  ;;  %v7839_v48 = vmul.f32 -1.442695, %v6445_v45  ;;  %v6446_v17 = vadd.f32 %v12102_v7, %v6433_v35  ;;  %v9907_v0 = vpop.eup %9906  ;;  %v6344_v15 = vadd.f32 %v12100_v26, %v6331_v56 }
0x137a   :  { %9926 = vpow2.f32 %v7841_v39  ;;  %v7842_v9 = vmul.f32 -1.442695, %v6448_v2  ;;  %v9909_v19 = vpop.eup %9908 }
0x137b   :  { %9928 = vpow2.f32 %v7839_v48  ;;  %v7840_v49 = vmul.f32 -1.442695, %v6446_v17  ;;  %v9911_v60 = vpop.eup %9910  ;;  %v6527_v40 = vmul.f32 %v9909_v19, %v12218_v27 }
0x137c   :  { %9930 = vtanh.f32 %v6346_v46  ;;  %v9913_v59 = vpop.eup %9912 }
0x137d   :  { %9932 = vpow2.f32 %v7842_v9  ;;  %v9915_v28 = vpop.eup %9914  ;;  %v6525_v26 = vmul.f32 %v9913_v59, %v12220_v41 }
0x137e   :  { %9934 = vtanh.f32 %v6344_v15  ;;  %v9917_v38 = vpop.eup %9916 }
0x137f   :  { %9936 = vpow2.f32 %v7840_v49  ;;  %v9919_v29 = vpop.eup %9918  ;;  %v6528_v47 = vmul.f32 %v9917_v38, %v12226_v63 }
0x1380   :  { %v9921_v37 = vpop.eup %9920 }
0x1381   :  { %v6526_v20 = vmul.f32 %v9921_v37, %v12229_v12 }
0x1382   :  { %v9923_v4 = vpop.eup %9922 }
0x1383   :  { %v9925_v7 = vpop.eup %9924  ;;  %v6531_v24 = vmul.f32 %v9923_v4, %v9907_v0 }
0x1384   :  { %v9927_v5 = vpop.eup %9926  ;;  %v6529_v6 = vmul.f32 %v9925_v7, %v9911_v60 }
0x1385   :  { %v9929_v53 = vpop.eup %9928  ;;  %v6535_v13 = vadd.f32 %v6531_v24, %v6527_v40  ;;  %v6515_v32 = vadd.f32 1.0, %v9927_v5 }
0x1386   :  { %v9931_v8 = vpop.eup %9930  ;;  %v6533_v31 = vadd.f32 %v6529_v6, %v6525_v26  ;;  %v6513_v3 = vadd.f32 1.0, %v9929_v53 }
0x1387   :  { %v9933_v62 = vpop.eup %9932  ;;  %9938 = vtanh.f32 %v6535_v13  ;;  %v6532_v43 = vmul.f32 %v9931_v8, %v9915_v28 }
0x1388   :  { %v9935_v36 = vpop.eup %9934  ;;  %9940 = vrcp.f32 %v6515_v32  ;;  %v6516_v23 = vadd.f32 1.0, %v9933_v62 }
0x1389   :  { %v9937_v27 = vpop.eup %9936  ;;  %9942 = vtanh.f32 %v6533_v31  ;;  %v6536_v41 = vadd.f32 %v6532_v43, %v6528_v47  ;;  %v6530_v25 = vmul.f32 %v9935_v36, %v9919_v29 }
0x138a   :  { %9944 = vrcp.f32 %v6513_v3  ;;  %v6514_v11 = vadd.f32 1.0, %v9937_v27 }
0x138b   :  { %9946 = vtanh.f32 %v6536_v41  ;;  %v6534_v61 = vadd.f32 %v6530_v25, %v6526_v20 }
0x138c   :  { %9948 = vrcp.f32 %v6516_v23 }
0x138d   :  { %9950 = vtanh.f32 %v6534_v61  ;;  %v8972_v45 = vpop.f32.mrb[92].mxu0 }
0x138e   :  { %9952 = vrcp.f32 %v6514_v11  ;;  %v6937_v63 = vpop.f32.mrb[93].mxu0 }
0x1391   :  { %v9939_v1 = vpop.eup %9938  ;;  %v8975_v10 = vpop.f32.mrb[94].mxu0 }
0x1392   :  { %v9941_v39 = vpop.eup %9940  ;;  %v6947_v46 = vpop.f32.mrb[95].mxu0 }
0x1393   :  { %v9943_v2 = vpop.eup %9942  ;;  %v6543_v56 = vmul.f32 %v9941_v39, %v9939_v1 }
0x1394   :  { %v9945_v35 = vpop.eup %9944 }
0x1395   :  { %v9947_v12 = vpop.eup %9946  ;;  %v6541_v48 = vmul.f32 %v9945_v35, %v9943_v2 }
0x1396   :  { %v9949_v17 = vpop.eup %9948 }
0x1397   :  { %v9951_v0 = vpop.eup %9950  ;;  %8916 = vmatprep.mubr.msk.f32.mxu1 %vm3284_vm2, %v6541_v48  ;;  %v6544_v9 = vmul.f32 %v9949_v17, %v9947_v12 }
0x1398   :  { %v9953_v15 = vpop.eup %9952 }
0x1399   :  { %v6542_v19 = vmul.f32 %v9953_v15, %v9951_v0 }
0x139b   :  { %8917 = vmatmul.mubr.msk.f32.vlgmr.msra.gmra.mrb[88].mxu1 %vm3284_vm2, %v6542_v19 }
0x139c   :  { %9107 = vmatpush3.bf16.msra.mxu1 %v12314_v22  ;;  %8919 = vmatprep.mubr.msk.f32.mxu1 %vm3284_vm2, %v6543_v56 }
0x139d   :  { %9109 = vmatprep.subr.bf16.mxu1 %v12322_v52 }
0x139f   :  { %8920 = vmatmul.mubr.msk.f32.gmra.mrb[90].mxu1 %vm3284_vm2, %v6544_v9 }
0x13a0   :  { %9111 = vmatpush3.bf16.msra.mxu1 %v12322_v52  ;;  %8934 = vmatprep.mubr.msk.f32.mxu1 %vm3284_vm2, %v11746_v34  ;;  %v7851_v34 = vld [vmem:[#allocation5] ss:$0 sm:$0xff] }
0x13a1   :  { %9113 = vmatprep.subr.bf16.mxu1 %v12334_v50 }
0x13a4   :  { %9115 = vmatpush3.bf16.msra.mxu1 %v12334_v50 }
0x13a5   :  { %9141 = vmatprep.subr.bf16.mxu1 %v12287_v42 }
0x13a7   :  { %8935 = vmatmul.mubr.msk.f32.vlgmr.msra.gmra.mrb[88].mxu1 %vm3284_vm2, %v11748_v21 }
0x13a8   :  { %8937 = vmatprep.mubr.msk.f32.mxu1 %vm3284_vm2, %v11750_v14  ;;  %9143 = vmatpush3.bf16.msra.mxu1 %v12287_v42  ;;  %v6957_v14 = vadd.f32 %v8972_v45, %v7851_v34 }
0x13a9   :  { %9145 = vmatprep.subr.bf16.mxu1 %v12295_v55 }
0x13ab   :  { %8938 = vmatmul.mubr.msk.f32.gmra.mrb[90].mxu1 %vm3284_vm2, %v11744_v18  ;;  %v12488_v18 = vld [vmem:[#allocation44_spill] sm:$0xff] }
0x13ac   :  { %9147 = vmatpush3.bf16.msra.mxu1 %v12295_v55  ;;  %8988 = vmatprep.mubr.msk.f32.mxu1 %vm3284_vm2, %v12126_v30 }
0x13ad   :  { %9149 = vmatprep.subr.bf16.mxu1 %v12306_v57 }
0x13b0   :  { %9151 = vmatpush3.bf16.msra.mxu1 %v12306_v57  ;;  %v6959_v57 = vadd.f32 %v8975_v10, %v7851_v34 }
0x13b1   :  { %9153 = vmatprep.subr.bf16.mxu1 %v12314_v22 }
0x13b3   :  { %8989 = vmatmul.mubr.msk.f32.vlgmr.msra.gmra.mrb[92].mxu1 %vm3284_vm2, %v12128_v54  ;;  %v6956_v54 = vadd.f32 %v7851_v34, %v6937_v63 }
0x13b4   :  { %8991 = vmatprep.mubr.msk.f32.mxu1 %vm3284_vm2, %v12130_v16  ;;  %9155 = vmatpush3.bf16.msra.mxu1 %v12314_v22 }
0x13b5   :  { %9157 = vmatprep.subr.bf16.mxu1 %v12322_v52 }
0x13b7   :  { %8992 = vmatmul.mubr.msk.f32.gmra.mrb[94].mxu1 %vm3284_vm2, %v12124_v51 }
0x13b8   :  { %9159 = vmatpush3.bf16.msra.mxu1 %v12322_v52  ;;  %9006 = vmatprep.mubr.msk.f32.mxu1 %vm3284_vm2, %v12094_v44 }
0x13b9   :  { %9161 = vmatprep.subr.bf16.mxu1 %v12334_v50 }
0x13bc   :  { %9163 = vmatpush3.bf16.msra.mxu1 %v12334_v50 }
0x13bf   :  { %9007 = vmatmul.mubr.msk.f32.vlgmr.msra.gmra.mrb[92].mxu1 %vm3284_vm2, %v12098_v58  ;;  %v6958_v58 = vadd.f32 %v7851_v34, %v6947_v46 }
0x13c0   :  { %9009 = vmatprep.mubr.msk.f32.mxu1 %vm3284_vm2, %v12092_v33 }
0x13c3   :  { %9010 = vmatmul.mubr.msk.f32.gmra.mrb[94].mxu1 %vm3284_vm2, %v12488_v18 }
0x147a   :  { %v8936_v21 = vpop.f32.mrb[88].mxu1 }
0x147b   :  { %v6759_v51 = vadd.f32 %v8936_v21, %v7851_v34  ;;  %v6733_v30 = vpop.f32.mrb[89].mxu1 }
0x147c   :  { %v6758_v44 = vadd.f32 %v7851_v34, %v6733_v30 }
0x147d   :  { %v7159_v16 = vmax.f32 %v6759_v51, %v6957_v14 }
0x147e   :  { %v7158_v42 = vmax.f32 %v6758_v44, %v6956_v54  ;;  %v8939_v55 = vpop.f32.mrb[90].mxu1 }
0x147f   :  { %v6761_v22 = vadd.f32 %v8939_v55, %v7851_v34  ;;  %v6743_v52 = vpop.f32.mrb[91].mxu1 }
0x1480   :  { %v6760_v50 = vadd.f32 %v7851_v34, %v6743_v52 }
0x1481   :  { %v7161_v49 = vmax.f32 %v6761_v22, %v6959_v57 }
0x1482   :  { %v7160_v33 = vmax.f32 %v6760_v50, %v6958_v58 }
0x1492   :  { %v9008_v60 = vpop.f32.mrb[92].mxu1 }
0x1493   :  { %v7155_v59 = vadd.f32 %v9008_v60, %v7851_v34  ;;  %v7135_v28 = vpop.f32.mrb[93].mxu1 }
0x1494   :  { %v7154_v38 = vadd.f32 %v7851_v34, %v7135_v28 }
0x1495   :  { %v7163_v29 = vmax.f32 %v7159_v16, %v7155_v59 }
0x1496   :  { %v7162_v37 = vmax.f32 %v7158_v42, %v7154_v38  ;;  %v9011_v4 = vpop.f32.mrb[94].mxu1 }
0x1497   :  { %v7167_v7 = vsub.f32 %v6759_v51, %v7163_v29  ;;  %v7179_v40 = vsub.f32 %v6957_v14, %v7163_v29  ;;  %v7191_v24 = vsub.f32 %v7155_v59, %v7163_v29  ;;  %v7157_v5 = vadd.f32 %v9011_v4, %v7851_v34  ;;  %v7145_v26 = vpop.f32.mrb[95].mxu1 }
0x1498   :  { %v7166_v6 = vsub.f32 %v6758_v44, %v7162_v37  ;;  %v7178_v53 = vsub.f32 %v6956_v54, %v7162_v37  ;;  %v7190_v13 = vsub.f32 %v7154_v38, %v7162_v37  ;;  %v7156_v32 = vadd.f32 %v7851_v34, %v7145_v26  ;;  %v9990_v37 = vld [vmem:[#allocation2] sm:$0xff]  ;;  %v9992_v26 = vld [vmem:[#allocation3 + $0x8] sm:$0xff] }
0x1499   :  { %v7172_v8 = vmul.f32 1.442695, %v7167_v7  ;;  %v7184_v31 = vmul.f32 1.442695, %v7179_v40  ;;  %v7196_v3 = vmul.f32 1.442695, %v7191_v24  ;;  %v7165_v62 = vmax.f32 %v7161_v49, %v7157_v5 }
0x149a   :  { %v7170_v47 = vmul.f32 1.442695, %v7166_v6  ;;  %v7182_v43 = vmul.f32 1.442695, %v7178_v53  ;;  %v7194_v36 = vmul.f32 1.442695, %v7190_v13  ;;  %v7164_v23 = vmax.f32 %v7160_v33, %v7156_v32 }
0x149b   :  { %9954 = vpow2.f32 %v7172_v8  ;;  %v7169_v27 = vsub.f32 %v6761_v22, %v7165_v62  ;;  %v7181_v20 = vsub.f32 %v6959_v57, %v7165_v62  ;;  %v7193_v41 = vsub.f32 %v7157_v5, %v7165_v62  ;;  %v9991_v40 = vld [vmem:[#allocation3] sm:$0xff]  ;;  %v9993_v53 = vld [vmem:[#allocation2 + $0x8] sm:$0xff] }
0x149c   :  { %9956 = vpow2.f32 %v7184_v31  ;;  %v7168_v25 = vsub.f32 %v6760_v50, %v7164_v23  ;;  %v7180_v11 = vsub.f32 %v6958_v58, %v7164_v23  ;;  %v7192_v61 = vsub.f32 %v7156_v32, %v7164_v23  ;;  %v9994_v8 = vld [vmem:[#allocation4 + $0x8] sm:$0xff]  ;;  %v9995_v62 = vld [vmem:[#allocation4] sm:$0xff] }
0x149d   :  { %9958 = vpow2.f32 %v7196_v3  ;;  %v7176_v45 = vmul.f32 1.442695, %v7169_v27  ;;  %v7188_v63 = vmul.f32 1.442695, %v7181_v20  ;;  %v7200_v1 = vmul.f32 1.442695, %v7193_v41 }
0x149e   :  { %9960 = vpow2.f32 %v7170_v47  ;;  %v7174_v10 = vmul.f32 1.442695, %v7168_v25  ;;  %v7186_v39 = vmul.f32 1.442695, %v7180_v11  ;;  %v7198_v46 = vmul.f32 1.442695, %v7192_v61 }
0x149f   :  { %9962 = vpow2.f32 %v7182_v43  ;;  %v10333_v58 = vmov 0.0   ;;  %v9996_v43 = vld [vmem:[#allocation3 + $0x10] sm:$0xff]  ;;  %v9997_v20 = vld [vmem:[#allocation3 + $0x18] sm:$0xff] }
0x14a0   :  { %9964 = vpow2.f32 %v7194_v36  ;;  %9012 = vmatprep.subr.bf16.mxu0 %v10333_v58  ;;  %9036 = vmatprep.subr.bf16.mxu1 %v10333_v58  ;;  %v9998_v25 = vld [vmem:[#allocation2 + $0x10] sm:$0xff] }
0x14a1   :  { %9966 = vpow2.f32 %v7176_v45  ;;  %9016 = vmatprep.mubr.msk.bf16.mxu0 %vm10334_vm15, %v10333_v58  ;;  %9040 = vmatprep.mubr.msk.bf16.mxu1 %vm10334_vm15, %v10333_v58  ;;  %v9999_v61 = vld [vmem:[#allocation4 + $0x10] sm:$0xff] }
0x14a2   :  { %9968 = vpow2.f32 %v7188_v63 }
0x14a3   :  { %9970 = vpow2.f32 %v7200_v1  ;;  %v10000_v1 = vld [vmem:[#allocation2 + $0x18] sm:$0xff] }
0x14a4   :  { %9972 = vpow2.f32 %v7174_v10 }
0x14a5   :  { %v9955_v2 = vpop.eup %9954  ;;  %9974 = vpow2.f32 %v7186_v39  ;;  %v10001_v39 = vld [vmem:[#allocation4 + $0x18] sm:$0xff] }
0x14a6   :  { %v9957_v56 = vpop.eup %9956  ;;  %7221 = vperm.xlu1 %9376, %v9955_v2   ;;  %9976 = vpow2.f32 %v7198_v46 }
0x14a7   :  { %v9959_v35 = vpop.eup %9958  ;;  %v7203_v12 = vadd.f32 %v9957_v56, %v9955_v2  ;;  %7245 = vperm.xlu0 %9377, %v9957_v56  }
0x14a8   :  { %v9961_v48 = vpop.eup %9960 }
0x14a9   :  { %v9963_v17 = vpop.eup %9962  ;;  %v7207_v0 = vadd.f32 %v9959_v35, %v7203_v12 }
0x14aa   :  { %v9965_v9 = vpop.eup %9964  ;;  %v7202_v15 = vadd.f32 %v9963_v17, %v9961_v48  ;;  %7240 = vperm.xlu1 %9376, %v9963_v17  }
0x14ab   :  { %v9967_v19 = vpop.eup %9966  ;;  %7273 = vperm.xlu0 %9377, %v9959_v35  }
0x14ac   :  { %v9969_v18 = vpop.eup %9968  ;;  %v7206_v34 = vadd.f32 %v9965_v9, %v7202_v15 }
0x14ad   :  { %v9971_v21 = vpop.eup %9970  ;;  %v7205_v14 = vadd.f32 %v9969_v18, %v9967_v19 }
0x14ae   :  { %v9973_v51 = vpop.eup %9972  ;;  %7268 = vperm.xlu1 %9376, %v9965_v9   ;;  %9978 = vrcp.f32 %v7206_v34 }
0x14af   :  { %v9975_v30 = vpop.eup %9974  ;;  %v7209_v54 = vadd.f32 %v9971_v21, %v7205_v14  ;;  %7216 = vperm.xlu0 %9377, %v9961_v48   ;;  %9980 = vrcp.f32 %v7207_v0 }
0x14b0   :  { %v7204_v44 = vadd.f32 %v9975_v30, %v9973_v51  ;;  %v9977_v16 = vpop.eup %9976 }
0x14b2   :  { %v7208_v42 = vadd.f32 %v9977_v16, %v7204_v44  ;;  %7226 = vperm.xlu1 %9376, %v9973_v51   ;;  %v7318_v51 = vld [vmem:[#allocation23] sm:$0x3] }
0x14b3   :  { %7231 = vperm.xlu0 %9377, %v9967_v19  }
0x14b4   :  { %9982 = vrcp.f32 %v7208_v42 }
0x14b5   :  { %9984 = vrcp.f32 %v7209_v54  ;;  %v7366_v54 = vld [vmem:[%s12489_s25 + $0x8] sm:$0xff] }
0x14b6   :  { %7250 = vperm.xlu1 %9376, %v9975_v30   ;;  %v7365_v30 = vld [vmem:[%s12489_s25] sm:$0xff] }
0x14b7   :  { %7255 = vperm.xlu0 %9377, %v9969_v18   ;;  %v7370_v42 = vpack.c.bf16 %v7366_v54, %v7365_v30 }
0x14b8   :  { %v9979_v55 = vpop.eup %9978 }
0x14b9   :  { %v9981_v57 = vpop.eup %9980 }
0x14ba   :  { %7278 = vperm.xlu1 %9376, %v9977_v16   ;;  %v7319_v16 = vpack.c.bf16 %v7318_v51, %v7318_v51 }
0x14bb   :  { %7283 = vperm.xlu0 %9377, %v9971_v21  }
0x14be   :  { %7296 = vperm.xlu1 %9376, %v9979_v55   ;;  %v9983_v22 = vpop.eup %9982  ;;  %v7367_v55 = vld [vmem:[%s12489_s25 + $0x10] sm:$0xff] }
0x14bf   :  { %7301 = vperm.xlu0 %9377, %v9981_v57   ;;  %v9985_v52 = vpop.eup %9984  ;;  %v7368_v57 = vld [vmem:[%s12489_s25 + $0x18] sm:$0xff] }
0x14c2   :  { %7306 = vperm.xlu1 %9376, %v9983_v22   ;;  %v7371_v22 = vpack.c.bf16 %v7368_v57, %v7367_v55 }
0x14c3   :  { %7311 = vperm.xlu0 %9377, %v9985_v52  }
0x1525   :  { %v7222_v50 = vpop.permute.xlu1 %7221 }
0x1526   :  { %v7246_v49 = vpop.permute.xlu0 %7245  ;;  %v7235_v13 = vmul.f32 %v9993_v53, %v7222_v50 }
0x1527   :  { %v7259_v6 = vmul.f32 %v9992_v26, %v7246_v49 }
0x1529   :  { %v7241_v33 = vpop.permute.xlu1 %7240  ;;  %v7263_v27 = vadd.f32 %v7259_v6, %v7235_v13 }
0x152a   :  { %v7274_v60 = vpop.permute.xlu0 %7273  ;;  %v7258_v24 = vmul.f32 %v9991_v40, %v7241_v33 }
0x152b   :  { %v7287_v31 = vmul.f32 %v9994_v8, %v7274_v60  ;;  %v7482_v8 = vld [vmem:[%s10482_s24 + $0x8] sm:$0xff] }
0x152d   :  { %v7269_v59 = vpop.permute.xlu1 %7268  ;;  %v7291_v2 = vadd.f32 %v7287_v31, %v7263_v27 }
0x152e   :  { %v7217_v28 = vpop.permute.xlu0 %7216  ;;  %v7286_v47 = vmul.f32 %v9995_v62, %v7269_v59  ;;  %v7423_v59 = vld [vmem:[%s10472_s29] sm:$0xff]  ;;  %v7484_v62 = vld [vmem:[%s10482_s24 + $0x18] sm:$0xff] }
0x152f   :  { %v7234_v4 = vmul.f32 %v9990_v37, %v7217_v28  ;;  %v7424_v28 = vld [vmem:[%s10472_s29 + $0x8] sm:$0xff]  ;;  %v7426_v37 = vld [vmem:[%s10472_s29 + $0x18] sm:$0xff] }
0x1531   :  { %v7227_v38 = vpop.permute.xlu1 %7226  ;;  %v7262_v32 = vadd.f32 %v7258_v24, %v7234_v4 }
0x1532   :  { %v7232_v29 = vpop.permute.xlu0 %7231  ;;  %v7236_v11 = vmul.f32 %v9998_v25, %v7227_v38  ;;  %v7428_v38 = vpack.c.bf16 %v7424_v28, %v7423_v59 }
0x1533   :  { %v7290_v63 = vadd.f32 %v7286_v47, %v7262_v32  ;;  %v7237_v10 = vmul.f32 %v10000_v1, %v7232_v29  ;;  %v7425_v29 = vld [vmem:[%s10472_s29 + $0x10] sm:$0xff]  ;;  %v7481_v32 = vld [vmem:[%s10482_s24] sm:$0xff]  ;;  %s10335_s29 = smov [#allocation24]  }
0x1534   :  { %v7429_v4 = vpack.c.bf16 %v7426_v37, %v7425_v29  ;;  %v7486_v31 = vpack.c.bf16 %v7482_v8, %v7481_v32  ;;  %s7546_s2 = sshll.u32 %s10335_s29, 4  ;;  %s7547_s2 = int_to_ptr.vmem [resolvable:$true] %s7546_s2 }
0x1535   :  { %v7251_v7 = vpop.permute.xlu1 %7250  ;;  %p10249_p5 = scmp.lt.s32.totalorder %s7547_s2, %s7547_s2 }
0x1536   :  { %v7256_v5 = vpop.permute.xlu0 %7255  ;;  %v7260_v36 = vmul.f32 %v9996_v43, %v7251_v7  ;;  %v7869_v7 = vld [vmem:[%s12490_s28] ss:$0 sm:$0xff]  ;;  %9037 = vmatpush3.bf16.msra.mxu1 %v7486_v31 }
0x1537   :  { %v7261_v41 = vmul.f32 %v9997_v20, %v7256_v5  ;;  %9038 = vmatprep.subr.bf16.mxu1 %v10333_v58  ;;  %v7871_v43 = vld [vmem:[%s10477_s21] ss:$0 sm:$0xff]  ;;  %s10244_s21 = scalar_lea.vmem %s7547_s2, 32 }
0x1538   :  { %v7264_v35 = vadd.f32 %v7260_v36, %v7236_v11  ;;  %p10245_p4 = scmp.ne.s32.totalorder %s7547_s2, %s10244_s21  ;;  %p10250_p6 = scmp.lt.s32.totalorder %s10244_s21, %s10244_s21 }
0x1539   :  { %v7279_v3 = vpop.permute.xlu1 %7278  ;;  %v7265_v17 = vadd.f32 %v7261_v41, %v7237_v10 }
0x153a   :  { %v7284_v23 = vpop.permute.xlu0 %7283  ;;  %v7288_v45 = vmul.f32 %v9999_v61, %v7279_v3  ;;  %v7483_v3 = vld [vmem:[%s10482_s24 + $0x10] sm:$0xff]  ;;  %v7873_v61 = vld [vmem:[%s10487_s7] ss:$0 sm:$0xff]  ;;  %p10251_p7 = por %p10250_p6, %p10249_p5 }
0x153b   :  { %v7289_v46 = vmul.f32 %v10001_v39, %v7284_v23  ;;  %v7487_v47 = vpack.c.bf16 %v7484_v62, %v7483_v3 }
0x153c   :  { %v7292_v9 = vadd.f32 %v7288_v45, %v7264_v35  ;;  %p10252_p8 = pnand %p10251_p7, %p10245_p4 }
0x153d   :  { %v7297_v56 = vpop.permute.xlu1 %7296  ;;  %v7293_v19 = vadd.f32 %v7289_v46, %v7265_v17  ;;  %9039 = vmatpush3.bf16.msra.mxu1 %v7487_v47 }
0x153e   :  { %v7302_v12 = vpop.permute.xlu0 %7301  ;;  %v7314_v48 = vmul.f32 %v7297_v56, %v7290_v63 }
0x153f   :  { %v7315_v0 = vmul.f32 %v7302_v12, %v7291_v2 }
0x1541   :  { %v7320_v15 = vpack.c.bf16 %v7315_v0, %v7314_v48  ;;  %v7307_v18 = vpop.permute.xlu1 %7306 }
0x1542   :  { %v7312_v34 = vpop.permute.xlu0 %7311  ;;  %v7316_v21 = vmul.f32 %v7307_v18, %v7292_v9 }
0x1543   :  { %v7317_v14 = vmul.f32 %v7312_v34, %v7293_v19  ;;  %9013 = vmatpush3.bf16.msra.mxu0 %v7320_v15 }
0x1544   :  { %9014 = vmatprep.subr.bf16.mxu0 %v10333_v58 }
0x1545   :  { %v7321_v44 = vpack.c.bf16 %v7317_v14, %v7316_v21 }
0x1547   :  { %9015 = vmatpush3.bf16.msra.mxu0 %v7321_v44 }
0x1548   :  { %9020 = vmatprep.subr.bf16.mxu0 %v10333_v58 }
0x154a   :  { %9017 = vmatmul.mubr.msk.bf16.vlgmr.msra.gmra.mrb[96].mxu0 %vm348_vm1, %v7319_v16 }
0x154b   :  { %9021 = vmatpush3.bf16.msra.mxu0 %v7370_v42  ;;  %9024 = vmatprep.mubr.msk.bf16.mxu0 %vm10334_vm15, %v10333_v58 }
0x154c   :  { %9022 = vmatprep.subr.bf16.mxu0 %v10333_v58 }
0x154f   :  { %9023 = vmatpush3.bf16.msra.mxu0 %v7371_v22 }
0x1550   :  { %9028 = vmatprep.subr.bf16.mxu0 %v10333_v58 }
0x161d   :  { %v7359_v52 = vpop.f32.mrb[96].mxu0 }
0x161e   :  { %v7369_v50 = vpack.c.bf16 %v7359_v52, %v7359_v52  ;;  %v9018_v49 = vpop.f32.mrb[97].mxu0 }
0x161f   :  { %v7362_v33 = vpop.f32.mrb[98].mxu0 }
0x1620   :  { %v9019_v60 = vpop.f32.mrb[99].mxu0  ;;  %9025 = vmatmul.mubr.msk.bf16.vlgmr.msra.gmra.mrb[100].mxu0 %vm348_vm1, %v7369_v50 }
0x1621   :  { %9032 = vmatprep.mubr.msk.bf16.mxu0 %vm10334_vm15, %v10333_v58  ;;  %9029 = vmatpush3.bf16.msra.mxu0 %v7428_v38 }
0x1622   :  { %9030 = vmatprep.subr.bf16.mxu0 %v10333_v58 }
0x1625   :  { %9031 = vmatpush3.bf16.msra.mxu0 %v7429_v4 }
0x16f3   :  { %v7416_v40 = vpop.f32.mrb[100].mxu0 }
0x16f4   :  { %v7417_v24 = vadd.f32 %v7869_v7, %v7416_v40  ;;  %v9026_v5 = vpop.f32.mrb[101].mxu0 }
0x16f5   :  { %v7419_v26 = vpop.f32.mrb[102].mxu0 }
0x16f6   :  { %v7422_v6 = vmax.f32 %v7417_v24, 0.0  ;;  %v9027_v53 = vpop.f32.mrb[103].mxu0 }
0x16f8   :  { %v7427_v13 = vpack.c.bf16 %v7422_v6, %v7422_v6 }
0x16fa   :  { %9033 = vmatmul.mubr.msk.bf16.vlgmr.msra.gmra.mrb[104].mxu0 %vm348_vm1, %v7427_v13 }
0x17cd   :  { %v7474_v36 = vpop.f32.mrb[104].mxu0 }
0x17ce   :  { %v7475_v23 = vadd.f32 %v7871_v43, %v7474_v36  ;;  %v9034_v27 = vpop.f32.mrb[105].mxu0 }
0x17cf   :  { %v7477_v20 = vpop.f32.mrb[106].mxu0 }
0x17d0   :  { %v7480_v41 = vmax.f32 %v7475_v23, 0.0  ;;  %v9035_v25 = vpop.f32.mrb[107].mxu0 }
0x17d2   :  { %v7485_v11 = vpack.c.bf16 %v7480_v41, %v7480_v41 }
0x17d4   :  { %9041 = vmatmul.mubr.msk.bf16.vlgmr.msra.gmra.mrb[96].mxu1 %vm348_vm1, %v7485_v11 }
0x18a7   :  { %v7532_v45 = vpop.f32.mrb[96].mxu1 }
0x18a8   :  { %v7533_v63 = vadd.f32 %v7873_v61, %v7532_v45  ;;  %v9042_v1 = vpop.f32.mrb[97].mxu1 }
0x18a9   :  { %v7535_v58 = vpop.f32.mrb[98].mxu1 }
0x18aa   :  { %v9043_v10 = vpop.f32.mrb[99].mxu1  ;;  %7539 = vst.msk [vmem:[#allocation24] sm:$0x3] %vm7538_vm9, %v7533_v63 }
0x18ab   :  { %10255 = shalt.err (!%p10252_p8)
}
0x18ac   :  { %s10256_s24 = scalar_lea.hbm %s10492_s16, 32 }
0x18ad   :  { %p10257_p9 = scmp.ne.s32.totalorder %s10492_s16, %s10256_s24  ;;  %p10260_p10 = scmp.lt.u32.totalorder %s10256_s24, %s10492_s16 }
0x18af   :  { %p10262_p11 = pnand %p10260_p10, %p10257_p9 }
0x18b1   :  { %10265 = shalt.err (!%p10262_p11)
}
0x18b2   :  { %7549 = dma.vmem_to_hbm [thread:$0]  %s7547_s2, 32, %s10492_s16, [#allocation8]  }
0x18b3   :  { %10278 = dma.done.wait [#allocation8], 32  }
0x18b4   :  { %10279 = vsyncadd [#allocation8], 4294967264 }
0x18b5   :  { %7553 = vsyncpa [#allocation7], 1 }
0x18b6   :  { %7554 = vsyncpa [#allocation10], 1 }
0x18b7   :  { %7555 = vsyncpa [#allocation13], 1 }
0x18b8   :  { %7556 = vsyncpa [#allocation16], 1 }
0x18b9   :  { %7557 = vsyncpa [#allocation19], 1 }
0x18ba   :  { %7558 = vsyncpa [#allocation22], 1 }
0x18bb   :  { %7559 = vsyncpa [#allocation8], 1 }

</bundles_post_ra>
